<compile_context>
chip_gen: v7x
topology: tpu7x:2x2x1
jax: 0.10.0
libtpu: 0.0.40
codegen_flags: <defaults>
</compile_context>

<pallas_src>
import functools

import jax
import jax.numpy as jnp
import numpy as np
from jax.experimental import pallas as pl
from jax.experimental.pallas import tpu as pltpu

EPS = 1e-5


def _round_up(x, m):
    return (x + m - 1) // m * m


def _conv_bn_relu_kernel(x_ref, w_ref, mask_ref, gamma_ref, beta_ref, o_ref,
                         sum_ref, ssq_ref, scale_ref, shift_ref,
                         *, wp, inv_count, eps):
    p = pl.program_id(0)          # 0 = stats pass, 1 = output pass
    i = pl.program_id(1)          # image-group index

    @pl.when((p == 0) & (i == 0))
    def _init():
        sum_ref[...] = jnp.zeros_like(sum_ref)
        ssq_ref[...] = jnp.zeros_like(ssq_ref)

    # 3x3 conv as 9 accumulated MXU matmuls over statically rolled taps.
    # Roll wrap-around only lands in padded/border rows, which are masked out of the
    # stats and never emitted, so results are exact.
    x = x_ref[...]                                   # (TM, C) f32
    tm = x.shape[0]
    acc = None
    for t in range(9):
        kh, kw = divmod(t, 3)
        delta = (kh - 1) * wp + (kw - 1)             # static flat-row offset of this tap
        shift = (-delta) % tm
        xs = x if shift == 0 else pltpu.roll(x, shift, axis=0)
        part = jnp.dot(xs, w_ref[t], preferred_element_type=jnp.float32)
        acc = part if acc is None else acc + part    # (TM, C)

    @pl.when(p == 0)
    def _stats():
        ym = acc * mask_ref[...]                     # zero padded/border rows
        sum_ref[...] += jnp.sum(ym, axis=0, keepdims=True)
        ssq_ref[...] += jnp.sum(ym * ym, axis=0, keepdims=True)

    @pl.when((p == 1) & (i == 0))
    def _finalize():
        mean = sum_ref[...] * inv_count
        var = jnp.maximum(ssq_ref[...] * inv_count - mean * mean, 0.0)
        inv_std = jax.lax.rsqrt(var + eps)
        scale = gamma_ref[...] * inv_std
        scale_ref[...] = scale
        shift_ref[...] = beta_ref[...] - mean * scale

    @pl.when(p == 1)
    def _emit():
        o_ref[...] = jnp.maximum(acc * scale_ref[...] + shift_ref[...], 0.0)


def _pick_group(n, rows, c, budget_bytes=8 * 1024 * 1024):
    """Images per grid step: double-buffered input + output tiles stay under scoped VMEM."""
    per_image = 4 * rows * c * 4                     # 2x input + 2x output buffers, f32
    g = max(1, min(n, budget_bytes // max(per_image, 1)))
    while n % g:
        g -= 1
    return g


def conv_reg(x_nchw, weight_oihw, bias, gamma, beta):
    """ConvReg forward. `bias` is accepted for parity with the torch module but is
    mathematically cancelled by training-mode BatchNorm mean subtraction, so it is
    not fed to the kernel (dead work removed)."""
    del bias
    N, C, H, W = x_nchw.shape
    HP, WP = H + 2, W + 2
    PP = HP * WP                                     # padded image, flattened spatial rows
    PP_PAD = _round_up(PP, 8)

    # ---- layout plumbing in the wrapper (1x input volume, no im2col) ----
    x_nhwc = jnp.transpose(x_nchw, (0, 2, 3, 1)).astype(jnp.float32)
    xp = jnp.pad(x_nhwc, ((0, 0), (1, 1), (1, 1), (0, 0)))          # (N, H+2, W+2, C)
    xf = jnp.pad(xp.reshape(N, PP, C), ((0, 0), (0, PP_PAD - PP), (0, 0)))
    xf = xf.reshape(N * PP_PAD, C)

    # 9 per-tap (C_in, C_out) weight matrices (no channel padding).
    w_taps = jnp.transpose(weight_oihw, (2, 3, 1, 0)).reshape(9, C, C).astype(jnp.float32)

    G = _pick_group(N, PP_PAD, C)
    TM = G * PP_PAD
    n_groups = N // G
    grid = (2, n_groups)                             # (pass, image-group)

    # Static 0/1 validity mask over one tile's rows (interior conv outputs only).
    p = np.arange(PP_PAD)
    hh, jj = p // WP, p % WP
    valid = (p < PP) & (hh >= 1) & (hh <= H) & (jj >= 1) & (jj <= W)
    mask = jnp.asarray(np.tile(valid.astype(np.float32)[:, None], (G, 1)))  # (TM, 1)

    gamma2 = gamma.reshape(1, C).astype(jnp.float32)
    beta2 = beta.reshape(1, C).astype(jnp.float32)

    kernel = functools.partial(_conv_bn_relu_kernel, wp=WP,
                               inv_count=1.0 / float(N * H * W), eps=EPS)

    out_flat = pl.pallas_call(
        kernel,
        out_shape=jax.ShapeDtypeStruct((N * PP_PAD, C), jnp.float32),
        grid=grid,
        in_specs=[
            pl.BlockSpec((TM, C), lambda p, i: (i, 0)),      # streamed input rows (both passes)
            pl.BlockSpec((9, C, C), lambda p, i: (0, 0, 0)),  # weights, VMEM-resident
            pl.BlockSpec((TM, 1), lambda p, i: (0, 0)),       # row mask, VMEM-resident
            pl.BlockSpec((1, C), lambda p, i: (0, 0)),        # gamma, VMEM-resident
            pl.BlockSpec((1, C), lambda p, i: (0, 0)),        # beta, VMEM-resident
        ],
        # Output block stays resident (index 0) through pass 0 -> only pass 1 writes HBM.
        out_specs=pl.BlockSpec((TM, C), lambda p, i: (p * i, 0)),
        scratch_shapes=[
            pltpu.VMEM((1, C), jnp.float32),   # per-channel sum
            pltpu.VMEM((1, C), jnp.float32),   # per-channel sum of squares
            pltpu.VMEM((1, C), jnp.float32),   # fused BN scale
            pltpu.VMEM((1, C), jnp.float32),   # fused BN shift
        ],
        compiler_params=pltpu.CompilerParams(
            dimension_semantics=("arbitrary", "arbitrary")),
    )(xf, w_taps, mask, gamma2, beta2)

    # Drop padded/border rows, restore NCHW to match the torch module.
    # TODO(synk): skip the final slice+transpose if the downstream consumer accepts NHWC.
    out = out_flat.reshape(N, PP_PAD, C)[:, :PP, :]
    out = out.reshape(N, HP, WP, C)[:, 1:H + 1, 1:W + 1, :]
    return jnp.transpose(out, (0, 3, 1, 2))


def reference(x, weight, bias, gamma, beta):
    y = jax.lax.conv_general_dilated(
        x, weight, window_strides=(1, 1), padding="SAME",
        dimension_numbers=("NCHW", "OIHW", "NCHW"),
    ) + bias.reshape(1, -1, 1, 1)
    mean = y.mean(axis=(0, 2, 3), keepdims=True)
    var = ((y - mean) ** 2).mean(axis=(0, 2, 3), keepdims=True)
    y_hat = (y - mean) / jnp.sqrt(var + EPS)
    return jnp.maximum(y_hat * gamma.reshape(1, -1, 1, 1) + beta.reshape(1, -1, 1, 1), 0.0)


if __name__ == "__main__":
    N, C, H, W = 2, 4, 16, 16
    key = jax.random.PRNGKey(0)
    kx, kw, kb = jax.random.split(key, 3)

    x = jax.random.normal(kx, (N, C, H, W), dtype=jnp.float32)

    # Deterministic parameter init (kaiming-uniform-like bound for conv, torch BN defaults)
    fan_in = C * 3 * 3
    bound = 1.0 / (fan_in ** 0.5)
    weight = jax.random.uniform(kw, (C, C, 3, 3), jnp.float32, -bound, bound)  # OIHW
    bias = jax.random.uniform(kb, (C,), jnp.float32, -bound, bound)
    gamma = jnp.ones((C,), jnp.float32)     # BatchNorm2d default weight
    beta = jnp.zeros((C,), jnp.float32)     # BatchNorm2d default bias

    out = conv_reg(x, weight, bias, gamma, beta)
    out = jax.block_until_ready(out)

    ref = reference(x, weight, bias, gamma, beta)
    assert out.shape == (N, C, H, W)
    assert jnp.allclose(out, ref, atol=1e-4, rtol=1e-4), float(jnp.max(jnp.abs(out - ref)))
    print("KERNEL_OK")
</pallas_src>

<mosaic_0001>
module attributes {stable_mosaic.version = 11 : i64} {
  func.func @_conv_bn_relu_kernel(%arg0: i32, %arg1: i32, %arg2: memref<656x4xf32, #tpu.memory_space<vmem>>, %arg3: memref<9x4x4xf32, #tpu.memory_space<vmem>>, %arg4: memref<656x1xf32, #tpu.memory_space<vmem>>, %arg5: memref<1x4xf32, #tpu.memory_space<vmem>>, %arg6: memref<1x4xf32, #tpu.memory_space<vmem>>, %arg7: memref<656x4xf32, #tpu.memory_space<vmem>>, %arg8: memref<1x4xf32, #tpu.memory_space<vmem>>, %arg9: memref<1x4xf32, #tpu.memory_space<vmem>>, %arg10: memref<1x4xf32, #tpu.memory_space<vmem>>, %arg11: memref<1x4xf32, #tpu.memory_space<vmem>>) attributes {dimension_semantics = [#tpu.dimension_semantics<arbitrary>, #tpu.dimension_semantics<arbitrary>], iteration_bounds = array<i64: 2, 1>, scalar_prefetch = 0 : i64, scratch_operands = 4 : i64, tpu.core_type = #tpu.core_type<tc>, window_params = [{transform_indices = @transform_0, window_bounds = array<i64: 656, 4>}, {pipeline_mode = #tpu.pipeline_mode<synchronous>, transform_indices = @transform_1, window_bounds = array<i64: 9, 4, 4>}, {pipeline_mode = #tpu.pipeline_mode<synchronous>, transform_indices = @transform_2, window_bounds = array<i64: 656, 1>}, {pipeline_mode = #tpu.pipeline_mode<synchronous>, transform_indices = @transform_3, window_bounds = array<i64: 1, 4>}, {pipeline_mode = #tpu.pipeline_mode<synchronous>, transform_indices = @transform_4, window_bounds = array<i64: 1, 4>}, {transform_indices = @transform_5, window_bounds = array<i64: 656, 4>}]} {
    %c0_i32 = arith.constant 0 : i32
    %0 = arith.cmpi eq, %arg0, %c0_i32 : i32
    %c0_i32_0 = arith.constant 0 : i32
    %1 = arith.cmpi eq, %arg1, %c0_i32_0 : i32
    %2 = arith.andi %0, %1 : i1
    %3 = arith.extui %2 : i1 to i32
    %c0_i32_1 = arith.constant 0 : i32
    %4 = arith.cmpi ne, %3, %c0_i32_1 : i32
    scf.if %4 {
      %cst_37 = arith.constant 0.000000e+00 : f32
      %60 = vector.broadcast %cst_37 : f32 to vector<1x4xf32>
      %c0_38 = arith.constant 0 : index
      %c0_39 = arith.constant 0 : index
      %61 = vector.load %arg8[%c0_38, %c0_39] : memref<1x4xf32, #tpu.memory_space<vmem>>, vector<1x4xf32>
      tpu.vector_store %arg8[%c0_38, %c0_39], %60 {strides = array<i32>} : memref<1x4xf32, #tpu.memory_space<vmem>>, vector<1x4xf32>,
      %cst_40 = arith.constant 0.000000e+00 : f32
      %62 = vector.broadcast %cst_40 : f32 to vector<1x4xf32>
      %c0_41 = arith.constant 0 : index
      %c0_42 = arith.constant 0 : index
      %63 = vector.load %arg9[%c0_41, %c0_42] : memref<1x4xf32, #tpu.memory_space<vmem>>, vector<1x4xf32>
      tpu.vector_store %arg9[%c0_41, %c0_42], %62 {strides = array<i32>} : memref<1x4xf32, #tpu.memory_space<vmem>>, vector<1x4xf32>,
    } else {
    }
    %c0 = arith.constant 0 : index
    %c0_2 = arith.constant 0 : index
    %5 = vector.load %arg2[%c0, %c0_2] : memref<656x4xf32, #tpu.memory_space<vmem>>, vector<656x4xf32>
    %c19_i32 = arith.constant 19 : i32
    %6 = tpu.dynamic_rotate %5 by %c19_i32 dim 0 : vector<656x4xf32>, i32 -> vector<656x4xf32>
    %c0_3 = arith.constant 0 : index
    %c0_4 = arith.constant 0 : index
    %c0_5 = arith.constant 0 : index
    %7 = vector.load %arg3[%c0_3, %c0_4, %c0_5] : memref<9x4x4xf32, #tpu.memory_space<vmem>>, vector<1x4x4xf32>
    %8 = vector.shape_cast %7 : vector<1x4x4xf32> to vector<4x4xf32>
    %cst = arith.constant dense<0.000000e+00> : vector<656x4xf32>
    %9 = tpu.matmul %6, %8, %cst {dimension_numbers = #tpu.dot_dimension_numbers<[1], [0], [0], [1], [0, 0, 1, 1], [], []>} : vector<656x4xf32>, vector<4x4xf32>, vector<656x4xf32> -> vector<656x4xf32>
    %c18_i32 = arith.constant 18 : i32
    %10 = tpu.dynamic_rotate %5 by %c18_i32 dim 0 : vector<656x4xf32>, i32 -> vector<656x4xf32>
    %c1 = arith.constant 1 : index
    %c0_6 = arith.constant 0 : index
    %c0_7 = arith.constant 0 : index
    %11 = vector.load %arg3[%c1, %c0_6, %c0_7] : memref<9x4x4xf32, #tpu.memory_space<vmem>>, vector<1x4x4xf32>
    %12 = vector.shape_cast %11 : vector<1x4x4xf32> to vector<4x4xf32>
    %cst_8 = arith.constant dense<0.000000e+00> : vector<656x4xf32>
    %13 = tpu.matmul %10, %12, %cst_8 {dimension_numbers = #tpu.dot_dimension_numbers<[1], [0], [0], [1], [0, 0, 1, 1], [], []>} : vector<656x4xf32>, vector<4x4xf32>, vector<656x4xf32> -> vector<656x4xf32>
    %14 = arith.addf %9, %13 : vector<656x4xf32>
    %c17_i32 = arith.constant 17 : i32
    %15 = tpu.dynamic_rotate %5 by %c17_i32 dim 0 : vector<656x4xf32>, i32 -> vector<656x4xf32>
    %c2 = arith.constant 2 : index
    %c0_9 = arith.constant 0 : index
    %c0_10 = arith.constant 0 : index
    %16 = vector.load %arg3[%c2, %c0_9, %c0_10] : memref<9x4x4xf32, #tpu.memory_space<vmem>>, vector<1x4x4xf32>
    %17 = vector.shape_cast %16 : vector<1x4x4xf32> to vector<4x4xf32>
    %cst_11 = arith.constant dense<0.000000e+00> : vector<656x4xf32>
    %18 = tpu.matmul %15, %17, %cst_11 {dimension_numbers = #tpu.dot_dimension_numbers<[1], [0], [0], [1], [0, 0, 1, 1], [], []>} : vector<656x4xf32>, vector<4x4xf32>, vector<656x4xf32> -> vector<656x4xf32>
    %19 = arith.addf %14, %18 : vector<656x4xf32>
    %c1_i32 = arith.constant 1 : i32
    %20 = tpu.dynamic_rotate %5 by %c1_i32 dim 0 : vector<656x4xf32>, i32 -> vector<656x4xf32>
    %c3 = arith.constant 3 : index
    %c0_12 = arith.constant 0 : index
    %c0_13 = arith.constant 0 : index
    %21 = vector.load %arg3[%c3, %c0_12, %c0_13] : memref<9x4x4xf32, #tpu.memory_space<vmem>>, vector<1x4x4xf32>
    %22 = vector.shape_cast %21 : vector<1x4x4xf32> to vector<4x4xf32>
    %cst_14 = arith.constant dense<0.000000e+00> : vector<656x4xf32>
    %23 = tpu.matmul %20, %22, %cst_14 {dimension_numbers = #tpu.dot_dimension_numbers<[1], [0], [0], [1], [0, 0, 1, 1], [], []>} : vector<656x4xf32>, vector<4x4xf32>, vector<656x4xf32> -> vector<656x4xf32>
    %24 = arith.addf %19, %23 : vector<656x4xf32>
    %c4 = arith.constant 4 : index
    %c0_15 = arith.constant 0 : index
    %c0_16 = arith.constant 0 : index
    %25 = vector.load %arg3[%c4, %c0_15, %c0_16] : memref<9x4x4xf32, #tpu.memory_space<vmem>>, vector<1x4x4xf32>
    %26 = vector.shape_cast %25 : vector<1x4x4xf32> to vector<4x4xf32>
    %cst_17 = arith.constant dense<0.000000e+00> : vector<656x4xf32>
    %27 = tpu.matmul %5, %26, %cst_17 {dimension_numbers = #tpu.dot_dimension_numbers<[1], [0], [0], [1], [0, 0, 1, 1], [], []>} : vector<656x4xf32>, vector<4x4xf32>, vector<656x4xf32> -> vector<656x4xf32>
    %28 = arith.addf %24, %27 : vector<656x4xf32>
    %c655_i32 = arith.constant 655 : i32
    %29 = tpu.dynamic_rotate %5 by %c655_i32 dim 0 : vector<656x4xf32>, i32 -> vector<656x4xf32>
    %c5 = arith.constant 5 : index
    %c0_18 = arith.constant 0 : index
    %c0_19 = arith.constant 0 : index
    %30 = vector.load %arg3[%c5, %c0_18, %c0_19] : memref<9x4x4xf32, #tpu.memory_space<vmem>>, vector<1x4x4xf32>
    %31 = vector.shape_cast %30 : vector<1x4x4xf32> to vector<4x4xf32>
    %cst_20 = arith.constant dense<0.000000e+00> : vector<656x4xf32>
    %32 = tpu.matmul %29, %31, %cst_20 {dimension_numbers = #tpu.dot_dimension_numbers<[1], [0], [0], [1], [0, 0, 1, 1], [], []>} : vector<656x4xf32>, vector<4x4xf32>, vector<656x4xf32> -> vector<656x4xf32>
    %33 = arith.addf %28, %32 : vector<656x4xf32>
    %c639_i32 = arith.constant 639 : i32
    %34 = tpu.dynamic_rotate %5 by %c639_i32 dim 0 : vector<656x4xf32>, i32 -> vector<656x4xf32>
    %c6 = arith.constant 6 : index
    %c0_21 = arith.constant 0 : index
    %c0_22 = arith.constant 0 : index
    %35 = vector.load %arg3[%c6, %c0_21, %c0_22] : memref<9x4x4xf32, #tpu.memory_space<vmem>>, vector<1x4x4xf32>
    %36 = vector.shape_cast %35 : vector<1x4x4xf32> to vector<4x4xf32>
    %cst_23 = arith.constant dense<0.000000e+00> : vector<656x4xf32>
    %37 = tpu.matmul %34, %36, %cst_23 {dimension_numbers = #tpu.dot_dimension_numbers<[1], [0], [0], [1], [0, 0, 1, 1], [], []>} : vector<656x4xf32>, vector<4x4xf32>, vector<656x4xf32> -> vector<656x4xf32>
    %38 = arith.addf %33, %37 : vector<656x4xf32>
    %c638_i32 = arith.constant 638 : i32
    %39 = tpu.dynamic_rotate %5 by %c638_i32 dim 0 : vector<656x4xf32>, i32 -> vector<656x4xf32>
    %c7 = arith.constant 7 : index
    %c0_24 = arith.constant 0 : index
    %c0_25 = arith.constant 0 : index
    %40 = vector.load %arg3[%c7, %c0_24, %c0_25] : memref<9x4x4xf32, #tpu.memory_space<vmem>>, vector<1x4x4xf32>
    %41 = vector.shape_cast %40 : vector<1x4x4xf32> to vector<4x4xf32>
    %cst_26 = arith.constant dense<0.000000e+00> : vector<656x4xf32>
    %42 = tpu.matmul %39, %41, %cst_26 {dimension_numbers = #tpu.dot_dimension_numbers<[1], [0], [0], [1], [0, 0, 1, 1], [], []>} : vector<656x4xf32>, vector<4x4xf32>, vector<656x4xf32> -> vector<656x4xf32>
    %43 = arith.addf %38, %42 : vector<656x4xf32>
    %c637_i32 = arith.constant 637 : i32
    %44 = tpu.dynamic_rotate %5 by %c637_i32 dim 0 : vector<656x4xf32>, i32 -> vector<656x4xf32>
    %c8 = arith.constant 8 : index
    %c0_27 = arith.constant 0 : index
    %c0_28 = arith.constant 0 : index
    %45 = vector.load %arg3[%c8, %c0_27, %c0_28] : memref<9x4x4xf32, #tpu.memory_space<vmem>>, vector<1x4x4xf32>
    %46 = vector.shape_cast %45 : vector<1x4x4xf32> to vector<4x4xf32>
    %cst_29 = arith.constant dense<0.000000e+00> : vector<656x4xf32>
    %47 = tpu.matmul %44, %46, %cst_29 {dimension_numbers = #tpu.dot_dimension_numbers<[1], [0], [0], [1], [0, 0, 1, 1], [], []>} : vector<656x4xf32>, vector<4x4xf32>, vector<656x4xf32> -> vector<656x4xf32>
    %48 = arith.addf %43, %47 : vector<656x4xf32>
    %c0_i32_30 = arith.constant 0 : i32
    %49 = arith.cmpi eq, %arg0, %c0_i32_30 : i32
    %50 = arith.extui %49 : i1 to i32
    %c0_i32_31 = arith.constant 0 : i32
    %51 = arith.cmpi ne, %50, %c0_i32_31 : i32
    scf.if %51 {
      %c0_37 = arith.constant 0 : index
      %c0_38 = arith.constant 0 : index
      %60 = vector.load %arg4[%c0_37, %c0_38] : memref<656x1xf32, #tpu.memory_space<vmem>>, vector<656x1xf32>
      %61 = vector.broadcast %60 : vector<656x1xf32> to vector<656x4xf32>
      %62 = arith.mulf %48, %61 : vector<656x4xf32>
      %c0_39 = arith.constant 0 : index
      %c0_40 = arith.constant 0 : index
      %63 = vector.load %arg8[%c0_39, %c0_40] : memref<1x4xf32, #tpu.memory_space<vmem>>, vector<1x4xf32>
      %cst_41 = arith.constant dense<0.000000e+00> : vector<4xf32>
      %64 = vector.multi_reduction <add>, %62, %cst_41 [0] : vector<656x4xf32> to vector<4xf32>
      %65 = vector.shape_cast %64 : vector<4xf32> to vector<1x4xf32>
      %66 = arith.addf %63, %65 : vector<1x4xf32>
      %c0_42 = arith.constant 0 : index
      %c0_43 = arith.constant 0 : index
      %67 = vector.load %arg8[%c0_42, %c0_43] : memref<1x4xf32, #tpu.memory_space<vmem>>, vector<1x4xf32>
      tpu.vector_store %arg8[%c0_42, %c0_43], %66 {strides = array<i32>} : memref<1x4xf32, #tpu.memory_space<vmem>>, vector<1x4xf32>,
      %c0_44 = arith.constant 0 : index
      %c0_45 = arith.constant 0 : index
      %68 = vector.load %arg9[%c0_44, %c0_45] : memref<1x4xf32, #tpu.memory_space<vmem>>, vector<1x4xf32>
      %69 = arith.mulf %62, %62 : vector<656x4xf32>
      %cst_46 = arith.constant dense<0.000000e+00> : vector<4xf32>
      %70 = vector.multi_reduction <add>, %69, %cst_46 [0] : vector<656x4xf32> to vector<4xf32>
      %71 = vector.shape_cast %70 : vector<4xf32> to vector<1x4xf32>
      %72 = arith.addf %68, %71 : vector<1x4xf32>
      %c0_47 = arith.constant 0 : index
      %c0_48 = arith.constant 0 : index
      %73 = vector.load %arg9[%c0_47, %c0_48] : memref<1x4xf32, #tpu.memory_space<vmem>>, vector<1x4xf32>
      tpu.vector_store %arg9[%c0_47, %c0_48], %72 {strides = array<i32>} : memref<1x4xf32, #tpu.memory_space<vmem>>, vector<1x4xf32>,
    } else {
    }
    %c1_i32_32 = arith.constant 1 : i32
    %52 = arith.cmpi eq, %arg0, %c1_i32_32 : i32
    %c0_i32_33 = arith.constant 0 : i32
    %53 = arith.cmpi eq, %arg1, %c0_i32_33 : i32
    %54 = arith.andi %52, %53 : i1
    %55 = arith.extui %54 : i1 to i32
    %c0_i32_34 = arith.constant 0 : i32
    %56 = arith.cmpi ne, %55, %c0_i32_34 : i32
    scf.if %56 {
      %c0_37 = arith.constant 0 : index
      %c0_38 = arith.constant 0 : index
      %60 = vector.load %arg8[%c0_37, %c0_38] : memref<1x4xf32, #tpu.memory_space<vmem>>, vector<1x4xf32>
      %cst_39 = arith.constant 0.001953125 : f32
      %61 = vector.broadcast %cst_39 : f32 to vector<1x4xf32>
      %62 = arith.mulf %60, %61 : vector<1x4xf32>
      %c0_40 = arith.constant 0 : index
      %c0_41 = arith.constant 0 : index
      %63 = vector.load %arg9[%c0_40, %c0_41] : memref<1x4xf32, #tpu.memory_space<vmem>>, vector<1x4xf32>
      %cst_42 = arith.constant 0.001953125 : f32
      %64 = vector.broadcast %cst_42 : f32 to vector<1x4xf32>
      %65 = arith.mulf %63, %64 : vector<1x4xf32>
      %66 = arith.mulf %62, %62 : vector<1x4xf32>
      %67 = arith.subf %65, %66 : vector<1x4xf32>
      %cst_43 = arith.constant 0.000000e+00 : f32
      %68 = vector.broadcast %cst_43 : f32 to vector<1x4xf32>
      %69 = arith.maximumf %67, %68 : vector<1x4xf32>
      %cst_44 = arith.constant 9.99999974E-6 : f32
      %70 = vector.broadcast %cst_44 : f32 to vector<1x4xf32>
      %71 = arith.addf %69, %70 : vector<1x4xf32>
      %72 = math.rsqrt %71 : vector<1x4xf32>
      %c0_45 = arith.constant 0 : index
      %c0_46 = arith.constant 0 : index
      %73 = vector.load %arg5[%c0_45, %c0_46] : memref<1x4xf32, #tpu.memory_space<vmem>>, vector<1x4xf32>
      %74 = arith.mulf %73, %72 : vector<1x4xf32>
      %c0_47 = arith.constant 0 : index
      %c0_48 = arith.constant 0 : index
      %75 = vector.load %arg10[%c0_47, %c0_48] : memref<1x4xf32, #tpu.memory_space<vmem>>, vector<1x4xf32>
      tpu.vector_store %arg10[%c0_47, %c0_48], %74 {strides = array<i32>} : memref<1x4xf32, #tpu.memory_space<vmem>>, vector<1x4xf32>,
      %c0_49 = arith.constant 0 : index
      %c0_50 = arith.constant 0 : index
      %76 = vector.load %arg6[%c0_49, %c0_50] : memref<1x4xf32, #tpu.memory_space<vmem>>, vector<1x4xf32>
      %77 = arith.mulf %62, %74 : vector<1x4xf32>
      %78 = arith.subf %76, %77 : vector<1x4xf32>
      %c0_51 = arith.constant 0 : index
      %c0_52 = arith.constant 0 : index
      %79 = vector.load %arg11[%c0_51, %c0_52] : memref<1x4xf32, #tpu.memory_space<vmem>>, vector<1x4xf32>
      tpu.vector_store %arg11[%c0_51, %c0_52], %78 {strides = array<i32>} : memref<1x4xf32, #tpu.memory_space<vmem>>, vector<1x4xf32>,
    } else {
    }
    %c1_i32_35 = arith.constant 1 : i32
    %57 = arith.cmpi eq, %arg0, %c1_i32_35 : i32
    %58 = arith.extui %57 : i1 to i32
    %c0_i32_36 = arith.constant 0 : i32
    %59 = arith.cmpi ne, %58, %c0_i32_36 : i32
    scf.if %59 {
      %c0_37 = arith.constant 0 : index
      %c0_38 = arith.constant 0 : index
      %60 = vector.load %arg10[%c0_37, %c0_38] : memref<1x4xf32, #tpu.memory_space<vmem>>, vector<1x4xf32>
      %61 = vector.broadcast %60 : vector<1x4xf32> to vector<656x4xf32>
      %62 = arith.mulf %48, %61 : vector<656x4xf32>
      %c0_39 = arith.constant 0 : index
      %c0_40 = arith.constant 0 : index
      %63 = vector.load %arg11[%c0_39, %c0_40] : memref<1x4xf32, #tpu.memory_space<vmem>>, vector<1x4xf32>
      %64 = vector.broadcast %63 : vector<1x4xf32> to vector<656x4xf32>
      %65 = arith.addf %62, %64 : vector<656x4xf32>
      %cst_41 = arith.constant 0.000000e+00 : f32
      %66 = vector.broadcast %cst_41 : f32 to vector<656x4xf32>
      %67 = arith.maximumf %65, %66 : vector<656x4xf32>
      %c0_42 = arith.constant 0 : index
      %c0_43 = arith.constant 0 : index
      %68 = vector.load %arg7[%c0_42, %c0_43] : memref<656x4xf32, #tpu.memory_space<vmem>>, vector<656x4xf32>
      tpu.vector_store %arg7[%c0_42, %c0_43], %67 {strides = array<i32>} : memref<656x4xf32, #tpu.memory_space<vmem>>, vector<656x4xf32>,
    } else {
    }
    return
  }
  func.func @transform_0(%arg0: i32, %arg1: i32) -> (i32, i32) {
    %c0_i32 = arith.constant 0 : i32
    %c0_i32_0 = arith.constant 0 : i32
    return %arg1, %c0_i32 : i32, i32
  }
  func.func @transform_1(%arg0: i32, %arg1: i32) -> (i32, i32, i32) {
    %c0_i32 = arith.constant 0 : i32
    %c0_i32_0 = arith.constant 0 : i32
    %c0_i32_1 = arith.constant 0 : i32
    %c0_i32_2 = arith.constant 0 : i32
    return %c0_i32, %c0_i32_0, %c0_i32_1 : i32, i32, i32
  }
  func.func @transform_2(%arg0: i32, %arg1: i32) -> (i32, i32) {
    %c0_i32 = arith.constant 0 : i32
    %c0_i32_0 = arith.constant 0 : i32
    %c0_i32_1 = arith.constant 0 : i32
    return %c0_i32, %c0_i32_0 : i32, i32
  }
  func.func @transform_3(%arg0: i32, %arg1: i32) -> (i32, i32) {
    %c0_i32 = arith.constant 0 : i32
    %c0_i32_0 = arith.constant 0 : i32
    %c0_i32_1 = arith.constant 0 : i32
    return %c0_i32, %c0_i32_0 : i32, i32
  }
  func.func @transform_4(%arg0: i32, %arg1: i32) -> (i32, i32) {
    %c0_i32 = arith.constant 0 : i32
    %c0_i32_0 = arith.constant 0 : i32
    %c0_i32_1 = arith.constant 0 : i32
    return %c0_i32, %c0_i32_0 : i32, i32
  }
  func.func @transform_5(%arg0: i32, %arg1: i32) -> (i32, i32) {
    %0 = arith.muli %arg0, %arg1 : i32
    %c0_i32 = arith.constant 0 : i32
    %c0_i32_0 = arith.constant 0 : i32
    return %0, %c0_i32 : i32, i32
  }
}

</mosaic_0001>

<bundles_post_ra>
// kernel: tpu_custom_call.1
= control target key start
LH: loop header
LB: loop body
LE: loop exit
PB: predicated region body
PF: predicated region fallthrough
CT: control target
= control target key end

     0   :  { %s12938_s18 = smov 0   ;;  %s12940_s19 = smov 0   ;;  %s18509_s0 = inlined_call_operand.vmem [shape: f32[656,4], index: 0, kind: input, shape index: {}]   ;;  %s18510_s1 = inlined_call_operand.vmem [shape: f32[9,4,4], index: 1, kind: input, shape index: {}]   ;;  %s18511_s2 = inlined_call_operand.vmem [shape: f32[656,1], index: 2, kind: input, shape index: {}]   ;;  %s18512_s3 = inlined_call_operand.vmem [shape: f32[1,4], index: 3, kind: input, shape index: {}]   ;;  %s18513_s4 = inlined_call_operand.vmem [shape: f32[1,4], index: 4, kind: input, shape index: {}]   ;;  %s18514_s5 = inlined_call_operand.vmem [shape: f32[656,4], index: 5, kind: output, shape index: {}]  }
   0x1   :  { %s12942_s20 = smov 0  }
   0x2 LB: > { %s27_s21 = sadd.s32 1, %s12900_s19  ;;  %p9391_p0 = scmp.ge.s32.totalorder %s12904_s20, 1  ;;  %s12904_s20 = sphi %s12942_s20, %s15_s20   ;;  %s12900_s19 = sphi %s12940_s19, %s19320_s19   ;;  %s12896_s18 = sphi %s12938_s18, %s19319_s18  }
   0x3   : > { %p29_p1 = scmp.ge.s32.totalorder %s27_s21, 2  ;;  %p202_p2 = scmp.lt.s32.totalorder %s12904_s20, 3 }
   0x5   : > { %s19322_s21 = smov (%p29_p1, %s27_s21), 0  ;;  %p203_p3 = pnand %p9391_p0, %p202_p2 }
   0x7   : > { %206 = sbr.rel (%p203_p3) target bundleno = 1399 (0x577), region = 40 }
   0xe   : > { %p245_p4 = scmp.eq.s32.totalorder %s12896_s18, 0 }
   0xf   : > { %vm251_vm0 = vcmask (%p245_p4), 24576   ;;  %v12906_v0 = vmov (%p245_p4), 0.0  }
  0x10   : > { %250 = sbr.rel (!%p245_p4) target bundleno = 23 (0x17), region = 44  ;;  %252 = vst.msk [vmem:[#allocation2] sm:$0x1] (%p245_p4), %vm251_vm0, %v12906_v0  ;;  %253 = vst.msk [vmem:[#allocation3] sm:$0x1] (%p245_p4), %vm251_vm0, %v12906_v0 }
  0x17 PF: > { %vm918_vm1 = vcmask 1043456   ;;  %v9728_v1 = vld [vmem:[%s18510_s1 + $0x10] sm:$0xf]  ;;  %v12965_v2 = vld [vmem:[%s18509_s0] sm:$0xff]  ;;  %vm671_vm2 = vcmask 31744   ;;  %v12970_v3 = vld [vmem:[%s18509_s0 + $0x8] sm:$0xff]  ;;  %v418_v4 = vlaneseq }
  0x18   : > { %11406 = vmatprep.subr.msk.mxu0 %vm918_vm1, %v9728_v1  ;;  %11408 = vmatprep.mubr.msk.f32.mxu0 %vm671_vm2, %v12965_v2  ;;  %v9812_v5 = vld [vmem:[%s18510_s1 + $0x14] sm:$0xf]  ;;  %v9393_v6 = vld [vmem:[%s18510_s1 + $0x4] sm:$0xf]  ;;  %v12984_v7 = vld [vmem:[%s18509_s0 + $0x278] sm:$0xff]  ;;  %v504_v8 = vrot.slane %v12965_v2, 6 }
  0x19   : > { %11407 = vmatpush3.msk.msra.mxu0 %vm918_vm1, %v9728_v1  ;;  %10906 = vmatprep.subr.msk.mxu1 %vm918_vm1, %v9393_v6  ;;  %v12992_v9 = vld [vmem:[%s18509_s0 + $0x280] sm:$0xff]  ;;  %v12994_v10 = vshrl.u32 %v418_v4, 7  ;;  %v583_v11 = vrot.slane %v12984_v7, 6  ;;  %v13000_v12 = vld [vmem:[%s18509_s0 + $0x10] sm:$0xff]  ;;  %v13005_v13 = vld [vmem:[%s18509_s0 + $0x288] sm:$0xff]  ;;  %v505_v18 = vrot.slane %v12970_v3, 6 }
  0x1a   : > { %11409 = vmatmul.mubr.msk.f32.vlgmr.msra.gmra.mrb[0].mxu0 %vm671_vm2, %v12970_v3  ;;  %11531 = vmatprep.subr.msk.mxu0 %vm918_vm1, %v9812_v5  ;;  %v584_v14 = vrot.slane %v12992_v9, 6  ;;  %v585_v15 = vrot.slane %v13005_v13, 6  ;;  %v503_v16 = vld [vmem:[%s18510_s1] sm:$0xf]  ;;  %v13021_v17 = vld [vmem:[%s18509_s0 + $0x18] sm:$0xff]  ;;  %v506_v22 = vrot.slane %v13000_v12, 6 }
  0x1b   : > { %11532 = vmatpush3.msk.msra.mxu0 %vm918_vm1, %v9812_v5  ;;  %10907 = vmatpush3.msk.msra.mxu1 %vm918_vm1, %v9393_v6  ;;  %vm586_vm3 = vcmp.lt.s32.totalorder %v12994_v10, 2  ;;  %v13040_v23 = vld [vmem:[%s18509_s0 + $0x20] sm:$0xff]  ;;  %v13052_v25 = vld [vmem:[%s18509_s0 + $0x28] sm:$0xff]  ;;  %v507_v26 = vrot.slane %v13021_v17, 6  ;;  %v13062_v28 = vld [vmem:[%s18509_s0 + $0x30] sm:$0xff]  ;;  %vm4546_vm4 = vcmp.lt.s32.totalorder %v12994_v10, 7 }
  0x1c   : > { %v588_v19 = vsel %vm586_vm3, %v583_v11, %v584_v14  ;;  %11411 = vmatprep.mubr.msk.f32.mxu0 %vm671_vm2, %v13000_v12  ;;  %v587_v20 = vsel %vm586_vm3, %v584_v14, %v585_v15  ;;  %11031 = vmatprep.subr.msk.mxu1 %vm918_vm1, %v503_v16  ;;  %v668_v21 = vsel %vm586_vm3, %v585_v15, %v504_v8  ;;  %v508_v29 = vrot.slane %v13040_v23, 6  ;;  %v13076_v31 = vld [vmem:[%s18509_s0 + $0x38] sm:$0xff]  ;;  %v13084_v34 = vld [vmem:[%s18509_s0 + $0x40] sm:$0xff]  ;;  %v13098_v37 = vld [vmem:[%s18509_s0 + $0x48] sm:$0xff]  ;;  %p10148_p5 = scmp.ne.s32.totalorder %s12896_s18, 0 }
  0x1d   : > { %10908 = vmatprep.mubr.msk.f32.mxu1 %vm671_vm2, %v588_v19  ;;  %v667_v24 = vsel %vm586_vm3, %v504_v8, %v505_v18  ;;  %v666_v27 = vsel %vm586_vm3, %v505_v18, %v506_v22  ;;  %v665_v30 = vsel %vm586_vm3, %v506_v22, %v507_v26  ;;  %v509_v32 = vrot.slane %v13052_v25, 6  ;;  %v13104_v39 = vld [vmem:[%s18510_s1 + $0x18] sm:$0xf]  ;;  %v13111_v41 = vld [vmem:[%s18509_s0 + $0x50] sm:$0xff]  ;;  %v13135_v47 = vld [vmem:[%s18509_s0 + $0x60] sm:$0xff] }
  0x1e   : > { %10909 = vmatmul.mubr.msk.f32.vlgmr.msra.gmra.mrb[0].mxu1 %vm671_vm2, %v587_v20  ;;  %11412 = vmatmul.mubr.msk.f32.gmra.mrb[2].mxu0 %vm671_vm2, %v13021_v17  ;;  %v664_v33 = vsel %vm586_vm3, %v507_v26, %v508_v29  ;;  %v510_v35 = vrot.slane %v13062_v28, 6  ;;  %v511_v38 = vrot.slane %v13076_v31, 6  ;;  %v512_v42 = vrot.slane %v13084_v34, 6  ;;  %v13127_v44 = vld [vmem:[%s18509_s0 + $0x58] sm:$0xff]  ;;  %v13149_v50 = vld [vmem:[%s18509_s0 + $0x68] sm:$0xff]  ;;  %v13157_v53 = vld [vmem:[%s18509_s0 + $0x70] sm:$0xff] }
  0x1f   : > { %11032 = vmatpush3.msk.msra.mxu1 %vm918_vm1, %v503_v16  ;;  %10911 = vmatprep.mubr.msk.f32.mxu1 %vm671_vm2, %v668_v21  ;;  %v663_v36 = vsel %vm586_vm3, %v508_v29, %v509_v32  ;;  %v513_v45 = vrot.slane %v13098_v37, 6  ;;  %v514_v48 = vrot.slane %v13111_v41, 6  ;;  %v515_v51 = vrot.slane %v13127_v44, 6  ;;  %v13171_v56 = vld [vmem:[%s18509_s0 + $0x78] sm:$0xff]  ;;  %v13179_v59 = vld [vmem:[%s18509_s0 + $0x80] sm:$0xff]  ;;  %v13193_v62 = vld [vmem:[%s18509_s0 + $0x88] sm:$0xff] }
  0x20   : > { %11414 = vmatprep.mubr.msk.f32.mxu0 %vm671_vm2, %v13040_v23  ;;  %v662_v40 = vsel %vm586_vm3, %v509_v32, %v510_v35  ;;  %11656 = vmatprep.subr.msk.mxu0 %vm918_vm1, %v13104_v39  ;;  %v661_v43 = vsel %vm586_vm3, %v510_v35, %v511_v38  ;;  %v660_v46 = vsel %vm586_vm3, %v511_v38, %v512_v42  ;;  %v516_v54 = vrot.slane %v13135_v47, 6  ;;  %v13201_v1 = vld [vmem:[%s18509_s0 + $0x90] sm:$0xff]  ;;  %v13215_v6 = vld [vmem:[%s18509_s0 + $0x98] sm:$0xff]  ;;  %v13223_v15 = vld [vmem:[%s18509_s0 + $0xa0] sm:$0xff] }
  0x21   : > { %v659_v49 = vsel %vm586_vm3, %v512_v42, %v513_v45  ;;  %v658_v52 = vsel %vm586_vm3, %v513_v45, %v514_v48  ;;  %v657_v55 = vsel %vm586_vm3, %v514_v48, %v515_v51  ;;  %v517_v57 = vrot.slane %v13149_v50, 6  ;;  %v13237_v19 = vld [vmem:[%s18509_s0 + $0xa8] sm:$0xff]  ;;  %v13245_v22 = vld [vmem:[%s18509_s0 + $0xb0] sm:$0xff]  ;;  %v13264_v29 = vld [vmem:[%s18509_s0 + $0xb8] sm:$0xff] }
  0x22   : > { %10912 = vmatmul.mubr.msk.f32.gmra.mrb[2].mxu1 %vm671_vm2, %v667_v24  ;;  %11415 = vmatmul.mubr.msk.f32.gmra.mrb[4].mxu0 %vm671_vm2, %v13052_v25  ;;  %v656_v58 = vsel %vm586_vm3, %v515_v51, %v516_v54  ;;  %v518_v60 = vrot.slane %v13157_v53, 6  ;;  %v519_v63 = vrot.slane %v13171_v56, 6  ;;  %v520_v4 = vrot.slane %v13179_v59, 6  ;;  %v13254_v26 = vld [vmem:[%s18510_s1 + $0x8] sm:$0xf]  ;;  %v13310_v48 = vld [vmem:[%s18509_s0 + $0xd8] sm:$0xff] }
  0x23   : > { %10914 = vmatprep.mubr.msk.f32.mxu1 %vm671_vm2, %v666_v27  ;;  %11417 = vmatprep.mubr.msk.f32.mxu0 %vm671_vm2, %v13062_v28  ;;  %v655_v61 = vsel %vm586_vm3, %v516_v54, %v517_v57  ;;  %v521_v8 = vrot.slane %v13193_v62, 6  ;;  %v522_v16 = vrot.slane %v13201_v1, 6  ;;  %v523_v20 = vrot.slane %v13215_v6, 6  ;;  %v13288_v38 = vld [vmem:[%s18509_s0 + $0xc8] sm:$0xff] }
  0x24   : > { %v654_v0 = vsel %vm586_vm3, %v517_v57, %v518_v60  ;;  %v653_v5 = vsel %vm586_vm3, %v518_v60, %v519_v63  ;;  %v652_v14 = vsel %vm586_vm3, %v519_v63, %v520_v4  ;;  %v524_v24 = vrot.slane %v13223_v15, 6  ;;  %11156 = vmatprep.subr.msk.mxu1 %vm918_vm1, %v13254_v26  ;;  %v13332_v57 = vld [vmem:[%s18509_s0 + $0xe8] sm:$0xff] }
  0x25   : > { %v651_v18 = vsel %vm586_vm3, %v520_v4, %v521_v8  ;;  %v650_v21 = vsel %vm586_vm3, %v521_v8, %v522_v16  ;;  %v649_v27 = vsel %vm586_vm3, %v522_v16, %v523_v20  ;;  %v526_v35 = vrot.slane %v13245_v22, 6  ;;  %v13354_v4 = vld [vmem:[%s18509_s0 + $0xf8] sm:$0xff]  ;;  %v13360_v8 = vld [vmem:[%s18509_s0 + $0x270] sm:$0xff]  ;;  %v13367_v16 = vld [vmem:[%s18509_s0 + $0x100] sm:$0xff] }
  0x26   : > { %10915 = vmatmul.mubr.msk.f32.gmra.mrb[4].mxu1 %vm671_vm2, %v665_v30  ;;  %11418 = vmatmul.mubr.msk.f32.gmra.mrb[6].mxu0 %vm671_vm2, %v13076_v31  ;;  %v525_v30 = vrot.slane %v13237_v19, 6  ;;  %v648_v32 = vsel %vm586_vm3, %v523_v20, %v524_v24  ;;  %v18516_v20 = vrot.slane %v13360_v8, 6  ;;  %vm420_vm5 = vcmp.lt.s32.totalorder %v12994_v10, 3 }
  0x27   : > { %10917 = vmatprep.mubr.msk.f32.mxu1 %vm671_vm2, %v664_v33  ;;  %11420 = vmatprep.mubr.msk.f32.mxu0 %vm671_vm2, %v13084_v34  ;;  %v13272_v33 = vld [vmem:[%s18509_s0 + $0xc0] sm:$0xff]  ;;  %vm2203_vm6 = vcmp.lt.s32.totalorder %v12994_v10, 1  ;;  %vm6081_vm7 = vcmp.lt.s32.totalorder %v12994_v10, 6  ;;  %vm7054_vm8 = vcmp.lt.s32.totalorder %v12994_v10, 5  ;;  %vm8693_vm9 = vcmask (!%p10148_p5), 24576  }
  0x28   : > { %v646_v42 = vsel %vm586_vm3, %v525_v30, %v526_v35  ;;  %v528_v45 = vrot.slane %v13272_v33, 6 }
  0x2a   : > { %10918 = vmatmul.mubr.msk.f32.gmra.mrb[6].mxu1 %vm671_vm2, %v663_v36  ;;  %11421 = vmatmul.mubr.msk.f32.gmra.mrb[8].mxu0 %vm671_vm2, %v13098_v37  ;;  %v647_v36 = vsel %vm586_vm3, %v524_v24, %v525_v30  ;;  %v13382_v24 = vld [vmem:[%s18509_s0 + $0x108] sm:$0xff] }
  0x2b   : > { %10920 = vmatprep.mubr.msk.f32.mxu1 %vm671_vm2, %v662_v40  ;;  %11423 = vmatprep.mubr.msk.f32.mxu0 %vm671_vm2, %v13111_v41  ;;  %v527_v40 = vrot.slane %v13264_v29, 6 }
  0x2d   : > { %v644_v51 = vsel %vm586_vm3, %v527_v40, %v528_v45 }
  0x2e   : > { %10921 = vmatmul.mubr.msk.f32.gmra.mrb[8].mxu1 %vm671_vm2, %v661_v43  ;;  %11424 = vmatmul.mubr.msk.f32.gmra.mrb[10].mxu0 %vm671_vm2, %v13127_v44  ;;  %v13296_v43 = vld [vmem:[%s18509_s0 + $0xd0] sm:$0xff] }
  0x2f   : > { %10923 = vmatprep.mubr.msk.f32.mxu1 %vm671_vm2, %v660_v46  ;;  %11426 = vmatprep.mubr.msk.f32.mxu0 %vm671_vm2, %v13135_v47  ;;  %v645_v46 = vsel %vm586_vm3, %v526_v35, %v527_v40  ;;  %v530_v54 = vrot.slane %v13296_v43, 6  ;;  %v536_v35 = vrot.slane %v13367_v16, 6 }
  0x32   : > { %10924 = vmatmul.mubr.msk.f32.gmra.mrb[10].mxu1 %vm671_vm2, %v659_v49  ;;  %11427 = vmatmul.mubr.msk.f32.gmra.mrb[12].mxu0 %vm671_vm2, %v13149_v50  ;;  %v529_v49 = vrot.slane %v13288_v38, 6 }
  0x33   : > { %10926 = vmatprep.mubr.msk.f32.mxu1 %vm671_vm2, %v658_v52  ;;  %11429 = vmatprep.mubr.msk.f32.mxu0 %vm671_vm2, %v13157_v53  ;;  %v13318_v52 = vld [vmem:[%s18509_s0 + $0xe0] sm:$0xff] }
  0x34   : > { %v642_v60 = vsel %vm586_vm3, %v529_v49, %v530_v54  ;;  %v532_v63 = vrot.slane %v13318_v52, 6 }
  0x36   : > { %10927 = vmatmul.mubr.msk.f32.gmra.mrb[12].mxu1 %vm671_vm2, %v657_v55  ;;  %11430 = vmatmul.mubr.msk.f32.gmra.mrb[14].mxu0 %vm671_vm2, %v13171_v56  ;;  %v643_v55 = vsel %vm586_vm3, %v528_v45, %v529_v49 }
  0x37   : > { %10929 = vmatprep.mubr.msk.f32.mxu1 %vm671_vm2, %v656_v58  ;;  %11432 = vmatprep.mubr.msk.f32.mxu0 %vm671_vm2, %v13179_v59  ;;  %v531_v58 = vrot.slane %v13310_v48, 6 }
  0x3a   : > { %10930 = vmatmul.mubr.msk.f32.gmra.mrb[14].mxu1 %vm671_vm2, %v655_v61  ;;  %11433 = vmatmul.mubr.msk.f32.gmra.mrb[16].mxu0 %vm671_vm2, %v13193_v62  ;;  %v13340_v61 = vld [vmem:[%s18509_s0 + $0xf0] sm:$0xff] }
  0x3b   : > { %10932 = vmatprep.mubr.msk.f32.mxu1 %vm671_vm2, %v654_v0  ;;  %11435 = vmatprep.mubr.msk.f32.mxu0 %vm671_vm2, %v13201_v1  ;;  %v641_v0 = vsel %vm586_vm3, %v530_v54, %v531_v58  ;;  %v13434_v54 = vld [vmem:[%s18509_s0 + $0x128] sm:$0xff] }
  0x3e   : > { %10933 = vmatmul.mubr.msk.f32.gmra.mrb[16].mxu1 %vm671_vm2, %v653_v5  ;;  %11436 = vmatmul.mubr.msk.f32.gmra.mrb[18].mxu0 %vm671_vm2, %v13215_v6  ;;  %v533_v5 = vrot.slane %v13332_v57, 6 }
  0x3f   : > { %10935 = vmatprep.mubr.msk.f32.mxu1 %vm671_vm2, %v652_v14  ;;  %11438 = vmatprep.mubr.msk.f32.mxu0 %vm671_vm2, %v13223_v15  ;;  %v640_v14 = vsel %vm586_vm3, %v531_v58, %v532_v63 }
  0x42   : > { %10936 = vmatmul.mubr.msk.f32.gmra.mrb[18].mxu1 %vm671_vm2, %v651_v18  ;;  %11439 = vmatmul.mubr.msk.f32.gmra.mrb[20].mxu0 %vm671_vm2, %v13237_v19  ;;  %v534_v18 = vrot.slane %v13340_v61, 6 }
  0x43   : > { %10938 = vmatprep.mubr.msk.f32.mxu1 %vm671_vm2, %v650_v21  ;;  %11441 = vmatprep.mubr.msk.f32.mxu0 %vm671_vm2, %v13245_v22  ;;  %v639_v21 = vsel %vm586_vm3, %v532_v63, %v533_v5 }
  0x44   : > { %v638_v30 = vsel %vm586_vm3, %v533_v5, %v534_v18  ;;  %v13456_v5 = vld [vmem:[%s18509_s0 + $0x138] sm:$0xff] }
  0x46   : > { %10939 = vmatmul.mubr.msk.f32.gmra.mrb[20].mxu1 %vm671_vm2, %v649_v27  ;;  %11442 = vmatmul.mubr.msk.f32.gmra.mrb[22].mxu0 %vm671_vm2, %v13264_v29  ;;  %v535_v27 = vrot.slane %v13354_v4, 6 }
  0x47   : > { %10941 = vmatprep.mubr.msk.f32.mxu1 %vm671_vm2, %v648_v32  ;;  %11444 = vmatprep.mubr.msk.f32.mxu0 %vm671_vm2, %v13272_v33  ;;  %v13390_v32 = vld [vmem:[%s18509_s0 + $0x110] sm:$0xff] }
  0x48   : > { %v637_v40 = vsel %vm586_vm3, %v534_v18, %v535_v27  ;;  %v636_v45 = vsel %vm586_vm3, %v535_v27, %v536_v35  ;;  %v538_v49 = vrot.slane %v13390_v32, 6 }
  0x4a   : > { %10942 = vmatmul.mubr.msk.f32.gmra.mrb[22].mxu1 %vm671_vm2, %v647_v36  ;;  %11445 = vmatmul.mubr.msk.f32.gmra.mrb[24].mxu0 %vm671_vm2, %v13288_v38  ;;  %v13399_v36 = vsel %vm586_vm3, %v18516_v20, %v583_v11  ;;  %v537_v11 = vrot.slane %v13382_v24, 6  ;;  %v4472_v20 = vrot.slane %v13084_v34, 1  ;;  %v13596_v34 = vld [vmem:[%s18509_s0 + $0x180] sm:$0xff] }
  0x4b   : > { %10944 = vmatprep.mubr.msk.f32.mxu1 %vm671_vm2, %v646_v42  ;;  %11447 = vmatprep.mubr.msk.f32.mxu0 %vm671_vm2, %v13296_v43  ;;  %v13412_v42 = vld [vmem:[%s18509_s0 + $0x118] sm:$0xff] }
  0x4c   : > { %v634_v58 = vsel %vm586_vm3, %v537_v11, %v538_v49 }
  0x4e   : > { %10945 = vmatmul.mubr.msk.f32.gmra.mrb[24].mxu1 %vm671_vm2, %v645_v46  ;;  %11448 = vmatmul.mubr.msk.f32.gmra.mrb[26].mxu0 %vm671_vm2, %v13310_v48  ;;  %v13420_v46 = vld [vmem:[%s18509_s0 + $0x120] sm:$0xff] }
  0x4f   : > { %10947 = vmatprep.mubr.msk.f32.mxu1 %vm671_vm2, %v644_v51  ;;  %11450 = vmatprep.mubr.msk.f32.mxu0 %vm671_vm2, %v13318_v52  ;;  %v635_v51 = vsel %vm586_vm3, %v536_v35, %v537_v11  ;;  %v540_v63 = vrot.slane %v13420_v46, 6  ;;  %v4465_v35 = vrot.slane %v12970_v3, 1  ;;  %v13481_v11 = vld [vmem:[%s18509_s0 + $0x148] sm:$0xff]  ;;  %v543_v3 = vrot.slane %v13456_v5, 6 }
  0x52   : > { %10948 = vmatmul.mubr.msk.f32.gmra.mrb[26].mxu1 %vm671_vm2, %v643_v55  ;;  %11451 = vmatmul.mubr.msk.f32.gmra.mrb[28].mxu0 %vm671_vm2, %v13332_v57  ;;  %v539_v55 = vrot.slane %v13412_v42, 6 }
  0x53   : > { %10950 = vmatprep.mubr.msk.f32.mxu1 %vm671_vm2, %v642_v60  ;;  %11453 = vmatprep.mubr.msk.f32.mxu0 %vm671_vm2, %v13340_v61  ;;  %v13442_v60 = vld [vmem:[%s18509_s0 + $0x130] sm:$0xff] }
  0x54   : > { %v632_v18 = vsel %vm586_vm3, %v539_v55, %v540_v63  ;;  %v542_v27 = vrot.slane %v13442_v60, 6 }
  0x56   : > { %10951 = vmatmul.mubr.msk.f32.gmra.mrb[28].mxu1 %vm671_vm2, %v641_v0  ;;  %11454 = vmatmul.mubr.msk.f32.gmra.mrb[30].mxu0 %vm671_vm2, %v13354_v4  ;;  %v633_v0 = vsel %vm586_vm3, %v538_v49, %v539_v55 }
  0x57   : > { %10953 = vmatprep.mubr.msk.f32.mxu1 %vm671_vm2, %v640_v14  ;;  %11456 = vmatprep.mubr.msk.f32.mxu0 %vm671_vm2, %v13367_v16  ;;  %v541_v14 = vrot.slane %v13434_v54, 6 }
  0x59   : > { %v630_v49 = vsel %vm586_vm3, %v541_v14, %v542_v27 }
  0x5a   : > { %10954 = vmatmul.mubr.msk.f32.gmra.mrb[30].mxu1 %vm671_vm2, %v639_v21  ;;  %11457 = vmatmul.mubr.msk.f32.gmra.mrb[32].mxu0 %vm671_vm2, %v13382_v24  ;;  %v13464_v21 = vld [vmem:[%s18509_s0 + $0x140] sm:$0xff] }
  0x5b   : > { %10956 = vmatprep.mubr.msk.f32.mxu1 %vm671_vm2, %v638_v30  ;;  %11459 = vmatprep.mubr.msk.f32.mxu0 %vm671_vm2, %v13390_v32  ;;  %v18515_v30 = vrot.slane %v12965_v2, 1  ;;  %v544_v55 = vrot.slane %v13464_v21, 6 }
  0x5e   : > { %10957 = vmatmul.mubr.msk.f32.gmra.mrb[32].mxu1 %vm671_vm2, %v637_v40  ;;  %11460 = vmatmul.mubr.msk.f32.gmra.mrb[34].mxu0 %vm671_vm2, %v13412_v42  ;;  %v631_v40 = vsel %vm586_vm3, %v540_v63, %v541_v14  ;;  %v13498_v63 = vld [vmem:[%s18509_s0 + $0x150] sm:$0xff]  ;;  %v4468_v14 = vrot.slane %v13040_v23, 1  ;;  %v13530_v23 = vld [vmem:[%s18509_s0 + $0x160] sm:$0xff] }
  0x5f   : > { %10959 = vmatprep.mubr.msk.f32.mxu1 %vm671_vm2, %v636_v45  ;;  %11462 = vmatprep.mubr.msk.f32.mxu0 %vm671_vm2, %v13420_v46  ;;  %v4466_v45 = vrot.slane %v13000_v12, 1  ;;  %v629_v12 = vsel %vm586_vm3, %v542_v27, %v543_v3 }
  0x62   : > { %10960 = vmatmul.mubr.msk.f32.gmra.mrb[34].mxu1 %vm671_vm2, %v635_v51  ;;  %11463 = vmatmul.mubr.msk.f32.gmra.mrb[36].mxu0 %vm671_vm2, %v13434_v54  ;;  %v13491_v51 = vsel %vm4546_vm4, %v18515_v30, %v4465_v35  ;;  %v13521_v30 = vld [vmem:[%s18509_s0 + $0x158] sm:$0xff] }
  0x63   : > { %10962 = vmatprep.mubr.msk.f32.mxu1 %vm671_vm2, %v634_v58  ;;  %11465 = vmatprep.mubr.msk.f32.mxu0 %vm671_vm2, %v13442_v60  ;;  %18757 = vst [vmem:[#allocation6_spill] sm:$0xff] %v13491_v51  ;;  %v4467_v58 = vrot.slane %v13021_v17, 1  ;;  %v13510_v17 = vsel %vm4546_vm4, %v4465_v35, %v4466_v45 }
  0x64   : > { %18758 = vst [vmem:[#allocation7_spill] sm:$0xff] %v13510_v17 }
  0x65   : > { %v13525_v27 = vsel %vm4546_vm4, %v4466_v45, %v4467_v58  ;;  %v13542_v35 = vsel %vm4546_vm4, %v4467_v58, %v4468_v14  ;;  %v4470_v45 = vrot.slane %v13062_v28, 1  ;;  %v13559_v58 = vld [vmem:[%s18509_s0 + $0x168] sm:$0xff]  ;;  %v13564_v28 = vld [vmem:[%s18509_s0 + $0x170] sm:$0xff] }
  0x66   : > { %10963 = vmatmul.mubr.msk.f32.gmra.mrb[36].mxu1 %vm671_vm2, %v633_v0  ;;  %11466 = vmatmul.mubr.msk.f32.gmra.mrb[38].mxu0 %vm671_vm2, %v13456_v5  ;;  %v545_v0 = vrot.slane %v13481_v11, 6 }
  0x67   : > { %10965 = vmatprep.mubr.msk.f32.mxu1 %vm671_vm2, %v632_v18  ;;  %11468 = vmatprep.mubr.msk.f32.mxu0 %vm671_vm2, %v13464_v21  ;;  %v628_v18 = vsel %vm586_vm3, %v543_v3, %v544_v55  ;;  %v547_v3 = vrot.slane %v13521_v30, 6 }
  0x6a   : > { %10966 = vmatmul.mubr.msk.f32.gmra.mrb[38].mxu1 %vm671_vm2, %v631_v40  ;;  %11469 = vmatmul.mubr.msk.f32.gmra.mrb[40].mxu0 %vm671_vm2, %v13481_v11  ;;  %v546_v40 = vrot.slane %v13498_v63, 6 }
  0x6b   : > { %10968 = vmatprep.mubr.msk.f32.mxu1 %vm671_vm2, %v630_v49  ;;  %11533 = vmatprep.mubr.msk.f32.mxu0 %vm671_vm2, %v13491_v51  ;;  %v4469_v49 = vrot.slane %v13052_v25, 1  ;;  %v627_v25 = vsel %vm586_vm3, %v544_v55, %v545_v0  ;;  %v548_v55 = vrot.slane %v13530_v23, 6  ;;  %v4473_v51 = vrot.slane %v13098_v37, 1 }
  0x6e   : > { %10969 = vmatmul.mubr.msk.f32.gmra.mrb[40].mxu1 %vm671_vm2, %v629_v12  ;;  %11534 = vmatmul.mubr.msk.f32.vlgmr.msra.gmra.mrb[0].mxu0 %vm671_vm2, %v13510_v17  ;;  %v626_v12 = vsel %vm586_vm3, %v545_v0, %v546_v40  ;;  %v13576_v0 = vsel %vm4546_vm4, %v4469_v49, %v4470_v45  ;;  %v550_v17 = vrot.slane %v13564_v28, 6 }
  0x6f   : > { %11657 = vmatpush3.msk.msra.mxu0 %vm918_vm1, %v13104_v39  ;;  %10971 = vmatprep.mubr.msk.f32.mxu1 %vm671_vm2, %v628_v18  ;;  %v13552_v39 = vsel %vm4546_vm4, %v4468_v14, %v4469_v49  ;;  %v4471_v18 = vrot.slane %v13076_v31, 1  ;;  %v625_v31 = vsel %vm586_vm3, %v546_v40, %v547_v3  ;;  %18760 = vst [vmem:[#allocation9_spill] sm:$0xff] %v13576_v0  ;;  %v549_v14 = vrot.slane %v13559_v58, 6  ;;  %v13591_v40 = vld [vmem:[%s18509_s0 + $0x178] sm:$0xff] }
  0x70   : > { %11536 = vmatprep.mubr.msk.f32.mxu0 %vm671_vm2, %v13525_v27  ;;  %18759 = vst [vmem:[#allocation8_spill] sm:$0xff] %v13552_v39 }
  0x71   : > { %v623_v37 = vsel %vm586_vm3, %v548_v55, %v549_v14  ;;  %v13608_v49 = vsel %vm4546_vm4, %v4471_v18, %v4472_v20 }
  0x72   : > { %10972 = vmatmul.mubr.msk.f32.gmra.mrb[42].mxu1 %vm671_vm2, %v627_v25  ;;  %11537 = vmatmul.mubr.msk.f32.gmra.mrb[2].mxu0 %vm671_vm2, %v13542_v35  ;;  %v624_v25 = vsel %vm586_vm3, %v547_v3, %v548_v55  ;;  %18762 = vst [vmem:[#allocation11_spill] sm:$0xff] %v13608_v49  ;;  %v551_v3 = vrot.slane %v13591_v40, 6  ;;  %v13623_v55 = vld [vmem:[%s18509_s0 + $0x188] sm:$0xff] }
  0x73   : > { %10974 = vmatprep.mubr.msk.f32.mxu1 %vm671_vm2, %v626_v12  ;;  %11539 = vmatprep.mubr.msk.f32.mxu0 %vm671_vm2, %v13552_v39  ;;  %v13584_v12 = vsel %vm4546_vm4, %v4470_v45, %v4471_v18  ;;  %v4474_v45 = vrot.slane %v13111_v41, 1  ;;  %v13628_v41 = vld [vmem:[%s18509_s0 + $0x190] sm:$0xff]  ;;  %v553_v18 = vrot.slane %v13623_v55, 6  ;;  %v4489_v39 = vrot.slane %v13288_v38, 1 }
  0x74   : > { %18761 = vst [vmem:[#allocation10_spill] sm:$0xff] %v13584_v12 }
  0x76   : > { %10975 = vmatmul.mubr.msk.f32.gmra.mrb[44].mxu1 %vm671_vm2, %v625_v31  ;;  %11540 = vmatmul.mubr.msk.f32.gmra.mrb[4].mxu0 %vm671_vm2, %v13576_v0  ;;  %v622_v31 = vsel %vm586_vm3, %v549_v14, %v550_v17  ;;  %v4475_v0 = vrot.slane %v13127_v44, 1  ;;  %v621_v44 = vsel %vm586_vm3, %v550_v17, %v551_v3  ;;  %v4476_v14 = vrot.slane %v13135_v47, 1  ;;  %v13660_v47 = vld [vmem:[%s18509_s0 + $0x1a0] sm:$0xff] }
  0x77   : > { %10977 = vmatprep.mubr.msk.f32.mxu1 %vm671_vm2, %v624_v25  ;;  %11542 = vmatprep.mubr.msk.f32.mxu0 %vm671_vm2, %v13584_v12  ;;  %v13616_v25 = vsel %vm4546_vm4, %v4472_v20, %v4473_v51  ;;  %v552_v12 = vrot.slane %v13596_v34, 6  ;;  %v13640_v20 = vsel %vm4546_vm4, %v4473_v51, %v4474_v45  ;;  %v13655_v51 = vld [vmem:[%s18509_s0 + $0x198] sm:$0xff] }
  0x78   : > { %18763 = vst [vmem:[#allocation12_spill] sm:$0xff] %v13616_v25  ;;  %18764 = vst [vmem:[#allocation13_spill] sm:$0xff] %v13640_v20  ;;  %v13672_v17 = vsel %vm4546_vm4, %v4475_v0, %v4476_v14 }
  0x79   : > { %18766 = vst [vmem:[#allocation15_spill] sm:$0xff] %v13672_v17 }
  0x7a   : > { %10978 = vmatmul.mubr.msk.f32.gmra.mrb[46].mxu1 %vm671_vm2, %v623_v37  ;;  %11543 = vmatmul.mubr.msk.f32.gmra.mrb[6].mxu0 %vm671_vm2, %v13608_v49  ;;  %v620_v37 = vsel %vm586_vm3, %v551_v3, %v552_v12  ;;  %v4477_v49 = vrot.slane %v13149_v50, 1  ;;  %v619_v50 = vsel %vm586_vm3, %v552_v12, %v553_v18  ;;  %v555_v3 = vrot.slane %v13655_v51, 6 }
  0x7b   : > { %10980 = vmatprep.mubr.msk.f32.mxu1 %vm671_vm2, %v622_v31  ;;  %11545 = vmatprep.mubr.msk.f32.mxu0 %vm671_vm2, %v13616_v25  ;;  %v13648_v31 = vsel %vm4546_vm4, %v4474_v45, %v4475_v0  ;;  %v554_v25 = vrot.slane %v13628_v41, 6  ;;  %v4478_v45 = vrot.slane %v13157_v53, 1  ;;  %v13687_v0 = vld [vmem:[%s18509_s0 + $0x1a8] sm:$0xff]  ;;  %v13692_v53 = vld [vmem:[%s18509_s0 + $0x1b0] sm:$0xff] }
  0x7c   : > { %18765 = vst [vmem:[#allocation14_spill] sm:$0xff] %v13648_v31 }
  0x7d   : > { %v13704_v12 = vsel %vm4546_vm4, %v4477_v49, %v4478_v45 }
  0x7e   : > { %10981 = vmatmul.mubr.msk.f32.gmra.mrb[48].mxu1 %vm671_vm2, %v621_v44  ;;  %11546 = vmatmul.mubr.msk.f32.gmra.mrb[8].mxu0 %vm671_vm2, %v13640_v20  ;;  %v618_v44 = vsel %vm586_vm3, %v553_v18, %v554_v25  ;;  %v4479_v20 = vrot.slane %v13171_v56, 1  ;;  %v617_v56 = vsel %vm586_vm3, %v554_v25, %v555_v3  ;;  %18768 = vst [vmem:[#allocation17_spill] sm:$0xff] %v13704_v12  ;;  %v557_v18 = vrot.slane %v13687_v0, 6 }
  0x7f   : > { %10983 = vmatprep.mubr.msk.f32.mxu1 %vm671_vm2, %v620_v37  ;;  %11548 = vmatprep.mubr.msk.f32.mxu0 %vm671_vm2, %v13648_v31  ;;  %v13680_v37 = vsel %vm4546_vm4, %v4476_v14, %v4477_v49  ;;  %v556_v31 = vrot.slane %v13660_v47, 6  ;;  %v4480_v14 = vrot.slane %v13179_v59, 1  ;;  %v13719_v49 = vld [vmem:[%s18509_s0 + $0x1b8] sm:$0xff]  ;;  %v13724_v59 = vld [vmem:[%s18509_s0 + $0x1c0] sm:$0xff] }
  0x80   : > { %18767 = vst [vmem:[#allocation16_spill] sm:$0xff] %v13680_v37 }
  0x81   : > { %v13736_v25 = vsel %vm4546_vm4, %v4479_v20, %v4480_v14 }
  0x82   : > { %10984 = vmatmul.mubr.msk.f32.gmra.mrb[50].mxu1 %vm671_vm2, %v619_v50  ;;  %11549 = vmatmul.mubr.msk.f32.gmra.mrb[10].mxu0 %vm671_vm2, %v13672_v17  ;;  %v616_v50 = vsel %vm586_vm3, %v555_v3, %v556_v31  ;;  %v4481_v17 = vrot.slane %v13193_v62, 1  ;;  %v615_v62 = vsel %vm586_vm3, %v556_v31, %v557_v18  ;;  %18770 = vst [vmem:[#allocation19_spill] sm:$0xff] %v13736_v25  ;;  %v559_v3 = vrot.slane %v13719_v49, 6 }
  0x83   : > { %10986 = vmatprep.mubr.msk.f32.mxu1 %vm671_vm2, %v618_v44  ;;  %11551 = vmatprep.mubr.msk.f32.mxu0 %vm671_vm2, %v13680_v37  ;;  %v13712_v44 = vsel %vm4546_vm4, %v4478_v45, %v4479_v20  ;;  %v558_v37 = vrot.slane %v13692_v53, 6  ;;  %v4482_v45 = vrot.slane %v13201_v1, 1  ;;  %v13751_v20 = vld [vmem:[%s18509_s0 + $0x1c8] sm:$0xff]  ;;  %v13756_v1 = vld [vmem:[%s18509_s0 + $0x1d0] sm:$0xff] }
  0x84   : > { %18769 = vst [vmem:[#allocation18_spill] sm:$0xff] %v13712_v44 }
  0x85   : > { %v13768_v31 = vsel %vm4546_vm4, %v4481_v17, %v4482_v45 }
  0x86   : > { %10987 = vmatmul.mubr.msk.f32.gmra.mrb[52].mxu1 %vm671_vm2, %v617_v56  ;;  %11552 = vmatmul.mubr.msk.f32.gmra.mrb[12].mxu0 %vm671_vm2, %v13704_v12  ;;  %v614_v56 = vsel %vm586_vm3, %v557_v18, %v558_v37  ;;  %v4483_v12 = vrot.slane %v13215_v6, 1  ;;  %v613_v6 = vsel %vm586_vm3, %v558_v37, %v559_v3  ;;  %18772 = vst [vmem:[#allocation21_spill] sm:$0xff] %v13768_v31  ;;  %v561_v18 = vrot.slane %v13751_v20, 6 }
  0x87   : > { %10989 = vmatprep.mubr.msk.f32.mxu1 %vm671_vm2, %v616_v50  ;;  %11554 = vmatprep.mubr.msk.f32.mxu0 %vm671_vm2, %v13712_v44  ;;  %v13744_v50 = vsel %vm4546_vm4, %v4480_v14, %v4481_v17  ;;  %v560_v44 = vrot.slane %v13724_v59, 6  ;;  %v4484_v14 = vrot.slane %v13223_v15, 1  ;;  %v13783_v17 = vld [vmem:[%s18509_s0 + $0x1d8] sm:$0xff]  ;;  %v13788_v15 = vld [vmem:[%s18509_s0 + $0x1e0] sm:$0xff] }
  0x88   : > { %18771 = vst [vmem:[#allocation20_spill] sm:$0xff] %v13744_v50 }
  0x89   : > { %v13800_v37 = vsel %vm4546_vm4, %v4483_v12, %v4484_v14 }
  0x8a   : > { %10990 = vmatmul.mubr.msk.f32.gmra.mrb[54].mxu1 %vm671_vm2, %v615_v62  ;;  %11555 = vmatmul.mubr.msk.f32.gmra.mrb[14].mxu0 %vm671_vm2, %v13736_v25  ;;  %v612_v62 = vsel %vm586_vm3, %v559_v3, %v560_v44  ;;  %v4485_v25 = vrot.slane %v13237_v19, 1  ;;  %v611_v19 = vsel %vm586_vm3, %v560_v44, %v561_v18  ;;  %18774 = vst [vmem:[#allocation23_spill] sm:$0xff] %v13800_v37  ;;  %v563_v3 = vrot.slane %v13783_v17, 6  ;;  %v13828_v44 = vld [vmem:[%s18510_s1 + $0x1c] sm:$0xf] }
  0x8b   : > { %10992 = vmatprep.mubr.msk.f32.mxu1 %vm671_vm2, %v614_v56  ;;  %11557 = vmatprep.mubr.msk.f32.mxu0 %vm671_vm2, %v13744_v50  ;;  %v13776_v56 = vsel %vm4546_vm4, %v4482_v45, %v4483_v12  ;;  %v562_v50 = vrot.slane %v13756_v1, 6  ;;  %v4486_v45 = vrot.slane %v13245_v22, 1  ;;  %v13815_v12 = vld [vmem:[%s18509_s0 + $0x1e8] sm:$0xff]  ;;  %v13820_v22 = vld [vmem:[%s18509_s0 + $0x1f0] sm:$0xff] }
  0x8c   : > { %18773 = vst [vmem:[#allocation22_spill] sm:$0xff] %v13776_v56  ;;  %11781 = vmatprep.subr.msk.mxu0 %vm918_vm1, %v13828_v44 }
  0x8e   : > { %10993 = vmatmul.mubr.msk.f32.gmra.mrb[56].mxu1 %vm671_vm2, %v613_v6  ;;  %11558 = vmatmul.mubr.msk.f32.gmra.mrb[16].mxu0 %vm671_vm2, %v13768_v31  ;;  %v610_v6 = vsel %vm586_vm3, %v561_v18, %v562_v50  ;;  %v4487_v31 = vrot.slane %v13264_v29, 1  ;;  %v609_v29 = vsel %vm586_vm3, %v562_v50, %v563_v3  ;;  %v13837_v18 = vsel %vm4546_vm4, %v4485_v25, %v4486_v45 }
  0x8f   : > { %10995 = vmatprep.mubr.msk.f32.mxu1 %vm671_vm2, %v612_v62  ;;  %11560 = vmatprep.mubr.msk.f32.mxu0 %vm671_vm2, %v13776_v56  ;;  %v13808_v62 = vsel %vm4546_vm4, %v4484_v14, %v4485_v25  ;;  %v564_v56 = vrot.slane %v13788_v15, 6  ;;  %18776 = vst [vmem:[#allocation25_spill] sm:$0xff] %v13837_v18  ;;  %v565_v14 = vrot.slane %v13815_v12, 6  ;;  %v13852_v25 = vld [vmem:[%s18509_s0 + $0x1f8] sm:$0xff] }
  0x90   : > { %18775 = vst [vmem:[#allocation24_spill] sm:$0xff] %v13808_v62 }
  0x91   : > { %v607_v38 = vsel %vm586_vm3, %v564_v56, %v565_v14 }
  0x92   : > { %10996 = vmatmul.mubr.msk.f32.gmra.mrb[58].mxu1 %vm671_vm2, %v611_v19  ;;  %11561 = vmatmul.mubr.msk.f32.gmra.mrb[18].mxu0 %vm671_vm2, %v13800_v37  ;;  %v4488_v19 = vrot.slane %v13272_v33, 1  ;;  %v608_v37 = vsel %vm586_vm3, %v563_v3, %v564_v56  ;;  %v13859_v33 = vld [vmem:[%s18509_s0 + $0x200] sm:$0xff]  ;;  %v567_v3 = vrot.slane %v13852_v25, 6 }
  0x93   : > { %10998 = vmatprep.mubr.msk.f32.mxu1 %vm671_vm2, %v610_v6  ;;  %11563 = vmatprep.mubr.msk.f32.mxu0 %vm671_vm2, %v13808_v62  ;;  %v13845_v6 = vsel %vm4546_vm4, %v4486_v45, %v4487_v31  ;;  %v566_v62 = vrot.slane %v13820_v22, 6  ;;  %v4490_v45 = vrot.slane %v13296_v43, 1  ;;  %v13891_v43 = vld [vmem:[%s18509_s0 + $0x210] sm:$0xff] }
  0x94   : > { %18777 = vst [vmem:[#allocation26_spill] sm:$0xff] %v13845_v6  ;;  %v13871_v50 = vsel %vm4546_vm4, %v4487_v31, %v4488_v19  ;;  %v13886_v31 = vld [vmem:[%s18509_s0 + $0x208] sm:$0xff] }
  0x95   : > { %18778 = vst [vmem:[#allocation27_spill] sm:$0xff] %v13871_v50  ;;  %v13903_v56 = vsel %vm4546_vm4, %v4489_v39, %v4490_v45 }
  0x96   : > { %10999 = vmatmul.mubr.msk.f32.gmra.mrb[60].mxu1 %vm671_vm2, %v609_v29  ;;  %11564 = vmatmul.mubr.msk.f32.gmra.mrb[20].mxu0 %vm671_vm2, %v13837_v18  ;;  %v606_v29 = vsel %vm586_vm3, %v565_v14, %v566_v62  ;;  %v4491_v18 = vrot.slane %v13310_v48, 1  ;;  %v605_v48 = vsel %vm586_vm3, %v566_v62, %v567_v3  ;;  %18780 = vst [vmem:[#allocation29_spill] sm:$0xff] %v13903_v56  ;;  %v569_v14 = vrot.slane %v13886_v31, 6 }
  0x97   : > { %11001 = vmatprep.mubr.msk.f32.mxu1 %vm671_vm2, %v608_v37  ;;  %11566 = vmatprep.mubr.msk.f32.mxu0 %vm671_vm2, %v13845_v6  ;;  %v13879_v37 = vsel %vm4546_vm4, %v4488_v19, %v4489_v39  ;;  %v568_v6 = vrot.slane %v13859_v33, 6  ;;  %v4492_v19 = vrot.slane %v13318_v52, 1  ;;  %v13918_v39 = vld [vmem:[%s18509_s0 + $0x218] sm:$0xff]  ;;  %v13923_v52 = vld [vmem:[%s18509_s0 + $0x220] sm:$0xff] }
  0x98   : > { %18779 = vst [vmem:[#allocation28_spill] sm:$0xff] %v13879_v37 }
  0x99   : > { %v13935_v62 = vsel %vm4546_vm4, %v4491_v18, %v4492_v19 }
  0x9a   : > { %11002 = vmatmul.mubr.msk.f32.gmra.mrb[62].mxu1 %vm671_vm2, %v607_v38  ;;  %11567 = vmatmul.mubr.msk.f32.gmra.mrb[22].mxu0 %vm671_vm2, %v13871_v50  ;;  %v604_v38 = vsel %vm586_vm3, %v567_v3, %v568_v6  ;;  %v4493_v50 = vrot.slane %v13332_v57, 1  ;;  %v603_v57 = vsel %vm586_vm3, %v568_v6, %v569_v14  ;;  %18782 = vst [vmem:[#allocation31_spill] sm:$0xff] %v13935_v62  ;;  %v571_v3 = vrot.slane %v13918_v39, 6 }
  0x9b   : > { %11004 = vmatprep.mubr.msk.f32.mxu1 %vm671_vm2, %v606_v29  ;;  %11569 = vmatprep.mubr.msk.f32.mxu0 %vm671_vm2, %v13879_v37  ;;  %v13911_v29 = vsel %vm4546_vm4, %v4490_v45, %v4491_v18  ;;  %v570_v37 = vrot.slane %v13891_v43, 6  ;;  %v4494_v45 = vrot.slane %v13340_v61, 1  ;;  %v13950_v18 = vld [vmem:[%s18509_s0 + $0x228] sm:$0xff]  ;;  %v13955_v61 = vld [vmem:[%s18509_s0 + $0x230] sm:$0xff] }
  0x9c   : > { %18781 = vst [vmem:[#allocation30_spill] sm:$0xff] %v13911_v29 }
  0x9d   : > { %v13967_v6 = vsel %vm4546_vm4, %v4493_v50, %v4494_v45 }
  0x9e   : > { %11005 = vmatmul.mubr.msk.f32.gmra.mrb[64].mxu1 %vm671_vm2, %v605_v48  ;;  %11570 = vmatmul.mubr.msk.f32.gmra.mrb[24].mxu0 %vm671_vm2, %v13903_v56  ;;  %v602_v48 = vsel %vm586_vm3, %v569_v14, %v570_v37  ;;  %v4495_v56 = vrot.slane %v13354_v4, 1  ;;  %v601_v4 = vsel %vm586_vm3, %v570_v37, %v571_v3  ;;  %18784 = vst [vmem:[#allocation33_spill] sm:$0xff] %v13967_v6  ;;  %v573_v14 = vrot.slane %v13950_v18, 6 }
  0x9f   : > { %11007 = vmatprep.mubr.msk.f32.mxu1 %vm671_vm2, %v604_v38  ;;  %11572 = vmatprep.mubr.msk.f32.mxu0 %vm671_vm2, %v13911_v29  ;;  %v13943_v38 = vsel %vm4546_vm4, %v4492_v19, %v4493_v50  ;;  %v572_v29 = vrot.slane %v13923_v52, 6  ;;  %v4496_v19 = vrot.slane %v13367_v16, 1  ;;  %v13982_v50 = vld [vmem:[%s18509_s0 + $0x238] sm:$0xff]  ;;  %v13987_v16 = vld [vmem:[%s18509_s0 + $0x240] sm:$0xff] }
  0xa0   : > { %18783 = vst [vmem:[#allocation32_spill] sm:$0xff] %v13943_v38 }
  0xa1   : > { %v13999_v37 = vsel %vm4546_vm4, %v4495_v56, %v4496_v19 }
  0xa2   : > { %11008 = vmatmul.mubr.msk.f32.gmra.mrb[66].mxu1 %vm671_vm2, %v603_v57  ;;  %11573 = vmatmul.mubr.msk.f32.gmra.mrb[26].mxu0 %vm671_vm2, %v13935_v62  ;;  %v600_v57 = vsel %vm586_vm3, %v571_v3, %v572_v29  ;;  %v4497_v62 = vrot.slane %v13382_v24, 1  ;;  %v599_v24 = vsel %vm586_vm3, %v572_v29, %v573_v14  ;;  %18786 = vst [vmem:[#allocation35_spill] sm:$0xff] %v13999_v37  ;;  %v575_v3 = vrot.slane %v13982_v50, 6 }
  0xa3   : > { %11010 = vmatprep.mubr.msk.f32.mxu1 %vm671_vm2, %v602_v48  ;;  %11575 = vmatprep.mubr.msk.f32.mxu0 %vm671_vm2, %v13943_v38  ;;  %v13975_v48 = vsel %vm4546_vm4, %v4494_v45, %v4495_v56  ;;  %v574_v38 = vrot.slane %v13955_v61, 6  ;;  %v4498_v45 = vrot.slane %v13390_v32, 1  ;;  %v14014_v56 = vld [vmem:[%s18509_s0 + $0x248] sm:$0xff]  ;;  %v14019_v32 = vld [vmem:[%s18509_s0 + $0x250] sm:$0xff] }
  0xa4   : > { %18785 = vst [vmem:[#allocation34_spill] sm:$0xff] %v13975_v48 }
  0xa5   : > { %v14031_v29 = vsel %vm4546_vm4, %v4497_v62, %v4498_v45 }
  0xa6   : > { %11011 = vmatmul.mubr.msk.f32.gmra.mrb[68].mxu1 %vm671_vm2, %v601_v4  ;;  %11576 = vmatmul.mubr.msk.f32.gmra.mrb[28].mxu0 %vm671_vm2, %v13967_v6  ;;  %v598_v4 = vsel %vm586_vm3, %v573_v14, %v574_v38  ;;  %v4499_v6 = vrot.slane %v13412_v42, 1  ;;  %v597_v42 = vsel %vm586_vm3, %v574_v38, %v575_v3  ;;  %18788 = vst [vmem:[#allocation37_spill] sm:$0xff] %v14031_v29  ;;  %v577_v14 = vrot.slane %v14014_v56, 6 }
  0xa7   : > { %11013 = vmatprep.mubr.msk.f32.mxu1 %vm671_vm2, %v600_v57  ;;  %11578 = vmatprep.mubr.msk.f32.mxu0 %vm671_vm2, %v13975_v48  ;;  %v14007_v57 = vsel %vm4546_vm4, %v4496_v19, %v4497_v62  ;;  %v576_v48 = vrot.slane %v13987_v16, 6  ;;  %v4500_v19 = vrot.slane %v13420_v46, 1  ;;  %v14046_v62 = vld [vmem:[%s18509_s0 + $0x258] sm:$0xff]  ;;  %v14051_v46 = vld [vmem:[%s18509_s0 + $0x260] sm:$0xff] }
  0xa8   : > { %18787 = vst [vmem:[#allocation36_spill] sm:$0xff] %v14007_v57 }
  0xa9   : > { %v14063_v38 = vsel %vm4546_vm4, %v4499_v6, %v4500_v19 }
  0xaa   : > { %11014 = vmatmul.mubr.msk.f32.gmra.mrb[70].mxu1 %vm671_vm2, %v599_v24  ;;  %11579 = vmatmul.mubr.msk.f32.gmra.mrb[30].mxu0 %vm671_vm2, %v13999_v37  ;;  %v596_v24 = vsel %vm586_vm3, %v575_v3, %v576_v48  ;;  %v4501_v37 = vrot.slane %v13434_v54, 1  ;;  %v595_v54 = vsel %vm586_vm3, %v576_v48, %v577_v14  ;;  %v579_v3 = vrot.slane %v14046_v62, 6 }
  0xab   : > { %11016 = vmatprep.mubr.msk.f32.mxu1 %vm671_vm2, %v598_v4  ;;  %11581 = vmatprep.mubr.msk.f32.mxu0 %vm671_vm2, %v14007_v57  ;;  %v14039_v4 = vsel %vm4546_vm4, %v4498_v45, %v4499_v6  ;;  %v578_v57 = vrot.slane %v14019_v32, 6  ;;  %v4502_v45 = vrot.slane %v13442_v60, 1  ;;  %v14078_v6 = vld [vmem:[%s18509_s0 + $0x268] sm:$0xff] }
  0xac   : > { %18789 = vst [vmem:[#allocation38_spill] sm:$0xff] %v14039_v4  ;;  %v581_v48 = vrot.slane %v14078_v6, 6 }
  0xad   : > { %v593_v60 = vsel %vm586_vm3, %v578_v57, %v579_v3 }
  0xae   : > { %11017 = vmatmul.mubr.msk.f32.gmra.mrb[72].mxu1 %vm671_vm2, %v597_v42  ;;  %11582 = vmatmul.mubr.msk.f32.gmra.mrb[32].mxu0 %vm671_vm2, %v14031_v29  ;;  %v594_v42 = vsel %vm586_vm3, %v577_v14, %v578_v57  ;;  %v4503_v29 = vrot.slane %v13456_v5, 1  ;;  %v14090_v5 = vsel %vm4546_vm4, %v4501_v37, %v4502_v45  ;;  %v4504_v14 = vrot.slane %v13464_v21, 1 }
  0xaf   : > { %11019 = vmatprep.mubr.msk.f32.mxu1 %vm671_vm2, %v596_v24  ;;  %11584 = vmatprep.mubr.msk.f32.mxu0 %vm671_vm2, %v14039_v4  ;;  %v14071_v24 = vsel %vm4546_vm4, %v4500_v19, %v4501_v37  ;;  %v580_v4 = vrot.slane %v14051_v46, 6  ;;  %v4506_v57 = vrot.slane %v13498_v63, 1 }
  0xb0   : > { %v14111_v37 = vsel %vm4546_vm4, %v4503_v29, %v4504_v14 }
  0xb1   : > { %v592_v19 = vsel %vm586_vm3, %v579_v3, %v580_v4  ;;  %v591_v21 = vsel %vm586_vm3, %v580_v4, %v581_v48  ;;  %v18790_v3 = vrot.slane %v13360_v8, 6  ;;  %v4507_v4 = vrot.slane %v13521_v30, 1 }
  0xb2   : > { %11020 = vmatmul.mubr.msk.f32.gmra.mrb[74].mxu1 %vm671_vm2, %v595_v54  ;;  %11585 = vmatmul.mubr.msk.f32.gmra.mrb[34].mxu0 %vm671_vm2, %v14063_v38  ;;  %v14098_v54 = vsel %vm4546_vm4, %v4502_v45, %v4503_v29  ;;  %v4508_v30 = vrot.slane %v13530_v23, 1 }
  0xb3   : > { %11022 = vmatprep.mubr.msk.f32.mxu1 %vm671_vm2, %v594_v42  ;;  %11587 = vmatprep.mubr.msk.f32.mxu0 %vm671_vm2, %v14071_v24  ;;  %v4505_v42 = vrot.slane %v13481_v11, 1  ;;  %v18550_v11 = vrot.slane %v12984_v7, 5  ;;  %v590_v45 = vsel %vm586_vm3, %v581_v48, %v18790_v3  ;;  %v14144_v29 = vsel %vm4546_vm4, %v4506_v57, %v4507_v4  ;;  %v14149_v48 = vld [vmem:[%s18509_s0] sm:$0xff]  ;;  %v14178_v3 = vld [vmem:[%s18509_s0 + $0x10] sm:$0xff] }
  0xb4   : > { %18791 = vst [vmem:[#allocation39_spill] sm:$0xff] %v14178_v3 }
  0xb5   : > { %v14134_v8 = vsel %vm4546_vm4, %v4505_v42, %v4506_v57 }
  0xb6   : > { %11023 = vmatmul.mubr.msk.f32.gmra.mrb[76].mxu1 %vm671_vm2, %v593_v60  ;;  %11588 = vmatmul.mubr.msk.f32.gmra.mrb[36].mxu0 %vm671_vm2, %v14090_v5  ;;  %v14121_v60 = vsel %vm4546_vm4, %v4504_v14, %v4505_v42  ;;  %v336_v14 = vrot.slane %v14149_v48, 5  ;;  %v14164_v42 = vsel %vm4546_vm4, %v4507_v4, %v4508_v30 }
  0xb7   : > { %11025 = vmatprep.mubr.msk.f32.mxu1 %vm671_vm2, %v592_v19  ;;  %11590 = vmatprep.mubr.msk.f32.mxu0 %vm671_vm2, %v14098_v54  ;;  %v416_v19 = vrot.slane %v12992_v9, 5  ;;  %v417_v9 = vrot.slane %v13005_v13, 5  ;;  %v4509_v13 = vrot.slane %v13559_v58, 1  ;;  %v14169_v58 = vld [vmem:[%s18509_s0 + $0x8] sm:$0xff] }
  0xb9   : > { %v422_v63 = vsel %vm420_vm5, %v18550_v11, %v416_v19  ;;  %v421_v23 = vsel %vm420_vm5, %v416_v19, %v417_v9  ;;  %v502_v57 = vsel %vm420_vm5, %v417_v9, %v336_v14  ;;  %v4511_v19 = vrot.slane %v13591_v40, 1  ;;  %v14201_v9 = vld [vmem:[%s18509_s0 + $0x18] sm:$0xff] }
  0xba   : > { %11026 = vmatmul.mubr.msk.f32.gmra.mrb[78].mxu1 %vm671_vm2, %v591_v21  ;;  %11591 = vmatmul.mubr.msk.f32.gmra.mrb[38].mxu0 %vm671_vm2, %v14111_v37  ;;  %v4510_v21 = vrot.slane %v13564_v28, 1  ;;  %v14184_v4 = vsel %vm4546_vm4, %v4508_v30, %v4509_v13  ;;  %18793 = vst [vmem:[#allocation41_spill] sm:$0xff] %v14201_v9  ;;  %v339_v30 = vrot.slane %v14201_v9, 5  ;;  %v4514_v11 = vrot.slane %v13628_v41, 1 }
  0xbb   : > { %11028 = vmatprep.mubr.msk.f32.mxu1 %vm671_vm2, %v590_v45  ;;  %11593 = vmatprep.mubr.msk.f32.mxu0 %vm671_vm2, %v14121_v60  ;;  %v338_v45 = vrot.slane %v14178_v3, 5  ;;  %v4531_v9 = vrot.slane %v13918_v39, 1 }
  0xbc   : > { %v14196_v40 = vsel %vm4546_vm4, %v4509_v13, %v4510_v21  ;;  %v14216_v13 = vld [vmem:[%s18509_s0 + $0x20] sm:$0xff] }
  0xbd   : > { %18792 = vst [vmem:[#allocation40_spill] sm:$0xff] %v14196_v40  ;;  %18795 = vst [vmem:[#allocation43_spill] sm:$0xff] %v14216_v13 }
  0xbe   : > { %11029 = vmatmul.mubr.msk.f32.gmra.mrb[80].mxu1 %vm671_vm2, %v13399_v36  ;;  %11594 = vmatmul.mubr.msk.f32.gmra.mrb[40].mxu0 %vm671_vm2, %v14134_v8  ;;  %v337_v36 = vrot.slane %v14169_v58, 5 }
  0xbf   : > { %11033 = vmatprep.mubr.msk.f32.mxu1 %vm671_vm2, %v422_v63  ;;  %11596 = vmatprep.mubr.msk.f32.mxu0 %vm671_vm2, %v14144_v29  ;;  %v4512_v63 = vrot.slane %v13596_v34, 1  ;;  %v499_v34 = vsel %vm420_vm5, %v338_v45, %v339_v30 }
  0xc0   : > { %v501_v28 = vsel %vm420_vm5, %v336_v14, %v337_v36  ;;  %v14211_v14 = vsel %vm4546_vm4, %v4510_v21, %v4511_v19  ;;  %v14235_v21 = vld [vmem:[%s18509_s0 + $0x28] sm:$0xff] }
  0xc1   : > { %18794 = vst [vmem:[#allocation42_spill] sm:$0xff] %v14211_v14  ;;  %18797 = vst [vmem:[#allocation45_spill] sm:$0xff] %v14235_v21 }
  0xc2   : > { %11034 = vmatmul.mubr.msk.f32.vlgmr.msra.gmra.mrb[0].mxu1 %vm671_vm2, %v421_v23  ;;  %11597 = vmatmul.mubr.msk.f32.gmra.mrb[42].mxu0 %vm671_vm2, %v14164_v42  ;;  %v340_v23 = vrot.slane %v14216_v13, 5 }
  0xc3   : > { %11157 = vmatpush3.msk.msra.mxu1 %vm918_vm1, %v13254_v26  ;;  %11036 = vmatprep.mubr.msk.f32.mxu1 %vm671_vm2, %v502_v57  ;;  %v500_v26 = vsel %vm420_vm5, %v337_v36, %v338_v45  ;;  %v4513_v57 = vrot.slane %v13623_v55, 1  ;;  %v14230_v36 = vsel %vm4546_vm4, %v4511_v19, %v4512_v63  ;;  %v14248_v45 = vld [vmem:[%s18509_s0 + $0x30] sm:$0xff] }
  0xc4   : > { %11599 = vmatprep.mubr.msk.f32.mxu0 %vm671_vm2, %v14184_v4  ;;  %18796 = vst [vmem:[#allocation44_spill] sm:$0xff] %v14230_v36  ;;  %18799 = vst [vmem:[#allocation47_spill] sm:$0xff] %v14248_v45  ;;  %v342_v19 = vrot.slane %v14248_v45, 5  ;;  %v14267_v45 = vld [vmem:[%s18509_s0 + $0x38] sm:$0xff] }
  0xc5   : > { %v14243_v13 = vsel %vm4546_vm4, %v4512_v63, %v4513_v57  ;;  %v14262_v63 = vsel %vm4546_vm4, %v4513_v57, %v4514_v11  ;;  %18801 = vst [vmem:[#allocation49_spill] sm:$0xff] %v14267_v45 }
  0xc6   : > { %11037 = vmatmul.mubr.msk.f32.gmra.mrb[2].mxu1 %vm671_vm2, %v501_v28  ;;  %11600 = vmatmul.mubr.msk.f32.gmra.mrb[44].mxu0 %vm671_vm2, %v14196_v40  ;;  %v341_v28 = vrot.slane %v14235_v21, 5  ;;  %18798 = vst [vmem:[#allocation46_spill] sm:$0xff] %v14243_v13  ;;  %18800 = vst [vmem:[#allocation48_spill] sm:$0xff] %v14262_v63  ;;  %v4516_v21 = vrot.slane %v13660_v47, 1  ;;  %v14756_v40 = vld [vmem:[%s18509_s0 + $0x288] sm:$0xff] }
  0xc7   : > { %11039 = vmatprep.mubr.msk.f32.mxu1 %vm671_vm2, %v500_v26  ;;  %11602 = vmatprep.mubr.msk.f32.mxu0 %vm671_vm2, %v14211_v14  ;;  %v498_v26 = vsel %vm420_vm5, %v339_v30, %v340_v23  ;;  %v4515_v14 = vrot.slane %v13655_v51, 1  ;;  %v4545_v3 = vrot.slane %v14756_v40, 1 }
  0xc8   : > { %v497_v30 = vsel %vm420_vm5, %v340_v23, %v341_v28  ;;  %v14280_v23 = vld [vmem:[%s18509_s0 + $0x40] sm:$0xff] }
  0xc9   : > { %18803 = vst [vmem:[#allocation51_spill] sm:$0xff] %v14280_v23  ;;  %v344_v57 = vrot.slane %v14280_v23, 5  ;;  %v14299_v23 = vld [vmem:[%s18509_s0 + $0x48] sm:$0xff] }
  0xca   : > { %11040 = vmatmul.mubr.msk.f32.gmra.mrb[4].mxu1 %vm671_vm2, %v499_v34  ;;  %11603 = vmatmul.mubr.msk.f32.gmra.mrb[46].mxu0 %vm671_vm2, %v14230_v36  ;;  %v343_v34 = vrot.slane %v14267_v45, 5  ;;  %v4517_v36 = vrot.slane %v13687_v0, 1  ;;  %18805 = vst [vmem:[#allocation53_spill] sm:$0xff] %v14299_v23  ;;  %v4518_v45 = vrot.slane %v13692_v53, 1 }
  0xcb   : > { %11042 = vmatprep.mubr.msk.f32.mxu1 %vm671_vm2, %v498_v26  ;;  %11605 = vmatprep.mubr.msk.f32.mxu0 %vm671_vm2, %v14243_v13  ;;  %v496_v26 = vsel %vm420_vm5, %v341_v28, %v342_v19  ;;  %v14275_v13 = vsel %vm4546_vm4, %v4514_v11, %v4515_v14  ;;  %v14294_v28 = vsel %vm4546_vm4, %v4515_v14, %v4516_v21  ;;  %v14312_v14 = vld [vmem:[%s18509_s0 + $0x50] sm:$0xff] }
  0xcc   : > { %18802 = vst [vmem:[#allocation50_spill] sm:$0xff] %v14275_v13  ;;  %v495_v11 = vsel %vm420_vm5, %v342_v19, %v343_v34  ;;  %18804 = vst [vmem:[#allocation52_spill] sm:$0xff] %v14294_v28  ;;  %v346_v19 = vrot.slane %v14312_v14, 5 }
  0xcd   : > { %18807 = vst [vmem:[#allocation55_spill] sm:$0xff] %v14312_v14  ;;  %v14331_v14 = vld [vmem:[%s18509_s0 + $0x58] sm:$0xff] }
  0xce   : > { %11043 = vmatmul.mubr.msk.f32.gmra.mrb[6].mxu1 %vm671_vm2, %v497_v30  ;;  %11606 = vmatmul.mubr.msk.f32.gmra.mrb[48].mxu0 %vm671_vm2, %v14262_v63  ;;  %v345_v30 = vrot.slane %v14299_v23, 5  ;;  %v4519_v63 = vrot.slane %v13719_v49, 1  ;;  %18809 = vst [vmem:[#allocation57_spill] sm:$0xff] %v14331_v14  ;;  %v4520_v23 = vrot.slane %v13724_v59, 1 }
  0xcf   : > { %11045 = vmatprep.mubr.msk.f32.mxu1 %vm671_vm2, %v496_v26  ;;  %11608 = vmatprep.mubr.msk.f32.mxu0 %vm671_vm2, %v14275_v13  ;;  %v494_v26 = vsel %vm420_vm5, %v343_v34, %v344_v57  ;;  %v14307_v13 = vsel %vm4546_vm4, %v4516_v21, %v4517_v36  ;;  %v14326_v34 = vsel %vm4546_vm4, %v4517_v36, %v4518_v45  ;;  %v14344_v36 = vld [vmem:[%s18509_s0 + $0x60] sm:$0xff] }
  0xd0   : > { %18806 = vst [vmem:[#allocation54_spill] sm:$0xff] %v14307_v13  ;;  %v493_v21 = vsel %vm420_vm5, %v344_v57, %v345_v30  ;;  %18808 = vst [vmem:[#allocation56_spill] sm:$0xff] %v14326_v34  ;;  %v348_v57 = vrot.slane %v14344_v36, 5 }
  0xd1   : > { %18811 = vst [vmem:[#allocation59_spill] sm:$0xff] %v14344_v36  ;;  %v14363_v36 = vld [vmem:[%s18509_s0 + $0x68] sm:$0xff] }
  0xd2   : > { %11046 = vmatmul.mubr.msk.f32.gmra.mrb[8].mxu1 %vm671_vm2, %v495_v11  ;;  %11609 = vmatmul.mubr.msk.f32.gmra.mrb[50].mxu0 %vm671_vm2, %v14294_v28  ;;  %v347_v11 = vrot.slane %v14331_v14, 5  ;;  %v4521_v28 = vrot.slane %v13751_v20, 1  ;;  %18813 = vst [vmem:[#allocation61_spill] sm:$0xff] %v14363_v36  ;;  %v4522_v14 = vrot.slane %v13756_v1, 1 }
  0xd3   : > { %11048 = vmatprep.mubr.msk.f32.mxu1 %vm671_vm2, %v494_v26  ;;  %11611 = vmatprep.mubr.msk.f32.mxu0 %vm671_vm2, %v14307_v13  ;;  %v492_v26 = vsel %vm420_vm5, %v345_v30, %v346_v19  ;;  %v14339_v13 = vsel %vm4546_vm4, %v4518_v45, %v4519_v63  ;;  %v14358_v30 = vsel %vm4546_vm4, %v4519_v63, %v4520_v23  ;;  %v14376_v63 = vld [vmem:[%s18509_s0 + $0x70] sm:$0xff] }
  0xd4   : > { %18810 = vst [vmem:[#allocation58_spill] sm:$0xff] %v14339_v13  ;;  %v491_v45 = vsel %vm420_vm5, %v346_v19, %v347_v11  ;;  %18812 = vst [vmem:[#allocation60_spill] sm:$0xff] %v14358_v30  ;;  %v350_v19 = vrot.slane %v14376_v63, 5 }
  0xd5   : > { %18815 = vst [vmem:[#allocation63_spill] sm:$0xff] %v14376_v63  ;;  %v14395_v63 = vld [vmem:[%s18509_s0 + $0x78] sm:$0xff] }
  0xd6   : > { %11049 = vmatmul.mubr.msk.f32.gmra.mrb[10].mxu1 %vm671_vm2, %v493_v21  ;;  %11612 = vmatmul.mubr.msk.f32.gmra.mrb[52].mxu0 %vm671_vm2, %v14326_v34  ;;  %v349_v21 = vrot.slane %v14363_v36, 5  ;;  %v4523_v34 = vrot.slane %v13783_v17, 1  ;;  %18817 = vst [vmem:[#allocation65_spill] sm:$0xff] %v14395_v63  ;;  %v4524_v36 = vrot.slane %v13788_v15, 1 }
  0xd7   : > { %11051 = vmatprep.mubr.msk.f32.mxu1 %vm671_vm2, %v492_v26  ;;  %11614 = vmatprep.mubr.msk.f32.mxu0 %vm671_vm2, %v14339_v13  ;;  %v490_v26 = vsel %vm420_vm5, %v347_v11, %v348_v57  ;;  %v14371_v13 = vsel %vm4546_vm4, %v4520_v23, %v4521_v28  ;;  %v14390_v11 = vsel %vm4546_vm4, %v4521_v28, %v4522_v14  ;;  %v14408_v28 = vld [vmem:[%s18509_s0 + $0x80] sm:$0xff] }
  0xd8   : > { %18814 = vst [vmem:[#allocation62_spill] sm:$0xff] %v14371_v13  ;;  %v489_v23 = vsel %vm420_vm5, %v348_v57, %v349_v21  ;;  %18816 = vst [vmem:[#allocation64_spill] sm:$0xff] %v14390_v11  ;;  %v352_v57 = vrot.slane %v14408_v28, 5 }
  0xd9   : > { %18819 = vst [vmem:[#allocation67_spill] sm:$0xff] %v14408_v28  ;;  %v14427_v28 = vld [vmem:[%s18509_s0 + $0x88] sm:$0xff] }
  0xda   : > { %11052 = vmatmul.mubr.msk.f32.gmra.mrb[12].mxu1 %vm671_vm2, %v491_v45  ;;  %11615 = vmatmul.mubr.msk.f32.gmra.mrb[54].mxu0 %vm671_vm2, %v14358_v30  ;;  %v351_v45 = vrot.slane %v14395_v63, 5  ;;  %v4525_v30 = vrot.slane %v13815_v12, 1  ;;  %18821 = vst [vmem:[#allocation69_spill] sm:$0xff] %v14427_v28  ;;  %v4526_v63 = vrot.slane %v13820_v22, 1 }
  0xdb   : > { %11054 = vmatprep.mubr.msk.f32.mxu1 %vm671_vm2, %v490_v26  ;;  %11617 = vmatprep.mubr.msk.f32.mxu0 %vm671_vm2, %v14371_v13  ;;  %v488_v26 = vsel %vm420_vm5, %v349_v21, %v350_v19  ;;  %v14403_v13 = vsel %vm4546_vm4, %v4522_v14, %v4523_v34  ;;  %v14422_v21 = vsel %vm4546_vm4, %v4523_v34, %v4524_v36  ;;  %v14440_v34 = vld [vmem:[%s18509_s0 + $0x90] sm:$0xff] }
  0xdc   : > { %18818 = vst [vmem:[#allocation66_spill] sm:$0xff] %v14403_v13  ;;  %v487_v14 = vsel %vm420_vm5, %v350_v19, %v351_v45  ;;  %18820 = vst [vmem:[#allocation68_spill] sm:$0xff] %v14422_v21  ;;  %v354_v19 = vrot.slane %v14440_v34, 5 }
  0xdd   : > { %18823 = vst [vmem:[#allocation71_spill] sm:$0xff] %v14440_v34  ;;  %v14459_v34 = vld [vmem:[%s18509_s0 + $0x98] sm:$0xff] }
  0xde   : > { %11055 = vmatmul.mubr.msk.f32.gmra.mrb[14].mxu1 %vm671_vm2, %v489_v23  ;;  %11618 = vmatmul.mubr.msk.f32.gmra.mrb[56].mxu0 %vm671_vm2, %v14390_v11  ;;  %v353_v23 = vrot.slane %v14427_v28, 5  ;;  %v4527_v11 = vrot.slane %v13852_v25, 1  ;;  %18825 = vst [vmem:[#allocation73_spill] sm:$0xff] %v14459_v34  ;;  %v4528_v28 = vrot.slane %v13859_v33, 1 }
  0xdf   : > { %11057 = vmatprep.mubr.msk.f32.mxu1 %vm671_vm2, %v488_v26  ;;  %11620 = vmatprep.mubr.msk.f32.mxu0 %vm671_vm2, %v14403_v13  ;;  %v486_v26 = vsel %vm420_vm5, %v351_v45, %v352_v57  ;;  %v14435_v13 = vsel %vm4546_vm4, %v4524_v36, %v4525_v30  ;;  %v14454_v45 = vsel %vm4546_vm4, %v4525_v30, %v4526_v63  ;;  %v14472_v30 = vld [vmem:[%s18509_s0 + $0xa0] sm:$0xff] }
  0xe0   : > { %18822 = vst [vmem:[#allocation70_spill] sm:$0xff] %v14435_v13  ;;  %v485_v36 = vsel %vm420_vm5, %v352_v57, %v353_v23  ;;  %18824 = vst [vmem:[#allocation72_spill] sm:$0xff] %v14454_v45  ;;  %v356_v57 = vrot.slane %v14472_v30, 5 }
  0xe1   : > { %18827 = vst [vmem:[#allocation75_spill] sm:$0xff] %v14472_v30  ;;  %v14491_v30 = vsel %vm4546_vm4, %v4527_v11, %v4528_v28 }
  0xe2   : > { %11058 = vmatmul.mubr.msk.f32.gmra.mrb[16].mxu1 %vm671_vm2, %v487_v14  ;;  %11621 = vmatmul.mubr.msk.f32.gmra.mrb[58].mxu0 %vm671_vm2, %v14422_v21  ;;  %v355_v14 = vrot.slane %v14459_v34, 5  ;;  %v4529_v21 = vrot.slane %v13886_v31, 1  ;;  %18829 = vst [vmem:[#allocation77_spill] sm:$0xff] %v14491_v30 }
  0xe3   : > { %11060 = vmatprep.mubr.msk.f32.mxu1 %vm671_vm2, %v486_v26  ;;  %11623 = vmatprep.mubr.msk.f32.mxu0 %vm671_vm2, %v14435_v13  ;;  %v484_v26 = vsel %vm420_vm5, %v353_v23, %v354_v19  ;;  %v14467_v13 = vsel %vm4546_vm4, %v4526_v63, %v4527_v11  ;;  %v14482_v23 = vld [vmem:[%s18510_s1 + $0xc] sm:$0xf]  ;;  %v14509_v11 = vld [vmem:[%s18509_s0 + $0xb0] sm:$0xff] }
  0xe4   : > { %18826 = vst [vmem:[#allocation74_spill] sm:$0xff] %v14467_v13  ;;  %18828 = vst [vmem:[#allocation76_spill] sm:$0xff] %v14482_v23  ;;  %v483_v63 = vsel %vm420_vm5, %v354_v19, %v355_v14  ;;  %v358_v19 = vrot.slane %v14509_v11, 5  ;;  %11281 = vmatprep.subr.msk.mxu1 %vm918_vm1, %v14482_v23 }
  0xe5   : > { %18832 = vst [vmem:[#allocation80_spill] sm:$0xff] %v14509_v11  ;;  %v14530_v11 = vld [vmem:[%s18509_s0 + $0xb8] sm:$0xff] }
  0xe6   : > { %11061 = vmatmul.mubr.msk.f32.gmra.mrb[18].mxu1 %vm671_vm2, %v485_v36  ;;  %11624 = vmatmul.mubr.msk.f32.gmra.mrb[60].mxu0 %vm671_vm2, %v14454_v45  ;;  %v14496_v36 = vld [vmem:[%s18509_s0 + $0xa8] sm:$0xff]  ;;  %v4530_v45 = vrot.slane %v13891_v43, 1  ;;  %18834 = vst [vmem:[#allocation82_spill] sm:$0xff] %v14530_v11 }
  0xe7   : > { %11063 = vmatprep.mubr.msk.f32.mxu1 %vm671_vm2, %v484_v26  ;;  %11626 = vmatprep.mubr.msk.f32.mxu0 %vm671_vm2, %v14467_v13  ;;  %18830 = vst [vmem:[#allocation78_spill] sm:$0xff] %v14496_v36  ;;  %v357_v34 = vrot.slane %v14496_v36, 5  ;;  %v482_v26 = vsel %vm420_vm5, %v355_v14, %v356_v57  ;;  %v14504_v13 = vsel %vm4546_vm4, %v4528_v28, %v4529_v21  ;;  %v4532_v36 = vrot.slane %v13923_v52, 1 }
  0xe8   : > { %18831 = vst [vmem:[#allocation79_spill] sm:$0xff] %v14504_v13  ;;  %v14525_v14 = vsel %vm4546_vm4, %v4529_v21, %v4530_v45  ;;  %v14543_v21 = vld [vmem:[%s18509_s0 + $0xc0] sm:$0xff] }
  0xe9   : > { %v481_v28 = vsel %vm420_vm5, %v356_v57, %v357_v34  ;;  %18833 = vst [vmem:[#allocation81_spill] sm:$0xff] %v14525_v14  ;;  %18836 = vst [vmem:[#allocation84_spill] sm:$0xff] %v14543_v21  ;;  %v360_v57 = vrot.slane %v14543_v21, 5  ;;  %v14562_v21 = vld [vmem:[%s18509_s0 + $0xc8] sm:$0xff] }
  0xea   : > { %11064 = vmatmul.mubr.msk.f32.gmra.mrb[20].mxu1 %vm671_vm2, %v483_v63  ;;  %11627 = vmatmul.mubr.msk.f32.gmra.mrb[62].mxu0 %vm671_vm2, %v14491_v30  ;;  %v359_v63 = vrot.slane %v14530_v11, 5  ;;  %v4533_v30 = vrot.slane %v13950_v18, 1  ;;  %18838 = vst [vmem:[#allocation86_spill] sm:$0xff] %v14562_v21  ;;  %v4534_v11 = vrot.slane %v13955_v61, 1 }
  0xeb   : > { %11066 = vmatprep.mubr.msk.f32.mxu1 %vm671_vm2, %v482_v26  ;;  %11629 = vmatprep.mubr.msk.f32.mxu0 %vm671_vm2, %v14504_v13  ;;  %v480_v26 = vsel %vm420_vm5, %v357_v34, %v358_v19  ;;  %v14538_v13 = vsel %vm4546_vm4, %v4530_v45, %v4531_v9  ;;  %v14557_v45 = vsel %vm4546_vm4, %v4531_v9, %v4532_v36  ;;  %v14575_v9 = vld [vmem:[%s18509_s0 + $0xd0] sm:$0xff] }
  0xec   : > { %18835 = vst [vmem:[#allocation83_spill] sm:$0xff] %v14538_v13  ;;  %v479_v34 = vsel %vm420_vm5, %v358_v19, %v359_v63  ;;  %18837 = vst [vmem:[#allocation85_spill] sm:$0xff] %v14557_v45  ;;  %v362_v19 = vrot.slane %v14575_v9, 5 }
  0xed   : > { %18840 = vst [vmem:[#allocation88_spill] sm:$0xff] %v14575_v9  ;;  %v14594_v9 = vld [vmem:[%s18509_s0 + $0xd8] sm:$0xff] }
  0xee   : > { %11067 = vmatmul.mubr.msk.f32.gmra.mrb[22].mxu1 %vm671_vm2, %v481_v28  ;;  %11630 = vmatmul.mubr.msk.f32.gmra.mrb[64].mxu0 %vm671_vm2, %v14525_v14  ;;  %v361_v28 = vrot.slane %v14562_v21, 5  ;;  %v4535_v14 = vrot.slane %v13982_v50, 1  ;;  %18842 = vst [vmem:[#allocation90_spill] sm:$0xff] %v14594_v9  ;;  %v4536_v21 = vrot.slane %v13987_v16, 1 }
  0xef   : > { %11069 = vmatprep.mubr.msk.f32.mxu1 %vm671_vm2, %v480_v26  ;;  %11632 = vmatprep.mubr.msk.f32.mxu0 %vm671_vm2, %v14538_v13  ;;  %v478_v26 = vsel %vm420_vm5, %v359_v63, %v360_v57  ;;  %v14570_v13 = vsel %vm4546_vm4, %v4532_v36, %v4533_v30  ;;  %v14589_v63 = vsel %vm4546_vm4, %v4533_v30, %v4534_v11  ;;  %v14607_v30 = vld [vmem:[%s18509_s0 + $0xe0] sm:$0xff] }
  0xf0   : > { %18839 = vst [vmem:[#allocation87_spill] sm:$0xff] %v14570_v13  ;;  %v477_v36 = vsel %vm420_vm5, %v360_v57, %v361_v28  ;;  %18841 = vst [vmem:[#allocation89_spill] sm:$0xff] %v14589_v63  ;;  %v364_v57 = vrot.slane %v14607_v30, 5 }
  0xf1   : > { %18844 = vst [vmem:[#allocation92_spill] sm:$0xff] %v14607_v30  ;;  %v14626_v30 = vld [vmem:[%s18509_s0 + $0xe8] sm:$0xff] }
  0xf2   : > { %11070 = vmatmul.mubr.msk.f32.gmra.mrb[24].mxu1 %vm671_vm2, %v479_v34  ;;  %11633 = vmatmul.mubr.msk.f32.gmra.mrb[66].mxu0 %vm671_vm2, %v14557_v45  ;;  %v363_v34 = vrot.slane %v14594_v9, 5  ;;  %v4537_v45 = vrot.slane %v14014_v56, 1  ;;  %18846 = vst [vmem:[#allocation94_spill] sm:$0xff] %v14626_v30  ;;  %v4538_v9 = vrot.slane %v14019_v32, 1 }
  0xf3   : > { %11072 = vmatprep.mubr.msk.f32.mxu1 %vm671_vm2, %v478_v26  ;;  %11635 = vmatprep.mubr.msk.f32.mxu0 %vm671_vm2, %v14570_v13  ;;  %v476_v26 = vsel %vm420_vm5, %v361_v28, %v362_v19  ;;  %v14602_v13 = vsel %vm4546_vm4, %v4534_v11, %v4535_v14  ;;  %v14621_v28 = vsel %vm4546_vm4, %v4535_v14, %v4536_v21  ;;  %v14639_v14 = vld [vmem:[%s18509_s0 + $0xf0] sm:$0xff] }
  0xf4   : > { %18843 = vst [vmem:[#allocation91_spill] sm:$0xff] %v14602_v13  ;;  %v475_v11 = vsel %vm420_vm5, %v362_v19, %v363_v34  ;;  %18845 = vst [vmem:[#allocation93_spill] sm:$0xff] %v14621_v28  ;;  %v366_v19 = vrot.slane %v14639_v14, 5 }
  0xf5   : > { %18848 = vst [vmem:[#allocation96_spill] sm:$0xff] %v14639_v14  ;;  %v14658_v14 = vld [vmem:[%s18509_s0 + $0xf8] sm:$0xff] }
  0xf6   : > { %11073 = vmatmul.mubr.msk.f32.gmra.mrb[26].mxu1 %vm671_vm2, %v477_v36  ;;  %11636 = vmatmul.mubr.msk.f32.gmra.mrb[68].mxu0 %vm671_vm2, %v14589_v63  ;;  %v365_v36 = vrot.slane %v14626_v30, 5  ;;  %v4539_v63 = vrot.slane %v14046_v62, 1  ;;  %18850 = vst [vmem:[#allocation98_spill] sm:$0xff] %v14658_v14  ;;  %v4540_v30 = vrot.slane %v14051_v46, 1 }
  0xf7   : > { %11075 = vmatprep.mubr.msk.f32.mxu1 %vm671_vm2, %v476_v26  ;;  %11638 = vmatprep.mubr.msk.f32.mxu0 %vm671_vm2, %v14602_v13  ;;  %v474_v26 = vsel %vm420_vm5, %v363_v34, %v364_v57  ;;  %v14634_v13 = vsel %vm4546_vm4, %v4536_v21, %v4537_v45  ;;  %v14653_v34 = vsel %vm4546_vm4, %v4537_v45, %v4538_v9  ;;  %v14671_v45 = vld [vmem:[%s18509_s0 + $0x100] sm:$0xff] }
  0xf8   : > { %18847 = vst [vmem:[#allocation95_spill] sm:$0xff] %v14634_v13  ;;  %v473_v21 = vsel %vm420_vm5, %v364_v57, %v365_v36  ;;  %18849 = vst [vmem:[#allocation97_spill] sm:$0xff] %v14653_v34  ;;  %v368_v57 = vrot.slane %v14671_v45, 5 }
  0xf9   : > { %18852 = vst [vmem:[#allocation100_spill] sm:$0xff] %v14671_v45  ;;  %v14690_v45 = vld [vmem:[%s18509_s0 + $0x108] sm:$0xff] }
  0xfa   : > { %11076 = vmatmul.mubr.msk.f32.gmra.mrb[28].mxu1 %vm671_vm2, %v475_v11  ;;  %11639 = vmatmul.mubr.msk.f32.gmra.mrb[70].mxu0 %vm671_vm2, %v14621_v28  ;;  %v367_v11 = vrot.slane %v14658_v14, 5  ;;  %v4541_v28 = vrot.slane %v14078_v6, 1  ;;  %18854 = vst [vmem:[#allocation102_spill] sm:$0xff] %v14690_v45 }
  0xfb   : > { %11078 = vmatprep.mubr.msk.f32.mxu1 %vm671_vm2, %v474_v26  ;;  %11641 = vmatprep.mubr.msk.f32.mxu0 %vm671_vm2, %v14634_v13  ;;  %v472_v26 = vsel %vm420_vm5, %v365_v36, %v366_v19  ;;  %v14666_v13 = vsel %vm4546_vm4, %v4538_v9, %v4539_v63  ;;  %v14685_v36 = vsel %vm4546_vm4, %v4539_v63, %v4540_v30 }
  0xfc   : > { %18851 = vst [vmem:[#allocation99_spill] sm:$0xff] %v14666_v13  ;;  %v471_v9 = vsel %vm420_vm5, %v366_v19, %v367_v11  ;;  %18853 = vst [vmem:[#allocation101_spill] sm:$0xff] %v14685_v36  ;;  %v470_v19 = vsel %vm420_vm5, %v367_v11, %v368_v57  ;;  %v14703_v63 = vsel %vm4546_vm4, %v4540_v30, %v4541_v28 }
  0xfd   : > { %18855 = vst [vmem:[#allocation103_spill] sm:$0xff] %v14703_v63 }
  0xfe   : > { %11079 = vmatmul.mubr.msk.f32.gmra.mrb[30].mxu1 %vm671_vm2, %v473_v21  ;;  %11642 = vmatmul.mubr.msk.f32.gmra.mrb[72].mxu0 %vm671_vm2, %v14653_v34  ;;  %v369_v21 = vrot.slane %v14690_v45, 5  ;;  %v14714_v34 = vld [vmem:[%s18509_s0 + $0x278] sm:$0xff] }
  0xff   : > { %11081 = vmatprep.mubr.msk.f32.mxu1 %vm671_vm2, %v472_v26  ;;  %11644 = vmatprep.mubr.msk.f32.mxu0 %vm671_vm2, %v14666_v13  ;;  %v14696_v26 = vld [vmem:[%s18509_s0 + $0x270] sm:$0xff]  ;;  %v4543_v23 = vrot.slane %v14714_v34, 1 }
 0x100   : > { %v4542_v14 = vrot.slane %v14696_v26, 1  ;;  %v14708_v13 = vld [vmem:[%s18509_s0 + $0x110] sm:$0xff]  ;;  %v469_v30 = vsel %vm420_vm5, %v368_v57, %v369_v21 }
 0x101   : > { %18856 = vst [vmem:[#allocation104_spill] sm:$0xff] %v14708_v13  ;;  %v370_v45 = vrot.slane %v14708_v13, 5  ;;  %v14732_v13 = vld [vmem:[%s18509_s0 + $0x118] sm:$0xff] }
 0x102   : > { %11082 = vmatmul.mubr.msk.f32.gmra.mrb[32].mxu1 %vm671_vm2, %v471_v9  ;;  %11645 = vmatmul.mubr.msk.f32.gmra.mrb[74].mxu0 %vm671_vm2, %v14685_v36  ;;  %v14727_v11 = vsel %vm4546_vm4, %v4541_v28, %v4542_v14  ;;  %18857 = vst [vmem:[#allocation105_spill] sm:$0xff] %v14732_v13  ;;  %v371_v9 = vrot.slane %v14732_v13, 5  ;;  %v14745_v28 = vsel %vm4546_vm4, %v4542_v14, %v4543_v23  ;;  %v14750_v36 = vld [vmem:[%s18509_s0 + $0x120] sm:$0xff] }
 0x103   : > { %11084 = vmatprep.mubr.msk.f32.mxu1 %vm671_vm2, %v470_v19  ;;  %11647 = vmatprep.mubr.msk.f32.mxu0 %vm671_vm2, %v14703_v63  ;;  %v14738_v19 = vld [vmem:[%s18509_s0 + $0x280] sm:$0xff]  ;;  %v468_v57 = vsel %vm420_vm5, %v369_v21, %v370_v45  ;;  %18858 = vst [vmem:[#allocation106_spill] sm:$0xff] %v14745_v28  ;;  %18859 = vst [vmem:[#allocation107_spill] sm:$0xff] %v14750_v36  ;;  %v372_v13 = vrot.slane %v14750_v36, 5  ;;  %v14774_v36 = vld [vmem:[%s18509_s0 + $0x128] sm:$0xff] }
 0x104   : > { %v4544_v63 = vrot.slane %v14738_v19, 1  ;;  %v467_v14 = vsel %vm420_vm5, %v370_v45, %v371_v9  ;;  %18860 = vst [vmem:[#allocation108_spill] sm:$0xff] %v14774_v36  ;;  %v14786_v45 = vld [vmem:[%s18509_s0 + $0x130] sm:$0xff] }
 0x105   : > { %18861 = vst [vmem:[#allocation109_spill] sm:$0xff] %v14786_v45 }
 0x106   : > { %11085 = vmatmul.mubr.msk.f32.gmra.mrb[34].mxu1 %vm671_vm2, %v469_v30  ;;  %11648 = vmatmul.mubr.msk.f32.gmra.mrb[76].mxu0 %vm671_vm2, %v14727_v11  ;;  %v14769_v21 = vsel %vm4546_vm4, %v4543_v23, %v4544_v63  ;;  %v373_v30 = vrot.slane %v14774_v36, 5  ;;  %v374_v23 = vrot.slane %v14786_v45, 5 }
 0x107   : > { %11087 = vmatprep.mubr.msk.f32.mxu1 %vm671_vm2, %v468_v57  ;;  %11650 = vmatprep.mubr.msk.f32.mxu0 %vm671_vm2, %v14745_v28  ;;  %v466_v57 = vsel %vm420_vm5, %v371_v9, %v372_v13  ;;  %v14781_v28 = vsel %vm4546_vm4, %v4544_v63, %v4545_v3  ;;  %v18862_v9 = vrot.slane %v12965_v2, 1 }
 0x108   : > { %v465_v63 = vsel %vm420_vm5, %v372_v13, %v373_v30  ;;  %v14814_v13 = vld [vmem:[%s18509_s0 + $0x140] sm:$0xff] }
 0x109   : > { %v14801_v36 = vsel %vm4546_vm4, %v4545_v3, %v18862_v9  ;;  %v376_v2 = vrot.slane %v14814_v13, 5 }
 0x10a   : > { %11088 = vmatmul.mubr.msk.f32.gmra.mrb[36].mxu1 %vm671_vm2, %v467_v14  ;;  %11651 = vmatmul.mubr.msk.f32.gmra.mrb[78].mxu0 %vm671_vm2, %v14769_v21  ;;  %v14806_v14 = vld [vmem:[%s18509_s0 + $0x138] sm:$0xff] }
 0x10b   : > { %11090 = vmatprep.mubr.msk.f32.mxu1 %vm671_vm2, %v466_v57  ;;  %11653 = vmatprep.mubr.msk.f32.mxu0 %vm671_vm2, %v14781_v28  ;;  %v375_v45 = vrot.slane %v14806_v14, 5  ;;  %v464_v57 = vsel %vm420_vm5, %v373_v30, %v374_v23  ;;  %v14828_v30 = vld [vmem:[%s18509_s0 + $0x148] sm:$0xff] }
 0x10c   : > { %18863 = vst [vmem:[#allocation110_spill] sm:$0xff] %v14828_v30  ;;  %v377_v9 = vrot.slane %v14828_v30, 5  ;;  %v18866_v30 = vld [vmem:[#allocation8_spill] sm:$0xff] }
 0x10d   : > { %v463_v3 = vsel %vm420_vm5, %v374_v23, %v375_v45  ;;  %v14850_v23 = vld [vmem:[%s18509_s0 + $0x158] sm:$0xff] }
 0x10e   : > { %11091 = vmatmul.mubr.msk.f32.gmra.mrb[38].mxu1 %vm671_vm2, %v465_v63  ;;  %11654 = vmatmul.mubr.msk.f32.gmra.mrb[80].mxu0 %vm671_vm2, %v14801_v36  ;;  %v462_v63 = vsel %vm420_vm5, %v375_v45, %v376_v2  ;;  %v461_v45 = vsel %vm420_vm5, %v376_v2, %v377_v9  ;;  %18865 = vst [vmem:[#allocation112_spill] sm:$0xff] %v14850_v23 }
 0x10f   : > { %11093 = vmatprep.mubr.msk.f32.mxu1 %vm671_vm2, %v464_v57  ;;  %11658 = vmatprep.mubr.msk.f32.mxu0 %vm671_vm2, %v13525_v27  ;;  %v14836_v57 = vld [vmem:[%s18509_s0 + $0x150] sm:$0xff] }
 0x110   : > { %18864 = vst [vmem:[#allocation111_spill] sm:$0xff] %v14836_v57  ;;  %v378_v27 = vrot.slane %v14836_v57, 5  ;;  %v379_v57 = vrot.slane %v14850_v23, 5 }
 0x112   : > { %11094 = vmatmul.mubr.msk.f32.gmra.mrb[40].mxu1 %vm671_vm2, %v463_v3  ;;  %11659 = vmatmul.mubr.msk.f32.vlgmr.msra.gmra.mrb[0].mxu0 %vm671_vm2, %v13542_v35  ;;  %v460_v35 = vsel %vm420_vm5, %v377_v9, %v378_v27  ;;  %v18868_v3 = vld [vmem:[#allocation9_spill] sm:$0xff]  ;;  %v14874_v9 = vld [vmem:[%s18509_s0 + $0x168] sm:$0xff] }
 0x113   : > { %11782 = vmatpush3.msk.msra.mxu0 %vm918_vm1, %v13828_v44  ;;  %11096 = vmatprep.mubr.msk.f32.mxu1 %vm671_vm2, %v462_v63  ;;  %v14860_v44 = vld [vmem:[%s18509_s0 + $0x160] sm:$0xff]  ;;  %18870 = vst [vmem:[#allocation9_spill] sm:$0xff] %v14874_v9 }
 0x114   : > { %11661 = vmatprep.mubr.msk.f32.mxu0 %vm671_vm2, %v18866_v30  ;;  %18867 = vst [vmem:[#allocation8_spill] sm:$0xff] %v14860_v44  ;;  %v380_v2 = vrot.slane %v14860_v44, 5  ;;  %v18869_v63 = vld [vmem:[#allocation10_spill] sm:$0xff]  ;;  %v459_v30 = vsel %vm420_vm5, %v378_v27, %v379_v57  ;;  %v381_v44 = vrot.slane %v14874_v9, 5  ;;  %v18872_v27 = vld [vmem:[#allocation11_spill] sm:$0xff]  ;;  %v14896_v9 = vld [vmem:[%s18509_s0 + $0x178] sm:$0xff] }
 0x115   : > { %18874 = vst [vmem:[#allocation11_spill] sm:$0xff] %v14896_v9 }
 0x116   : > { %11097 = vmatmul.mubr.msk.f32.gmra.mrb[42].mxu1 %vm671_vm2, %v461_v45  ;;  %11662 = vmatmul.mubr.msk.f32.gmra.mrb[2].mxu0 %vm671_vm2, %v18868_v3  ;;  %v458_v45 = vsel %vm420_vm5, %v379_v57, %v380_v2  ;;  %v457_v57 = vsel %vm420_vm5, %v380_v2, %v381_v44  ;;  %v18876_v2 = vld [vmem:[#allocation13_spill] sm:$0xff] }
 0x117   : > { %11099 = vmatprep.mubr.msk.f32.mxu1 %vm671_vm2, %v460_v35  ;;  %11664 = vmatprep.mubr.msk.f32.mxu0 %vm671_vm2, %v18869_v63  ;;  %v14882_v35 = vld [vmem:[%s18509_s0 + $0x170] sm:$0xff] }
 0x118   : > { %18871 = vst [vmem:[#allocation10_spill] sm:$0xff] %v14882_v35  ;;  %v382_v3 = vrot.slane %v14882_v35, 5  ;;  %v18873_v63 = vld [vmem:[#allocation12_spill] sm:$0xff]  ;;  %v383_v35 = vrot.slane %v14896_v9, 5  ;;  %v385_v9 = vrot.slane %v13623_v55, 5  ;;  %v387_v55 = vrot.slane %v13655_v51, 5 }
 0x119   : > { %v389_v51 = vrot.slane %v13687_v0, 5  ;;  %v391_v0 = vrot.slane %v13719_v49, 5  ;;  %v393_v49 = vrot.slane %v13751_v20, 5  ;;  %v395_v20 = vrot.slane %v13783_v17, 5 }
 0x11a   : > { %11100 = vmatmul.mubr.msk.f32.gmra.mrb[44].mxu1 %vm671_vm2, %v459_v30  ;;  %11665 = vmatmul.mubr.msk.f32.gmra.mrb[4].mxu0 %vm671_vm2, %v18872_v27  ;;  %v456_v30 = vsel %vm420_vm5, %v381_v44, %v382_v3  ;;  %v455_v44 = vsel %vm420_vm5, %v382_v3, %v383_v35 }
 0x11b   : > { %11102 = vmatprep.mubr.msk.f32.mxu1 %vm671_vm2, %v458_v45  ;;  %11667 = vmatprep.mubr.msk.f32.mxu0 %vm671_vm2, %v18873_v63  ;;  %v14904_v45 = vld [vmem:[%s18509_s0 + $0x180] sm:$0xff] }
 0x11c   : > { %18875 = vst [vmem:[#allocation12_spill] sm:$0xff] %v14904_v45  ;;  %v384_v27 = vrot.slane %v14904_v45, 5  ;;  %v18877_v63 = vld [vmem:[#allocation14_spill] sm:$0xff]  ;;  %v386_v45 = vrot.slane %v13628_v41, 5  ;;  %v388_v41 = vrot.slane %v13660_v47, 5  ;;  %v390_v47 = vrot.slane %v13692_v53, 5 }
 0x11d   : > { %v392_v53 = vrot.slane %v13724_v59, 5  ;;  %v394_v59 = vrot.slane %v13756_v1, 5  ;;  %v396_v1 = vrot.slane %v13788_v15, 5  ;;  %v397_v15 = vrot.slane %v13815_v12, 5 }
 0x11e   : > { %11103 = vmatmul.mubr.msk.f32.gmra.mrb[46].mxu1 %vm671_vm2, %v457_v57  ;;  %11668 = vmatmul.mubr.msk.f32.gmra.mrb[6].mxu0 %vm671_vm2, %v18876_v2  ;;  %v454_v23 = vsel %vm420_vm5, %v383_v35, %v384_v27  ;;  %v18878_v57 = vld [vmem:[#allocation15_spill] sm:$0xff]  ;;  %v453_v3 = vsel %vm420_vm5, %v384_v27, %v385_v9  ;;  %v452_v35 = vsel %vm420_vm5, %v385_v9, %v386_v45  ;;  %v18880_v2 = vld [vmem:[#allocation17_spill] sm:$0xff] }
 0x11f   : > { %11105 = vmatprep.mubr.msk.f32.mxu1 %vm671_vm2, %v456_v30  ;;  %11670 = vmatprep.mubr.msk.f32.mxu0 %vm671_vm2, %v18877_v63  ;;  %v18879_v30 = vld [vmem:[#allocation16_spill] sm:$0xff]  ;;  %v451_v27 = vsel %vm420_vm5, %v386_v45, %v387_v55  ;;  %v450_v9 = vsel %vm420_vm5, %v387_v55, %v388_v41  ;;  %v18882_v63 = vld [vmem:[#allocation19_spill] sm:$0xff]  ;;  %v449_v45 = vsel %vm420_vm5, %v388_v41, %v389_v51 }
 0x120   : > { %v447_v55 = vsel %vm420_vm5, %v390_v47, %v391_v0  ;;  %v18886_v41 = vld [vmem:[#allocation23_spill] sm:$0xff]  ;;  %v443_v17 = vsel %vm420_vm5, %v394_v59, %v395_v20  ;;  %v441_v12 = vsel %vm420_vm5, %v396_v1, %v397_v15 }
 0x122   : > { %11106 = vmatmul.mubr.msk.f32.gmra.mrb[48].mxu1 %vm671_vm2, %v455_v44  ;;  %11671 = vmatmul.mubr.msk.f32.gmra.mrb[8].mxu0 %vm671_vm2, %v18878_v57  ;;  %v18883_v44 = vld [vmem:[#allocation20_spill] sm:$0xff]  ;;  %v448_v57 = vsel %vm420_vm5, %v389_v51, %v390_v47  ;;  %v18888_v51 = vld [vmem:[#allocation25_spill] sm:$0xff]  ;;  %v18889_v47 = vld [vmem:[#allocation26_spill] sm:$0xff] }
 0x123   : > { %11108 = vmatprep.mubr.msk.f32.mxu1 %vm671_vm2, %v454_v23  ;;  %11673 = vmatprep.mubr.msk.f32.mxu0 %vm671_vm2, %v18879_v30  ;;  %v18881_v23 = vld [vmem:[#allocation18_spill] sm:$0xff]  ;;  %v18884_v30 = vld [vmem:[#allocation21_spill] sm:$0xff] }
 0x126   : > { %11109 = vmatmul.mubr.msk.f32.gmra.mrb[50].mxu1 %vm671_vm2, %v453_v3  ;;  %11674 = vmatmul.mubr.msk.f32.gmra.mrb[10].mxu0 %vm671_vm2, %v18880_v2  ;;  %v18885_v3 = vld [vmem:[#allocation22_spill] sm:$0xff]  ;;  %v18887_v2 = vld [vmem:[#allocation24_spill] sm:$0xff] }
 0x127   : > { %11111 = vmatprep.mubr.msk.f32.mxu1 %vm671_vm2, %v452_v35  ;;  %11676 = vmatprep.mubr.msk.f32.mxu0 %vm671_vm2, %v18881_v23  ;;  %v446_v35 = vsel %vm420_vm5, %v391_v0, %v392_v53  ;;  %v445_v23 = vsel %vm420_vm5, %v392_v53, %v393_v49  ;;  %v18891_v0 = vld [vmem:[#allocation28_spill] sm:$0xff]  ;;  %v400_v53 = vrot.slane %v13859_v33, 5  ;;  %v402_v33 = vrot.slane %v13891_v43, 5 }
 0x128   : > { %v404_v43 = vrot.slane %v13923_v52, 5  ;;  %v406_v52 = vrot.slane %v13955_v61, 5  ;;  %v408_v61 = vrot.slane %v13987_v16, 5  ;;  %v410_v16 = vrot.slane %v14019_v32, 5 }
 0x129   : > { %v412_v32 = vrot.slane %v14051_v46, 5  ;;  %v414_v46 = vrot.slane %v14696_v26, 5  ;;  %v2201_v26 = vrot.slane %v14738_v19, 7 }
 0x12a   : > { %11112 = vmatmul.mubr.msk.f32.gmra.mrb[52].mxu1 %vm671_vm2, %v451_v27  ;;  %11677 = vmatmul.mubr.msk.f32.gmra.mrb[12].mxu0 %vm671_vm2, %v18882_v63  ;;  %v444_v27 = vsel %vm420_vm5, %v393_v49, %v394_v59  ;;  %v442_v63 = vsel %vm420_vm5, %v395_v20, %v396_v1  ;;  %v18895_v59 = vld [vmem:[#allocation32_spill] sm:$0xff]  ;;  %v18897_v20 = vld [vmem:[#allocation34_spill] sm:$0xff] }
 0x12b   : > { %11114 = vmatprep.mubr.msk.f32.mxu1 %vm671_vm2, %v450_v9  ;;  %11679 = vmatprep.mubr.msk.f32.mxu0 %vm671_vm2, %v18883_v44  ;;  %v14985_v9 = vld [vmem:[%s18510_s1 + $0x20] sm:$0xf]  ;;  %v398_v44 = vrot.slane %v13820_v22, 5 }
 0x12c   : > { %11906 = vmatprep.subr.msk.mxu0 %vm918_vm1, %v14985_v9 }
 0x12d   : > { %v440_v22 = vsel %vm420_vm5, %v397_v15, %v398_v44 }
 0x12e   : > { %11115 = vmatmul.mubr.msk.f32.gmra.mrb[54].mxu1 %vm671_vm2, %v449_v45  ;;  %11680 = vmatmul.mubr.msk.f32.gmra.mrb[14].mxu0 %vm671_vm2, %v18884_v30  ;;  %v18890_v45 = vld [vmem:[#allocation27_spill] sm:$0xff]  ;;  %v18892_v30 = vld [vmem:[#allocation29_spill] sm:$0xff] }
 0x12f   : > { %11117 = vmatprep.mubr.msk.f32.mxu1 %vm671_vm2, %v448_v57  ;;  %11682 = vmatprep.mubr.msk.f32.mxu0 %vm671_vm2, %v18885_v3  ;;  %v399_v57 = vrot.slane %v13852_v25, 5  ;;  %v18893_v3 = vld [vmem:[#allocation30_spill] sm:$0xff]  ;;  %v401_v25 = vrot.slane %v13886_v31, 5  ;;  %v403_v31 = vrot.slane %v13918_v39, 5  ;;  %v405_v39 = vrot.slane %v13950_v18, 5 }
 0x130   : > { %v407_v18 = vrot.slane %v13982_v50, 5  ;;  %v409_v50 = vrot.slane %v14014_v56, 5  ;;  %v411_v56 = vrot.slane %v14046_v62, 5  ;;  %v413_v62 = vrot.slane %v14078_v6, 5 }
 0x131   : > { %v438_v49 = vsel %vm420_vm5, %v399_v57, %v400_v53  ;;  %v434_v1 = vsel %vm420_vm5, %v403_v31, %v404_v43  ;;  %v432_v15 = vsel %vm420_vm5, %v405_v39, %v406_v52 }
 0x132   : > { %11118 = vmatmul.mubr.msk.f32.gmra.mrb[56].mxu1 %vm671_vm2, %v447_v55  ;;  %11683 = vmatmul.mubr.msk.f32.gmra.mrb[16].mxu0 %vm671_vm2, %v18886_v41  ;;  %v439_v55 = vsel %vm420_vm5, %v398_v44, %v399_v57  ;;  %v437_v41 = vsel %vm420_vm5, %v400_v53, %v401_v25  ;;  %v18901_v44 = vld [vmem:[#allocation38_spill] sm:$0xff]  ;;  %v428_v57 = vsel %vm420_vm5, %v409_v50, %v410_v16 }
 0x133   : > { %11120 = vmatprep.mubr.msk.f32.mxu1 %vm671_vm2, %v446_v35  ;;  %11685 = vmatprep.mubr.msk.f32.mxu0 %vm671_vm2, %v18887_v2  ;;  %v18894_v35 = vld [vmem:[#allocation31_spill] sm:$0xff]  ;;  %v436_v2 = vsel %vm420_vm5, %v401_v25, %v402_v33  ;;  %v424_v6 = vsel %vm420_vm5, %v413_v62, %v414_v46 }
 0x136   : > { %11121 = vmatmul.mubr.msk.f32.gmra.mrb[58].mxu1 %vm671_vm2, %v445_v23  ;;  %11686 = vmatmul.mubr.msk.f32.gmra.mrb[18].mxu0 %vm671_vm2, %v18888_v51  ;;  %v18896_v23 = vld [vmem:[#allocation33_spill] sm:$0xff]  ;;  %v18898_v51 = vld [vmem:[#allocation35_spill] sm:$0xff] }
 0x137   : > { %11123 = vmatprep.mubr.msk.f32.mxu1 %vm671_vm2, %v444_v27  ;;  %11688 = vmatprep.mubr.msk.f32.mxu0 %vm671_vm2, %v18889_v47  ;;  %v435_v27 = vsel %vm420_vm5, %v402_v33, %v403_v31  ;;  %v18899_v47 = vld [vmem:[#allocation36_spill] sm:$0xff] }
 0x13a   : > { %11124 = vmatmul.mubr.msk.f32.gmra.mrb[60].mxu1 %vm671_vm2, %v443_v17  ;;  %11689 = vmatmul.mubr.msk.f32.gmra.mrb[20].mxu0 %vm671_vm2, %v18890_v45  ;;  %v433_v17 = vsel %vm420_vm5, %v404_v43, %v405_v39  ;;  %v431_v45 = vsel %vm420_vm5, %v406_v52, %v407_v18  ;;  %v18915_v39 = vld [vmem:[#allocation48_spill] sm:$0xff] }
 0x13b   : > { %11126 = vmatprep.mubr.msk.f32.mxu1 %vm671_vm2, %v442_v63  ;;  %11691 = vmatprep.mubr.msk.f32.mxu0 %vm671_vm2, %v18891_v0  ;;  %v18900_v63 = vld [vmem:[#allocation37_spill] sm:$0xff]  ;;  %v430_v0 = vsel %vm420_vm5, %v407_v18, %v408_v61  ;;  %v18918_v18 = vld [vmem:[#allocation51_spill] sm:$0xff] }
 0x13e   : > { %11127 = vmatmul.mubr.msk.f32.gmra.mrb[62].mxu1 %vm671_vm2, %v441_v12  ;;  %11692 = vmatmul.mubr.msk.f32.gmra.mrb[22].mxu0 %vm671_vm2, %v18892_v30  ;;  %v429_v12 = vsel %vm420_vm5, %v408_v61, %v409_v50  ;;  %v18907_v30 = vld [vmem:[#allocation76_spill] sm:$0xff] }
 0x13f   : > { %11129 = vmatprep.mubr.msk.f32.mxu1 %vm671_vm2, %v440_v22  ;;  %11694 = vmatprep.mubr.msk.f32.mxu0 %vm671_vm2, %v18893_v3  ;;  %v2202_v22 = vrot.slane %v14756_v40, 7  ;;  %v18905_v40 = vld [vmem:[#allocation39_spill] sm:$0xff]  ;;  %v18919_v61 = vld [vmem:[#allocation52_spill] sm:$0xff] }
 0x140   : > { %v2123_v53 = vrot.slane %v18905_v40, 7 }
 0x142   : > { %11130 = vmatmul.mubr.msk.f32.gmra.mrb[64].mxu1 %vm671_vm2, %v439_v55  ;;  %11695 = vmatmul.mubr.msk.f32.gmra.mrb[24].mxu0 %vm671_vm2, %v18894_v35  ;;  %v18909_v55 = vld [vmem:[#allocation42_spill] sm:$0xff]  ;;  %v15165_v35 = vld [vmem:[%s18510_s1 + $0x10] sm:$0xf] }
 0x143   : > { %11132 = vmatprep.mubr.msk.f32.mxu1 %vm671_vm2, %v438_v49  ;;  %11697 = vmatprep.mubr.msk.f32.mxu0 %vm671_vm2, %v18895_v59  ;;  %v18910_v49 = vld [vmem:[#allocation43_spill] sm:$0xff]  ;;  %v18911_v59 = vld [vmem:[#allocation44_spill] sm:$0xff] }
 0x144   : > { %v2125_v33 = vrot.slane %v18910_v49, 7  ;;  %v18934_v49 = vld [vmem:[#allocation67_spill] sm:$0xff] }
 0x146   : > { %11133 = vmatmul.mubr.msk.f32.gmra.mrb[66].mxu1 %vm671_vm2, %v437_v41  ;;  %11698 = vmatmul.mubr.msk.f32.gmra.mrb[26].mxu0 %vm671_vm2, %v18896_v23  ;;  %v18912_v41 = vld [vmem:[#allocation46_spill] sm:$0xff] }
 0x147   : > { %11135 = vmatprep.mubr.msk.f32.mxu1 %vm671_vm2, %v436_v2  ;;  %11700 = vmatprep.mubr.msk.f32.mxu0 %vm671_vm2, %v18897_v20  ;;  %v18913_v2 = vld [vmem:[#allocation45_spill] sm:$0xff]  ;;  %v18914_v20 = vld [vmem:[#allocation47_spill] sm:$0xff] }
 0x148   : > { %v2126_v43 = vrot.slane %v18913_v2, 7 }
 0x14a   : > { %11136 = vmatmul.mubr.msk.f32.gmra.mrb[68].mxu1 %vm671_vm2, %v435_v27  ;;  %11701 = vmatmul.mubr.msk.f32.gmra.mrb[28].mxu0 %vm671_vm2, %v18898_v51  ;;  %v2127_v27 = vrot.slane %v18914_v20, 7  ;;  %v15197_v52 = vsel %vm2203_vm6, %v2125_v33, %v2126_v43  ;;  %v18917_v51 = vld [vmem:[#allocation49_spill] sm:$0xff] }
 0x14b   : > { %11138 = vmatprep.mubr.msk.f32.mxu1 %vm671_vm2, %v434_v1  ;;  %11703 = vmatprep.mubr.msk.f32.mxu0 %vm671_vm2, %v18899_v47  ;;  %v18916_v1 = vld [vmem:[#allocation50_spill] sm:$0xff]  ;;  %v2128_v47 = vrot.slane %v18917_v51, 7  ;;  %v18939_v51 = vld [vmem:[#allocation72_spill] sm:$0xff] }
 0x14e   : > { %11139 = vmatmul.mubr.msk.f32.gmra.mrb[70].mxu1 %vm671_vm2, %v433_v17  ;;  %11704 = vmatmul.mubr.msk.f32.gmra.mrb[30].mxu0 %vm671_vm2, %v18900_v63  ;;  %v15202_v17 = vsel %vm2203_vm6, %v2126_v43, %v2127_v27  ;;  %v18920_v63 = vld [vmem:[#allocation54_spill] sm:$0xff]  ;;  %v18937_v43 = vld [vmem:[#allocation69_spill] sm:$0xff] }
 0x14f   : > { %11141 = vmatprep.mubr.msk.f32.mxu1 %vm671_vm2, %v432_v15  ;;  %11706 = vmatprep.mubr.msk.f32.mxu0 %vm671_vm2, %v18901_v44  ;;  %v2129_v15 = vrot.slane %v18918_v18, 7  ;;  %v15215_v44 = vsel %vm2203_vm6, %v2127_v27, %v2128_v47  ;;  %v2138_v20 = vrot.slane %v18937_v43, 7  ;;  %v18955_v43 = vld [vmem:[#allocation88_spill] sm:$0xff] }
 0x152   : > { %11142 = vmatmul.mubr.msk.f32.gmra.mrb[72].mxu1 %vm671_vm2, %v431_v45  ;;  %11707 = vmatmul.mubr.msk.f32.gmra.mrb[32].mxu0 %vm671_vm2, %v14063_v38  ;;  %v427_v38 = vsel %vm420_vm5, %v410_v16, %v411_v56  ;;  %v18921_v45 = vld [vmem:[#allocation53_spill] sm:$0xff]  ;;  %v18922_v16 = vld [vmem:[#allocation55_spill] sm:$0xff] }
 0x153   : > { %11144 = vmatprep.mubr.msk.f32.mxu1 %vm671_vm2, %v430_v0  ;;  %11709 = vmatprep.mubr.msk.f32.mxu0 %vm671_vm2, %v14071_v24  ;;  %v426_v24 = vsel %vm420_vm5, %v411_v56, %v412_v32  ;;  %v2130_v50 = vrot.slane %v18921_v45, 7  ;;  %v15220_v0 = vsel %vm2203_vm6, %v2128_v47, %v2129_v15  ;;  %v18923_v56 = vld [vmem:[#allocation56_spill] sm:$0xff]  ;;  %v18940_v47 = vld [vmem:[#allocation74_spill] sm:$0xff]  ;;  %v18942_v45 = vld [vmem:[#allocation75_spill] sm:$0xff] }
 0x156   : > { %11145 = vmatmul.mubr.msk.f32.gmra.mrb[74].mxu1 %vm671_vm2, %v429_v12  ;;  %11710 = vmatmul.mubr.msk.f32.gmra.mrb[34].mxu0 %vm671_vm2, %v14090_v5  ;;  %v425_v5 = vsel %vm420_vm5, %v412_v32, %v413_v62  ;;  %v2131_v12 = vrot.slane %v18922_v16, 7  ;;  %v15233_v32 = vsel %vm2203_vm6, %v2129_v15, %v2130_v50  ;;  %v18941_v15 = vld [vmem:[#allocation73_spill] sm:$0xff] }
 0x157   : > { %11147 = vmatprep.mubr.msk.f32.mxu1 %vm671_vm2, %v428_v57  ;;  %11712 = vmatprep.mubr.msk.f32.mxu0 %vm671_vm2, %v14098_v54  ;;  %v18631_v54 = vrot.slane %v14714_v34, 7  ;;  %v18924_v57 = vld [vmem:[#allocation58_spill] sm:$0xff]  ;;  %v18943_v16 = vld [vmem:[#allocation77_spill] sm:$0xff] }
 0x159   : > { %v15122_v19 = vsel %vm2203_vm6, %v18631_v54, %v2201_v26 }
 0x15a   : > { %11148 = vmatmul.mubr.msk.f32.gmra.mrb[76].mxu1 %vm671_vm2, %v427_v38  ;;  %11713 = vmatmul.mubr.msk.f32.gmra.mrb[36].mxu0 %vm671_vm2, %v14111_v37  ;;  %v18902_v37 = vrot.slane %v12984_v7, 5  ;;  %18903 = vst [vmem:[#allocation13_spill] sm:$0xff] %v15122_v19  ;;  %v15134_v7 = vsel %vm2203_vm6, %v2201_v26, %v2202_v22  ;;  %v18925_v38 = vld [vmem:[#allocation57_spill] sm:$0xff]  ;;  %v18928_v26 = vld [vmem:[#allocation62_spill] sm:$0xff] }
 0x15b   : > { %11150 = vmatprep.mubr.msk.f32.mxu1 %vm671_vm2, %v426_v24  ;;  %11715 = vmatprep.mubr.msk.f32.mxu0 %vm671_vm2, %v14121_v60  ;;  %18904 = vst [vmem:[#allocation14_spill] sm:$0xff] %v15134_v7  ;;  %v2132_v62 = vrot.slane %v18925_v38, 7  ;;  %v15238_v24 = vsel %vm2203_vm6, %v2130_v50, %v2131_v12  ;;  %v2141_v50 = vrot.slane %v18942_v45, 7  ;;  %v18961_v45 = vld [vmem:[#allocation92_spill] sm:$0xff] }
 0x15c   : > { %v423_v60 = vsel %vm420_vm5, %v414_v46, %v18902_v37  ;;  %v18926_v46 = vld [vmem:[#allocation59_spill] sm:$0xff] }
 0x15d   : > { %v15251_v37 = vsel %vm2203_vm6, %v2131_v12, %v2132_v62  ;;  %v18944_v12 = vld [vmem:[#allocation79_spill] sm:$0xff] }
 0x15e   : > { %11151 = vmatmul.mubr.msk.f32.gmra.mrb[78].mxu1 %vm671_vm2, %v425_v5  ;;  %11716 = vmatmul.mubr.msk.f32.gmra.mrb[38].mxu0 %vm671_vm2, %v14134_v8  ;;  %v2121_v8 = vrot.slane %v14149_v48, 7  ;;  %v2133_v5 = vrot.slane %v18926_v46, 7  ;;  %v18946_v46 = vld [vmem:[#allocation80_spill] sm:$0xff] }
 0x15f   : > { %11153 = vmatprep.mubr.msk.f32.mxu1 %vm671_vm2, %v424_v6  ;;  %11718 = vmatprep.mubr.msk.f32.mxu0 %vm671_vm2, %v14144_v29  ;;  %v2122_v29 = vrot.slane %v14169_v58, 7  ;;  %v18927_v6 = vld [vmem:[#allocation60_spill] sm:$0xff] }
 0x160   : > { %v15139_v48 = vsel %vm2203_vm6, %v2202_v22, %v2121_v8 }
 0x161   : > { %v15152_v58 = vsel %vm2203_vm6, %v2121_v8, %v2122_v29  ;;  %v15159_v25 = vsel %vm2203_vm6, %v2122_v29, %v2123_v53  ;;  %v15256_v8 = vsel %vm2203_vm6, %v2132_v62, %v2133_v5  ;;  %v18930_v29 = vld [vmem:[#allocation63_spill] sm:$0xff] }
 0x162   : > { %11154 = vmatmul.mubr.msk.f32.gmra.mrb[80].mxu1 %vm671_vm2, %v423_v60  ;;  %11719 = vmatmul.mubr.msk.f32.gmra.mrb[40].mxu0 %vm671_vm2, %v14164_v42  ;;  %v18906_v42 = vld [vmem:[#allocation40_spill] sm:$0xff]  ;;  %v18929_v60 = vld [vmem:[#allocation61_spill] sm:$0xff]  ;;  %v2135_v40 = vrot.slane %v18930_v29, 7 }
 0x163   : > { %11158 = vmatprep.mubr.msk.f32.mxu1 %vm671_vm2, %v15122_v19  ;;  %11721 = vmatprep.mubr.msk.f32.mxu0 %vm671_vm2, %v14184_v4  ;;  %v18908_v4 = vld [vmem:[#allocation41_spill] sm:$0xff]  ;;  %v2134_v22 = vrot.slane %v18929_v60, 7 }
 0x164   : > { %v2124_v3 = vrot.slane %v18908_v4, 7  ;;  %v18933_v4 = vld [vmem:[#allocation65_spill] sm:$0xff] }
 0x165   : > { %v15572_v19 = vld [vmem:[%s18509_s0 + $0x40] sm:$0xff] }
 0x166   : > { %11159 = vmatmul.mubr.msk.f32.vlgmr.msra.gmra.mrb[0].mxu1 %vm671_vm2, %v15134_v7  ;;  %11722 = vmatmul.mubr.msk.f32.gmra.mrb[42].mxu0 %vm671_vm2, %v18906_v42  ;;  %v15179_v31 = vsel %vm2203_vm6, %v2123_v53, %v2124_v3  ;;  %v15184_v23 = vsel %vm2203_vm6, %v2124_v3, %v2125_v33  ;;  %v18931_v53 = vld [vmem:[#allocation64_spill] sm:$0xff]  ;;  %v18932_v42 = vld [vmem:[#allocation66_spill] sm:$0xff]  ;;  %v2136_v3 = vrot.slane %v18933_v4, 7  ;;  %v2137_v33 = vrot.slane %v18934_v49, 7  ;;  %v18951_v4 = vld [vmem:[#allocation85_spill] sm:$0xff]  ;;  %19005 = vst [vmem:[#allocation39_spill] sm:$0xff] %v15572_v19 }
 0x167   : > { %11282 = vmatpush3.msk.msra.mxu1 %vm918_vm1, %v18907_v30  ;;  %11161 = vmatprep.mubr.msk.f32.mxu1 %vm671_vm2, %v15139_v48  ;;  %v15269_v30 = vsel %vm2203_vm6, %v2133_v5, %v2134_v22  ;;  %v2143_v5 = vrot.slane %v18946_v46, 7  ;;  %v19004_v7 = vld [vmem:[#allocation112_spill] sm:$0xff] }
 0x168   : > { %11724 = vmatprep.mubr.msk.f32.mxu0 %vm671_vm2, %v18909_v55  ;;  %12031 = vmatprep.subr.msk.mxu1 %vm918_vm1, %v15165_v35  ;;  %v15274_v55 = vsel %vm2203_vm6, %v2134_v22, %v2135_v40  ;;  %v15287_v2 = vsel %vm2203_vm6, %v2135_v40, %v2136_v3  ;;  %v15292_v27 = vsel %vm2203_vm6, %v2136_v3, %v2137_v33  ;;  %v18949_v22 = vld [vmem:[#allocation82_spill] sm:$0xff]  ;;  %v18952_v3 = vld [vmem:[#allocation87_spill] sm:$0xff] }
 0x169   : > { %v15305_v18 = vsel %vm2203_vm6, %v2137_v33, %v2138_v20  ;;  %v2144_v29 = vrot.slane %v18949_v22, 7  ;;  %v18953_v33 = vld [vmem:[#allocation86_spill] sm:$0xff]  ;;  %v18968_v22 = vld [vmem:[#allocation97_spill] sm:$0xff] }
 0x16a   : > { %11162 = vmatmul.mubr.msk.f32.gmra.mrb[2].mxu1 %vm671_vm2, %v15152_v58  ;;  %11725 = vmatmul.mubr.msk.f32.gmra.mrb[44].mxu0 %vm671_vm2, %v18911_v59  ;;  %v18935_v59 = vld [vmem:[#allocation68_spill] sm:$0xff] }
 0x16b   : > { %11164 = vmatprep.mubr.msk.f32.mxu1 %vm671_vm2, %v15159_v25  ;;  %11727 = vmatprep.mubr.msk.f32.mxu0 %vm671_vm2, %v18912_v41  ;;  %v18936_v41 = vld [vmem:[#allocation70_spill] sm:$0xff]  ;;  %v15359_v49 = vsel %vm2203_vm6, %v2143_v5, %v2144_v29 }
 0x16e   : > { %11165 = vmatmul.mubr.msk.f32.gmra.mrb[4].mxu1 %vm671_vm2, %v15179_v31  ;;  %11728 = vmatmul.mubr.msk.f32.gmra.mrb[46].mxu0 %vm671_vm2, %v18915_v39  ;;  %v18938_v39 = vld [vmem:[#allocation71_spill] sm:$0xff] }
 0x16f   : > { %11167 = vmatprep.mubr.msk.f32.mxu1 %vm671_vm2, %v15184_v23  ;;  %11730 = vmatprep.mubr.msk.f32.mxu0 %vm671_vm2, %v18916_v1  ;;  %v2139_v1 = vrot.slane %v18938_v39, 7  ;;  %v18956_v39 = vld [vmem:[#allocation89_spill] sm:$0xff] }
 0x172   : > { %11168 = vmatmul.mubr.msk.f32.gmra.mrb[6].mxu1 %vm671_vm2, %v15197_v52  ;;  %11731 = vmatmul.mubr.msk.f32.gmra.mrb[48].mxu0 %vm671_vm2, %v18919_v61  ;;  %v2140_v61 = vrot.slane %v18941_v15, 7 }
 0x173   : > { %11170 = vmatprep.mubr.msk.f32.mxu1 %vm671_vm2, %v15202_v17  ;;  %11733 = vmatprep.mubr.msk.f32.mxu0 %vm671_vm2, %v18920_v63  ;;  %v15310_v63 = vsel %vm2203_vm6, %v2138_v20, %v2139_v1  ;;  %v2147_v20 = vrot.slane %v18955_v43, 7  ;;  %v18974_v43 = vld [vmem:[#allocation101_spill] sm:$0xff] }
 0x174   : > { %v15328_v62 = vsel %vm2203_vm6, %v2140_v61, %v2141_v50 }
 0x176   : > { %11171 = vmatmul.mubr.msk.f32.gmra.mrb[8].mxu1 %vm671_vm2, %v15215_v44  ;;  %11734 = vmatmul.mubr.msk.f32.gmra.mrb[50].mxu0 %vm671_vm2, %v18923_v56  ;;  %v15323_v56 = vsel %vm2203_vm6, %v2139_v1, %v2140_v61  ;;  %v18957_v1 = vld [vmem:[#allocation91_spill] sm:$0xff] }
 0x177   : > { %11173 = vmatprep.mubr.msk.f32.mxu1 %vm671_vm2, %v15220_v0  ;;  %11736 = vmatprep.mubr.msk.f32.mxu0 %vm671_vm2, %v18924_v57  ;;  %v18945_v57 = vld [vmem:[#allocation78_spill] sm:$0xff] }
 0x178   : > { %v2142_v38 = vrot.slane %v18945_v57, 7 }
 0x17a   : > { %11174 = vmatmul.mubr.msk.f32.gmra.mrb[10].mxu1 %vm671_vm2, %v15233_v32  ;;  %11737 = vmatmul.mubr.msk.f32.gmra.mrb[52].mxu0 %vm671_vm2, %v18927_v6  ;;  %v18947_v6 = vld [vmem:[#allocation81_spill] sm:$0xff]  ;;  %v15341_v60 = vsel %vm2203_vm6, %v2141_v50, %v2142_v38  ;;  %v15346_v40 = vsel %vm2203_vm6, %v2142_v38, %v2143_v5  ;;  %v2149_v50 = vrot.slane %v18961_v45, 7  ;;  %v18965_v38 = vld [vmem:[#allocation94_spill] sm:$0xff]  ;;  %v18979_v45 = vld [vmem:[#allocation104_spill] sm:$0xff] }
 0x17b   : > { %11176 = vmatprep.mubr.msk.f32.mxu1 %vm671_vm2, %v15238_v24  ;;  %11739 = vmatprep.mubr.msk.f32.mxu0 %vm671_vm2, %v18928_v26  ;;  %v18948_v26 = vld [vmem:[#allocation83_spill] sm:$0xff]  ;;  %v2150_v46 = vrot.slane %v18965_v38, 7  ;;  %v18982_v38 = vld [vmem:[#allocation105_spill] sm:$0xff] }
 0x17e   : > { %11177 = vmatmul.mubr.msk.f32.gmra.mrb[12].mxu1 %vm671_vm2, %v15251_v37  ;;  %11740 = vmatmul.mubr.msk.f32.gmra.mrb[54].mxu0 %vm671_vm2, %v18931_v53  ;;  %v18950_v53 = vld [vmem:[#allocation84_spill] sm:$0xff] }
 0x17f   : > { %11179 = vmatprep.mubr.msk.f32.mxu1 %vm671_vm2, %v15256_v8  ;;  %11742 = vmatprep.mubr.msk.f32.mxu0 %vm671_vm2, %v18932_v42  ;;  %v2145_v42 = vrot.slane %v18950_v53, 7  ;;  %v15413_v53 = vsel %vm2203_vm6, %v2149_v50, %v2150_v46 }
 0x180   : > { %18970 = vst [vmem:[#allocation20_spill] sm:$0xff] %v15413_v53 }
 0x182   : > { %11180 = vmatmul.mubr.msk.f32.gmra.mrb[14].mxu1 %vm671_vm2, %v15269_v30  ;;  %11743 = vmatmul.mubr.msk.f32.gmra.mrb[56].mxu0 %vm671_vm2, %v18935_v59  ;;  %v2146_v59 = vrot.slane %v18953_v33, 7  ;;  %v18973_v33 = vld [vmem:[#allocation100_spill] sm:$0xff] }
 0x183   : > { %11182 = vmatprep.mubr.msk.f32.mxu1 %vm671_vm2, %v15274_v55  ;;  %11745 = vmatprep.mubr.msk.f32.mxu0 %vm671_vm2, %v18936_v41  ;;  %v15364_v41 = vsel %vm2203_vm6, %v2144_v29, %v2145_v42  ;;  %v18969_v29 = vld [vmem:[#allocation99_spill] sm:$0xff] }
 0x184   : > { %18954 = vst [vmem:[#allocation15_spill] sm:$0xff] %v15364_v41  ;;  %v15382_v61 = vsel %vm2203_vm6, %v2146_v59, %v2147_v20 }
 0x185   : > { %18960 = vst [vmem:[#allocation17_spill] sm:$0xff] %v15382_v61 }
 0x186   : > { %11183 = vmatmul.mubr.msk.f32.gmra.mrb[16].mxu1 %vm671_vm2, %v15287_v2  ;;  %11746 = vmatmul.mubr.msk.f32.gmra.mrb[58].mxu0 %vm671_vm2, %v18939_v51  ;;  %v15377_v51 = vsel %vm2203_vm6, %v2145_v42, %v2146_v59  ;;  %v18971_v42 = vld [vmem:[#allocation98_spill] sm:$0xff]  ;;  %v2153_v59 = vrot.slane %v18973_v33, 7  ;;  %v18988_v33 = vld [vmem:[#allocation109_spill] sm:$0xff] }
 0x187   : > { %11185 = vmatprep.mubr.msk.f32.mxu1 %vm671_vm2, %v15292_v27  ;;  %11748 = vmatprep.mubr.msk.f32.mxu0 %vm671_vm2, %v18940_v47  ;;  %18958 = vst [vmem:[#allocation16_spill] sm:$0xff] %v15377_v51  ;;  %v18959_v47 = vld [vmem:[#allocation90_spill] sm:$0xff] }
 0x188   : > { %v2148_v15 = vrot.slane %v18959_v47, 7 }
 0x18a   : > { %11186 = vmatmul.mubr.msk.f32.gmra.mrb[18].mxu1 %vm671_vm2, %v15305_v18  ;;  %11749 = vmatmul.mubr.msk.f32.gmra.mrb[60].mxu0 %vm671_vm2, %v18943_v16  ;;  %v18962_v16 = vld [vmem:[#allocation93_spill] sm:$0xff]  ;;  %v15395_v57 = vsel %vm2203_vm6, %v2147_v20, %v2148_v15  ;;  %v15400_v5 = vsel %vm2203_vm6, %v2148_v15, %v2149_v50  ;;  %v18975_v20 = vld [vmem:[#allocation103_spill] sm:$0xff]  ;;  %v2155_v50 = vrot.slane %v18979_v45, 7  ;;  %v2160_v45 = vrot.slane %v14806_v14, 7 }
 0x18b   : > { %11188 = vmatprep.mubr.msk.f32.mxu1 %vm671_vm2, %v15310_v63  ;;  %11751 = vmatprep.mubr.msk.f32.mxu0 %vm671_vm2, %v18944_v12  ;;  %v18963_v12 = vld [vmem:[#allocation95_spill] sm:$0xff]  ;;  %18964 = vst [vmem:[#allocation18_spill] sm:$0xff] %v15395_v57  ;;  %18966 = vst [vmem:[#allocation19_spill] sm:$0xff] %v15400_v5 }
 0x18c   : > { %v15519_v14 = vld [vmem:[%s18509_s0 + $0x28] sm:$0xff] }
 0x18d   : > { %18995 = vst [vmem:[#allocation33_spill] sm:$0xff] %v15519_v14 }
 0x18e   : > { %11189 = vmatmul.mubr.msk.f32.gmra.mrb[20].mxu1 %vm671_vm2, %v15323_v56  ;;  %11752 = vmatmul.mubr.msk.f32.gmra.mrb[62].mxu0 %vm671_vm2, %v18947_v6  ;;  %v18967_v6 = vld [vmem:[#allocation96_spill] sm:$0xff] }
 0x18f   : > { %11191 = vmatprep.mubr.msk.f32.mxu1 %vm671_vm2, %v15328_v62  ;;  %11754 = vmatprep.mubr.msk.f32.mxu0 %vm671_vm2, %v18948_v26  ;;  %v2151_v26 = vrot.slane %v18967_v6, 7 }
 0x192   : > { %11192 = vmatmul.mubr.msk.f32.gmra.mrb[22].mxu1 %vm671_vm2, %v15341_v60  ;;  %11755 = vmatmul.mubr.msk.f32.gmra.mrb[64].mxu0 %vm671_vm2, %v18951_v4  ;;  %v2152_v4 = vrot.slane %v18971_v42, 7 }
 0x193   : > { %11194 = vmatprep.mubr.msk.f32.mxu1 %vm671_vm2, %v15346_v40  ;;  %11757 = vmatprep.mubr.msk.f32.mxu0 %vm671_vm2, %v18952_v3  ;;  %v15418_v3 = vsel %vm2203_vm6, %v2150_v46, %v2151_v26  ;;  %v2156_v46 = vrot.slane %v18982_v38, 7 }
 0x194   : > { %18972 = vst [vmem:[#allocation21_spill] sm:$0xff] %v15418_v3  ;;  %v15436_v15 = vsel %vm2203_vm6, %v2152_v4, %v2153_v59 }
 0x195   : > { %18978 = vst [vmem:[#allocation23_spill] sm:$0xff] %v15436_v15 }
 0x196   : > { %11195 = vmatmul.mubr.msk.f32.gmra.mrb[24].mxu1 %vm671_vm2, %v15359_v49  ;;  %11758 = vmatmul.mubr.msk.f32.gmra.mrb[66].mxu0 %vm671_vm2, %v18956_v39  ;;  %v15431_v39 = vsel %vm2203_vm6, %v2151_v26, %v2152_v4  ;;  %v18984_v26 = vld [vmem:[#allocation107_spill] sm:$0xff] }
 0x197   : > { %11197 = vmatprep.mubr.msk.f32.mxu1 %vm671_vm2, %v15364_v41  ;;  %11760 = vmatprep.mubr.msk.f32.mxu0 %vm671_vm2, %v18957_v1  ;;  %18976 = vst [vmem:[#allocation22_spill] sm:$0xff] %v15431_v39  ;;  %v18977_v1 = vld [vmem:[#allocation102_spill] sm:$0xff] }
 0x198   : > { %v2154_v47 = vrot.slane %v18977_v1, 7  ;;  %v18991_v1 = vld [vmem:[#allocation6_spill] sm:$0xff] }
 0x199   : > { %v16154_v41 = vld [vmem:[%s18509_s0 + $0x128] sm:$0xff] }
 0x19a   : > { %11198 = vmatmul.mubr.msk.f32.gmra.mrb[26].mxu1 %vm671_vm2, %v15377_v51  ;;  %11761 = vmatmul.mubr.msk.f32.gmra.mrb[68].mxu0 %vm671_vm2, %v18962_v16  ;;  %v18980_v16 = vld [vmem:[#allocation106_spill] sm:$0xff]  ;;  %v15454_v6 = vsel %vm2203_vm6, %v2154_v47, %v2155_v50  ;;  %19069 = vst [vmem:[#allocation99_spill] sm:$0xff] %v16154_v41 }
 0x19b   : > { %11200 = vmatprep.mubr.msk.f32.mxu1 %vm671_vm2, %v15382_v61  ;;  %11763 = vmatprep.mubr.msk.f32.mxu0 %vm671_vm2, %v18963_v12  ;;  %v15449_v12 = vsel %vm2203_vm6, %v2153_v59, %v2154_v47  ;;  %18983 = vst [vmem:[#allocation25_spill] sm:$0xff] %v15454_v6  ;;  %v2159_v59 = vrot.slane %v18988_v33, 7  ;;  %v16112_v61 = vld [vmem:[%s18509_s0 + $0x118] sm:$0xff] }
 0x19c   : > { %18981 = vst [vmem:[#allocation24_spill] sm:$0xff] %v15449_v12  ;;  %19064 = vst [vmem:[#allocation93_spill] sm:$0xff] %v16112_v61 }
 0x19e   : > { %11201 = vmatmul.mubr.msk.f32.gmra.mrb[28].mxu1 %vm671_vm2, %v15395_v57  ;;  %11764 = vmatmul.mubr.msk.f32.gmra.mrb[70].mxu0 %vm671_vm2, %v18968_v22  ;;  %v2157_v22 = vrot.slane %v18984_v26, 7  ;;  %v6004_v26 = vrot.slane %v15519_v14, 2  ;;  %v15776_v14 = vld [vmem:[%s18509_s0 + $0x98] sm:$0xff] }
 0x19f   : > { %11203 = vmatprep.mubr.msk.f32.mxu1 %vm671_vm2, %v15400_v5  ;;  %11766 = vmatprep.mubr.msk.f32.mxu0 %vm671_vm2, %v18969_v29  ;;  %v18986_v29 = vld [vmem:[#allocation108_spill] sm:$0xff]  ;;  %19032 = vst [vmem:[#allocation60_spill] sm:$0xff] %v15776_v14  ;;  %v16070_v5 = vld [vmem:[%s18509_s0 + $0x108] sm:$0xff] }
 0x1a0   : > { %v2158_v42 = vrot.slane %v18986_v29, 7  ;;  %v15472_v4 = vsel %vm2203_vm6, %v2156_v46, %v2157_v22  ;;  %19060 = vst [vmem:[#allocation89_spill] sm:$0xff] %v16070_v5 }
 0x1a1   : > { %18987 = vst [vmem:[#allocation27_spill] sm:$0xff] %v15472_v4 }
 0x1a2   : > { %11204 = vmatmul.mubr.msk.f32.gmra.mrb[30].mxu1 %vm671_vm2, %v15413_v53  ;;  %11767 = vmatmul.mubr.msk.f32.gmra.mrb[72].mxu0 %vm671_vm2, %v18974_v43  ;;  %v15498_v47 = vsel %vm2203_vm6, %v2157_v22, %v2158_v42  ;;  %v18996_v22 = vld [vmem:[#allocation7_spill] sm:$0xff] }
 0x1a3   : > { %11206 = vmatprep.mubr.msk.f32.mxu1 %vm671_vm2, %v15418_v3  ;;  %11769 = vmatprep.mubr.msk.f32.mxu0 %vm671_vm2, %v18975_v20  ;;  %18992 = vst [vmem:[#allocation30_spill] sm:$0xff] %v15498_v47  ;;  %v16028_v3 = vld [vmem:[%s18509_s0 + $0xf8] sm:$0xff] }
 0x1a4   : > { %19056 = vst [vmem:[#allocation85_spill] sm:$0xff] %v16028_v3 }
 0x1a6   : > { %11207 = vmatmul.mubr.msk.f32.gmra.mrb[32].mxu1 %vm671_vm2, %v15431_v39  ;;  %11770 = vmatmul.mubr.msk.f32.gmra.mrb[74].mxu0 %vm671_vm2, %v14727_v11  ;;  %v15467_v11 = vsel %vm2203_vm6, %v2155_v50, %v2156_v46  ;;  %v15504_v50 = vld [vmem:[%s18509_s0 + $0x20] sm:$0xff]  ;;  %v2161_v46 = vrot.slane %v14814_v13, 7  ;;  %v15531_v13 = vsel %vm2203_vm6, %v2159_v59, %v2160_v45 }
 0x1a7   : > { %11209 = vmatprep.mubr.msk.f32.mxu1 %vm671_vm2, %v15436_v15  ;;  %11772 = vmatprep.mubr.msk.f32.mxu0 %vm671_vm2, %v18980_v16  ;;  %18985 = vst [vmem:[#allocation26_spill] sm:$0xff] %v15467_v11  ;;  %18993 = vst [vmem:[#allocation31_spill] sm:$0xff] %v15504_v50  ;;  %v6003_v16 = vrot.slane %v15504_v50, 2  ;;  %v15986_v15 = vld [vmem:[%s18509_s0 + $0xe8] sm:$0xff] }
 0x1a8   : > { %18997 = vst [vmem:[#allocation34_spill] sm:$0xff] %v15531_v13  ;;  %19052 = vst [vmem:[#allocation81_spill] sm:$0xff] %v15986_v15 }
 0x1aa   : > { %11210 = vmatmul.mubr.msk.f32.gmra.mrb[34].mxu1 %vm671_vm2, %v15449_v12  ;;  %11773 = vmatmul.mubr.msk.f32.gmra.mrb[76].mxu0 %vm671_vm2, %v14769_v21  ;;  %v15478_v21 = vld [vmem:[%s18509_s0 + $0x10] sm:$0xff] }
 0x1ab   : > { %11212 = vmatprep.mubr.msk.f32.mxu1 %vm671_vm2, %v15454_v6  ;;  %11775 = vmatprep.mubr.msk.f32.mxu0 %vm671_vm2, %v14781_v28  ;;  %18989 = vst [vmem:[#allocation28_spill] sm:$0xff] %v15478_v21  ;;  %v18630_v43 = vrot.slane %v15478_v21, 2  ;;  %v15484_v28 = vld [vmem:[%s18509_s0 + $0x18] sm:$0xff] }
 0x1ac   : > { %18990 = vst [vmem:[#allocation29_spill] sm:$0xff] %v15484_v28  ;;  %v6002_v20 = vrot.slane %v15484_v28, 2  ;;  %v15860_v28 = vld [vmem:[%s18509_s0 + $0xb8] sm:$0xff] }
 0x1ad   : > { %19040 = vst [vmem:[#allocation68_spill] sm:$0xff] %v15860_v28  ;;  %v15944_v6 = vld [vmem:[%s18509_s0 + $0xd8] sm:$0xff] }
 0x1ae   : > { %11213 = vmatmul.mubr.msk.f32.gmra.mrb[36].mxu1 %vm671_vm2, %v15467_v11  ;;  %11776 = vmatmul.mubr.msk.f32.gmra.mrb[78].mxu0 %vm671_vm2, %v14801_v36  ;;  %v15509_v36 = vsel %vm2203_vm6, %v2158_v42, %v2159_v59  ;;  %v6160_v38 = vsel %vm6081_vm7, %v18630_v43, %v6002_v20  ;;  %v6159_v29 = vsel %vm6081_vm7, %v6002_v20, %v6003_v16  ;;  %v18998_v42 = vld [vmem:[#allocation110_spill] sm:$0xff]  ;;  %v15550_v59 = vld [vmem:[%s18509_s0 + $0x38] sm:$0xff] }
 0x1af   : > { %11215 = vmatprep.mubr.msk.f32.mxu1 %vm671_vm2, %v15472_v4  ;;  %11778 = vmatprep.mubr.msk.f32.mxu0 %vm671_vm2, %v18991_v1  ;;  %18994 = vst [vmem:[#allocation32_spill] sm:$0xff] %v15509_v36  ;;  %v2162_v33 = vrot.slane %v18998_v42, 7  ;;  %v15539_v1 = vld [vmem:[%s18509_s0 + $0x30] sm:$0xff]  ;;  %v15544_v43 = vsel %vm2203_vm6, %v2160_v45, %v2161_v46  ;;  %19002 = vst [vmem:[#allocation37_spill] sm:$0xff] %v15550_v59  ;;  %v6006_v20 = vrot.slane %v15550_v59, 2  ;;  %v15902_v4 = vld [vmem:[%s18509_s0 + $0xc8] sm:$0xff] }
 0x1b0   : > { %18999 = vst [vmem:[#allocation35_spill] sm:$0xff] %v15539_v1  ;;  %19000 = vst [vmem:[#allocation36_spill] sm:$0xff] %v15544_v43  ;;  %v6158_v42 = vsel %vm6081_vm7, %v6003_v16, %v6004_v26  ;;  %v2164_v16 = vrot.slane %v19004_v7, 7  ;;  %v19007_v59 = vld [vmem:[#allocation8_spill] sm:$0xff]  ;;  %v15586_v7 = vld [vmem:[%s18509_s0 + $0x48] sm:$0xff] }
 0x1b1   : > { %v15564_v45 = vsel %vm2203_vm6, %v2161_v46, %v2162_v33  ;;  %19008 = vst [vmem:[#allocation76_spill] sm:$0xff] %v15586_v7  ;;  %19044 = vst [vmem:[#allocation72_spill] sm:$0xff] %v15902_v4 }
 0x1b2   : > { %11216 = vmatmul.mubr.msk.f32.gmra.mrb[38].mxu1 %vm671_vm2, %v15498_v47  ;;  %11779 = vmatmul.mubr.msk.f32.gmra.mrb[80].mxu0 %vm671_vm2, %v18996_v22  ;;  %v6005_v22 = vrot.slane %v15539_v1, 2  ;;  %19003 = vst [vmem:[#allocation38_spill] sm:$0xff] %v15564_v45  ;;  %v6008_v1 = vrot.slane %v15586_v7, 2  ;;  %v15605_v7 = vld [vmem:[%s18509_s0 + $0x50] sm:$0xff]  ;;  %19048 = vst [vmem:[#allocation77_spill] sm:$0xff] %v15944_v6 }
 0x1b3   : > { %11218 = vmatprep.mubr.msk.f32.mxu1 %vm671_vm2, %v15509_v36  ;;  %11783 = vmatprep.mubr.msk.f32.mxu0 %vm671_vm2, %v6160_v38  ;;  %v19001_v38 = vld [vmem:[#allocation111_spill] sm:$0xff]  ;;  %19011 = vst [vmem:[#allocation42_spill] sm:$0xff] %v15605_v7 }
 0x1b4   : > { %v2163_v54 = vrot.slane %v19001_v38, 7  ;;  %v6157_v38 = vsel %vm6081_vm7, %v6004_v26, %v6005_v22  ;;  %v6156_v46 = vsel %vm6081_vm7, %v6005_v22, %v6006_v20  ;;  %v2165_v26 = vrot.slane %v19007_v59, 7  ;;  %v19010_v59 = vld [vmem:[#allocation9_spill] sm:$0xff]  ;;  %v15818_v36 = vld [vmem:[%s18509_s0 + $0xa8] sm:$0xff] }
 0x1b5   : > { %19036 = vst [vmem:[#allocation64_spill] sm:$0xff] %v15818_v36 }
 0x1b6   : > { %11219 = vmatmul.mubr.msk.f32.gmra.mrb[40].mxu1 %vm671_vm2, %v15531_v13  ;;  %11784 = vmatmul.mubr.msk.f32.vlgmr.msra.gmra.mrb[0].mxu0 %vm671_vm2, %v6159_v29  ;;  %v6007_v29 = vrot.slane %v15572_v19, 2  ;;  %v15610_v19 = vsel %vm2203_vm6, %v2164_v16, %v2165_v26 }
 0x1b7   : > { %11907 = vmatpush3.msk.msra.mxu0 %vm918_vm1, %v14985_v9  ;;  %11221 = vmatprep.mubr.msk.f32.mxu1 %vm671_vm2, %v15544_v43  ;;  %v15578_v9 = vsel %vm2203_vm6, %v2162_v33, %v2163_v54  ;;  %v15597_v33 = vsel %vm2203_vm6, %v2163_v54, %v2164_v16  ;;  %19012 = vst [vmem:[#allocation43_spill] sm:$0xff] %v15610_v19  ;;  %v15734_v43 = vld [vmem:[%s18509_s0 + $0x88] sm:$0xff] }
 0x1b8   : > { %11786 = vmatprep.mubr.msk.f32.mxu0 %vm671_vm2, %v6158_v42  ;;  %19006 = vst [vmem:[#allocation40_spill] sm:$0xff] %v15578_v9  ;;  %19009 = vst [vmem:[#allocation41_spill] sm:$0xff] %v15597_v33  ;;  %v6155_v22 = vsel %vm6081_vm7, %v6006_v20, %v6007_v29  ;;  %v2166_v42 = vrot.slane %v19010_v59, 7  ;;  %v6154_v54 = vsel %vm6081_vm7, %v6007_v29, %v6008_v1  ;;  %v15618_v20 = vld [vmem:[%s18509_s0 + $0x58] sm:$0xff] }
 0x1b9   : > { %19014 = vst [vmem:[#allocation44_spill] sm:$0xff] %v15618_v20  ;;  %v6010_v59 = vrot.slane %v15618_v20, 2  ;;  %v15637_v20 = vld [vmem:[%s18509_s0 + $0x60] sm:$0xff]  ;;  %19028 = vst [vmem:[#allocation56_spill] sm:$0xff] %v15734_v43 }
 0x1ba   : > { %11222 = vmatmul.mubr.msk.f32.gmra.mrb[42].mxu1 %vm671_vm2, %v15564_v45  ;;  %11787 = vmatmul.mubr.msk.f32.gmra.mrb[2].mxu0 %vm671_vm2, %v6157_v38  ;;  %v6009_v38 = vrot.slane %v15605_v7, 2  ;;  %v15629_v16 = vsel %vm2203_vm6, %v2165_v26, %v2166_v42  ;;  %19017 = vst [vmem:[#allocation45_spill] sm:$0xff] %v15637_v20 }
 0x1bb   : > { %11224 = vmatprep.mubr.msk.f32.mxu1 %vm671_vm2, %v15578_v9  ;;  %11789 = vmatprep.mubr.msk.f32.mxu0 %vm671_vm2, %v6156_v46  ;;  %v19013_v46 = vld [vmem:[#allocation10_spill] sm:$0xff]  ;;  %19015 = vst [vmem:[#allocation46_spill] sm:$0xff] %v15629_v16 }
 0x1bc   : > { %v2167_v9 = vrot.slane %v19013_v46, 7  ;;  %v6153_v29 = vsel %vm6081_vm7, %v6008_v1, %v6009_v38  ;;  %v19016_v46 = vld [vmem:[#allocation11_spill] sm:$0xff]  ;;  %v6152_v26 = vsel %vm6081_vm7, %v6009_v38, %v6010_v59 }
 0x1bd   : > { %v2168_v7 = vrot.slane %v19016_v46, 7  ;;  %v15650_v1 = vld [vmem:[%s18509_s0 + $0x68] sm:$0xff] }
 0x1be   : > { %11225 = vmatmul.mubr.msk.f32.gmra.mrb[44].mxu1 %vm671_vm2, %v15597_v33  ;;  %11790 = vmatmul.mubr.msk.f32.gmra.mrb[4].mxu0 %vm671_vm2, %v6155_v22  ;;  %v6011_v22 = vrot.slane %v15637_v20, 2  ;;  %19020 = vst [vmem:[#allocation48_spill] sm:$0xff] %v15650_v1  ;;  %v6012_v46 = vrot.slane %v15650_v1, 2  ;;  %v15686_v20 = vld [vmem:[%s18509_s0 + $0x190] sm:$0xff] }
 0x1bf   : > { %11227 = vmatprep.mubr.msk.f32.mxu1 %vm671_vm2, %v15610_v19  ;;  %11792 = vmatprep.mubr.msk.f32.mxu0 %vm671_vm2, %v6154_v54  ;;  %v15642_v19 = vsel %vm2203_vm6, %v2166_v42, %v2167_v9  ;;  %v19019_v54 = vld [vmem:[#allocation12_spill] sm:$0xff]  ;;  %v15661_v42 = vsel %vm2203_vm6, %v2167_v9, %v2168_v7 }
 0x1c0   : > { %19018 = vst [vmem:[#allocation47_spill] sm:$0xff] %v15642_v19  ;;  %v2169_v33 = vrot.slane %v19019_v54, 7  ;;  %19021 = vst [vmem:[#allocation50_spill] sm:$0xff] %v15661_v42  ;;  %v6151_v38 = vsel %vm6081_vm7, %v6010_v59, %v6011_v22  ;;  %v15668_v54 = vld [vmem:[%s18509_s0 + $0x188] sm:$0xff]  ;;  %v6150_v59 = vsel %vm6081_vm7, %v6011_v22, %v6012_v46 }
 0x1c1   : > { %v2170_v1 = vrot.slane %v15668_v54, 7 }
 0x1c2   : > { %11228 = vmatmul.mubr.msk.f32.gmra.mrb[46].mxu1 %vm671_vm2, %v15629_v16  ;;  %11793 = vmatmul.mubr.msk.f32.gmra.mrb[6].mxu0 %vm671_vm2, %v6153_v29  ;;  %v15674_v29 = vld [vmem:[%s18509_s0 + $0x70] sm:$0xff]  ;;  %v15679_v9 = vsel %vm2203_vm6, %v2168_v7, %v2169_v33  ;;  %v15692_v16 = vld [vmem:[%s18509_s0 + $0x78] sm:$0xff] }
 0x1c3   : > { %11230 = vmatprep.mubr.msk.f32.mxu1 %vm671_vm2, %v15642_v19  ;;  %11795 = vmatprep.mubr.msk.f32.mxu0 %vm671_vm2, %v6152_v26  ;;  %19022 = vst [vmem:[#allocation49_spill] sm:$0xff] %v15674_v29  ;;  %v6013_v26 = vrot.slane %v15674_v29, 2  ;;  %19023 = vst [vmem:[#allocation51_spill] sm:$0xff] %v15679_v9  ;;  %v2171_v19 = vrot.slane %v15686_v20, 7  ;;  %v6014_v29 = vrot.slane %v15692_v16, 2  ;;  %v15703_v7 = vsel %vm2203_vm6, %v2169_v33, %v2170_v1 }
 0x1c4   : > { %19024 = vst [vmem:[#allocation52_spill] sm:$0xff] %v15692_v16  ;;  %19025 = vst [vmem:[#allocation54_spill] sm:$0xff] %v15703_v7  ;;  %v15710_v16 = vld [vmem:[%s18509_s0 + $0x198] sm:$0xff] }
 0x1c5   : > { %v6149_v22 = vsel %vm6081_vm7, %v6012_v46, %v6013_v26  ;;  %v15721_v33 = vsel %vm2203_vm6, %v2170_v1, %v2171_v19  ;;  %v6148_v46 = vsel %vm6081_vm7, %v6013_v26, %v6014_v29 }
 0x1c6   : > { %11231 = vmatmul.mubr.msk.f32.gmra.mrb[48].mxu1 %vm671_vm2, %v15661_v42  ;;  %11796 = vmatmul.mubr.msk.f32.gmra.mrb[8].mxu0 %vm671_vm2, %v6151_v38  ;;  %v2172_v42 = vrot.slane %v15710_v16, 7  ;;  %v15716_v38 = vld [vmem:[%s18509_s0 + $0x80] sm:$0xff]  ;;  %19027 = vst [vmem:[#allocation55_spill] sm:$0xff] %v15721_v33 }
 0x1c7   : > { %11233 = vmatprep.mubr.msk.f32.mxu1 %vm671_vm2, %v15679_v9  ;;  %11798 = vmatprep.mubr.msk.f32.mxu0 %vm671_vm2, %v6150_v59  ;;  %19026 = vst [vmem:[#allocation53_spill] sm:$0xff] %v15716_v38  ;;  %v6015_v59 = vrot.slane %v15716_v38, 2  ;;  %v15728_v9 = vld [vmem:[%s18509_s0 + $0x1a0] sm:$0xff]  ;;  %v6016_v38 = vrot.slane %v15734_v43, 2  ;;  %v15752_v43 = vld [vmem:[%s18509_s0 + $0x1a8] sm:$0xff] }
 0x1c8   : > { %v2173_v45 = vrot.slane %v15728_v9, 7  ;;  %v15745_v1 = vsel %vm2203_vm6, %v2171_v19, %v2172_v42 }
 0x1c9   : > { %19029 = vst [vmem:[#allocation58_spill] sm:$0xff] %v15745_v1  ;;  %v6147_v26 = vsel %vm6081_vm7, %v6014_v29, %v6015_v59  ;;  %v6146_v29 = vsel %vm6081_vm7, %v6015_v59, %v6016_v38 }
 0x1ca   : > { %11234 = vmatmul.mubr.msk.f32.gmra.mrb[50].mxu1 %vm671_vm2, %v15703_v7  ;;  %11799 = vmatmul.mubr.msk.f32.gmra.mrb[10].mxu0 %vm671_vm2, %v6149_v22  ;;  %v2174_v7 = vrot.slane %v15752_v43, 7  ;;  %v15758_v22 = vld [vmem:[%s18509_s0 + $0x90] sm:$0xff]  ;;  %v15763_v19 = vsel %vm2203_vm6, %v2172_v42, %v2173_v45 }
 0x1cb   : > { %11236 = vmatprep.mubr.msk.f32.mxu1 %vm671_vm2, %v15721_v33  ;;  %11801 = vmatprep.mubr.msk.f32.mxu0 %vm671_vm2, %v6148_v46  ;;  %19030 = vst [vmem:[#allocation57_spill] sm:$0xff] %v15758_v22  ;;  %v6017_v46 = vrot.slane %v15758_v22, 2  ;;  %19031 = vst [vmem:[#allocation59_spill] sm:$0xff] %v15763_v19  ;;  %v15770_v33 = vld [vmem:[%s18509_s0 + $0x1b0] sm:$0xff]  ;;  %v6018_v22 = vrot.slane %v15776_v14, 2  ;;  %v15794_v14 = vld [vmem:[%s18509_s0 + $0x1b8] sm:$0xff] }
 0x1cc   : > { %v2175_v13 = vrot.slane %v15770_v33, 7  ;;  %v15787_v42 = vsel %vm2203_vm6, %v2173_v45, %v2174_v7 }
 0x1cd   : > { %19033 = vst [vmem:[#allocation62_spill] sm:$0xff] %v15787_v42  ;;  %v6145_v59 = vsel %vm6081_vm7, %v6016_v38, %v6017_v46  ;;  %v6144_v38 = vsel %vm6081_vm7, %v6017_v46, %v6018_v22 }
 0x1ce   : > { %11237 = vmatmul.mubr.msk.f32.gmra.mrb[52].mxu1 %vm671_vm2, %v15745_v1  ;;  %11802 = vmatmul.mubr.msk.f32.gmra.mrb[12].mxu0 %vm671_vm2, %v6147_v26  ;;  %v2176_v1 = vrot.slane %v15794_v14, 7  ;;  %v15800_v26 = vld [vmem:[%s18509_s0 + $0xa0] sm:$0xff]  ;;  %v15805_v45 = vsel %vm2203_vm6, %v2174_v7, %v2175_v13 }
 0x1cf   : > { %11239 = vmatprep.mubr.msk.f32.mxu1 %vm671_vm2, %v15763_v19  ;;  %11804 = vmatprep.mubr.msk.f32.mxu0 %vm671_vm2, %v6146_v29  ;;  %19034 = vst [vmem:[#allocation61_spill] sm:$0xff] %v15800_v26  ;;  %v6019_v29 = vrot.slane %v15800_v26, 2  ;;  %19035 = vst [vmem:[#allocation63_spill] sm:$0xff] %v15805_v45  ;;  %v15812_v19 = vld [vmem:[%s18509_s0 + $0x1c0] sm:$0xff]  ;;  %v6020_v26 = vrot.slane %v15818_v36, 2  ;;  %v15836_v36 = vld [vmem:[%s18509_s0 + $0x1c8] sm:$0xff] }
 0x1d0   : > { %v2177_v50 = vrot.slane %v15812_v19, 7  ;;  %v15829_v7 = vsel %vm2203_vm6, %v2175_v13, %v2176_v1 }
 0x1d1   : > { %19037 = vst [vmem:[#allocation66_spill] sm:$0xff] %v15829_v7  ;;  %v6143_v46 = vsel %vm6081_vm7, %v6018_v22, %v6019_v29  ;;  %v6142_v22 = vsel %vm6081_vm7, %v6019_v29, %v6020_v26 }
 0x1d2   : > { %11240 = vmatmul.mubr.msk.f32.gmra.mrb[54].mxu1 %vm671_vm2, %v15787_v42  ;;  %11805 = vmatmul.mubr.msk.f32.gmra.mrb[14].mxu0 %vm671_vm2, %v6145_v59  ;;  %v2178_v42 = vrot.slane %v15836_v36, 7  ;;  %v15842_v59 = vld [vmem:[%s18509_s0 + $0xb0] sm:$0xff]  ;;  %v15847_v13 = vsel %vm2203_vm6, %v2176_v1, %v2177_v50 }
 0x1d3   : > { %11242 = vmatprep.mubr.msk.f32.mxu1 %vm671_vm2, %v15805_v45  ;;  %11807 = vmatprep.mubr.msk.f32.mxu0 %vm671_vm2, %v6144_v38  ;;  %19038 = vst [vmem:[#allocation65_spill] sm:$0xff] %v15842_v59  ;;  %v6021_v38 = vrot.slane %v15842_v59, 2  ;;  %19039 = vst [vmem:[#allocation67_spill] sm:$0xff] %v15847_v13  ;;  %v15854_v45 = vld [vmem:[%s18509_s0 + $0x1d0] sm:$0xff]  ;;  %v6022_v59 = vrot.slane %v15860_v28, 2  ;;  %v15878_v28 = vld [vmem:[%s18509_s0 + $0x1d8] sm:$0xff] }
 0x1d4   : > { %v2179_v47 = vrot.slane %v15854_v45, 7  ;;  %v15871_v1 = vsel %vm2203_vm6, %v2177_v50, %v2178_v42 }
 0x1d5   : > { %19041 = vst [vmem:[#allocation70_spill] sm:$0xff] %v15871_v1  ;;  %v6141_v29 = vsel %vm6081_vm7, %v6020_v26, %v6021_v38  ;;  %v6140_v26 = vsel %vm6081_vm7, %v6021_v38, %v6022_v59 }
 0x1d6   : > { %11243 = vmatmul.mubr.msk.f32.gmra.mrb[56].mxu1 %vm671_vm2, %v15829_v7  ;;  %11808 = vmatmul.mubr.msk.f32.gmra.mrb[16].mxu0 %vm671_vm2, %v6143_v46  ;;  %v2180_v7 = vrot.slane %v15878_v28, 7  ;;  %v15884_v46 = vld [vmem:[%s18509_s0 + $0xc0] sm:$0xff]  ;;  %v15889_v50 = vsel %vm2203_vm6, %v2178_v42, %v2179_v47 }
 0x1d7   : > { %11245 = vmatprep.mubr.msk.f32.mxu1 %vm671_vm2, %v15847_v13  ;;  %11810 = vmatprep.mubr.msk.f32.mxu0 %vm671_vm2, %v6142_v22  ;;  %19042 = vst [vmem:[#allocation69_spill] sm:$0xff] %v15884_v46  ;;  %v6023_v22 = vrot.slane %v15884_v46, 2  ;;  %19043 = vst [vmem:[#allocation71_spill] sm:$0xff] %v15889_v50  ;;  %v15896_v13 = vld [vmem:[%s18509_s0 + $0x1e0] sm:$0xff]  ;;  %v6024_v46 = vrot.slane %v15902_v4, 2  ;;  %v15920_v4 = vld [vmem:[%s18509_s0 + $0x1e8] sm:$0xff] }
 0x1d8   : > { %v2181_v21 = vrot.slane %v15896_v13, 7  ;;  %v15913_v42 = vsel %vm2203_vm6, %v2179_v47, %v2180_v7 }
 0x1d9   : > { %19045 = vst [vmem:[#allocation74_spill] sm:$0xff] %v15913_v42  ;;  %v6139_v38 = vsel %vm6081_vm7, %v6022_v59, %v6023_v22  ;;  %v6138_v59 = vsel %vm6081_vm7, %v6023_v22, %v6024_v46 }
 0x1da   : > { %11246 = vmatmul.mubr.msk.f32.gmra.mrb[58].mxu1 %vm671_vm2, %v15871_v1  ;;  %11811 = vmatmul.mubr.msk.f32.gmra.mrb[18].mxu0 %vm671_vm2, %v6141_v29  ;;  %v2182_v1 = vrot.slane %v15920_v4, 7  ;;  %v15926_v29 = vld [vmem:[%s18509_s0 + $0xd0] sm:$0xff]  ;;  %v15931_v47 = vsel %vm2203_vm6, %v2180_v7, %v2181_v21 }
 0x1db   : > { %11248 = vmatprep.mubr.msk.f32.mxu1 %vm671_vm2, %v15889_v50  ;;  %11813 = vmatprep.mubr.msk.f32.mxu0 %vm671_vm2, %v6140_v26  ;;  %19046 = vst [vmem:[#allocation73_spill] sm:$0xff] %v15926_v29  ;;  %v6025_v26 = vrot.slane %v15926_v29, 2  ;;  %19047 = vst [vmem:[#allocation75_spill] sm:$0xff] %v15931_v47  ;;  %v15938_v50 = vld [vmem:[%s18509_s0 + $0x1f0] sm:$0xff]  ;;  %v6026_v29 = vrot.slane %v15944_v6, 2  ;;  %v15962_v6 = vld [vmem:[%s18509_s0 + $0x1f8] sm:$0xff] }
 0x1dc   : > { %v2183_v11 = vrot.slane %v15938_v50, 7  ;;  %v15955_v7 = vsel %vm2203_vm6, %v2181_v21, %v2182_v1 }
 0x1dd   : > { %19049 = vst [vmem:[#allocation79_spill] sm:$0xff] %v15955_v7  ;;  %v6137_v22 = vsel %vm6081_vm7, %v6024_v46, %v6025_v26  ;;  %v6136_v46 = vsel %vm6081_vm7, %v6025_v26, %v6026_v29 }
 0x1de   : > { %11249 = vmatmul.mubr.msk.f32.gmra.mrb[60].mxu1 %vm671_vm2, %v15913_v42  ;;  %11814 = vmatmul.mubr.msk.f32.gmra.mrb[20].mxu0 %vm671_vm2, %v6139_v38  ;;  %v2184_v42 = vrot.slane %v15962_v6, 7  ;;  %v15968_v38 = vld [vmem:[%s18509_s0 + $0xe0] sm:$0xff]  ;;  %v15973_v21 = vsel %vm2203_vm6, %v2182_v1, %v2183_v11 }
 0x1df   : > { %11251 = vmatprep.mubr.msk.f32.mxu1 %vm671_vm2, %v15931_v47  ;;  %11816 = vmatprep.mubr.msk.f32.mxu0 %vm671_vm2, %v6138_v59  ;;  %19050 = vst [vmem:[#allocation78_spill] sm:$0xff] %v15968_v38  ;;  %v6027_v59 = vrot.slane %v15968_v38, 2  ;;  %19051 = vst [vmem:[#allocation80_spill] sm:$0xff] %v15973_v21  ;;  %v15980_v47 = vld [vmem:[%s18509_s0 + $0x200] sm:$0xff]  ;;  %v6028_v38 = vrot.slane %v15986_v15, 2  ;;  %v16004_v15 = vld [vmem:[%s18509_s0 + $0x208] sm:$0xff] }
 0x1e0   : > { %v2185_v12 = vrot.slane %v15980_v47, 7  ;;  %v15997_v1 = vsel %vm2203_vm6, %v2183_v11, %v2184_v42 }
 0x1e1   : > { %19053 = vst [vmem:[#allocation83_spill] sm:$0xff] %v15997_v1  ;;  %v6135_v26 = vsel %vm6081_vm7, %v6026_v29, %v6027_v59  ;;  %v6134_v29 = vsel %vm6081_vm7, %v6027_v59, %v6028_v38 }
 0x1e2   : > { %11252 = vmatmul.mubr.msk.f32.gmra.mrb[62].mxu1 %vm671_vm2, %v15955_v7  ;;  %11817 = vmatmul.mubr.msk.f32.gmra.mrb[22].mxu0 %vm671_vm2, %v6137_v22  ;;  %v2186_v7 = vrot.slane %v16004_v15, 7  ;;  %v16010_v22 = vld [vmem:[%s18509_s0 + $0xf0] sm:$0xff]  ;;  %v16015_v11 = vsel %vm2203_vm6, %v2184_v42, %v2185_v12 }
 0x1e3   : > { %11254 = vmatprep.mubr.msk.f32.mxu1 %vm671_vm2, %v15973_v21  ;;  %11819 = vmatprep.mubr.msk.f32.mxu0 %vm671_vm2, %v6136_v46  ;;  %19054 = vst [vmem:[#allocation82_spill] sm:$0xff] %v16010_v22  ;;  %v6029_v46 = vrot.slane %v16010_v22, 2  ;;  %19055 = vst [vmem:[#allocation84_spill] sm:$0xff] %v16015_v11  ;;  %v16022_v21 = vld [vmem:[%s18509_s0 + $0x210] sm:$0xff]  ;;  %v6030_v22 = vrot.slane %v16028_v3, 2  ;;  %v16046_v3 = vld [vmem:[%s18509_s0 + $0x218] sm:$0xff] }
 0x1e4   : > { %v2187_v39 = vrot.slane %v16022_v21, 7  ;;  %v16039_v42 = vsel %vm2203_vm6, %v2185_v12, %v2186_v7 }
 0x1e5   : > { %19057 = vst [vmem:[#allocation87_spill] sm:$0xff] %v16039_v42  ;;  %v6133_v59 = vsel %vm6081_vm7, %v6028_v38, %v6029_v46  ;;  %v6132_v38 = vsel %vm6081_vm7, %v6029_v46, %v6030_v22 }
 0x1e6   : > { %11255 = vmatmul.mubr.msk.f32.gmra.mrb[64].mxu1 %vm671_vm2, %v15997_v1  ;;  %11820 = vmatmul.mubr.msk.f32.gmra.mrb[24].mxu0 %vm671_vm2, %v6135_v26  ;;  %v2188_v1 = vrot.slane %v16046_v3, 7  ;;  %v16052_v26 = vld [vmem:[%s18509_s0 + $0x100] sm:$0xff]  ;;  %v16057_v12 = vsel %vm2203_vm6, %v2186_v7, %v2187_v39 }
 0x1e7   : > { %11257 = vmatprep.mubr.msk.f32.mxu1 %vm671_vm2, %v16015_v11  ;;  %11822 = vmatprep.mubr.msk.f32.mxu0 %vm671_vm2, %v6134_v29  ;;  %19058 = vst [vmem:[#allocation86_spill] sm:$0xff] %v16052_v26  ;;  %v6031_v29 = vrot.slane %v16052_v26, 2  ;;  %19059 = vst [vmem:[#allocation88_spill] sm:$0xff] %v16057_v12  ;;  %v16064_v11 = vld [vmem:[%s18509_s0 + $0x220] sm:$0xff]  ;;  %v6032_v26 = vrot.slane %v16070_v5, 2  ;;  %v16088_v5 = vld [vmem:[%s18509_s0 + $0x228] sm:$0xff] }
 0x1e8   : > { %v2189_v53 = vrot.slane %v16064_v11, 7  ;;  %v16081_v7 = vsel %vm2203_vm6, %v2187_v39, %v2188_v1 }
 0x1e9   : > { %19061 = vst [vmem:[#allocation91_spill] sm:$0xff] %v16081_v7  ;;  %v6131_v46 = vsel %vm6081_vm7, %v6030_v22, %v6031_v29  ;;  %v6130_v22 = vsel %vm6081_vm7, %v6031_v29, %v6032_v26 }
 0x1ea   : > { %11258 = vmatmul.mubr.msk.f32.gmra.mrb[66].mxu1 %vm671_vm2, %v16039_v42  ;;  %11823 = vmatmul.mubr.msk.f32.gmra.mrb[26].mxu0 %vm671_vm2, %v6133_v59  ;;  %v2190_v42 = vrot.slane %v16088_v5, 7  ;;  %v16094_v59 = vld [vmem:[%s18509_s0 + $0x110] sm:$0xff]  ;;  %v16099_v39 = vsel %vm2203_vm6, %v2188_v1, %v2189_v53 }
 0x1eb   : > { %11260 = vmatprep.mubr.msk.f32.mxu1 %vm671_vm2, %v16057_v12  ;;  %11825 = vmatprep.mubr.msk.f32.mxu0 %vm671_vm2, %v6132_v38  ;;  %19062 = vst [vmem:[#allocation90_spill] sm:$0xff] %v16094_v59  ;;  %v6033_v38 = vrot.slane %v16094_v59, 2  ;;  %19063 = vst [vmem:[#allocation92_spill] sm:$0xff] %v16099_v39  ;;  %v16106_v12 = vld [vmem:[%s18509_s0 + $0x230] sm:$0xff]  ;;  %v6034_v59 = vrot.slane %v16112_v61, 2  ;;  %v16130_v61 = vld [vmem:[%s18509_s0 + $0x238] sm:$0xff] }
 0x1ec   : > { %v2191_v57 = vrot.slane %v16106_v12, 7  ;;  %v16123_v1 = vsel %vm2203_vm6, %v2189_v53, %v2190_v42 }
 0x1ed   : > { %19065 = vst [vmem:[#allocation95_spill] sm:$0xff] %v16123_v1  ;;  %v6129_v29 = vsel %vm6081_vm7, %v6032_v26, %v6033_v38  ;;  %v6128_v26 = vsel %vm6081_vm7, %v6033_v38, %v6034_v59 }
 0x1ee   : > { %11261 = vmatmul.mubr.msk.f32.gmra.mrb[68].mxu1 %vm671_vm2, %v16081_v7  ;;  %11826 = vmatmul.mubr.msk.f32.gmra.mrb[28].mxu0 %vm671_vm2, %v6131_v46  ;;  %v2192_v7 = vrot.slane %v16130_v61, 7  ;;  %v16136_v46 = vld [vmem:[%s18509_s0 + $0x120] sm:$0xff]  ;;  %v16141_v53 = vsel %vm2203_vm6, %v2190_v42, %v2191_v57 }
 0x1ef   : > { %11263 = vmatprep.mubr.msk.f32.mxu1 %vm671_vm2, %v16099_v39  ;;  %11828 = vmatprep.mubr.msk.f32.mxu0 %vm671_vm2, %v6130_v22  ;;  %19066 = vst [vmem:[#allocation94_spill] sm:$0xff] %v16136_v46  ;;  %v6035_v22 = vrot.slane %v16136_v46, 2  ;;  %19067 = vst [vmem:[#allocation96_spill] sm:$0xff] %v16141_v53  ;;  %v16148_v39 = vld [vmem:[%s18509_s0 + $0x240] sm:$0xff]  ;;  %v6036_v46 = vrot.slane %v16154_v41, 2  ;;  %v16172_v41 = vld [vmem:[%s18509_s0 + $0x248] sm:$0xff] }
 0x1f0   : > { %19068 = vst [vmem:[#allocation97_spill] sm:$0xff] %v16148_v39  ;;  %v2193_v51 = vrot.slane %v16148_v39, 7  ;;  %v16165_v42 = vsel %vm2203_vm6, %v2191_v57, %v2192_v7  ;;  %19071 = vst [vmem:[#allocation100_spill] sm:$0xff] %v16172_v41  ;;  %v16196_v39 = vld [vmem:[%s18509_s0 + $0x138] sm:$0xff] }
 0x1f1   : > { %19070 = vst [vmem:[#allocation98_spill] sm:$0xff] %v16165_v42  ;;  %v6127_v38 = vsel %vm6081_vm7, %v6034_v59, %v6035_v22  ;;  %v6126_v59 = vsel %vm6081_vm7, %v6035_v22, %v6036_v46  ;;  %19075 = vst [vmem:[#allocation104_spill] sm:$0xff] %v16196_v39 }
 0x1f2   : > { %11264 = vmatmul.mubr.msk.f32.gmra.mrb[70].mxu1 %vm671_vm2, %v16123_v1  ;;  %11829 = vmatmul.mubr.msk.f32.gmra.mrb[30].mxu0 %vm671_vm2, %v6129_v29  ;;  %v2194_v1 = vrot.slane %v16172_v41, 7  ;;  %v16178_v29 = vld [vmem:[%s18509_s0 + $0x130] sm:$0xff]  ;;  %v16183_v57 = vsel %vm2203_vm6, %v2192_v7, %v2193_v51 }
 0x1f3   : > { %11266 = vmatprep.mubr.msk.f32.mxu1 %vm671_vm2, %v16141_v53  ;;  %11831 = vmatprep.mubr.msk.f32.mxu0 %vm671_vm2, %v6128_v26  ;;  %19072 = vst [vmem:[#allocation101_spill] sm:$0xff] %v16178_v29  ;;  %v6037_v26 = vrot.slane %v16178_v29, 2  ;;  %19073 = vst [vmem:[#allocation103_spill] sm:$0xff] %v16183_v57  ;;  %v16190_v53 = vld [vmem:[%s18509_s0 + $0x250] sm:$0xff]  ;;  %v6038_v29 = vrot.slane %v16196_v39, 2  ;;  %v16214_v39 = vld [vmem:[%s18509_s0 + $0x258] sm:$0xff] }
 0x1f4   : > { %19074 = vst [vmem:[#allocation102_spill] sm:$0xff] %v16190_v53  ;;  %v2195_v41 = vrot.slane %v16190_v53, 7  ;;  %v16207_v7 = vsel %vm2203_vm6, %v2193_v51, %v2194_v1  ;;  %19077 = vst [vmem:[#allocation105_spill] sm:$0xff] %v16214_v39  ;;  %v16238_v53 = vld [vmem:[%s18509_s0 + $0x148] sm:$0xff] }
 0x1f5   : > { %19076 = vst [vmem:[#allocation106_spill] sm:$0xff] %v16207_v7  ;;  %v6125_v22 = vsel %vm6081_vm7, %v6036_v46, %v6037_v26  ;;  %v6124_v46 = vsel %vm6081_vm7, %v6037_v26, %v6038_v29  ;;  %19081 = vst [vmem:[#allocation6_spill] sm:$0xff] %v16238_v53 }
 0x1f6   : > { %11267 = vmatmul.mubr.msk.f32.gmra.mrb[72].mxu1 %vm671_vm2, %v16165_v42  ;;  %11832 = vmatmul.mubr.msk.f32.gmra.mrb[32].mxu0 %vm671_vm2, %v6127_v38  ;;  %v2196_v42 = vrot.slane %v16214_v39, 7  ;;  %v16220_v38 = vld [vmem:[%s18509_s0 + $0x140] sm:$0xff]  ;;  %v16225_v51 = vsel %vm2203_vm6, %v2194_v1, %v2195_v41 }
 0x1f7   : > { %11269 = vmatprep.mubr.msk.f32.mxu1 %vm671_vm2, %v16183_v57  ;;  %11834 = vmatprep.mubr.msk.f32.mxu0 %vm671_vm2, %v6126_v59  ;;  %19078 = vst [vmem:[#allocation107_spill] sm:$0xff] %v16220_v38  ;;  %v6039_v59 = vrot.slane %v16220_v38, 2  ;;  %19079 = vst [vmem:[#allocation108_spill] sm:$0xff] %v16225_v51  ;;  %v16232_v57 = vld [vmem:[%s18509_s0 + $0x260] sm:$0xff]  ;;  %v6040_v38 = vrot.slane %v16238_v53, 2  ;;  %v16256_v53 = vld [vmem:[%s18509_s0 + $0x268] sm:$0xff] }
 0x1f8   : > { %19080 = vst [vmem:[#allocation109_spill] sm:$0xff] %v16232_v57  ;;  %v2197_v39 = vrot.slane %v16232_v57, 7  ;;  %v16249_v1 = vsel %vm2203_vm6, %v2195_v41, %v2196_v42  ;;  %19083 = vst [vmem:[#allocation110_spill] sm:$0xff] %v16256_v53  ;;  %v16280_v57 = vld [vmem:[%s18509_s0 + $0x158] sm:$0xff] }
 0x1f9   : > { %19082 = vst [vmem:[#allocation7_spill] sm:$0xff] %v16249_v1  ;;  %v6123_v26 = vsel %vm6081_vm7, %v6038_v29, %v6039_v59  ;;  %v6122_v29 = vsel %vm6081_vm7, %v6039_v59, %v6040_v38  ;;  %19085 = vst [vmem:[#allocation112_spill] sm:$0xff] %v16280_v57 }
 0x1fa   : > { %11270 = vmatmul.mubr.msk.f32.gmra.mrb[74].mxu1 %vm671_vm2, %v16207_v7  ;;  %11835 = vmatmul.mubr.msk.f32.gmra.mrb[34].mxu0 %vm671_vm2, %v6125_v22  ;;  %v2198_v7 = vrot.slane %v16256_v53, 7  ;;  %v16262_v22 = vld [vmem:[%s18509_s0 + $0x150] sm:$0xff]  ;;  %v16267_v41 = vsel %vm2203_vm6, %v2196_v42, %v2197_v39 }
 0x1fb   : > { %11272 = vmatprep.mubr.msk.f32.mxu1 %vm671_vm2, %v16225_v51  ;;  %11837 = vmatprep.mubr.msk.f32.mxu0 %vm671_vm2, %v6124_v46  ;;  %19084 = vst [vmem:[#allocation111_spill] sm:$0xff] %v16262_v22  ;;  %v6041_v46 = vrot.slane %v16262_v22, 2  ;;  %v16274_v51 = vld [vmem:[%s18509_s0 + $0x270] sm:$0xff]  ;;  %v6042_v22 = vrot.slane %v16280_v57, 2  ;;  %v16298_v57 = vld [vmem:[%s18509_s0 + $0x160] sm:$0xff] }
 0x1fc   : > { %v2199_v53 = vrot.slane %v16274_v51, 7  ;;  %v16291_v42 = vsel %vm2203_vm6, %v2197_v39, %v2198_v7  ;;  %19086 = vst [vmem:[#allocation8_spill] sm:$0xff] %v16298_v57  ;;  %v16310_v39 = vld [vmem:[%s18509_s0 + $0x168] sm:$0xff] }
 0x1fd   : > { %v6121_v59 = vsel %vm6081_vm7, %v6040_v38, %v6041_v46  ;;  %19088 = vst [vmem:[#allocation10_spill] sm:$0xff] %v16310_v39  ;;  %v6044_v38 = vrot.slane %v16310_v39, 2  ;;  %v16330_v39 = vld [vmem:[%s18509_s0 + $0x170] sm:$0xff] }
 0x1fe   : > { %11273 = vmatmul.mubr.msk.f32.gmra.mrb[76].mxu1 %vm671_vm2, %v16249_v1  ;;  %11838 = vmatmul.mubr.msk.f32.gmra.mrb[36].mxu0 %vm671_vm2, %v6123_v26  ;;  %v6043_v1 = vrot.slane %v16298_v57, 2  ;;  %v16303_v26 = vsel %vm2203_vm6, %v2198_v7, %v2199_v53  ;;  %v19089_v7 = vrot.slane %v14714_v34, 7  ;;  %v16338_v34 = vld [vmem:[%s18509_s0 + $0x178] sm:$0xff] }
 0x1ff   : > { %11275 = vmatprep.mubr.msk.f32.mxu1 %vm671_vm2, %v16267_v41  ;;  %11840 = vmatprep.mubr.msk.f32.mxu0 %vm671_vm2, %v6122_v29  ;;  %19087 = vst [vmem:[#allocation9_spill] sm:$0xff] %v16303_v26  ;;  %v6120_v29 = vsel %vm6081_vm7, %v6041_v46, %v6042_v22 }
 0x200   : > { %v16323_v46 = vsel %vm2203_vm6, %v2199_v53, %v19089_v7  ;;  %v6119_v57 = vsel %vm6081_vm7, %v6042_v22, %v6043_v1  ;;  %v6046_v53 = vrot.slane %v16338_v34, 2  ;;  %v16352_v22 = vld [vmem:[%s18509_s0 + $0x180] sm:$0xff]  ;;  %v6048_v7 = vrot.slane %v15668_v54, 2 }
 0x202   : > { %11276 = vmatmul.mubr.msk.f32.gmra.mrb[78].mxu1 %vm671_vm2, %v16291_v42  ;;  %11841 = vmatmul.mubr.msk.f32.gmra.mrb[38].mxu0 %vm671_vm2, %v6121_v59  ;;  %v6045_v59 = vrot.slane %v16330_v39, 2 }
 0x203   : > { %11278 = vmatprep.mubr.msk.f32.mxu1 %vm671_vm2, %v16303_v26  ;;  %11843 = vmatprep.mubr.msk.f32.mxu0 %vm671_vm2, %v6120_v29  ;;  %v6118_v26 = vsel %vm6081_vm7, %v6043_v1, %v6044_v38  ;;  %v6047_v29 = vrot.slane %v16352_v22, 2 }
 0x204   : > { %v6117_v1 = vsel %vm6081_vm7, %v6044_v38, %v6045_v59  ;;  %v6060_v38 = vrot.slane %v15920_v4, 2 }
 0x205   : > { %v6114_v54 = vsel %vm6081_vm7, %v6047_v29, %v6048_v7 }
 0x206   : > { %11279 = vmatmul.mubr.msk.f32.gmra.mrb[80].mxu1 %vm671_vm2, %v16323_v46  ;;  %11844 = vmatmul.mubr.msk.f32.gmra.mrb[40].mxu0 %vm671_vm2, %v6119_v57  ;;  %v6116_v57 = vsel %vm6081_vm7, %v6045_v59, %v6046_v53  ;;  %v6062_v59 = vrot.slane %v15962_v6, 2 }
 0x207   : > { %11283 = vmatprep.mubr.msk.f32.mxu1 %vm671_vm2, %v15139_v48  ;;  %11846 = vmatprep.mubr.msk.f32.mxu0 %vm671_vm2, %v6118_v26  ;;  %v6115_v48 = vsel %vm6081_vm7, %v6046_v53, %v6047_v29  ;;  %v6049_v26 = vrot.slane %v15686_v20, 2 }
 0x20a   : > { %11284 = vmatmul.mubr.msk.f32.vlgmr.msra.gmra.mrb[0].mxu1 %vm671_vm2, %v15152_v58  ;;  %11847 = vmatmul.mubr.msk.f32.gmra.mrb[42].mxu0 %vm671_vm2, %v6117_v1  ;;  %v6050_v58 = vrot.slane %v15710_v16, 2  ;;  %v6052_v16 = vrot.slane %v15752_v43, 2  ;;  %v6054_v43 = vrot.slane %v15794_v14, 2  ;;  %v6056_v14 = vrot.slane %v15836_v36, 2 }
 0x20b   : > { %12032 = vmatpush3.msk.msra.mxu1 %vm918_vm1, %v15165_v35  ;;  %11286 = vmatprep.mubr.msk.f32.mxu1 %vm671_vm2, %v15159_v25  ;;  %v6113_v25 = vsel %vm6081_vm7, %v6048_v7, %v6049_v26  ;;  %v6051_v35 = vrot.slane %v15728_v9, 2  ;;  %v6058_v36 = vrot.slane %v15878_v28, 2  ;;  %v6064_v1 = vrot.slane %v16004_v15, 2 }
 0x20c   : > { %11849 = vmatprep.mubr.msk.f32.mxu0 %vm671_vm2, %v6116_v57  ;;  %v6112_v20 = vsel %vm6081_vm7, %v6049_v26, %v6050_v58  ;;  %v6066_v7 = vrot.slane %v16046_v3, 2 }
 0x20d   : > { %v6110_v9 = vsel %vm6081_vm7, %v6051_v35, %v6052_v16 }
 0x20e   : > { %11287 = vmatmul.mubr.msk.f32.gmra.mrb[2].mxu1 %vm671_vm2, %v15179_v31  ;;  %11850 = vmatmul.mubr.msk.f32.gmra.mrb[44].mxu0 %vm671_vm2, %v6115_v48  ;;  %v6111_v31 = vsel %vm6081_vm7, %v6050_v58, %v6051_v35  ;;  %v6068_v48 = vrot.slane %v16088_v5, 2  ;;  %v19091_v58 = vld [vmem:[#allocation97_spill] sm:$0xff] }
 0x20f   : > { %11289 = vmatprep.mubr.msk.f32.mxu1 %vm671_vm2, %v15184_v23  ;;  %11852 = vmatprep.mubr.msk.f32.mxu0 %vm671_vm2, %v6114_v54  ;;  %v6053_v23 = vrot.slane %v15770_v33, 2  ;;  %v6070_v54 = vrot.slane %v16130_v61, 2 }
 0x211   : > { %v6108_v33 = vsel %vm6081_vm7, %v6053_v23, %v6054_v43 }
 0x212   : > { %11290 = vmatmul.mubr.msk.f32.gmra.mrb[4].mxu1 %vm671_vm2, %v15197_v52  ;;  %11853 = vmatmul.mubr.msk.f32.gmra.mrb[46].mxu0 %vm671_vm2, %v6113_v25  ;;  %v6109_v52 = vsel %vm6081_vm7, %v6052_v16, %v6053_v23  ;;  %v6071_v25 = vrot.slane %v19091_v58, 2 }
 0x213   : > { %11292 = vmatprep.mubr.msk.f32.mxu1 %vm671_vm2, %v15202_v17  ;;  %11855 = vmatprep.mubr.msk.f32.mxu0 %vm671_vm2, %v6112_v20  ;;  %v6055_v17 = vrot.slane %v15812_v19, 2  ;;  %v19092_v20 = vld [vmem:[#allocation100_spill] sm:$0xff] }
 0x214   : > { %v6072_v16 = vrot.slane %v19092_v20, 2  ;;  %v6091_v23 = vsel %vm6081_vm7, %v6070_v54, %v6071_v25 }
 0x215   : > { %v6106_v19 = vsel %vm6081_vm7, %v6055_v17, %v6056_v14 }
 0x216   : > { %11293 = vmatmul.mubr.msk.f32.gmra.mrb[6].mxu1 %vm671_vm2, %v15215_v44  ;;  %11856 = vmatmul.mubr.msk.f32.gmra.mrb[48].mxu0 %vm671_vm2, %v6111_v31  ;;  %v6107_v44 = vsel %vm6081_vm7, %v6054_v43, %v6055_v17  ;;  %v19093_v31 = vld [vmem:[#allocation16_spill] sm:$0xff]  ;;  %v19096_v17 = vld [vmem:[#allocation105_spill] sm:$0xff] }
 0x217   : > { %11295 = vmatprep.mubr.msk.f32.mxu1 %vm671_vm2, %v15220_v0  ;;  %11858 = vmatprep.mubr.msk.f32.mxu0 %vm671_vm2, %v6110_v9  ;;  %v6057_v0 = vrot.slane %v15854_v45, 2  ;;  %v19095_v9 = vld [vmem:[#allocation102_spill] sm:$0xff] }
 0x218   : > { %v6073_v43 = vrot.slane %v19095_v9, 2 }
 0x219   : > { %v6104_v45 = vsel %vm6081_vm7, %v6057_v0, %v6058_v36 }
 0x21a   : > { %11296 = vmatmul.mubr.msk.f32.gmra.mrb[8].mxu1 %vm671_vm2, %v15233_v32  ;;  %11859 = vmatmul.mubr.msk.f32.gmra.mrb[50].mxu0 %vm671_vm2, %v6109_v52  ;;  %v6105_v32 = vsel %vm6081_vm7, %v6056_v14, %v6057_v0  ;;  %v6090_v52 = vsel %vm6081_vm7, %v6071_v25, %v6072_v16  ;;  %v19097_v14 = vld [vmem:[#allocation18_spill] sm:$0xff]  ;;  %v6089_v0 = vsel %vm6081_vm7, %v6072_v16, %v6073_v43 }
 0x21b   : > { %11298 = vmatprep.mubr.msk.f32.mxu1 %vm671_vm2, %v15238_v24  ;;  %11861 = vmatprep.mubr.msk.f32.mxu0 %vm671_vm2, %v6108_v33  ;;  %v6059_v24 = vrot.slane %v15896_v13, 2  ;;  %v6074_v33 = vrot.slane %v19096_v17, 2  ;;  %v19107_v25 = vld [vmem:[#allocation26_spill] sm:$0xff] }
 0x21d   : > { %v6102_v13 = vsel %vm6081_vm7, %v6059_v24, %v6060_v38 }
 0x21e   : > { %11299 = vmatmul.mubr.msk.f32.gmra.mrb[10].mxu1 %vm671_vm2, %v15251_v37  ;;  %11862 = vmatmul.mubr.msk.f32.gmra.mrb[52].mxu0 %vm671_vm2, %v6107_v44  ;;  %v6103_v37 = vsel %vm6081_vm7, %v6058_v36, %v6059_v24  ;;  %v19098_v44 = vld [vmem:[#allocation19_spill] sm:$0xff]  ;;  %v19100_v24 = vld [vmem:[#allocation110_spill] sm:$0xff] }
 0x21f   : > { %11301 = vmatprep.mubr.msk.f32.mxu1 %vm671_vm2, %v15256_v8  ;;  %11864 = vmatprep.mubr.msk.f32.mxu0 %vm671_vm2, %v6106_v19  ;;  %v6061_v8 = vrot.slane %v15938_v50, 2  ;;  %v19099_v19 = vld [vmem:[#allocation109_spill] sm:$0xff] }
 0x220   : > { %v6075_v36 = vrot.slane %v19099_v19, 2 }
 0x221   : > { %v6100_v53 = vsel %vm6081_vm7, %v6061_v8, %v6062_v59 }
 0x222   : > { %11302 = vmatmul.mubr.msk.f32.gmra.mrb[12].mxu1 %vm671_vm2, %v15269_v30  ;;  %11865 = vmatmul.mubr.msk.f32.gmra.mrb[54].mxu0 %vm671_vm2, %v6105_v32  ;;  %v6101_v30 = vsel %vm6081_vm7, %v6060_v38, %v6061_v8  ;;  %v6088_v32 = vsel %vm6081_vm7, %v6073_v43, %v6074_v33  ;;  %v19101_v38 = vld [vmem:[#allocation20_spill] sm:$0xff]  ;;  %v6087_v8 = vsel %vm6081_vm7, %v6074_v33, %v6075_v36  ;;  %v19110_v43 = vld [vmem:[#allocation29_spill] sm:$0xff]  ;;  %v19111_v33 = vld [vmem:[#allocation30_spill] sm:$0xff] }
 0x223   : > { %11304 = vmatprep.mubr.msk.f32.mxu1 %vm671_vm2, %v15274_v55  ;;  %11867 = vmatprep.mubr.msk.f32.mxu0 %vm671_vm2, %v6104_v45  ;;  %v6063_v55 = vrot.slane %v15980_v47, 2  ;;  %v6076_v45 = vrot.slane %v19100_v24, 2 }
 0x225   : > { %v6098_v29 = vsel %vm6081_vm7, %v6063_v55, %v6064_v1 }
 0x226   : > { %11305 = vmatmul.mubr.msk.f32.gmra.mrb[14].mxu1 %vm671_vm2, %v15287_v2  ;;  %11868 = vmatmul.mubr.msk.f32.gmra.mrb[56].mxu0 %vm671_vm2, %v6103_v37  ;;  %v6099_v2 = vsel %vm6081_vm7, %v6062_v59, %v6063_v55  ;;  %v19102_v37 = vld [vmem:[#allocation21_spill] sm:$0xff]  ;;  %v6086_v59 = vsel %vm6081_vm7, %v6075_v36, %v6076_v45  ;;  %v19114_v36 = vld [vmem:[#allocation31_spill] sm:$0xff] }
 0x227   : > { %11307 = vmatprep.mubr.msk.f32.mxu1 %vm671_vm2, %v15292_v27  ;;  %11870 = vmatprep.mubr.msk.f32.mxu0 %vm671_vm2, %v6102_v13  ;;  %v6065_v27 = vrot.slane %v16022_v21, 2  ;;  %v6077_v13 = vrot.slane %v16274_v51, 2 }
 0x229   : > { %v6096_v57 = vsel %vm6081_vm7, %v6065_v27, %v6066_v7 }
 0x22a   : > { %11308 = vmatmul.mubr.msk.f32.gmra.mrb[16].mxu1 %vm671_vm2, %v15305_v18  ;;  %11871 = vmatmul.mubr.msk.f32.gmra.mrb[58].mxu0 %vm671_vm2, %v6101_v30  ;;  %v6097_v18 = vsel %vm6081_vm7, %v6064_v1, %v6065_v27  ;;  %v16542_v30 = vld [vmem:[%s18509_s0 + $0x278] sm:$0xff]  ;;  %v19104_v1 = vld [vmem:[#allocation23_spill] sm:$0xff]  ;;  %v16556_v27 = vld [vmem:[%s18509_s0 + $0x280] sm:$0xff] }
 0x22b   : > { %11310 = vmatprep.mubr.msk.f32.mxu1 %vm671_vm2, %v15310_v63  ;;  %11873 = vmatprep.mubr.msk.f32.mxu0 %vm671_vm2, %v6100_v53  ;;  %v6067_v63 = vrot.slane %v16064_v11, 2  ;;  %v6078_v55 = vrot.slane %v16542_v30, 2  ;;  %v19103_v53 = vld [vmem:[#allocation22_spill] sm:$0xff] }
 0x22d   : > { %v6094_v26 = vsel %vm6081_vm7, %v6067_v63, %v6068_v48 }
 0x22e   : > { %11311 = vmatmul.mubr.msk.f32.gmra.mrb[18].mxu1 %vm671_vm2, %v15323_v56  ;;  %11874 = vmatmul.mubr.msk.f32.gmra.mrb[60].mxu0 %vm671_vm2, %v6099_v2  ;;  %v6095_v56 = vsel %vm6081_vm7, %v6066_v7, %v6067_v63  ;;  %v6085_v2 = vsel %vm6081_vm7, %v6076_v45, %v6077_v13  ;;  %v6084_v7 = vsel %vm6081_vm7, %v6077_v13, %v6078_v55  ;;  %v19117_v13 = vld [vmem:[#allocation36_spill] sm:$0xff] }
 0x22f   : > { %11313 = vmatprep.mubr.msk.f32.mxu1 %vm671_vm2, %v15328_v62  ;;  %11876 = vmatprep.mubr.msk.f32.mxu0 %vm671_vm2, %v6098_v29  ;;  %v6069_v62 = vrot.slane %v16106_v12, 2  ;;  %v6079_v29 = vrot.slane %v16556_v27, 2 }
 0x231   : > { %v6092_v35 = vsel %vm6081_vm7, %v6069_v62, %v6070_v54 }
 0x232   : > { %11314 = vmatmul.mubr.msk.f32.gmra.mrb[20].mxu1 %vm671_vm2, %v15341_v60  ;;  %11877 = vmatmul.mubr.msk.f32.gmra.mrb[62].mxu0 %vm671_vm2, %v6097_v18  ;;  %v19090_v60 = vld [vmem:[#allocation15_spill] sm:$0xff] }
 0x233   : > { %11316 = vmatprep.mubr.msk.f32.mxu1 %vm671_vm2, %v15346_v40  ;;  %11879 = vmatprep.mubr.msk.f32.mxu0 %vm671_vm2, %v6096_v57  ;;  %v6093_v40 = vsel %vm6081_vm7, %v6068_v48, %v6069_v62  ;;  %v16564_v18 = vld [vmem:[%s18509_s0 + $0x288] sm:$0xff]  ;;  %v19105_v57 = vld [vmem:[#allocation24_spill] sm:$0xff]  ;;  %v19106_v48 = vld [vmem:[#allocation25_spill] sm:$0xff] }
 0x234   : > { %v6080_v63 = vrot.slane %v16564_v18, 2  ;;  %v16578_v62 = vld [vmem:[%s18509_s0] sm:$0xff] }
 0x236   : > { %11317 = vmatmul.mubr.msk.f32.gmra.mrb[22].mxu1 %vm671_vm2, %v15359_v49  ;;  %11880 = vmatmul.mubr.msk.f32.gmra.mrb[64].mxu0 %vm671_vm2, %v6095_v56  ;;  %v19094_v49 = vld [vmem:[#allocation17_spill] sm:$0xff]  ;;  %v6083_v56 = vsel %vm6081_vm7, %v6078_v55, %v6079_v29  ;;  %v6082_v54 = vsel %vm6081_vm7, %v6079_v29, %v6080_v63  ;;  %v19118_v55 = vld [vmem:[#allocation35_spill] sm:$0xff] }
 0x237   : > { %11319 = vmatprep.mubr.msk.f32.mxu1 %vm671_vm2, %v19090_v60  ;;  %11882 = vmatprep.mubr.msk.f32.mxu0 %vm671_vm2, %v6094_v26  ;;  %v5999_v26 = vrot.slane %v16578_v62, 2  ;;  %v16586_v60 = vld [vmem:[%s18509_s0 + $0x8] sm:$0xff] }
 0x239   : > { %v6163_v16 = vsel %vm6081_vm7, %v6080_v63, %v5999_v26  ;;  %v19121_v63 = vld [vmem:[#allocation40_spill] sm:$0xff] }
 0x23a   : > { %11320 = vmatmul.mubr.msk.f32.gmra.mrb[24].mxu1 %vm671_vm2, %v19093_v31  ;;  %11883 = vmatmul.mubr.msk.f32.gmra.mrb[66].mxu0 %vm671_vm2, %v6093_v40  ;;  %v6000_v40 = vrot.slane %v16586_v60, 2 }
 0x23b   : > { %11322 = vmatprep.mubr.msk.f32.mxu1 %vm671_vm2, %v19094_v49  ;;  %11885 = vmatprep.mubr.msk.f32.mxu0 %vm671_vm2, %v6092_v35  ;;  %v19108_v35 = vld [vmem:[#allocation27_spill] sm:$0xff]  ;;  %v19109_v49 = vld [vmem:[#allocation28_spill] sm:$0xff] }
 0x23c   : > { %v6162_v31 = vsel %vm6081_vm7, %v5999_v26, %v6000_v40 }
 0x23e   : > { %11323 = vmatmul.mubr.msk.f32.gmra.mrb[26].mxu1 %vm671_vm2, %v19097_v14  ;;  %11886 = vmatmul.mubr.msk.f32.gmra.mrb[68].mxu0 %vm671_vm2, %v6091_v23  ;;  %v6974_v23 = vrot.slane %v19109_v49, 3  ;;  %v19112_v14 = vld [vmem:[#allocation32_spill] sm:$0xff] }
 0x23f   : > { %11325 = vmatprep.mubr.msk.f32.mxu1 %vm671_vm2, %v19098_v44  ;;  %11888 = vmatprep.mubr.msk.f32.mxu0 %vm671_vm2, %v6090_v52  ;;  %v6975_v52 = vrot.slane %v19110_v43, 3  ;;  %v19113_v44 = vrot.slane %v19109_v49, 2 }
 0x241   : > { %v7133_v45 = vsel %vm7054_vm8, %v6974_v23, %v6975_v52 }
 0x242   : > { %11326 = vmatmul.mubr.msk.f32.gmra.mrb[28].mxu1 %vm671_vm2, %v19101_v38  ;;  %11889 = vmatmul.mubr.msk.f32.gmra.mrb[70].mxu0 %vm671_vm2, %v6089_v0  ;;  %v6161_v0 = vsel %vm6081_vm7, %v6000_v40, %v19113_v44  ;;  %v19115_v38 = vld [vmem:[#allocation33_spill] sm:$0xff]  ;;  %v19128_v44 = vld [vmem:[#allocation46_spill] sm:$0xff] }
 0x243   : > { %11328 = vmatprep.mubr.msk.f32.mxu1 %vm671_vm2, %v19102_v37  ;;  %11891 = vmatprep.mubr.msk.f32.mxu0 %vm671_vm2, %v6088_v32  ;;  %v6976_v32 = vrot.slane %v19114_v36, 3  ;;  %v6977_v37 = vrot.slane %v19115_v38, 3 }
 0x246   : > { %11329 = vmatmul.mubr.msk.f32.gmra.mrb[30].mxu1 %vm671_vm2, %v19103_v53  ;;  %11892 = vmatmul.mubr.msk.f32.gmra.mrb[72].mxu0 %vm671_vm2, %v6087_v8  ;;  %v19116_v8 = vld [vmem:[#allocation34_spill] sm:$0xff]  ;;  %v6978_v53 = vrot.slane %v19118_v55, 3 }
 0x247   : > { %11331 = vmatprep.mubr.msk.f32.mxu1 %vm671_vm2, %v19104_v1  ;;  %11894 = vmatprep.mubr.msk.f32.mxu0 %vm671_vm2, %v6086_v59  ;;  %v7132_v59 = vsel %vm7054_vm8, %v6975_v52, %v6976_v32  ;;  %v7131_v1 = vsel %vm7054_vm8, %v6976_v32, %v6977_v37  ;;  %v19130_v32 = vld [vmem:[#allocation45_spill] sm:$0xff] }
 0x24a   : > { %11332 = vmatmul.mubr.msk.f32.gmra.mrb[32].mxu1 %vm671_vm2, %v19105_v57  ;;  %11895 = vmatmul.mubr.msk.f32.gmra.mrb[74].mxu0 %vm671_vm2, %v6085_v2  ;;  %v19119_v2 = vld [vmem:[#allocation37_spill] sm:$0xff]  ;;  %v7130_v57 = vsel %vm7054_vm8, %v6977_v37, %v6978_v53  ;;  %v19131_v37 = vld [vmem:[#allocation48_spill] sm:$0xff] }
 0x24b   : > { %11334 = vmatprep.mubr.msk.f32.mxu1 %vm671_vm2, %v19106_v48  ;;  %11897 = vmatprep.mubr.msk.f32.mxu0 %vm671_vm2, %v6084_v7  ;;  %v6979_v29 = vrot.slane %v19119_v2, 3  ;;  %v19120_v7 = vld [vmem:[#allocation38_spill] sm:$0xff]  ;;  %v19122_v48 = vld [vmem:[#allocation39_spill] sm:$0xff] }
 0x24d   : > { %v7129_v26 = vsel %vm7054_vm8, %v6978_v53, %v6979_v29  ;;  %v19134_v53 = vld [vmem:[#allocation49_spill] sm:$0xff] }
 0x24e   : > { %11335 = vmatmul.mubr.msk.f32.gmra.mrb[34].mxu1 %vm671_vm2, %v19107_v25  ;;  %11898 = vmatmul.mubr.msk.f32.gmra.mrb[76].mxu0 %vm671_vm2, %v6083_v56  ;;  %v6980_v56 = vrot.slane %v19122_v48, 3  ;;  %v19124_v25 = vld [vmem:[#allocation41_spill] sm:$0xff] }
 0x24f   : > { %11337 = vmatprep.mubr.msk.f32.mxu1 %vm671_vm2, %v19108_v35  ;;  %11900 = vmatprep.mubr.msk.f32.mxu0 %vm671_vm2, %v6082_v54  ;;  %v19123_v54 = vld [vmem:[#allocation76_spill] sm:$0xff]  ;;  %v19125_v35 = vld [vmem:[#allocation43_spill] sm:$0xff] }
 0x250   : > { %v6981_v40 = vrot.slane %v19123_v54, 3 }
 0x252   : > { %11338 = vmatmul.mubr.msk.f32.gmra.mrb[36].mxu1 %vm671_vm2, %v19111_v33  ;;  %11901 = vmatmul.mubr.msk.f32.gmra.mrb[78].mxu0 %vm671_vm2, %v6163_v16  ;;  %v7128_v16 = vsel %vm7054_vm8, %v6979_v29, %v6980_v56  ;;  %v7127_v52 = vsel %vm7054_vm8, %v6980_v56, %v6981_v40  ;;  %v19127_v33 = vld [vmem:[#allocation44_spill] sm:$0xff]  ;;  %v19138_v56 = vld [vmem:[#allocation53_spill] sm:$0xff] }
 0x253   : > { %11340 = vmatprep.mubr.msk.f32.mxu1 %vm671_vm2, %v19112_v14  ;;  %11903 = vmatprep.mubr.msk.f32.mxu0 %vm671_vm2, %v6162_v31  ;;  %v19126_v31 = vld [vmem:[#allocation42_spill] sm:$0xff]  ;;  %v6983_v14 = vrot.slane %v19127_v33, 3  ;;  %v19135_v29 = vld [vmem:[#allocation52_spill] sm:$0xff] }
 0x254   : > { %v6982_v43 = vrot.slane %v19126_v31, 3 }
 0x256   : > { %11341 = vmatmul.mubr.msk.f32.gmra.mrb[38].mxu1 %vm671_vm2, %v19116_v8  ;;  %11904 = vmatmul.mubr.msk.f32.gmra.mrb[80].mxu0 %vm671_vm2, %v6161_v0  ;;  %v19129_v0 = vld [vmem:[#allocation47_spill] sm:$0xff]  ;;  %v7126_v36 = vsel %vm7054_vm8, %v6981_v40, %v6982_v43  ;;  %v7125_v38 = vsel %vm7054_vm8, %v6982_v43, %v6983_v14  ;;  %v6985_v8 = vrot.slane %v19131_v37, 3  ;;  %v19139_v40 = vld [vmem:[#allocation56_spill] sm:$0xff]  ;;  %v19142_v43 = vld [vmem:[#allocation57_spill] sm:$0xff] }
 0x257   : > { %11343 = vmatprep.mubr.msk.f32.mxu1 %vm671_vm2, %v19117_v13  ;;  %11908 = vmatprep.mubr.msk.f32.mxu0 %vm671_vm2, %v7133_v45  ;;  %v6984_v45 = vrot.slane %v19130_v32, 3  ;;  %v19132_v13 = vld [vmem:[#allocation50_spill] sm:$0xff] }
 0x259   : > { %v7124_v55 = vsel %vm7054_vm8, %v6983_v14, %v6984_v45  ;;  %v7123_v2 = vsel %vm7054_vm8, %v6984_v45, %v6985_v8  ;;  %v19143_v14 = vld [vmem:[#allocation60_spill] sm:$0xff]  ;;  %v19146_v45 = vld [vmem:[#allocation61_spill] sm:$0xff] }
 0x25a   : > { %11344 = vmatmul.mubr.msk.f32.gmra.mrb[40].mxu1 %vm671_vm2, %v19120_v7  ;;  %11909 = vmatmul.mubr.msk.f32.vlgmr.msra.gmra.mrb[0].mxu0 %vm671_vm2, %v7132_v59  ;;  %v19133_v59 = vld [vmem:[#allocation51_spill] sm:$0xff]  ;;  %v6987_v7 = vrot.slane %v19135_v29, 3 }
 0x25b   : > { %11346 = vmatprep.mubr.msk.f32.mxu1 %vm671_vm2, %v19121_v63  ;;  %11911 = vmatprep.mubr.msk.f32.mxu0 %vm671_vm2, %v7131_v1  ;;  %v6986_v1 = vrot.slane %v19134_v53, 3  ;;  %v19136_v63 = vld [vmem:[#allocation54_spill] sm:$0xff] }
 0x25d   : > { %v7122_v48 = vsel %vm7054_vm8, %v6985_v8, %v6986_v1  ;;  %v7121_v54 = vsel %vm7054_vm8, %v6986_v1, %v6987_v7  ;;  %v19147_v8 = vld [vmem:[#allocation64_spill] sm:$0xff]  ;;  %v19150_v1 = vld [vmem:[#allocation65_spill] sm:$0xff] }
 0x25e   : > { %11347 = vmatmul.mubr.msk.f32.gmra.mrb[42].mxu1 %vm671_vm2, %v19124_v25  ;;  %11912 = vmatmul.mubr.msk.f32.gmra.mrb[2].mxu0 %vm671_vm2, %v7130_v57  ;;  %v19137_v57 = vld [vmem:[#allocation55_spill] sm:$0xff]  ;;  %v6989_v25 = vrot.slane %v19139_v40, 3 }
 0x25f   : > { %11349 = vmatprep.mubr.msk.f32.mxu1 %vm671_vm2, %v19125_v35  ;;  %11914 = vmatprep.mubr.msk.f32.mxu0 %vm671_vm2, %v7129_v26  ;;  %v6988_v26 = vrot.slane %v19138_v56, 3  ;;  %v19140_v35 = vld [vmem:[#allocation58_spill] sm:$0xff] }
 0x261   : > { %v7120_v31 = vsel %vm7054_vm8, %v6987_v7, %v6988_v26  ;;  %v7119_v33 = vsel %vm7054_vm8, %v6988_v26, %v6989_v25  ;;  %v19151_v7 = vld [vmem:[#allocation68_spill] sm:$0xff]  ;;  %v19154_v26 = vld [vmem:[#allocation69_spill] sm:$0xff] }
 0x262   : > { %11350 = vmatmul.mubr.msk.f32.gmra.mrb[44].mxu1 %vm671_vm2, %v19128_v44  ;;  %11915 = vmatmul.mubr.msk.f32.gmra.mrb[4].mxu0 %vm671_vm2, %v7128_v16  ;;  %v19141_v16 = vld [vmem:[#allocation59_spill] sm:$0xff]  ;;  %v6991_v44 = vrot.slane %v19143_v14, 3 }
 0x263   : > { %11352 = vmatprep.mubr.msk.f32.mxu1 %vm671_vm2, %v19129_v0  ;;  %11917 = vmatprep.mubr.msk.f32.mxu0 %vm671_vm2, %v7127_v52  ;;  %v6990_v52 = vrot.slane %v19142_v43, 3  ;;  %v19144_v0 = vld [vmem:[#allocation62_spill] sm:$0xff] }
 0x265   : > { %v7118_v32 = vsel %vm7054_vm8, %v6989_v25, %v6990_v52  ;;  %v7117_v37 = vsel %vm7054_vm8, %v6990_v52, %v6991_v44  ;;  %v19155_v25 = vld [vmem:[#allocation72_spill] sm:$0xff]  ;;  %v19158_v52 = vld [vmem:[#allocation73_spill] sm:$0xff] }
 0x266   : > { %11353 = vmatmul.mubr.msk.f32.gmra.mrb[46].mxu1 %vm671_vm2, %v19132_v13  ;;  %11918 = vmatmul.mubr.msk.f32.gmra.mrb[6].mxu0 %vm671_vm2, %v7126_v36  ;;  %v19145_v36 = vld [vmem:[#allocation63_spill] sm:$0xff]  ;;  %v6993_v13 = vrot.slane %v19147_v8, 3 }
 0x267   : > { %11355 = vmatprep.mubr.msk.f32.mxu1 %vm671_vm2, %v19133_v59  ;;  %11920 = vmatprep.mubr.msk.f32.mxu0 %vm671_vm2, %v7125_v38  ;;  %v6992_v38 = vrot.slane %v19146_v45, 3  ;;  %v19148_v59 = vld [vmem:[#allocation66_spill] sm:$0xff] }
 0x269   : > { %v7116_v53 = vsel %vm7054_vm8, %v6991_v44, %v6992_v38  ;;  %v7115_v29 = vsel %vm7054_vm8, %v6992_v38, %v6993_v13  ;;  %v19159_v44 = vld [vmem:[#allocation77_spill] sm:$0xff]  ;;  %v19162_v38 = vld [vmem:[#allocation78_spill] sm:$0xff] }
 0x26a   : > { %11356 = vmatmul.mubr.msk.f32.gmra.mrb[48].mxu1 %vm671_vm2, %v19136_v63  ;;  %11921 = vmatmul.mubr.msk.f32.gmra.mrb[8].mxu0 %vm671_vm2, %v7124_v55  ;;  %v19149_v55 = vld [vmem:[#allocation67_spill] sm:$0xff]  ;;  %v6995_v63 = vrot.slane %v19151_v7, 3 }
 0x26b   : > { %11358 = vmatprep.mubr.msk.f32.mxu1 %vm671_vm2, %v19137_v57  ;;  %11923 = vmatprep.mubr.msk.f32.mxu0 %vm671_vm2, %v7123_v2  ;;  %v6994_v2 = vrot.slane %v19150_v1, 3  ;;  %v19152_v57 = vld [vmem:[#allocation70_spill] sm:$0xff] }
 0x26d   : > { %v7114_v56 = vsel %vm7054_vm8, %v6993_v13, %v6994_v2  ;;  %v7113_v40 = vsel %vm7054_vm8, %v6994_v2, %v6995_v63  ;;  %v19163_v13 = vld [vmem:[#allocation81_spill] sm:$0xff]  ;;  %v19166_v2 = vld [vmem:[#allocation82_spill] sm:$0xff] }
 0x26e   : > { %11359 = vmatmul.mubr.msk.f32.gmra.mrb[50].mxu1 %vm671_vm2, %v19140_v35  ;;  %11924 = vmatmul.mubr.msk.f32.gmra.mrb[10].mxu0 %vm671_vm2, %v7122_v48  ;;  %v19153_v48 = vld [vmem:[#allocation71_spill] sm:$0xff]  ;;  %v6997_v35 = vrot.slane %v19155_v25, 3 }
 0x26f   : > { %11361 = vmatprep.mubr.msk.f32.mxu1 %vm671_vm2, %v19141_v16  ;;  %11926 = vmatprep.mubr.msk.f32.mxu0 %vm671_vm2, %v7121_v54  ;;  %v6996_v54 = vrot.slane %v19154_v26, 3  ;;  %v19156_v16 = vld [vmem:[#allocation74_spill] sm:$0xff] }
 0x271   : > { %v7112_v43 = vsel %vm7054_vm8, %v6995_v63, %v6996_v54  ;;  %v7111_v14 = vsel %vm7054_vm8, %v6996_v54, %v6997_v35  ;;  %v19167_v63 = vld [vmem:[#allocation85_spill] sm:$0xff]  ;;  %v19170_v54 = vld [vmem:[#allocation86_spill] sm:$0xff] }
 0x272   : > { %11362 = vmatmul.mubr.msk.f32.gmra.mrb[52].mxu1 %vm671_vm2, %v19144_v0  ;;  %11927 = vmatmul.mubr.msk.f32.gmra.mrb[12].mxu0 %vm671_vm2, %v7120_v31  ;;  %v19157_v31 = vld [vmem:[#allocation75_spill] sm:$0xff]  ;;  %v6999_v0 = vrot.slane %v19159_v44, 3 }
 0x273   : > { %11364 = vmatprep.mubr.msk.f32.mxu1 %vm671_vm2, %v19145_v36  ;;  %11929 = vmatprep.mubr.msk.f32.mxu0 %vm671_vm2, %v7119_v33  ;;  %v6998_v33 = vrot.slane %v19158_v52, 3  ;;  %v19160_v36 = vld [vmem:[#allocation79_spill] sm:$0xff] }
 0x275   : > { %v7110_v45 = vsel %vm7054_vm8, %v6997_v35, %v6998_v33  ;;  %v7109_v8 = vsel %vm7054_vm8, %v6998_v33, %v6999_v0  ;;  %v19171_v35 = vld [vmem:[#allocation89_spill] sm:$0xff]  ;;  %v19174_v33 = vld [vmem:[#allocation90_spill] sm:$0xff] }
 0x276   : > { %11365 = vmatmul.mubr.msk.f32.gmra.mrb[54].mxu1 %vm671_vm2, %v19148_v59  ;;  %11930 = vmatmul.mubr.msk.f32.gmra.mrb[14].mxu0 %vm671_vm2, %v7118_v32  ;;  %v19161_v32 = vld [vmem:[#allocation80_spill] sm:$0xff]  ;;  %v7001_v59 = vrot.slane %v19163_v13, 3 }
 0x277   : > { %11367 = vmatprep.mubr.msk.f32.mxu1 %vm671_vm2, %v19149_v55  ;;  %11932 = vmatprep.mubr.msk.f32.mxu0 %vm671_vm2, %v7117_v37  ;;  %v7000_v37 = vrot.slane %v19162_v38, 3  ;;  %v19164_v55 = vld [vmem:[#allocation83_spill] sm:$0xff] }
 0x279   : > { %v7108_v1 = vsel %vm7054_vm8, %v6999_v0, %v7000_v37  ;;  %v7107_v7 = vsel %vm7054_vm8, %v7000_v37, %v7001_v59  ;;  %v19175_v0 = vld [vmem:[#allocation93_spill] sm:$0xff]  ;;  %v19178_v37 = vld [vmem:[#allocation94_spill] sm:$0xff] }
 0x27a   : > { %11368 = vmatmul.mubr.msk.f32.gmra.mrb[56].mxu1 %vm671_vm2, %v19152_v57  ;;  %11933 = vmatmul.mubr.msk.f32.gmra.mrb[16].mxu0 %vm671_vm2, %v7116_v53  ;;  %v19165_v53 = vld [vmem:[#allocation84_spill] sm:$0xff]  ;;  %v7003_v57 = vrot.slane %v19167_v63, 3 }
 0x27b   : > { %11370 = vmatprep.mubr.msk.f32.mxu1 %vm671_vm2, %v19153_v48  ;;  %11935 = vmatprep.mubr.msk.f32.mxu0 %vm671_vm2, %v7115_v29  ;;  %v7002_v29 = vrot.slane %v19166_v2, 3  ;;  %v19168_v48 = vld [vmem:[#allocation87_spill] sm:$0xff] }
 0x27d   : > { %v7106_v26 = vsel %vm7054_vm8, %v7001_v59, %v7002_v29  ;;  %v7105_v25 = vsel %vm7054_vm8, %v7002_v29, %v7003_v57  ;;  %v19179_v59 = vld [vmem:[#allocation99_spill] sm:$0xff]  ;;  %v19182_v29 = vld [vmem:[#allocation101_spill] sm:$0xff] }
 0x27e   : > { %11371 = vmatmul.mubr.msk.f32.gmra.mrb[58].mxu1 %vm671_vm2, %v19156_v16  ;;  %11936 = vmatmul.mubr.msk.f32.gmra.mrb[18].mxu0 %vm671_vm2, %v7114_v56  ;;  %v19169_v56 = vld [vmem:[#allocation88_spill] sm:$0xff]  ;;  %v7005_v16 = vrot.slane %v19171_v35, 3 }
 0x27f   : > { %11373 = vmatprep.mubr.msk.f32.mxu1 %vm671_vm2, %v19157_v31  ;;  %11938 = vmatprep.mubr.msk.f32.mxu0 %vm671_vm2, %v7113_v40  ;;  %v7004_v40 = vrot.slane %v19170_v54, 3  ;;  %v19172_v31 = vld [vmem:[#allocation91_spill] sm:$0xff] }
 0x281   : > { %v7104_v52 = vsel %vm7054_vm8, %v7003_v57, %v7004_v40  ;;  %v7103_v44 = vsel %vm7054_vm8, %v7004_v40, %v7005_v16  ;;  %v19183_v57 = vld [vmem:[#allocation104_spill] sm:$0xff]  ;;  %v19186_v40 = vld [vmem:[#allocation107_spill] sm:$0xff] }
 0x282   : > { %11374 = vmatmul.mubr.msk.f32.gmra.mrb[60].mxu1 %vm671_vm2, %v19160_v36  ;;  %11939 = vmatmul.mubr.msk.f32.gmra.mrb[20].mxu0 %vm671_vm2, %v7112_v43  ;;  %v19173_v43 = vld [vmem:[#allocation92_spill] sm:$0xff]  ;;  %v7007_v36 = vrot.slane %v19175_v0, 3 }
 0x283   : > { %11376 = vmatprep.mubr.msk.f32.mxu1 %vm671_vm2, %v19161_v32  ;;  %11941 = vmatprep.mubr.msk.f32.mxu0 %vm671_vm2, %v7111_v14  ;;  %v7006_v14 = vrot.slane %v19174_v33, 3  ;;  %v19176_v32 = vld [vmem:[#allocation95_spill] sm:$0xff]  ;;  %v19190_v0 = vld [vmem:[#allocation112_spill] sm:$0xff] }
 0x284   : > { %v19189_v33 = vld [vmem:[#allocation111_spill] sm:$0xff] }
 0x285   : > { %v7102_v38 = vsel %vm7054_vm8, %v7005_v16, %v7006_v14  ;;  %v7101_v13 = vsel %vm7054_vm8, %v7006_v14, %v7007_v36  ;;  %v19187_v16 = vld [vmem:[#allocation6_spill] sm:$0xff]  ;;  %v7014_v14 = vrot.slane %v19189_v33, 3 }
 0x286   : > { %11377 = vmatmul.mubr.msk.f32.gmra.mrb[62].mxu1 %vm671_vm2, %v19164_v55  ;;  %11942 = vmatmul.mubr.msk.f32.gmra.mrb[22].mxu0 %vm671_vm2, %v7110_v45  ;;  %v19177_v45 = vld [vmem:[#allocation96_spill] sm:$0xff]  ;;  %v7009_v55 = vrot.slane %v19179_v59, 3 }
 0x287   : > { %11379 = vmatprep.mubr.msk.f32.mxu1 %vm671_vm2, %v19165_v53  ;;  %11944 = vmatprep.mubr.msk.f32.mxu0 %vm671_vm2, %v7109_v8  ;;  %v7008_v8 = vrot.slane %v19178_v37, 3  ;;  %v19180_v53 = vld [vmem:[#allocation98_spill] sm:$0xff] }
 0x289   : > { %v7100_v2 = vsel %vm7054_vm8, %v7007_v36, %v7008_v8  ;;  %v7099_v63 = vsel %vm7054_vm8, %v7008_v8, %v7009_v55  ;;  %v7015_v36 = vrot.slane %v19190_v0, 3  ;;  %v19193_v8 = vld [vmem:[#allocation10_spill] sm:$0xff] }
 0x28a   : > { %11380 = vmatmul.mubr.msk.f32.gmra.mrb[64].mxu1 %vm671_vm2, %v19168_v48  ;;  %11945 = vmatmul.mubr.msk.f32.gmra.mrb[24].mxu0 %vm671_vm2, %v7108_v1  ;;  %v19181_v1 = vld [vmem:[#allocation103_spill] sm:$0xff]  ;;  %v7011_v48 = vrot.slane %v19183_v57, 3 }
 0x28b   : > { %11382 = vmatprep.mubr.msk.f32.mxu1 %vm671_vm2, %v19169_v56  ;;  %11947 = vmatprep.mubr.msk.f32.mxu0 %vm671_vm2, %v7107_v7  ;;  %v7010_v7 = vrot.slane %v19182_v29, 3  ;;  %v19184_v56 = vld [vmem:[#allocation106_spill] sm:$0xff]  ;;  %v7093_v37 = vsel %vm7054_vm8, %v7014_v14, %v7015_v36  ;;  %v7020_v29 = vrot.slane %v16352_v22, 3 }
 0x28d   : > { %v7098_v54 = vsel %vm7054_vm8, %v7009_v55, %v7010_v7  ;;  %v7097_v35 = vsel %vm7054_vm8, %v7010_v7, %v7011_v48  ;;  %v7018_v55 = vrot.slane %v16330_v39, 3 }
 0x28e   : > { %11383 = vmatmul.mubr.msk.f32.gmra.mrb[66].mxu1 %vm671_vm2, %v19172_v31  ;;  %11948 = vmatmul.mubr.msk.f32.gmra.mrb[26].mxu0 %vm671_vm2, %v7106_v26  ;;  %v19185_v26 = vld [vmem:[#allocation108_spill] sm:$0xff]  ;;  %v7013_v31 = vrot.slane %v19187_v16, 3  ;;  %v12854_v16 = vld [vmem:[%s18509_s0 + $0x1a0] sm:$0xff] }
 0x28f   : > { %11385 = vmatprep.mubr.msk.f32.mxu1 %vm671_vm2, %v19173_v43  ;;  %11950 = vmatprep.mubr.msk.f32.mxu0 %vm671_vm2, %v7105_v25  ;;  %v7012_v25 = vrot.slane %v19186_v40, 3  ;;  %v19188_v43 = vld [vmem:[#allocation7_spill] sm:$0xff]  ;;  %v12853_v40 = vld [vmem:[%s18509_s0 + $0x198] sm:$0xff] }
 0x292   : > { %11386 = vmatmul.mubr.msk.f32.gmra.mrb[68].mxu1 %vm671_vm2, %v19176_v32  ;;  %11951 = vmatmul.mubr.msk.f32.gmra.mrb[28].mxu0 %vm671_vm2, %v7104_v52  ;;  %v7096_v52 = vsel %vm7054_vm8, %v7011_v48, %v7012_v25  ;;  %v19191_v32 = vld [vmem:[#allocation9_spill] sm:$0xff] }
 0x293   : > { %11388 = vmatprep.mubr.msk.f32.mxu1 %vm671_vm2, %v19177_v45  ;;  %11953 = vmatprep.mubr.msk.f32.mxu0 %vm671_vm2, %v7103_v44  ;;  %v7095_v44 = vsel %vm7054_vm8, %v7012_v25, %v7013_v31  ;;  %v19192_v45 = vld [vmem:[#allocation8_spill] sm:$0xff]  ;;  %v7023_v25 = vrot.slane %v12853_v40, 3 }
 0x296   : > { %11389 = vmatmul.mubr.msk.f32.gmra.mrb[70].mxu1 %vm671_vm2, %v19180_v53  ;;  %11954 = vmatmul.mubr.msk.f32.gmra.mrb[30].mxu0 %vm671_vm2, %v7102_v38  ;;  %v7016_v38 = vrot.slane %v19192_v45, 3 }
 0x297   : > { %11391 = vmatprep.mubr.msk.f32.mxu1 %vm671_vm2, %v19181_v1  ;;  %11956 = vmatprep.mubr.msk.f32.mxu0 %vm671_vm2, %v7101_v13  ;;  %v7017_v13 = vrot.slane %v19193_v8, 3  ;;  %v7019_v1 = vrot.slane %v16338_v34, 3 }
 0x298   : > { %v7092_v59 = vsel %vm7054_vm8, %v7015_v36, %v7016_v38 }
 0x299   : > { %v7091_v53 = vsel %vm7054_vm8, %v7016_v38, %v7017_v13  ;;  %v7089_v7 = vsel %vm7054_vm8, %v7018_v55, %v7019_v1  ;;  %v7088_v48 = vsel %vm7054_vm8, %v7019_v1, %v7020_v29  ;;  %v12859_v38 = vld [vmem:[%s18509_s0 + $0x1c8] sm:$0xff]  ;;  %v12861_v1 = vld [vmem:[%s18509_s0 + $0x1e0] sm:$0xff] }
 0x29a   : > { %11392 = vmatmul.mubr.msk.f32.gmra.mrb[72].mxu1 %vm671_vm2, %v19184_v56  ;;  %11957 = vmatmul.mubr.msk.f32.gmra.mrb[32].mxu0 %vm671_vm2, %v7100_v2  ;;  %v19195_v2 = vld [vmem:[#allocation14_spill] sm:$0xff]  ;;  %v12852_v56 = vld [vmem:[%s18509_s0 + $0x190] sm:$0xff] }
 0x29b   : > { %11394 = vmatprep.mubr.msk.f32.mxu1 %vm671_vm2, %v19185_v26  ;;  %11959 = vmatprep.mubr.msk.f32.mxu0 %vm671_vm2, %v7099_v63  ;;  %v12851_v63 = vld [vmem:[%s18509_s0 + $0x188] sm:$0xff]  ;;  %v7022_v26 = vrot.slane %v12852_v56, 3 }
 0x29c   : > { %v7021_v57 = vrot.slane %v12851_v63, 3 }
 0x29e   : > { %11395 = vmatmul.mubr.msk.f32.gmra.mrb[74].mxu1 %vm671_vm2, %v19188_v43  ;;  %11960 = vmatmul.mubr.msk.f32.gmra.mrb[34].mxu0 %vm671_vm2, %v7098_v54  ;;  %v7087_v54 = vsel %vm7054_vm8, %v7020_v29, %v7021_v57  ;;  %v7085_v43 = vsel %vm7054_vm8, %v7022_v26, %v7023_v25 }
 0x29f   : > { %11397 = vmatprep.mubr.msk.f32.mxu1 %vm671_vm2, %v16267_v41  ;;  %11962 = vmatprep.mubr.msk.f32.mxu0 %vm671_vm2, %v7097_v35  ;;  %v7094_v41 = vsel %vm7054_vm8, %v7013_v31, %v7014_v14  ;;  %v7086_v35 = vsel %vm7054_vm8, %v7021_v57, %v7022_v26  ;;  %v7024_v31 = vrot.slane %v12854_v16, 3  ;;  %v12856_v14 = vld [vmem:[%s18509_s0 + $0x1b0] sm:$0xff]  ;;  %v7035_v57 = vrot.slane %v15962_v6, 3  ;;  %v12862_v6 = vld [vmem:[%s18509_s0 + $0x1d8] sm:$0xff] }
 0x2a0   : > { %v7038_v26 = vrot.slane %v16022_v21, 3 }
 0x2a2   : > { %11398 = vmatmul.mubr.msk.f32.gmra.mrb[76].mxu1 %vm671_vm2, %v16291_v42  ;;  %11963 = vmatmul.mubr.msk.f32.gmra.mrb[36].mxu0 %vm671_vm2, %v7096_v52  ;;  %v19194_v42 = vld [vmem:[#allocation13_spill] sm:$0xff]  ;;  %v12855_v52 = vld [vmem:[%s18509_s0 + $0x1a8] sm:$0xff] }
 0x2a3   : > { %11400 = vmatprep.mubr.msk.f32.mxu1 %vm671_vm2, %v19191_v32  ;;  %11965 = vmatprep.mubr.msk.f32.mxu0 %vm671_vm2, %v7095_v44  ;;  %v7026_v44 = vrot.slane %v12856_v14, 3  ;;  %v12858_v32 = vld [vmem:[%s18509_s0 + $0x1c0] sm:$0xff] }
 0x2a6   : > { %11401 = vmatmul.mubr.msk.f32.gmra.mrb[78].mxu1 %vm671_vm2, %v16323_v46  ;;  %11966 = vmatmul.mubr.msk.f32.gmra.mrb[38].mxu0 %vm671_vm2, %v7094_v41  ;;  %v7090_v46 = vsel %vm7054_vm8, %v7017_v13, %v7018_v55  ;;  %v7028_v41 = vrot.slane %v12858_v32, 3  ;;  %v12860_v13 = vld [vmem:[%s18509_s0 + $0x1d0] sm:$0xff]  ;;  %v7031_v55 = vrot.slane %v15878_v28, 3  ;;  %v7033_v28 = vrot.slane %v15920_v4, 3 }
 0x2a7   : > { %11403 = vmatprep.mubr.msk.f32.mxu1 %vm671_vm2, %v19194_v42  ;;  %11968 = vmatprep.mubr.msk.f32.mxu0 %vm671_vm2, %v7093_v37  ;;  %v7029_v37 = vrot.slane %v12859_v38, 3  ;;  %v7030_v42 = vrot.slane %v12860_v13, 3 }
 0x2aa   : > { %11404 = vmatmul.mubr.msk.f32.gmra.mrb[80].mxu1 %vm671_vm2, %v19195_v2  ;;  %11969 = vmatmul.mubr.msk.f32.gmra.mrb[40].mxu0 %vm671_vm2, %v7092_v59  ;;  %v7079_v59 = vsel %vm7054_vm8, %v7028_v41, %v7029_v37  ;;  %v7032_v2 = vrot.slane %v12861_v1, 3 }
 0x2ab   : > { %11471 = vmatprep.mubr.msk.f32.mxu1 %vm671_vm2, %v19189_v33  ;;  %11971 = vmatprep.mubr.msk.f32.mxu0 %vm671_vm2, %v7091_v53  ;;  %v7025_v33 = vrot.slane %v12855_v52, 3  ;;  %v7078_v53 = vsel %vm7054_vm8, %v7029_v37, %v7030_v42 }
 0x2ac   : > { %v7076_v29 = vsel %vm7054_vm8, %v7031_v55, %v7032_v2 }
 0x2ae   : > { %11472 = vmatmul.mubr.msk.f32.vlgmr.msra.gmra.mrb[42].mxu1 %vm671_vm2, %v19190_v0  ;;  %11972 = vmatmul.mubr.msk.f32.gmra.mrb[42].mxu0 %vm671_vm2, %v7090_v46  ;;  %v7083_v0 = vsel %vm7054_vm8, %v7024_v31, %v7025_v33  ;;  %v7077_v46 = vsel %vm7054_vm8, %v7030_v42, %v7031_v55 }
 0x2af   : > { %11474 = vmatprep.mubr.msk.f32.mxu1 %vm671_vm2, %v19192_v45  ;;  %11974 = vmatprep.mubr.msk.f32.mxu0 %vm671_vm2, %v7089_v7  ;;  %v7034_v7 = vrot.slane %v15938_v50, 3 }
 0x2b1   : > { %v7074_v4 = vsel %vm7054_vm8, %v7033_v28, %v7034_v7  ;;  %v7073_v50 = vsel %vm7054_vm8, %v7034_v7, %v7035_v57  ;;  %v7051_v7 = vrot.slane %v16542_v30, 3 }
 0x2b2   : > { %11475 = vmatmul.mubr.msk.f32.gmra.mrb[44].mxu1 %vm671_vm2, %v19193_v8  ;;  %11975 = vmatmul.mubr.msk.f32.gmra.mrb[44].mxu0 %vm671_vm2, %v7088_v48  ;;  %v7036_v48 = vrot.slane %v15980_v47, 3 }
 0x2b3   : > { %11477 = vmatprep.mubr.msk.f32.mxu1 %vm671_vm2, %v16330_v39  ;;  %11977 = vmatprep.mubr.msk.f32.mxu0 %vm671_vm2, %v7087_v54  ;;  %v7084_v39 = vsel %vm7054_vm8, %v7023_v25, %v7024_v31  ;;  %v7039_v54 = vrot.slane %v16046_v3, 3  ;;  %v12864_v25 = vld [vmem:[%s18509_s0 + $0x1f0] sm:$0xff]  ;;  %v7040_v3 = vrot.slane %v16064_v11, 3  ;;  %v12865_v31 = vld [vmem:[%s18509_s0 + $0x1f8] sm:$0xff] }
 0x2b4   : > { %v7072_v47 = vsel %vm7054_vm8, %v7035_v57, %v7036_v48 }
 0x2b5   : > { %v7068_v11 = vsel %vm7054_vm8, %v7039_v54, %v7040_v3 }
 0x2b6   : > { %11478 = vmatmul.mubr.msk.f32.gmra.mrb[46].mxu1 %vm671_vm2, %v16338_v34  ;;  %11978 = vmatmul.mubr.msk.f32.gmra.mrb[46].mxu0 %vm671_vm2, %v7086_v35  ;;  %v12857_v34 = vld [vmem:[%s18509_s0 + $0x1b8] sm:$0xff]  ;;  %v7069_v35 = vsel %vm7054_vm8, %v7038_v26, %v7039_v54 }
 0x2b7   : > { %11480 = vmatprep.mubr.msk.f32.mxu1 %vm671_vm2, %v16352_v22  ;;  %11980 = vmatprep.mubr.msk.f32.mxu0 %vm671_vm2, %v7085_v43  ;;  %v7027_v36 = vrot.slane %v12857_v34, 3  ;;  %v7082_v22 = vsel %vm7054_vm8, %v7025_v33, %v7026_v44  ;;  %v12866_v43 = vld [vmem:[%s18509_s0 + $0x200] sm:$0xff]  ;;  %v7043_v33 = vrot.slane %v16130_v61, 3  ;;  %v7044_v61 = vrot.slane %v19091_v58, 3  ;;  %v12877_v54 = vld [vmem:[%s18509_s0 + $0x258] sm:$0xff] }
 0x2b8   : > { %v12870_v58 = vld [vmem:[%s18509_s0 + $0x220] sm:$0xff] }
 0x2b9   : > { %v7081_v45 = vsel %vm7054_vm8, %v7026_v44, %v7027_v36  ;;  %v7080_v8 = vsel %vm7054_vm8, %v7027_v36, %v7028_v41 }
 0x2ba   : > { %11481 = vmatmul.mubr.msk.f32.gmra.mrb[48].mxu1 %vm671_vm2, %v12851_v63  ;;  %11981 = vmatmul.mubr.msk.f32.gmra.mrb[48].mxu0 %vm671_vm2, %v7084_v39  ;;  %v7075_v63 = vsel %vm7054_vm8, %v7032_v2, %v7033_v28  ;;  %v12867_v39 = vld [vmem:[%s18509_s0 + $0x208] sm:$0xff]  ;;  %v12874_v2 = vld [vmem:[%s18509_s0 + $0x240] sm:$0xff]  ;;  %v7050_v28 = vrot.slane %v16274_v51, 3 }
 0x2bb   : > { %11483 = vmatprep.mubr.msk.f32.mxu1 %vm671_vm2, %v12852_v56  ;;  %11983 = vmatprep.mubr.msk.f32.mxu0 %vm671_vm2, %v7083_v0  ;;  %v7037_v56 = vrot.slane %v16004_v15, 3  ;;  %v7045_v0 = vrot.slane %v19092_v20, 3  ;;  %v7064_v20 = vsel %vm7054_vm8, %v7043_v33, %v7044_v61 }
 0x2bd   : > { %v7071_v15 = vsel %vm7054_vm8, %v7036_v48, %v7037_v56  ;;  %v7070_v21 = vsel %vm7054_vm8, %v7037_v56, %v7038_v26  ;;  %v7063_v41 = vsel %vm7054_vm8, %v7044_v61, %v7045_v0  ;;  %v12876_v48 = vld [vmem:[%s18509_s0 + $0x250] sm:$0xff]  ;;  %v7052_v56 = vrot.slane %v16556_v27, 3 }
 0x2be   : > { %11484 = vmatmul.mubr.msk.f32.gmra.mrb[50].mxu1 %vm671_vm2, %v12853_v40  ;;  %11984 = vmatmul.mubr.msk.f32.gmra.mrb[50].mxu0 %vm671_vm2, %v7082_v22  ;;  %v12863_v40 = vld [vmem:[%s18509_s0 + $0x1e8] sm:$0xff]  ;;  %v12869_v22 = vld [vmem:[%s18509_s0 + $0x218] sm:$0xff] }
 0x2bf   : > { %11486 = vmatprep.mubr.msk.f32.mxu1 %vm671_vm2, %v12854_v16  ;;  %11986 = vmatprep.mubr.msk.f32.mxu0 %vm671_vm2, %v7081_v45  ;;  %v7041_v16 = vrot.slane %v16088_v5, 3  ;;  %v7042_v5 = vrot.slane %v16106_v12, 3  ;;  %v7047_v45 = vrot.slane %v19096_v17, 3 }
 0x2c1   : > { %v7066_v12 = vsel %vm7054_vm8, %v7041_v16, %v7042_v5  ;;  %v7065_v44 = vsel %vm7054_vm8, %v7042_v5, %v7043_v33 }
 0x2c2   : > { %11487 = vmatmul.mubr.msk.f32.gmra.mrb[52].mxu1 %vm671_vm2, %v12855_v52  ;;  %11987 = vmatmul.mubr.msk.f32.gmra.mrb[52].mxu0 %vm671_vm2, %v7080_v8  ;;  %v7067_v52 = vsel %vm7054_vm8, %v7040_v3, %v7041_v16  ;;  %v12871_v8 = vld [vmem:[%s18509_s0 + $0x228] sm:$0xff]  ;;  %v6973_v3 = vrot.slane %v16586_v60, 3 }
 0x2c3   : > { %11489 = vmatprep.mubr.msk.f32.mxu1 %vm671_vm2, %v12856_v14  ;;  %11989 = vmatprep.mubr.msk.f32.mxu0 %vm671_vm2, %v7079_v59  ;;  %v12868_v14 = vld [vmem:[%s18509_s0 + $0x210] sm:$0xff]  ;;  %v7049_v59 = vrot.slane %v19100_v24, 3 }
 0x2c6   : > { %11490 = vmatmul.mubr.msk.f32.gmra.mrb[54].mxu1 %vm671_vm2, %v12857_v34  ;;  %11990 = vmatmul.mubr.msk.f32.gmra.mrb[54].mxu0 %vm671_vm2, %v7078_v53 }
 0x2c7   : > { %11492 = vmatprep.mubr.msk.f32.mxu1 %vm671_vm2, %v12858_v32  ;;  %11992 = vmatprep.mubr.msk.f32.mxu0 %vm671_vm2, %v7077_v46  ;;  %v7046_v32 = vrot.slane %v19095_v9, 3  ;;  %v12872_v9 = vld [vmem:[%s18509_s0 + $0x230] sm:$0xff] }
 0x2c9   : > { %v7062_v17 = vsel %vm7054_vm8, %v7045_v0, %v7046_v32  ;;  %v7061_v42 = vsel %vm7054_vm8, %v7046_v32, %v7047_v45 }
 0x2ca   : > { %11493 = vmatmul.mubr.msk.f32.gmra.mrb[56].mxu1 %vm671_vm2, %v12859_v38  ;;  %11993 = vmatmul.mubr.msk.f32.gmra.mrb[56].mxu0 %vm671_vm2, %v7076_v29 }
 0x2cb   : > { %11495 = vmatprep.mubr.msk.f32.mxu1 %vm671_vm2, %v12860_v13  ;;  %11995 = vmatprep.mubr.msk.f32.mxu0 %vm671_vm2, %v7075_v63  ;;  %v7048_v13 = vrot.slane %v19099_v19, 3 }
 0x2cd   : > { %v7060_v46 = vsel %vm7054_vm8, %v7047_v45, %v7048_v13  ;;  %v7059_v29 = vsel %vm7054_vm8, %v7048_v13, %v7049_v59 }
 0x2ce   : > { %11496 = vmatmul.mubr.msk.f32.gmra.mrb[58].mxu1 %vm671_vm2, %v12862_v6  ;;  %11996 = vmatmul.mubr.msk.f32.gmra.mrb[58].mxu0 %vm671_vm2, %v7074_v4  ;;  %v12875_v4 = vld [vmem:[%s18509_s0 + $0x248] sm:$0xff]  ;;  %v7057_v6 = vsel %vm7054_vm8, %v7050_v28, %v7051_v7 }
 0x2cf   : > { %11498 = vmatprep.mubr.msk.f32.mxu1 %vm671_vm2, %v12861_v1  ;;  %11998 = vmatprep.mubr.msk.f32.mxu0 %vm671_vm2, %v7073_v50  ;;  %v12873_v1 = vld [vmem:[%s18509_s0 + $0x238] sm:$0xff]  ;;  %v7058_v50 = vsel %vm7054_vm8, %v7049_v59, %v7050_v28 }
 0x2d2   : > { %11499 = vmatmul.mubr.msk.f32.gmra.mrb[60].mxu1 %vm671_vm2, %v12863_v40  ;;  %11999 = vmatmul.mubr.msk.f32.gmra.mrb[60].mxu0 %vm671_vm2, %v7072_v47  ;;  %v7053_v47 = vrot.slane %v16564_v18, 3  ;;  %v7056_v40 = vsel %vm7054_vm8, %v7051_v7, %v7052_v56 }
 0x2d3   : > { %11501 = vmatprep.mubr.msk.f32.mxu1 %vm671_vm2, %v12864_v25  ;;  %12001 = vmatprep.mubr.msk.f32.mxu0 %vm671_vm2, %v7071_v15  ;;  %v6972_v25 = vrot.slane %v16578_v62, 3 }
 0x2d5   : > { %v7135_v62 = vsel %vm7054_vm8, %v6972_v25, %v6973_v3 }
 0x2d6   : > { %11502 = vmatmul.mubr.msk.f32.gmra.mrb[62].mxu1 %vm671_vm2, %v12865_v31  ;;  %12002 = vmatmul.mubr.msk.f32.gmra.mrb[62].mxu0 %vm671_vm2, %v7070_v21  ;;  %v7055_v21 = vsel %vm7054_vm8, %v7052_v56, %v7053_v47 }
 0x2d7   : > { %11504 = vmatprep.mubr.msk.f32.mxu1 %vm671_vm2, %v12866_v43  ;;  %12004 = vmatprep.mubr.msk.f32.mxu0 %vm671_vm2, %v7069_v35 }
 0x2da   : > { %11505 = vmatmul.mubr.msk.f32.gmra.mrb[64].mxu1 %vm671_vm2, %v12867_v39  ;;  %12005 = vmatmul.mubr.msk.f32.gmra.mrb[64].mxu0 %vm671_vm2, %v7068_v11 }
 0x2db   : > { %11507 = vmatprep.mubr.msk.f32.mxu1 %vm671_vm2, %v12868_v14  ;;  %12007 = vmatprep.mubr.msk.f32.mxu0 %vm671_vm2, %v7067_v52 }
 0x2dd   : > { %v17051_v34 = vpop.f32.mrb[0].mxu1 }
 0x2de   : > { %v17053_v36 = vpop.f32.mrb[1].mxu1  ;;  %11508 = vmatmul.mubr.msk.f32.gmra.mrb[66].mxu1 %vm671_vm2, %v12869_v22  ;;  %12008 = vmatmul.mubr.msk.f32.gmra.mrb[66].mxu0 %vm671_vm2, %v7066_v12 }
 0x2df   : > { %11510 = vmatprep.mubr.msk.f32.mxu1 %vm671_vm2, %v12870_v58  ;;  %12010 = vmatprep.mubr.msk.f32.mxu0 %vm671_vm2, %v7065_v44 }
 0x2e1   : > { %v17071_v38 = vpop.f32.mrb[2].mxu1 }
 0x2e2   : > { %v17073_v37 = vpop.f32.mrb[3].mxu1  ;;  %11511 = vmatmul.mubr.msk.f32.gmra.mrb[68].mxu1 %vm671_vm2, %v12871_v8  ;;  %12011 = vmatmul.mubr.msk.f32.gmra.mrb[68].mxu0 %vm671_vm2, %v7064_v20 }
 0x2e3   : > { %11513 = vmatprep.mubr.msk.f32.mxu1 %vm671_vm2, %v12872_v9  ;;  %12013 = vmatprep.mubr.msk.f32.mxu0 %vm671_vm2, %v7063_v41 }
 0x2e5   : > { %v17091_v55 = vpop.f32.mrb[4].mxu1 }
 0x2e6   : > { %v17093_v53 = vpop.f32.mrb[5].mxu1  ;;  %11514 = vmatmul.mubr.msk.f32.gmra.mrb[70].mxu1 %vm671_vm2, %v12873_v1  ;;  %12014 = vmatmul.mubr.msk.f32.gmra.mrb[70].mxu0 %vm671_vm2, %v7062_v17 }
 0x2e7   : > { %11516 = vmatprep.mubr.msk.f32.mxu1 %vm671_vm2, %v12874_v2  ;;  %12016 = vmatprep.mubr.msk.f32.mxu0 %vm671_vm2, %v7061_v42 }
 0x2e9   : > { %v17111_v63 = vpop.f32.mrb[6].mxu1 }
 0x2ea   : > { %v17113_v57 = vpop.f32.mrb[7].mxu1  ;;  %11517 = vmatmul.mubr.msk.f32.gmra.mrb[72].mxu1 %vm671_vm2, %v12875_v4  ;;  %12017 = vmatmul.mubr.msk.f32.gmra.mrb[72].mxu0 %vm671_vm2, %v7060_v46 }
 0x2eb   : > { %11519 = vmatprep.mubr.msk.f32.mxu1 %vm671_vm2, %v12876_v48  ;;  %12019 = vmatprep.mubr.msk.f32.mxu0 %vm671_vm2, %v7059_v29 }
 0x2ed   : > { %v17131_v26 = vpop.f32.mrb[8].mxu1 }
 0x2ee   : > { %v17133_v15 = vpop.f32.mrb[9].mxu1  ;;  %11520 = vmatmul.mubr.msk.f32.gmra.mrb[74].mxu1 %vm671_vm2, %v12877_v54  ;;  %12020 = vmatmul.mubr.msk.f32.gmra.mrb[74].mxu0 %vm671_vm2, %v7058_v50 }
 0x2ef   : > { %11522 = vmatprep.mubr.msk.f32.mxu1 %vm671_vm2, %v19099_v19  ;;  %12022 = vmatprep.mubr.msk.f32.mxu0 %vm671_vm2, %v7057_v6  ;;  %v7136_v19 = vsel %vm7054_vm8, %v7053_v47, %v6972_v25 }
 0x2f1   : > { %v17149_v35 = vpop.f32.mrb[10].mxu1 }
 0x2f2   : > { %v17151_v16 = vpop.f32.mrb[11].mxu1  ;;  %11523 = vmatmul.mubr.msk.f32.gmra.mrb[76].mxu1 %vm671_vm2, %v19100_v24  ;;  %12023 = vmatmul.mubr.msk.f32.gmra.mrb[76].mxu0 %vm671_vm2, %v7056_v40 }
 0x2f3   : > { %11525 = vmatprep.mubr.msk.f32.mxu1 %vm671_vm2, %v16274_v51  ;;  %12025 = vmatprep.mubr.msk.f32.mxu0 %vm671_vm2, %v7055_v21  ;;  %v7134_v51 = vsel %vm7054_vm8, %v6973_v3, %v6974_v23 }
 0x2f5   : > { %v11303_v60 = vpop.f32.mrb[12].mxu1 }
 0x2f6   : > { %v17163_v31 = vpop.f32.mrb[13].mxu1  ;;  %11526 = vmatmul.mubr.msk.f32.gmra.mrb[78].mxu1 %vm671_vm2, %v16542_v30  ;;  %12026 = vmatmul.mubr.msk.f32.gmra.mrb[78].mxu0 %vm671_vm2, %v7136_v19 }
 0x2f7   : > { %11528 = vmatprep.mubr.msk.f32.mxu1 %vm671_vm2, %v16556_v27  ;;  %12028 = vmatprep.mubr.msk.f32.mxu0 %vm671_vm2, %v7135_v62 }
 0x2f9   : > { %v11306_v24 = vpop.f32.mrb[14].mxu1 }
 0x2fa   : > { %v3235_v43 = vpop.f32.mrb[15].mxu1  ;;  %11529 = vmatmul.mubr.msk.f32.gmra.mrb[80].mxu1 %vm671_vm2, %v16564_v18  ;;  %12029 = vmatmul.mubr.msk.f32.gmra.mrb[80].mxu0 %vm671_vm2, %v7134_v51 }
 0x2fd   : > { %v11309_v30 = vpop.f32.mrb[16].mxu1 }
 0x2fe   : > { %v3245_v11 = vpop.f32.mrb[17].mxu1 }
 0x301   : > { %v11312_v5 = vpop.f32.mrb[18].mxu1 }
 0x302   : > { %v3255_v52 = vpop.f32.mrb[19].mxu1 }
 0x305   : > { %v17178_v33 = vpop.f32.mrb[20].mxu1 }
 0x306   : > { %v17180_v27 = vpop.f32.mrb[21].mxu1 }
 0x309   : > { %v17182_v39 = vpop.f32.mrb[22].mxu1 }
 0x30a   : > { %v17184_v49 = vpop.f32.mrb[23].mxu1 }
 0x30d   : > { %v17186_v10 = vpop.f32.mrb[24].mxu1 }
 0x30e   : > { %v17188_v23 = vpop.f32.mrb[25].mxu1 }
 0x311   : > { %v17190_v14 = vpop.f32.mrb[26].mxu1 }
 0x312   : > { %v17192_v18 = vpop.f32.mrb[27].mxu1 }
 0x315   : > { %v17194_v12 = vpop.f32.mrb[28].mxu1 }
 0x316   : > { %v17196_v61 = vpop.f32.mrb[29].mxu1 }
 0x319   : > { %v17198_v44 = vpop.f32.mrb[30].mxu1 }
 0x31a   : > { %v17200_v0 = vpop.f32.mrb[31].mxu1 }
 0x31d   : > { %v17202_v22 = vpop.f32.mrb[32].mxu1 }
 0x31e   : > { %v17204_v58 = vpop.f32.mrb[33].mxu1 }
 0x321   : > { %v17206_v20 = vpop.f32.mrb[34].mxu1 }
 0x322   : > { %v17208_v32 = vpop.f32.mrb[35].mxu1 }
 0x325   : > { %v17210_v41 = vpop.f32.mrb[36].mxu1 }
 0x326   : > { %v17212_v45 = vpop.f32.mrb[37].mxu1 }
 0x329   : > { %v17214_v8 = vpop.f32.mrb[38].mxu1 }
 0x32a   : > { %v17216_v9 = vpop.f32.mrb[39].mxu1 }
 0x32d   : > { %v17218_v17 = vpop.f32.mrb[40].mxu1  ;;  %v11910_v13 = vpop.f32.mrb[0].mxu0 }
 0x32e   : > { %v17221_v42 = vadd.f32 %v11910_v13, %v17051_v34  ;;  %v17223_v59 = vpop.f32.mrb[41].mxu1  ;;  %v7454_v1 = vpop.f32.mrb[1].mxu0 }
 0x32f   : > { %v17226_v2 = vadd.f32 %v7454_v1, %v17053_v36 }
 0x330   : > { %19196 = vst [vmem:[#allocation11_spill] sm:$0xff] %v17221_v42 }
 0x331   : > { %19197 = vst [vmem:[#allocation12_spill] sm:$0xff] %v17226_v2  ;;  %v11913_v46 = vpop.f32.mrb[2].mxu0 }
 0x332   : > { %v17229_v28 = vadd.f32 %v11913_v46, %v17071_v38  ;;  %v7464_v29 = vpop.f32.mrb[3].mxu0 }
 0x333   : > { %v17232_v7 = vadd.f32 %v7464_v29, %v17073_v37 }
 0x334   : > { %19198 = vst [vmem:[#allocation15_spill] sm:$0xff] %v17229_v28 }
 0x335   : > { %19199 = vst [vmem:[#allocation97_spill] sm:$0xff] %v17232_v7  ;;  %v11916_v4 = vpop.f32.mrb[4].mxu0 }
 0x336   : > { %v17235_v48 = vadd.f32 %v11916_v4, %v17091_v55  ;;  %v7474_v34 = vpop.f32.mrb[5].mxu0 }
 0x337   : > { %v17238_v50 = vadd.f32 %v7474_v34, %v17093_v53 }
 0x338   : > { %19200 = vst [vmem:[#allocation100_spill] sm:$0xff] %v17235_v48 }
 0x339   : > { %v11919_v56 = vpop.f32.mrb[6].mxu0 }
 0x33a   : > { %v17241_v36 = vadd.f32 %v11919_v56, %v17111_v63  ;;  %v7484_v6 = vpop.f32.mrb[7].mxu0 }
 0x33b   : > { %v17244_v38 = vadd.f32 %v7484_v6, %v17113_v57 }
 0x33d   : > { %v11922_v47 = vpop.f32.mrb[8].mxu0 }
 0x33e   : > { %v17247_v37 = vadd.f32 %v11922_v47, %v17131_v26  ;;  %v7494_v54 = vpop.f32.mrb[9].mxu0 }
 0x33f   : > { %v17250_v55 = vadd.f32 %v7494_v54, %v17133_v15 }
 0x341   : > { %v11925_v40 = vpop.f32.mrb[10].mxu0 }
 0x342   : > { %v17253_v53 = vadd.f32 %v11925_v40, %v17149_v35  ;;  %v7504_v25 = vpop.f32.mrb[11].mxu0 }
 0x343   : > { %v17256_v63 = vadd.f32 %v7504_v25, %v17151_v16 }
 0x345   : > { %v11928_v21 = vpop.f32.mrb[12].mxu0 }
 0x346   : > { %v17258_v3 = vadd.f32 %v11928_v21, %v11303_v60  ;;  %v7514_v57 = vpop.f32.mrb[13].mxu0 }
 0x347   : > { %v17261_v19 = vadd.f32 %v7514_v57, %v17163_v31 }
 0x349   : > { %v11931_v26 = vpop.f32.mrb[14].mxu0 }
 0x34a   : > { %v17263_v62 = vadd.f32 %v11931_v26, %v11306_v24  ;;  %v7524_v15 = vpop.f32.mrb[15].mxu0 }
 0x34b   : > { %v17265_v51 = vadd.f32 %v7524_v15, %v3235_v43 }
 0x34c   : > { %19201 = vst [vmem:[#allocation16_spill] sm:$0xff] %v17263_v62 }
 0x34d   : > { %19202 = vst [vmem:[#allocation17_spill] sm:$0xff] %v17265_v51  ;;  %v11934_v13 = vpop.f32.mrb[16].mxu0 }
 0x34e   : > { %v17267_v35 = vadd.f32 %v11934_v13, %v11309_v30  ;;  %v7534_v1 = vpop.f32.mrb[17].mxu0 }
 0x34f   : > { %v17269_v46 = vadd.f32 %v7534_v1, %v3245_v11 }
 0x351   : > { %v11937_v16 = vpop.f32.mrb[18].mxu0 }
 0x352   : > { %v17271_v29 = vadd.f32 %v11937_v16, %v11312_v5  ;;  %v7544_v60 = vpop.f32.mrb[19].mxu0 }
 0x353   : > { %v17273_v4 = vadd.f32 %v7544_v60, %v3255_v52 }
 0x355   : > { %v11940_v31 = vpop.f32.mrb[20].mxu0 }
 0x356   : > { %v17276_v34 = vadd.f32 %v11940_v31, %v17178_v33  ;;  %v7554_v24 = vpop.f32.mrb[21].mxu0 }
 0x357   : > { %v17279_v43 = vadd.f32 %v7554_v24, %v17180_v27 }
 0x359   : > { %v11943_v56 = vpop.f32.mrb[22].mxu0 }
 0x35a   : > { %v17282_v30 = vadd.f32 %v11943_v56, %v17182_v39  ;;  %v7564_v11 = vpop.f32.mrb[23].mxu0 }
 0x35b   : > { %v17285_v6 = vadd.f32 %v7564_v11, %v17184_v49 }
 0x35d   : > { %v11946_v5 = vpop.f32.mrb[24].mxu0 }
 0x35e   : > { %v17288_v52 = vadd.f32 %v11946_v5, %v17186_v10  ;;  %v7574_v47 = vpop.f32.mrb[25].mxu0 }
 0x35f   : > { %v17291_v33 = vadd.f32 %v7574_v47, %v17188_v23 }
 0x361   : > { %v11949_v54 = vpop.f32.mrb[26].mxu0 }
 0x362   : > { %v17294_v27 = vadd.f32 %v11949_v54, %v17190_v14  ;;  %v7584_v40 = vpop.f32.mrb[27].mxu0 }
 0x363   : > { %v17297_v39 = vadd.f32 %v7584_v40, %v17192_v18 }
 0x365   : > { %v11952_v25 = vpop.f32.mrb[28].mxu0 }
 0x366   : > { %v17300_v49 = vadd.f32 %v11952_v25, %v17194_v12  ;;  %v7594_v21 = vpop.f32.mrb[29].mxu0 }
 0x367   : > { %v17303_v10 = vadd.f32 %v7594_v21, %v17196_v61 }
 0x369   : > { %v11955_v57 = vpop.f32.mrb[30].mxu0 }
 0x36a   : > { %v17306_v23 = vadd.f32 %v11955_v57, %v17198_v44  ;;  %v7604_v26 = vpop.f32.mrb[31].mxu0 }
 0x36b   : > { %v17309_v14 = vadd.f32 %v7604_v26, %v17200_v0 }
 0x36d   : > { %v11958_v15 = vpop.f32.mrb[32].mxu0 }
 0x36e   : > { %v17312_v18 = vadd.f32 %v11958_v15, %v17202_v22  ;;  %v7614_v13 = vpop.f32.mrb[33].mxu0 }
 0x36f   : > { %v17315_v12 = vadd.f32 %v7614_v13, %v17204_v58 }
 0x371   : > { %v11961_v1 = vpop.f32.mrb[34].mxu0 }
 0x372   : > { %v17318_v61 = vadd.f32 %v11961_v1, %v17206_v20  ;;  %v7624_v16 = vpop.f32.mrb[35].mxu0 }
 0x373   : > { %v17321_v44 = vadd.f32 %v7624_v16, %v17208_v32 }
 0x375   : > { %v11964_v60 = vpop.f32.mrb[36].mxu0 }
 0x376   : > { %v17324_v0 = vadd.f32 %v11964_v60, %v17210_v41  ;;  %v7634_v31 = vpop.f32.mrb[37].mxu0 }
 0x377   : > { %v17327_v22 = vadd.f32 %v7634_v31, %v17212_v45 }
 0x379   : > { %v11967_v24 = vpop.f32.mrb[38].mxu0 }
 0x37a   : > { %v17330_v58 = vadd.f32 %v11967_v24, %v17214_v8  ;;  %v7644_v56 = vpop.f32.mrb[39].mxu0 }
 0x37b   : > { %v17333_v20 = vadd.f32 %v7644_v56, %v17216_v9 }
 0x37d   : > { %v11970_v11 = vpop.f32.mrb[40].mxu0 }
 0x37e   : > { %v17336_v32 = vadd.f32 %v11970_v11, %v17218_v17  ;;  %v7654_v5 = vpop.f32.mrb[41].mxu0 }
 0x37f   : > { %v17339_v41 = vadd.f32 %v7654_v5, %v17223_v59 }
 0x381   : > { %v11473_v47 = vpop.f32.mrb[42].mxu1  ;;  %v11973_v54 = vpop.f32.mrb[42].mxu0 }
 0x382   : > { %v17341_v45 = vadd.f32 %v11973_v54, %v11473_v47  ;;  %v4183_v40 = vpop.f32.mrb[43].mxu1  ;;  %v7664_v25 = vpop.f32.mrb[43].mxu0 }
 0x383   : > { %v17343_v8 = vadd.f32 %v7664_v25, %v4183_v40 }
 0x385   : > { %v11476_v21 = vpop.f32.mrb[44].mxu1  ;;  %v11976_v57 = vpop.f32.mrb[44].mxu0 }
 0x386   : > { %v17345_v9 = vadd.f32 %v11976_v57, %v11476_v21  ;;  %v4193_v26 = vpop.f32.mrb[45].mxu1  ;;  %v7674_v15 = vpop.f32.mrb[45].mxu0 }
 0x387   : > { %v17347_v17 = vadd.f32 %v7674_v15, %v4193_v26 }
 0x388   : > { %19203 = vst [vmem:[#allocation102_spill] sm:$0xff] %v17345_v9 }
 0x389   : > { %v11479_v13 = vpop.f32.mrb[46].mxu1  ;;  %v11979_v1 = vpop.f32.mrb[46].mxu0 }
 0x38a   : > { %v17349_v59 = vadd.f32 %v11979_v1, %v11479_v13  ;;  %v4203_v16 = vpop.f32.mrb[47].mxu1  ;;  %v7684_v60 = vpop.f32.mrb[47].mxu0 }
 0x38b   : > { %v17351_v31 = vadd.f32 %v7684_v60, %v4203_v16 }
 0x38c   : > { %19204 = vst [vmem:[#allocation105_spill] sm:$0xff] %v17349_v59 }
 0x38d   : > { %19205 = vst [vmem:[#allocation18_spill] sm:$0xff] %v17351_v31  ;;  %v11482_v24 = vpop.f32.mrb[48].mxu1  ;;  %v11982_v56 = vpop.f32.mrb[48].mxu0 }
 0x38e   : > { %v17353_v11 = vadd.f32 %v11982_v56, %v11482_v24  ;;  %v4213_v5 = vpop.f32.mrb[49].mxu1  ;;  %v7694_v47 = vpop.f32.mrb[49].mxu0 }
 0x38f   : > { %v17355_v54 = vadd.f32 %v7694_v47, %v4213_v5 }
 0x390   : > { %19206 = vst [vmem:[#allocation19_spill] sm:$0xff] %v17353_v11 }
 0x391   : > { %19207 = vst [vmem:[#allocation109_spill] sm:$0xff] %v17355_v54  ;;  %v11485_v40 = vpop.f32.mrb[50].mxu1  ;;  %v11985_v25 = vpop.f32.mrb[50].mxu0 }
 0x392   : > { %v17357_v21 = vadd.f32 %v11985_v25, %v11485_v40  ;;  %v4223_v57 = vpop.f32.mrb[51].mxu1  ;;  %v7704_v26 = vpop.f32.mrb[51].mxu0 }
 0x393   : > { %v17359_v15 = vadd.f32 %v7704_v26, %v4223_v57 }
 0x394   : > { %19208 = vst [vmem:[#allocation110_spill] sm:$0xff] %v17357_v21 }
 0x395   : > { %19209 = vst [vmem:[#allocation20_spill] sm:$0xff] %v17359_v15  ;;  %v11488_v13 = vpop.f32.mrb[52].mxu1  ;;  %v11988_v1 = vpop.f32.mrb[52].mxu0 }
 0x396   : > { %v17361_v16 = vadd.f32 %v11988_v1, %v11488_v13  ;;  %v4233_v60 = vpop.f32.mrb[53].mxu1  ;;  %v7714_v31 = vpop.f32.mrb[53].mxu0 }
 0x397   : > { %v17363_v24 = vadd.f32 %v7714_v31, %v4233_v60 }
 0x398   : > { %19210 = vst [vmem:[#allocation21_spill] sm:$0xff] %v17361_v16 }
 0x399   : > { %19211 = vst [vmem:[#allocation22_spill] sm:$0xff] %v17363_v24  ;;  %v11491_v56 = vpop.f32.mrb[54].mxu1  ;;  %v11991_v11 = vpop.f32.mrb[54].mxu0 }
 0x39a   : > { %v17365_v5 = vadd.f32 %v11991_v11, %v11491_v56  ;;  %v4243_v47 = vpop.f32.mrb[55].mxu1  ;;  %v7724_v54 = vpop.f32.mrb[55].mxu0 }
 0x39b   : > { %v17367_v40 = vadd.f32 %v7724_v54, %v4243_v47 }
 0x39c   : > { %19212 = vst [vmem:[#allocation23_spill] sm:$0xff] %v17365_v5 }
 0x39d   : > { %19213 = vst [vmem:[#allocation24_spill] sm:$0xff] %v17367_v40  ;;  %v11494_v25 = vpop.f32.mrb[56].mxu1  ;;  %v11994_v21 = vpop.f32.mrb[56].mxu0 }
 0x39e   : > { %v17369_v57 = vadd.f32 %v11994_v21, %v11494_v25  ;;  %v4253_v26 = vpop.f32.mrb[57].mxu1  ;;  %v7734_v15 = vpop.f32.mrb[57].mxu0 }
 0x39f   : > { %v17371_v13 = vadd.f32 %v7734_v15, %v4253_v26 }
 0x3a0   : > { %19214 = vst [vmem:[#allocation25_spill] sm:$0xff] %v17369_v57 }
 0x3a1   : > { %19215 = vst [vmem:[#allocation26_spill] sm:$0xff] %v17371_v13  ;;  %v11497_v1 = vpop.f32.mrb[58].mxu1  ;;  %v11997_v16 = vpop.f32.mrb[58].mxu0 }
 0x3a2   : > { %v17373_v31 = vadd.f32 %v11997_v16, %v11497_v1  ;;  %v4263_v60 = vpop.f32.mrb[59].mxu1  ;;  %v7744_v24 = vpop.f32.mrb[59].mxu0 }
 0x3a3   : > { %v17375_v11 = vadd.f32 %v7744_v24, %v4263_v60 }
 0x3a4   : > { %19216 = vst [vmem:[#allocation27_spill] sm:$0xff] %v17373_v31 }
 0x3a5   : > { %19217 = vst [vmem:[#allocation28_spill] sm:$0xff] %v17375_v11  ;;  %v11500_v56 = vpop.f32.mrb[60].mxu1  ;;  %v12000_v5 = vpop.f32.mrb[60].mxu0 }
 0x3a6   : > { %v17377_v54 = vadd.f32 %v12000_v5, %v11500_v56  ;;  %v4273_v47 = vpop.f32.mrb[61].mxu1  ;;  %v7754_v40 = vpop.f32.mrb[61].mxu0 }
 0x3a7   : > { %v17379_v21 = vadd.f32 %v7754_v40, %v4273_v47 }
 0x3a8   : > { %19218 = vst [vmem:[#allocation29_spill] sm:$0xff] %v17377_v54 }
 0x3a9   : > { %19219 = vst [vmem:[#allocation30_spill] sm:$0xff] %v17379_v21  ;;  %v11503_v25 = vpop.f32.mrb[62].mxu1  ;;  %v12003_v57 = vpop.f32.mrb[62].mxu0 }
 0x3aa   : > { %v17381_v15 = vadd.f32 %v12003_v57, %v11503_v25  ;;  %v4283_v26 = vpop.f32.mrb[63].mxu1  ;;  %v7764_v13 = vpop.f32.mrb[63].mxu0 }
 0x3ab   : > { %v17383_v16 = vadd.f32 %v7764_v13, %v4283_v26 }
 0x3ac   : > { %19220 = vst [vmem:[#allocation32_spill] sm:$0xff] %v17381_v15 }
 0x3ad   : > { %19221 = vst [vmem:[#allocation31_spill] sm:$0xff] %v17383_v16  ;;  %v11506_v1 = vpop.f32.mrb[64].mxu1  ;;  %v12006_v31 = vpop.f32.mrb[64].mxu0 }
 0x3ae   : > { %v17385_v24 = vadd.f32 %v12006_v31, %v11506_v1  ;;  %v4293_v60 = vpop.f32.mrb[65].mxu1  ;;  %v7774_v11 = vpop.f32.mrb[65].mxu0 }
 0x3af   : > { %v17387_v5 = vadd.f32 %v7774_v11, %v4293_v60 }
 0x3b0   : > { %19222 = vst [vmem:[#allocation33_spill] sm:$0xff] %v17385_v24 }
 0x3b1   : > { %19223 = vst [vmem:[#allocation34_spill] sm:$0xff] %v17387_v5  ;;  %v11509_v56 = vpop.f32.mrb[66].mxu1  ;;  %v12009_v54 = vpop.f32.mrb[66].mxu0 }
 0x3b2   : > { %v17389_v40 = vadd.f32 %v12009_v54, %v11509_v56  ;;  %v4303_v47 = vpop.f32.mrb[67].mxu1  ;;  %v7784_v21 = vpop.f32.mrb[67].mxu0 }
 0x3b3   : > { %v17391_v57 = vadd.f32 %v7784_v21, %v4303_v47 }
 0x3b4   : > { %19224 = vst [vmem:[#allocation36_spill] sm:$0xff] %v17389_v40 }
 0x3b5   : > { %19225 = vst [vmem:[#allocation35_spill] sm:$0xff] %v17391_v57  ;;  %v11512_v25 = vpop.f32.mrb[68].mxu1  ;;  %v12012_v15 = vpop.f32.mrb[68].mxu0 }
 0x3b6   : > { %v17393_v13 = vadd.f32 %v12012_v15, %v11512_v25  ;;  %v4313_v26 = vpop.f32.mrb[69].mxu1  ;;  %v7794_v16 = vpop.f32.mrb[69].mxu0 }
 0x3b7   : > { %v17395_v31 = vadd.f32 %v7794_v16, %v4313_v26 }
 0x3b8   : > { %19226 = vst [vmem:[#allocation37_spill] sm:$0xff] %v17393_v13 }
 0x3b9   : > { %19227 = vst [vmem:[#allocation38_spill] sm:$0xff] %v17395_v31  ;;  %v11515_v1 = vpop.f32.mrb[70].mxu1  ;;  %v12015_v24 = vpop.f32.mrb[70].mxu0 }
 0x3ba   : > { %v17397_v11 = vadd.f32 %v12015_v24, %v11515_v1  ;;  %v4323_v60 = vpop.f32.mrb[71].mxu1  ;;  %v7804_v5 = vpop.f32.mrb[71].mxu0 }
 0x3bb   : > { %v17399_v54 = vadd.f32 %v7804_v5, %v4323_v60 }
 0x3bc   : > { %19228 = vst [vmem:[#allocation40_spill] sm:$0xff] %v17397_v11 }
 0x3bd   : > { %19229 = vst [vmem:[#allocation39_spill] sm:$0xff] %v17399_v54  ;;  %v11518_v56 = vpop.f32.mrb[72].mxu1  ;;  %v12018_v40 = vpop.f32.mrb[72].mxu0 }
 0x3be   : > { %v17401_v21 = vadd.f32 %v12018_v40, %v11518_v56  ;;  %v4333_v47 = vpop.f32.mrb[73].mxu1  ;;  %v7814_v57 = vpop.f32.mrb[73].mxu0 }
 0x3bf   : > { %v17403_v15 = vadd.f32 %v7814_v57, %v4333_v47 }
 0x3c0   : > { %19230 = vst [vmem:[#allocation76_spill] sm:$0xff] %v17401_v21 }
 0x3c1   : > { %19231 = vst [vmem:[#allocation41_spill] sm:$0xff] %v17403_v15  ;;  %v11521_v25 = vpop.f32.mrb[74].mxu1  ;;  %v12021_v13 = vpop.f32.mrb[74].mxu0 }
 0x3c2   : > { %v17405_v16 = vadd.f32 %v12021_v13, %v11521_v25  ;;  %v4343_v26 = vpop.f32.mrb[75].mxu1  ;;  %v7824_v31 = vpop.f32.mrb[75].mxu0 }
 0x3c3   : > { %v17407_v24 = vadd.f32 %v7824_v31, %v4343_v26 }
 0x3c4   : > { %19232 = vst [vmem:[#allocation43_spill] sm:$0xff] %v17405_v16 }
 0x3c5   : > { %19233 = vst [vmem:[#allocation42_spill] sm:$0xff] %v17407_v24  ;;  %v11524_v1 = vpop.f32.mrb[76].mxu1  ;;  %v12024_v11 = vpop.f32.mrb[76].mxu0 }
 0x3c6   : > { %v17409_v5 = vadd.f32 %v12024_v11, %v11524_v1  ;;  %v4353_v60 = vpop.f32.mrb[77].mxu1  ;;  %v7834_v54 = vpop.f32.mrb[77].mxu0  ;;  %v7953_v1 = vld [vmem:[%s18511_s2 + $0x28] sm:$0xff] (!%p10148_p5) }
 0x3c7   : > { %v17411_v40 = vadd.f32 %v7834_v54, %v4353_v60  ;;  %v7950_v54 = vld [vmem:[%s18511_s2 + $0x10] sm:$0xff] (!%p10148_p5)  ;;  %v7952_v60 = vld [vmem:[%s18511_s2 + $0x20] sm:$0xff] (!%p10148_p5) }
 0x3c8   : > { %19234 = vst [vmem:[#allocation44_spill] sm:$0xff] %v17409_v5 }
 0x3c9   : > { %19235 = vst [vmem:[#allocation46_spill] sm:$0xff] %v17411_v40  ;;  %v11527_v56 = vpop.f32.mrb[78].mxu1  ;;  %v12027_v21 = vpop.f32.mrb[78].mxu0 }
 0x3ca   : > { %v17413_v57 = vadd.f32 %v12027_v21, %v11527_v56  ;;  %v4363_v47 = vpop.f32.mrb[79].mxu1  ;;  %v7844_v15 = vpop.f32.mrb[79].mxu0  ;;  %v7948_v21 = vld [vmem:[%s18511_s2] sm:$0xff] (!%p10148_p5)  ;;  %v7955_v56 = vld [vmem:[%s18511_s2 + $0x38] sm:$0xff] (!%p10148_p5) }
 0x3cb   : > { %v17415_v13 = vadd.f32 %v7844_v15, %v4363_v47  ;;  %7947 = sbr.rel (%p10148_p5) target bundleno = 1287 (0x507), region = 48  ;;  %v12907_v15 = vmov (!%p10148_p5), 0   ;;  %v7954_v47 = vld [vmem:[%s18511_s2 + $0x30] sm:$0xff] (!%p10148_p5) }
 0x3cc   : > { %19236 = vst [vmem:[#allocation47_spill] sm:$0xff] %v17413_v57  ;;  %12879 = vset.pattern.permute.xlu1 (!%p10148_p5), %v12907_v15  ;;  %12878 = vset.pattern.permute.xlu0 (!%p10148_p5), %v12907_v15  ;;  %v7961_v15 = vld [vmem:[%s18511_s2 + $0x68] sm:$0xff] (!%p10148_p5) }
 0x3cd   : > { %19237 = vst [vmem:[#allocation45_spill] sm:$0xff] %v17415_v13  ;;  %v11530_v25 = vpop.f32.mrb[80].mxu1  ;;  %v12030_v16 = vpop.f32.mrb[80].mxu0  ;;  %8042 = vperm.xlu1 (!%p10148_p5), %12879, %v7950_v54   ;;  %8032 = vperm.xlu0 (!%p10148_p5), %12878, %v7948_v21   ;;  %v7959_v54 = vld [vmem:[%s18511_s2 + $0x58] sm:$0xff] (!%p10148_p5)  ;;  %v7958_v21 = vld [vmem:[%s18511_s2 + $0x50] sm:$0xff] (!%p10148_p5) }
 0x3ce   : > { %v17417_v31 = vadd.f32 %v12030_v16, %v11530_v25  ;;  %v4373_v26 = vpop.f32.mrb[81].mxu1  ;;  %v7854_v24 = vpop.f32.mrb[81].mxu0  ;;  %v7951_v16 = vld [vmem:[%s18511_s2 + $0x18] sm:$0xff] (!%p10148_p5)  ;;  %v7957_v25 = vld [vmem:[%s18511_s2 + $0x48] sm:$0xff] (!%p10148_p5) }
 0x3cf   : > { %v17419_v11 = vadd.f32 %v7854_v24, %v4373_v26  ;;  %v7949_v24 = vld [vmem:[%s18511_s2 + $0x8] sm:$0xff] (!%p10148_p5)  ;;  %v7956_v26 = vld [vmem:[%s18511_s2 + $0x40] sm:$0xff] (!%p10148_p5) }
 0x3d0   : > { %19238 = vst [vmem:[#allocation48_spill] sm:$0xff] %v17417_v31 }
 0x3d1   : > { %19239 = vst [vmem:[#allocation50_spill] sm:$0xff] %v17419_v11  ;;  %8047 = vperm.xlu1 (!%p10148_p5), %12879, %v7951_v16   ;;  %8037 = vperm.xlu0 (!%p10148_p5), %12878, %v7949_v24   ;;  %v7960_v16 = vld [vmem:[%s18511_s2 + $0x60] sm:$0xff] (!%p10148_p5)  ;;  %v7963_v24 = vld [vmem:[%s18511_s2 + $0x78] sm:$0xff] (!%p10148_p5) }
 0x3d5   : > { %8057 = vperm.xlu1 %12879, %v7953_v1   ;;  %8052 = vperm.xlu0 %12878, %v7952_v60   ;;  %v7962_v1 = vld [vmem:[%s18511_s2 + $0x70] sm:$0xff]  ;;  %v7965_v60 = vld [vmem:[%s18511_s2 + $0x88] sm:$0xff] }
 0x3d9   : > { %8067 = vperm.xlu1 %12879, %v7955_v56   ;;  %8062 = vperm.xlu0 %12878, %v7954_v47   ;;  %v7964_v56 = vld [vmem:[%s18511_s2 + $0x80] sm:$0xff]  ;;  %v7967_v47 = vld [vmem:[%s18511_s2 + $0x98] sm:$0xff] }
 0x3dd   : > { %8077 = vperm.xlu1 %12879, %v7957_v25   ;;  %8072 = vperm.xlu0 %12878, %v7956_v26   ;;  %v7966_v25 = vld [vmem:[%s18511_s2 + $0x90] sm:$0xff]  ;;  %v7969_v26 = vld [vmem:[%s18511_s2 + $0xa8] sm:$0xff] }
 0x3e1   : > { %8087 = vperm.xlu1 %12879, %v7959_v54   ;;  %8082 = vperm.xlu0 %12878, %v7958_v21   ;;  %v7968_v54 = vld [vmem:[%s18511_s2 + $0xa0] sm:$0xff]  ;;  %v7971_v21 = vld [vmem:[%s18511_s2 + $0xb8] sm:$0xff] }
 0x3e5   : > { %8097 = vperm.xlu1 %12879, %v7961_v15   ;;  %8092 = vperm.xlu0 %12878, %v7960_v16   ;;  %v7970_v15 = vld [vmem:[%s18511_s2 + $0xb0] sm:$0xff]  ;;  %v7973_v16 = vld [vmem:[%s18511_s2 + $0xc8] sm:$0xff] }
 0x3e9   : > { %8107 = vperm.xlu1 %12879, %v7963_v24   ;;  %8102 = vperm.xlu0 %12878, %v7962_v1   ;;  %v7972_v24 = vld [vmem:[%s18511_s2 + $0xc0] sm:$0xff]  ;;  %v7975_v1 = vld [vmem:[%s18511_s2 + $0xd8] sm:$0xff] }
 0x3ed   : > { %8117 = vperm.xlu1 %12879, %v7965_v60   ;;  %8112 = vperm.xlu0 %12878, %v7964_v56   ;;  %v7974_v60 = vld [vmem:[%s18511_s2 + $0xd0] sm:$0xff]  ;;  %v7977_v56 = vld [vmem:[%s18511_s2 + $0xe8] sm:$0xff] }
 0x3f1   : > { %8127 = vperm.xlu1 %12879, %v7967_v47   ;;  %8122 = vperm.xlu0 %12878, %v7966_v25   ;;  %v7976_v47 = vld [vmem:[%s18511_s2 + $0xe0] sm:$0xff]  ;;  %v7979_v25 = vld [vmem:[%s18511_s2 + $0xf8] sm:$0xff] }
 0x3f5   : > { %8137 = vperm.xlu1 %12879, %v7969_v26   ;;  %8132 = vperm.xlu0 %12878, %v7968_v54   ;;  %v7978_v26 = vld [vmem:[%s18511_s2 + $0xf0] sm:$0xff]  ;;  %v7981_v54 = vld [vmem:[%s18511_s2 + $0x108] sm:$0xff] }
 0x3f9   : > { %8147 = vperm.xlu1 %12879, %v7971_v21   ;;  %8142 = vperm.xlu0 %12878, %v7970_v15   ;;  %v7980_v21 = vld [vmem:[%s18511_s2 + $0x100] sm:$0xff]  ;;  %v7983_v15 = vld [vmem:[%s18511_s2 + $0x118] sm:$0xff] }
 0x3fd   : > { %8157 = vperm.xlu1 %12879, %v7973_v16   ;;  %8152 = vperm.xlu0 %12878, %v7972_v24   ;;  %v7982_v16 = vld [vmem:[%s18511_s2 + $0x110] sm:$0xff]  ;;  %v7985_v24 = vld [vmem:[%s18511_s2 + $0x128] sm:$0xff] }
 0x401   : > { %8167 = vperm.xlu1 %12879, %v7975_v1   ;;  %8162 = vperm.xlu0 %12878, %v7974_v60   ;;  %v7984_v1 = vld [vmem:[%s18511_s2 + $0x120] sm:$0xff]  ;;  %v7987_v60 = vld [vmem:[%s18511_s2 + $0x138] sm:$0xff] }
 0x405   : > { %8177 = vperm.xlu1 %12879, %v7977_v56   ;;  %8172 = vperm.xlu0 %12878, %v7976_v47   ;;  %v7986_v56 = vld [vmem:[%s18511_s2 + $0x130] sm:$0xff]  ;;  %v7989_v47 = vld [vmem:[%s18511_s2 + $0x148] sm:$0xff] }
 0x409   : > { %8187 = vperm.xlu1 %12879, %v7979_v25   ;;  %8182 = vperm.xlu0 %12878, %v7978_v26   ;;  %v7988_v25 = vld [vmem:[%s18511_s2 + $0x140] sm:$0xff]  ;;  %v7991_v26 = vld [vmem:[%s18511_s2 + $0x158] sm:$0xff] }
 0x40d   : > { %8197 = vperm.xlu1 %12879, %v7981_v54   ;;  %8192 = vperm.xlu0 %12878, %v7980_v21   ;;  %v7990_v54 = vld [vmem:[%s18511_s2 + $0x150] sm:$0xff]  ;;  %v7993_v21 = vld [vmem:[%s18511_s2 + $0x168] sm:$0xff] }
 0x411   : > { %8207 = vperm.xlu1 %12879, %v7983_v15   ;;  %8202 = vperm.xlu0 %12878, %v7982_v16   ;;  %v7992_v15 = vld [vmem:[%s18511_s2 + $0x160] sm:$0xff]  ;;  %v7995_v16 = vld [vmem:[%s18511_s2 + $0x178] sm:$0xff] }
 0x415   : > { %8217 = vperm.xlu1 %12879, %v7985_v24   ;;  %8212 = vperm.xlu0 %12878, %v7984_v1   ;;  %v7994_v24 = vld [vmem:[%s18511_s2 + $0x170] sm:$0xff]  ;;  %v7997_v1 = vld [vmem:[%s18511_s2 + $0x188] sm:$0xff] }
 0x419   : > { %8227 = vperm.xlu1 %12879, %v7987_v60   ;;  %8222 = vperm.xlu0 %12878, %v7986_v56   ;;  %v7996_v60 = vld [vmem:[%s18511_s2 + $0x180] sm:$0xff]  ;;  %v7999_v56 = vld [vmem:[%s18511_s2 + $0x198] sm:$0xff] }
 0x41d   : > { %8237 = vperm.xlu1 %12879, %v7989_v47   ;;  %8232 = vperm.xlu0 %12878, %v7988_v25   ;;  %v7998_v47 = vld [vmem:[%s18511_s2 + $0x190] sm:$0xff]  ;;  %v8001_v25 = vld [vmem:[%s18511_s2 + $0x1a8] sm:$0xff] }
 0x421   : > { %8247 = vperm.xlu1 %12879, %v7991_v26   ;;  %8242 = vperm.xlu0 %12878, %v7990_v54   ;;  %v8000_v26 = vld [vmem:[%s18511_s2 + $0x1a0] sm:$0xff]  ;;  %v8003_v54 = vld [vmem:[%s18511_s2 + $0x1b8] sm:$0xff] }
 0x425   : > { %8257 = vperm.xlu1 %12879, %v7993_v21   ;;  %8252 = vperm.xlu0 %12878, %v7992_v15   ;;  %v8002_v21 = vld [vmem:[%s18511_s2 + $0x1b0] sm:$0xff]  ;;  %v8005_v15 = vld [vmem:[%s18511_s2 + $0x1c8] sm:$0xff] }
 0x429   : > { %8267 = vperm.xlu1 %12879, %v7995_v16   ;;  %8262 = vperm.xlu0 %12878, %v7994_v24   ;;  %v8004_v16 = vld [vmem:[%s18511_s2 + $0x1c0] sm:$0xff]  ;;  %v8007_v24 = vld [vmem:[%s18511_s2 + $0x1d8] sm:$0xff] }
 0x42d   : > { %8277 = vperm.xlu1 %12879, %v7997_v1   ;;  %8272 = vperm.xlu0 %12878, %v7996_v60   ;;  %v8006_v1 = vld [vmem:[%s18511_s2 + $0x1d0] sm:$0xff]  ;;  %v8009_v60 = vld [vmem:[%s18511_s2 + $0x1e8] sm:$0xff] }
 0x431   : > { %8287 = vperm.xlu1 %12879, %v7999_v56   ;;  %8282 = vperm.xlu0 %12878, %v7998_v47   ;;  %v8008_v56 = vld [vmem:[%s18511_s2 + $0x1e0] sm:$0xff]  ;;  %v8011_v47 = vld [vmem:[%s18511_s2 + $0x1f8] sm:$0xff] }
 0x435   : > { %8297 = vperm.xlu1 %12879, %v8001_v25   ;;  %8292 = vperm.xlu0 %12878, %v8000_v26   ;;  %v8010_v25 = vld [vmem:[%s18511_s2 + $0x1f0] sm:$0xff]  ;;  %v8013_v26 = vld [vmem:[%s18511_s2 + $0x208] sm:$0xff] }
 0x439   : > { %8307 = vperm.xlu1 %12879, %v8003_v54   ;;  %8302 = vperm.xlu0 %12878, %v8002_v21   ;;  %v8012_v54 = vld [vmem:[%s18511_s2 + $0x200] sm:$0xff] }
 0x43d   : > { %8317 = vperm.xlu1 %12879, %v8005_v15   ;;  %8312 = vperm.xlu0 %12878, %v8004_v16  }
 0x441   : > { %8327 = vperm.xlu1 %12879, %v8007_v24   ;;  %8322 = vperm.xlu0 %12878, %v8006_v1   ;;  %v8015_v24 = vld [vmem:[%s18511_s2 + $0x218] sm:$0xff]  ;;  %v8014_v1 = vld [vmem:[%s18511_s2 + $0x210] sm:$0xff] }
 0x445   : > { %8337 = vperm.xlu1 %12879, %v8009_v60   ;;  %8332 = vperm.xlu0 %12878, %v8008_v56  }
 0x449   : > { %8347 = vperm.xlu1 %12879, %v8011_v47   ;;  %8342 = vperm.xlu0 %12878, %v8010_v25  }
 0x44c   : > { %v8043_v21 = vpop.permute.xlu1 %8042  ;;  %v8033_v15 = vpop.permute.xlu0 %8032 }
 0x44d   : > { %v8440_v16 = vmul.f32 %v17226_v2, %v8033_v15  ;;  %8357 = vperm.xlu1 %12879, %v8013_v26   ;;  %8352 = vperm.xlu0 %12878, %v8012_v54   ;;  %v8442_v60 = vmul.f32 %v17232_v7, %v8043_v21  ;;  %v8017_v26 = vld [vmem:[%s18511_s2 + $0x228] sm:$0xff]  ;;  %v8016_v54 = vld [vmem:[%s18511_s2 + $0x220] sm:$0xff] }
 0x44f   : > { %v8696_v56 = vmul.f32 %v8440_v16, %v8440_v16  ;;  %v8698_v15 = vmul.f32 %v8442_v60, %v8442_v60  ;;  %v8523_v21 = vsel %vm671_vm2, %v8440_v16, 0.0 }
 0x450   : > { %v8048_v47 = vpop.permute.xlu1 %8047  ;;  %v8038_v25 = vpop.permute.xlu0 %8037 }
 0x451   : > { %v8443_v11 = vmul.f32 %v17229_v28, %v8048_v47  ;;  %v8441_v31 = vmul.f32 %v17221_v42, %v8038_v25  ;;  %8367 = vperm.xlu1 %12879, %v8015_v24   ;;  %8362 = vperm.xlu0 %12878, %v8014_v1   ;;  %v8526_v47 = vsel %vm671_vm2, %v8442_v60, 0.0  ;;  %v8778_v25 = vsel %vm671_vm2, %v8696_v56, 0.0 }
 0x452   : > { %v8781_v60 = vsel %vm671_vm2, %v8698_v15, 0.0 }
 0x453   : > { %v8524_v7 = vsel %vm671_vm2, %v8441_v31, 0.0  ;;  %v8697_v2 = vmul.f32 %v8441_v31, %v8441_v31  ;;  %v8699_v42 = vmul.f32 %v8443_v11, %v8443_v11  ;;  %v8019_v31 = vld [vmem:[%s18511_s2 + $0x238] sm:$0xff] }
 0x454   : > { %v8525_v24 = vadd.f32 %v8524_v7, %v8523_v21  ;;  %v8058_v1 = vpop.permute.xlu1 %8057  ;;  %v8053_v28 = vpop.permute.xlu0 %8052  ;;  %v8018_v7 = vld [vmem:[%s18511_s2 + $0x230] sm:$0xff] }
 0x455   : > { %v8779_v13 = vsel %vm671_vm2, %v8697_v2, 0.0  ;;  %v8445_v57 = vmul.f32 %v17235_v48, %v8058_v1  ;;  %v8444_v40 = vmul.f32 %v17238_v50, %v8053_v28  ;;  %8377 = vperm.xlu1 %12879, %v8017_v26   ;;  %8372 = vperm.xlu0 %12878, %v8016_v54   ;;  %v8528_v2 = vsel %vm671_vm2, %v8443_v11, 0.0  ;;  %v8021_v11 = vld [vmem:[%s18511_s2 + $0x248] sm:$0xff] }
 0x456   : > { %v8527_v16 = vadd.f32 %v8526_v47, %v8525_v24  ;;  %v8780_v5 = vadd.f32 %v8779_v13, %v8778_v25  ;;  %v8783_v13 = vsel %vm671_vm2, %v8699_v42, 0.0 }
 0x457   : > { %v8700_v56 = vmul.f32 %v8444_v40, %v8444_v40  ;;  %v8701_v28 = vmul.f32 %v8445_v57, %v8445_v57  ;;  %v8530_v47 = vsel %vm671_vm2, %v8444_v40, 0.0  ;;  %v8532_v42 = vsel %vm671_vm2, %v8445_v57, 0.0 }
 0x458   : > { %v8529_v21 = vadd.f32 %v8528_v2, %v8527_v16  ;;  %v8782_v1 = vadd.f32 %v8781_v60, %v8780_v5  ;;  %v8068_v26 = vpop.permute.xlu1 %8067  ;;  %v8063_v54 = vpop.permute.xlu0 %8062  ;;  %v8020_v5 = vld [vmem:[%s18511_s2 + $0x240] sm:$0xff] }
 0x459   : > { %v8447_v25 = vmul.f32 %v17241_v36, %v8068_v26  ;;  %v8446_v24 = vmul.f32 %v17244_v38, %v8063_v54  ;;  %8387 = vperm.xlu1 %12879, %v8019_v31   ;;  %8382 = vperm.xlu0 %12878, %v8018_v7   ;;  %v8785_v40 = vsel %vm671_vm2, %v8700_v56, 0.0  ;;  %v8787_v60 = vsel %vm671_vm2, %v8701_v28, 0.0  ;;  %v8023_v56 = vld [vmem:[%s18511_s2 + $0x258] sm:$0xff] }
 0x45a   : > { %v8784_v48 = vadd.f32 %v8783_v13, %v8782_v1  ;;  %v8531_v15 = vadd.f32 %v8530_v47, %v8529_v21 }
 0x45b   : > { %v8702_v16 = vmul.f32 %v8446_v24, %v8446_v24  ;;  %v8703_v21 = vmul.f32 %v8447_v25, %v8447_v25  ;;  %v8534_v26 = vsel %vm671_vm2, %v8446_v24, 0.0  ;;  %v8536_v28 = vsel %vm671_vm2, %v8447_v25, 0.0 }
 0x45c   : > { %v8533_v2 = vadd.f32 %v8532_v42, %v8531_v15  ;;  %v8786_v31 = vadd.f32 %v8785_v40, %v8784_v48  ;;  %v8078_v7 = vpop.permute.xlu1 %8077  ;;  %v8073_v1 = vpop.permute.xlu0 %8072  ;;  %v8022_v48 = vld [vmem:[%s18511_s2 + $0x250] sm:$0xff] }
 0x45d   : > { %v8449_v54 = vmul.f32 %v17247_v37, %v8078_v7  ;;  %v8448_v13 = vmul.f32 %v17250_v55, %v8073_v1  ;;  %8397 = vperm.xlu1 %12879, %v8021_v11   ;;  %8392 = vperm.xlu0 %12878, %v8020_v5   ;;  %v8789_v24 = vsel %vm671_vm2, %v8702_v16, 0.0  ;;  %v8025_v16 = vld [vmem:[%s18511_s2 + $0x268] sm:$0xff] }
 0x45e   : > { %v8788_v47 = vadd.f32 %v8787_v60, %v8786_v31  ;;  %v8535_v57 = vadd.f32 %v8534_v26, %v8533_v2  ;;  %v8791_v60 = vsel %vm671_vm2, %v8703_v21, 0.0 }
 0x45f   : > { %v8704_v15 = vmul.f32 %v8448_v13, %v8448_v13  ;;  %v8705_v7 = vmul.f32 %v8449_v54, %v8449_v54  ;;  %v8538_v2 = vsel %vm671_vm2, %v8448_v13, 0.0  ;;  %v8540_v21 = vsel %vm671_vm2, %v8449_v54, 0.0 }
 0x460   : > { %v8537_v42 = vadd.f32 %v8536_v28, %v8535_v57  ;;  %v8790_v40 = vadd.f32 %v8789_v24, %v8788_v47  ;;  %v8088_v11 = vpop.permute.xlu1 %8087  ;;  %v8083_v5 = vpop.permute.xlu0 %8082  ;;  %v8024_v47 = vld [vmem:[%s18511_s2 + $0x260] sm:$0xff] }
 0x461   : > { %v8451_v31 = vmul.f32 %v17253_v53, %v8088_v11  ;;  %v8450_v1 = vmul.f32 %v17256_v63, %v8083_v5  ;;  %8407 = vperm.xlu1 %12879, %v8023_v56   ;;  %8402 = vperm.xlu0 %12878, %v8022_v48   ;;  %v8793_v13 = vsel %vm671_vm2, %v8704_v15, 0.0  ;;  %v8795_v28 = vsel %vm671_vm2, %v8705_v7, 0.0  ;;  %v8027_v15 = vld [vmem:[%s18511_s2 + $0x278] sm:$0xff]  ;;  %v8026_v7 = vld [vmem:[%s18511_s2 + $0x270] sm:$0xff] }
 0x462   : > { %v8792_v26 = vadd.f32 %v8791_v60, %v8790_v40  ;;  %v8539_v25 = vadd.f32 %v8538_v2, %v8537_v42 }
 0x463   : > { %v8706_v57 = vmul.f32 %v8450_v1, %v8450_v1  ;;  %v8707_v42 = vmul.f32 %v8451_v31, %v8451_v31  ;;  %v8542_v11 = vsel %vm671_vm2, %v8450_v1, 0.0 }
 0x464   : > { %v8541_v24 = vadd.f32 %v8540_v21, %v8539_v25  ;;  %v8794_v56 = vadd.f32 %v8793_v13, %v8792_v26  ;;  %v8098_v48 = vpop.permute.xlu1 %8097  ;;  %v8093_v40 = vpop.permute.xlu0 %8092  ;;  %v8544_v26 = vsel %vm671_vm2, %v8451_v31, 0.0 }
 0x465   : > { %v8453_v5 = vmul.f32 %v17258_v3, %v8098_v48  ;;  %v8452_v60 = vmul.f32 %v17261_v19, %v8093_v40  ;;  %8417 = vperm.xlu1 %12879, %v8025_v16   ;;  %8412 = vperm.xlu0 %12878, %v8024_v47   ;;  %v8797_v1 = vsel %vm671_vm2, %v8706_v57, 0.0  ;;  %v8029_v57 = vld [vmem:[%s18511_s2 + $0x288] sm:$0xff] }
 0x466   : > { %v8796_v2 = vadd.f32 %v8795_v28, %v8794_v56  ;;  %v8543_v54 = vadd.f32 %v8542_v11, %v8541_v24  ;;  %v8799_v28 = vsel %vm671_vm2, %v8707_v42, 0.0 }
 0x467   : > { %v8708_v25 = vmul.f32 %v8452_v60, %v8452_v60  ;;  %v8709_v48 = vmul.f32 %v8453_v5, %v8453_v5  ;;  %v8546_v24 = vsel %vm671_vm2, %v8452_v60, 0.0  ;;  %v8548_v42 = vsel %vm671_vm2, %v8453_v5, 0.0 }
 0x468   : > { %v8545_v21 = vadd.f32 %v8544_v26, %v8543_v54  ;;  %v8798_v13 = vadd.f32 %v8797_v1, %v8796_v2  ;;  %v8108_v16 = vpop.permute.xlu1 %8107  ;;  %v8103_v47 = vpop.permute.xlu0 %8102  ;;  %v8028_v2 = vld [vmem:[%s18511_s2 + $0x280] sm:$0xff] }
 0x469   : > { %v8455_v56 = vmul.f32 %v17263_v62, %v8108_v16  ;;  %v8454_v40 = vmul.f32 %v17265_v51, %v8103_v47  ;;  %8427 = vperm.xlu1 %12879, %v8027_v15   ;;  %8422 = vperm.xlu0 %12878, %v8026_v7   ;;  %v8801_v60 = vsel %vm671_vm2, %v8708_v25, 0.0  ;;  %v8803_v26 = vsel %vm671_vm2, %v8709_v48, 0.0 }
 0x46a   : > { %v8800_v11 = vadd.f32 %v8799_v28, %v8798_v13  ;;  %v8547_v31 = vadd.f32 %v8546_v24, %v8545_v21 }
 0x46b   : > { %v8710_v54 = vmul.f32 %v8454_v40, %v8454_v40  ;;  %v8711_v21 = vmul.f32 %v8455_v56, %v8455_v56  ;;  %v8550_v16 = vsel %vm671_vm2, %v8454_v40, 0.0  ;;  %v8552_v25 = vsel %vm671_vm2, %v8455_v56, 0.0 }
 0x46c   : > { %v8549_v1 = vadd.f32 %v8548_v42, %v8547_v31  ;;  %v8802_v15 = vadd.f32 %v8801_v60, %v8800_v11  ;;  %v8118_v7 = vpop.permute.xlu1 %8117  ;;  %v8113_v13 = vpop.permute.xlu0 %8112 }
 0x46d   : > { %v8457_v47 = vmul.f32 %v17267_v35, %v8118_v7  ;;  %v8456_v28 = vmul.f32 %v17269_v46, %v8113_v13  ;;  %8437 = vperm.xlu1 %12879, %v8029_v57   ;;  %8432 = vperm.xlu0 %12878, %v8028_v2   ;;  %v8805_v62 = vsel %vm671_vm2, %v8710_v54, 0.0  ;;  %v8807_v40 = vsel %vm671_vm2, %v8711_v21, 0.0 }
 0x46e   : > { %v8804_v24 = vadd.f32 %v8803_v26, %v8802_v15  ;;  %v8551_v5 = vadd.f32 %v8550_v16, %v8549_v1 }
 0x46f   : > { %v8712_v48 = vmul.f32 %v8456_v28, %v8456_v28  ;;  %v8713_v42 = vmul.f32 %v8457_v47, %v8457_v47  ;;  %v8554_v7 = vsel %vm671_vm2, %v8456_v28, 0.0  ;;  %v8556_v56 = vsel %vm671_vm2, %v8457_v47, 0.0 }
 0x470   : > { %v8553_v31 = vadd.f32 %v8552_v25, %v8551_v5  ;;  %v8806_v11 = vadd.f32 %v8805_v62, %v8804_v24  ;;  %v8128_v60 = vpop.permute.xlu1 %8127  ;;  %v8123_v51 = vpop.permute.xlu0 %8122 }
 0x471   : > { %v8459_v13 = vmul.f32 %v17271_v29, %v8128_v60  ;;  %v8458_v57 = vmul.f32 %v17273_v4, %v8123_v51  ;;  %v8809_v54 = vsel %vm671_vm2, %v8712_v48, 0.0  ;;  %v8811_v62 = vsel %vm671_vm2, %v8713_v42, 0.0 }
 0x472   : > { %v8808_v2 = vadd.f32 %v8807_v40, %v8806_v11  ;;  %v8555_v26 = vadd.f32 %v8554_v7, %v8553_v31 }
 0x473   : > { %v8714_v1 = vmul.f32 %v8458_v57, %v8458_v57  ;;  %v8715_v21 = vmul.f32 %v8459_v13, %v8459_v13  ;;  %v8558_v28 = vsel %vm671_vm2, %v8458_v57, 0.0  ;;  %v8560_v47 = vsel %vm671_vm2, %v8459_v13, 0.0 }
 0x474   : > { %v8557_v15 = vadd.f32 %v8556_v56, %v8555_v26  ;;  %v8810_v16 = vadd.f32 %v8809_v54, %v8808_v2  ;;  %v8138_v24 = vpop.permute.xlu1 %8137  ;;  %v8133_v5 = vpop.permute.xlu0 %8132 }
 0x475   : > { %v8461_v25 = vmul.f32 %v17276_v34, %v8138_v24  ;;  %v8460_v51 = vmul.f32 %v17279_v43, %v8133_v5  ;;  %v8813_v48 = vsel %vm671_vm2, %v8714_v1, 0.0  ;;  %v8815_v56 = vsel %vm671_vm2, %v8715_v21, 0.0 }
 0x476   : > { %v8812_v11 = vadd.f32 %v8811_v62, %v8810_v16  ;;  %v8559_v31 = vadd.f32 %v8558_v28, %v8557_v15 }
 0x477   : > { %v8716_v60 = vmul.f32 %v8460_v51, %v8460_v51  ;;  %v8717_v7 = vmul.f32 %v8461_v25, %v8461_v25  ;;  %v8562_v57 = vsel %vm671_vm2, %v8460_v51, 0.0  ;;  %v8564_v13 = vsel %vm671_vm2, %v8461_v25, 0.0 }
 0x478   : > { %v8561_v40 = vadd.f32 %v8560_v47, %v8559_v31  ;;  %v8814_v42 = vadd.f32 %v8813_v48, %v8812_v11  ;;  %v8148_v2 = vpop.permute.xlu1 %8147  ;;  %v8143_v26 = vpop.permute.xlu0 %8142 }
 0x479   : > { %v8463_v54 = vmul.f32 %v17282_v30, %v8148_v2  ;;  %v8462_v24 = vmul.f32 %v17285_v6, %v8143_v26  ;;  %v8817_v1 = vsel %vm671_vm2, %v8716_v60, 0.0  ;;  %v8819_v5 = vsel %vm671_vm2, %v8717_v7, 0.0 }
 0x47a   : > { %v8816_v62 = vadd.f32 %v8815_v56, %v8814_v42  ;;  %v8563_v15 = vadd.f32 %v8562_v57, %v8561_v40 }
 0x47b   : > { %v8718_v16 = vmul.f32 %v8462_v24, %v8462_v24  ;;  %v8719_v21 = vmul.f32 %v8463_v54, %v8463_v54  ;;  %v8566_v51 = vsel %vm671_vm2, %v8462_v24, 0.0  ;;  %v8568_v25 = vsel %vm671_vm2, %v8463_v54, 0.0 }
 0x47c   : > { %v8818_v28 = vadd.f32 %v8817_v1, %v8816_v62  ;;  %v8565_v11 = vadd.f32 %v8564_v13, %v8563_v15  ;;  %v8158_v31 = vpop.permute.xlu1 %8157  ;;  %v8153_v47 = vpop.permute.xlu0 %8152 }
 0x47d   : > { %v8465_v48 = vmul.f32 %v17288_v52, %v8158_v31  ;;  %v8464_v2 = vmul.f32 %v17291_v33, %v8153_v47  ;;  %v8821_v60 = vsel %vm671_vm2, %v8718_v16, 0.0  ;;  %v8823_v13 = vsel %vm671_vm2, %v8719_v21, 0.0 }
 0x47e   : > { %v8820_v42 = vadd.f32 %v8819_v5, %v8818_v28  ;;  %v8567_v40 = vadd.f32 %v8566_v51, %v8565_v11 }
 0x47f   : > { %v8720_v26 = vmul.f32 %v8464_v2, %v8464_v2  ;;  %v8721_v7 = vmul.f32 %v8465_v48, %v8465_v48  ;;  %v8570_v24 = vsel %vm671_vm2, %v8464_v2, 0.0  ;;  %v8572_v54 = vsel %vm671_vm2, %v8465_v48, 0.0 }
 0x480   : > { %v8822_v56 = vadd.f32 %v8821_v60, %v8820_v42  ;;  %v8569_v57 = vadd.f32 %v8568_v25, %v8567_v40  ;;  %v8168_v62 = vpop.permute.xlu1 %8167  ;;  %v8163_v15 = vpop.permute.xlu0 %8162 }
 0x481   : > { %v8467_v1 = vmul.f32 %v17294_v27, %v8168_v62  ;;  %v8466_v31 = vmul.f32 %v17297_v39, %v8163_v15  ;;  %v8825_v16 = vsel %vm671_vm2, %v8720_v26, 0.0  ;;  %v8827_v47 = vsel %vm671_vm2, %v8721_v7, 0.0 }
 0x482   : > { %v8824_v5 = vadd.f32 %v8823_v13, %v8822_v56  ;;  %v8571_v28 = vadd.f32 %v8570_v24, %v8569_v57 }
 0x483   : > { %v8722_v11 = vmul.f32 %v8466_v31, %v8466_v31  ;;  %v8723_v21 = vmul.f32 %v8467_v1, %v8467_v1  ;;  %v8574_v2 = vsel %vm671_vm2, %v8466_v31, 0.0  ;;  %v8576_v48 = vsel %vm671_vm2, %v8467_v1, 0.0 }
 0x484   : > { %v8826_v51 = vadd.f32 %v8825_v16, %v8824_v5  ;;  %v8573_v42 = vadd.f32 %v8572_v54, %v8571_v28  ;;  %v8178_v40 = vpop.permute.xlu1 %8177  ;;  %v8173_v25 = vpop.permute.xlu0 %8172 }
 0x485   : > { %v8469_v60 = vmul.f32 %v17300_v49, %v8178_v40  ;;  %v8468_v62 = vmul.f32 %v17303_v10, %v8173_v25  ;;  %v8829_v26 = vsel %vm671_vm2, %v8722_v11, 0.0  ;;  %v8831_v54 = vsel %vm671_vm2, %v8723_v21, 0.0 }
 0x486   : > { %v8828_v56 = vadd.f32 %v8827_v47, %v8826_v51  ;;  %v8575_v57 = vadd.f32 %v8574_v2, %v8573_v42 }
 0x487   : > { %v8724_v15 = vmul.f32 %v8468_v62, %v8468_v62  ;;  %v8725_v7 = vmul.f32 %v8469_v60, %v8469_v60  ;;  %v8578_v31 = vsel %vm671_vm2, %v8468_v62, 0.0  ;;  %v8580_v1 = vsel %vm671_vm2, %v8469_v60, 0.0 }
 0x488   : > { %v8830_v13 = vadd.f32 %v8829_v26, %v8828_v56  ;;  %v8577_v24 = vadd.f32 %v8576_v48, %v8575_v57  ;;  %v8188_v5 = vpop.permute.xlu1 %8187  ;;  %v8183_v28 = vpop.permute.xlu0 %8182 }
 0x489   : > { %v8471_v16 = vmul.f32 %v17306_v23, %v8188_v5  ;;  %v8470_v40 = vmul.f32 %v17309_v14, %v8183_v28  ;;  %v8833_v11 = vsel %vm671_vm2, %v8724_v15, 0.0  ;;  %v8835_v25 = vsel %vm671_vm2, %v8725_v7, 0.0 }
 0x48a   : > { %v8832_v47 = vadd.f32 %v8831_v54, %v8830_v13  ;;  %v8579_v51 = vadd.f32 %v8578_v31, %v8577_v24 }
 0x48b   : > { %v8726_v42 = vmul.f32 %v8470_v40, %v8470_v40  ;;  %v8727_v21 = vmul.f32 %v8471_v16, %v8471_v16  ;;  %v8582_v62 = vsel %vm671_vm2, %v8470_v40, 0.0  ;;  %v8584_v60 = vsel %vm671_vm2, %v8471_v16, 0.0 }
 0x48c   : > { %v8834_v2 = vadd.f32 %v8833_v11, %v8832_v47  ;;  %v8581_v56 = vadd.f32 %v8580_v1, %v8579_v51  ;;  %v8198_v57 = vpop.permute.xlu1 %8197  ;;  %v8193_v48 = vpop.permute.xlu0 %8192 }
 0x48d   : > { %v8473_v26 = vmul.f32 %v17312_v18, %v8198_v57  ;;  %v8472_v5 = vmul.f32 %v17315_v12, %v8193_v48  ;;  %v8837_v15 = vsel %vm671_vm2, %v8726_v42, 0.0  ;;  %v8839_v1 = vsel %vm671_vm2, %v8727_v21, 0.0 }
 0x48e   : > { %v8836_v13 = vadd.f32 %v8835_v25, %v8834_v2  ;;  %v8583_v24 = vadd.f32 %v8582_v62, %v8581_v56 }
 0x48f   : > { %v8728_v28 = vmul.f32 %v8472_v5, %v8472_v5  ;;  %v8729_v7 = vmul.f32 %v8473_v26, %v8473_v26  ;;  %v8586_v40 = vsel %vm671_vm2, %v8472_v5, 0.0  ;;  %v8588_v16 = vsel %vm671_vm2, %v8473_v26, 0.0 }
 0x490   : > { %v8838_v54 = vadd.f32 %v8837_v15, %v8836_v13  ;;  %v8585_v31 = vadd.f32 %v8584_v60, %v8583_v24  ;;  %v8208_v47 = vpop.permute.xlu1 %8207  ;;  %v8203_v51 = vpop.permute.xlu0 %8202 }
 0x491   : > { %v8475_v11 = vmul.f32 %v17318_v61, %v8208_v47  ;;  %v8474_v57 = vmul.f32 %v17321_v44, %v8203_v51  ;;  %v8841_v42 = vsel %vm671_vm2, %v8728_v28, 0.0  ;;  %v8843_v48 = vsel %vm671_vm2, %v8729_v7, 0.0 }
 0x492   : > { %v8840_v25 = vadd.f32 %v8839_v1, %v8838_v54  ;;  %v8587_v2 = vadd.f32 %v8586_v40, %v8585_v31 }
 0x493   : > { %v8730_v56 = vmul.f32 %v8474_v57, %v8474_v57  ;;  %v8731_v21 = vmul.f32 %v8475_v11, %v8475_v11  ;;  %v8590_v5 = vsel %vm671_vm2, %v8474_v57, 0.0  ;;  %v8592_v26 = vsel %vm671_vm2, %v8475_v11, 0.0 }
 0x494   : > { %v8842_v62 = vadd.f32 %v8841_v42, %v8840_v25  ;;  %v8589_v13 = vadd.f32 %v8588_v16, %v8587_v2  ;;  %v8218_v24 = vpop.permute.xlu1 %8217  ;;  %v8213_v60 = vpop.permute.xlu0 %8212 }
 0x495   : > { %v8477_v15 = vmul.f32 %v17324_v0, %v8218_v24  ;;  %v8476_v47 = vmul.f32 %v17327_v22, %v8213_v60  ;;  %v8845_v28 = vsel %vm671_vm2, %v8730_v56, 0.0  ;;  %v8847_v16 = vsel %vm671_vm2, %v8731_v21, 0.0 }
 0x496   : > { %v8844_v54 = vadd.f32 %v8843_v48, %v8842_v62  ;;  %v8591_v31 = vadd.f32 %v8590_v5, %v8589_v13 }
 0x497   : > { %v8732_v51 = vmul.f32 %v8476_v47, %v8476_v47  ;;  %v8733_v7 = vmul.f32 %v8477_v15, %v8477_v15  ;;  %v8594_v57 = vsel %vm671_vm2, %v8476_v47, 0.0  ;;  %v8596_v11 = vsel %vm671_vm2, %v8477_v15, 0.0 }
 0x498   : > { %v8846_v1 = vadd.f32 %v8845_v28, %v8844_v54  ;;  %v8593_v40 = vadd.f32 %v8592_v26, %v8591_v31  ;;  %v8228_v25 = vpop.permute.xlu1 %8227  ;;  %v8223_v2 = vpop.permute.xlu0 %8222 }
 0x499   : > { %v8479_v42 = vmul.f32 %v17330_v58, %v8228_v25  ;;  %v8478_v24 = vmul.f32 %v17333_v20, %v8223_v2  ;;  %v8849_v56 = vsel %vm671_vm2, %v8732_v51, 0.0  ;;  %v8851_v60 = vsel %vm671_vm2, %v8733_v7, 0.0 }
 0x49a   : > { %v8848_v48 = vadd.f32 %v8847_v16, %v8846_v1  ;;  %v8595_v62 = vadd.f32 %v8594_v57, %v8593_v40 }
 0x49b   : > { %v8734_v13 = vmul.f32 %v8478_v24, %v8478_v24  ;;  %v8735_v21 = vmul.f32 %v8479_v42, %v8479_v42  ;;  %v8598_v47 = vsel %vm671_vm2, %v8478_v24, 0.0  ;;  %v8600_v15 = vsel %vm671_vm2, %v8479_v42, 0.0 }
 0x49c   : > { %v8850_v5 = vadd.f32 %v8849_v56, %v8848_v48  ;;  %v8597_v54 = vadd.f32 %v8596_v11, %v8595_v62  ;;  %v8238_v31 = vpop.permute.xlu1 %8237  ;;  %v8233_v26 = vpop.permute.xlu0 %8232 }
 0x49d   : > { %v8481_v28 = vmul.f32 %v17336_v32, %v8238_v31  ;;  %v8480_v25 = vmul.f32 %v17339_v41, %v8233_v26  ;;  %v8853_v51 = vsel %vm671_vm2, %v8734_v13, 0.0  ;;  %v8855_v11 = vsel %vm671_vm2, %v8735_v21, 0.0 }
 0x49e   : > { %v8852_v1 = vadd.f32 %v8851_v60, %v8850_v5  ;;  %v8599_v40 = vadd.f32 %v8598_v47, %v8597_v54 }
 0x49f   : > { %v8736_v2 = vmul.f32 %v8480_v25, %v8480_v25  ;;  %v8737_v7 = vmul.f32 %v8481_v28, %v8481_v28  ;;  %v8602_v24 = vsel %vm671_vm2, %v8480_v25, 0.0  ;;  %v8604_v42 = vsel %vm671_vm2, %v8481_v28, 0.0 }
 0x4a0   : > { %v8854_v16 = vadd.f32 %v8853_v51, %v8852_v1  ;;  %v8601_v57 = vadd.f32 %v8600_v15, %v8599_v40  ;;  %v8248_v48 = vpop.permute.xlu1 %8247  ;;  %v8243_v62 = vpop.permute.xlu0 %8242 }
 0x4a1   : > { %v8483_v56 = vmul.f32 %v17341_v45, %v8248_v48  ;;  %v8482_v31 = vmul.f32 %v17343_v8, %v8243_v62  ;;  %v8857_v13 = vsel %vm671_vm2, %v8736_v2, 0.0  ;;  %v8859_v26 = vsel %vm671_vm2, %v8737_v7, 0.0 }
 0x4a2   : > { %v8856_v60 = vadd.f32 %v8855_v11, %v8854_v16  ;;  %v8603_v5 = vadd.f32 %v8602_v24, %v8601_v57 }
 0x4a3   : > { %v8738_v54 = vmul.f32 %v8482_v31, %v8482_v31  ;;  %v8739_v21 = vmul.f32 %v8483_v56, %v8483_v56  ;;  %v8606_v25 = vsel %vm671_vm2, %v8482_v31, 0.0  ;;  %v8608_v28 = vsel %vm671_vm2, %v8483_v56, 0.0 }
 0x4a4   : > { %v8858_v47 = vadd.f32 %v8857_v13, %v8856_v60  ;;  %v8605_v1 = vadd.f32 %v8604_v42, %v8603_v5  ;;  %v8258_v40 = vpop.permute.xlu1 %8257  ;;  %v8253_v15 = vpop.permute.xlu0 %8252 }
 0x4a5   : > { %v8485_v51 = vmul.f32 %v17345_v9, %v8258_v40  ;;  %v8484_v48 = vmul.f32 %v17347_v17, %v8253_v15  ;;  %v8861_v2 = vsel %vm671_vm2, %v8738_v54, 0.0  ;;  %v8863_v42 = vsel %vm671_vm2, %v8739_v21, 0.0  ;;  %v19240_v40 = vld [vmem:[#allocation18_spill] sm:$0xff]  ;;  %v19241_v9 = vld [vmem:[#allocation19_spill] sm:$0xff] }
 0x4a6   : > { %v8860_v16 = vadd.f32 %v8859_v26, %v8858_v47  ;;  %v8607_v57 = vadd.f32 %v8606_v25, %v8605_v1 }
 0x4a7   : > { %v8740_v62 = vmul.f32 %v8484_v48, %v8484_v48  ;;  %v8741_v7 = vmul.f32 %v8485_v51, %v8485_v51  ;;  %v8610_v31 = vsel %vm671_vm2, %v8484_v48, 0.0  ;;  %v8612_v56 = vsel %vm671_vm2, %v8485_v51, 0.0 }
 0x4a8   : > { %v8862_v11 = vadd.f32 %v8861_v2, %v8860_v16  ;;  %v8609_v24 = vadd.f32 %v8608_v28, %v8607_v57  ;;  %v8268_v60 = vpop.permute.xlu1 %8267  ;;  %v8263_v5 = vpop.permute.xlu0 %8262 }
 0x4a9   : > { %v8487_v13 = vmul.f32 %v17349_v59, %v8268_v60  ;;  %v8486_v15 = vmul.f32 %v19240_v40, %v8263_v5  ;;  %v8865_v54 = vsel %vm671_vm2, %v8740_v62, 0.0  ;;  %v8867_v25 = vsel %vm671_vm2, %v8741_v7, 0.0  ;;  %v19242_v59 = vld [vmem:[#allocation109_spill] sm:$0xff] }
 0x4aa   : > { %v8864_v26 = vadd.f32 %v8863_v42, %v8862_v11  ;;  %v8611_v47 = vadd.f32 %v8610_v31, %v8609_v24 }
 0x4ab   : > { %v8742_v1 = vmul.f32 %v8486_v15, %v8486_v15  ;;  %v8743_v21 = vmul.f32 %v8487_v13, %v8487_v13  ;;  %v8614_v48 = vsel %vm671_vm2, %v8486_v15, 0.0  ;;  %v8616_v51 = vsel %vm671_vm2, %v8487_v13, 0.0 }
 0x4ac   : > { %v8866_v16 = vadd.f32 %v8865_v54, %v8864_v26  ;;  %v8613_v57 = vadd.f32 %v8612_v56, %v8611_v47  ;;  %v8278_v28 = vpop.permute.xlu1 %8277  ;;  %v8273_v2 = vpop.permute.xlu0 %8272  ;;  %v19243_v54 = vld [vmem:[#allocation110_spill] sm:$0xff] }
 0x4ad   : > { %v8489_v60 = vmul.f32 %v19241_v9, %v8278_v28  ;;  %v8488_v5 = vmul.f32 %v19242_v59, %v8273_v2  ;;  %v8869_v62 = vsel %vm671_vm2, %v8742_v1, 0.0  ;;  %v8871_v56 = vsel %vm671_vm2, %v8743_v21, 0.0  ;;  %v19244_v28 = vld [vmem:[#allocation20_spill] sm:$0xff] }
 0x4ae   : > { %v8868_v11 = vadd.f32 %v8867_v25, %v8866_v16  ;;  %v8615_v24 = vadd.f32 %v8614_v48, %v8613_v57 }
 0x4af   : > { %v8744_v42 = vmul.f32 %v8488_v5, %v8488_v5  ;;  %v8745_v7 = vmul.f32 %v8489_v60, %v8489_v60  ;;  %v8618_v15 = vsel %vm671_vm2, %v8488_v5, 0.0  ;;  %v8620_v13 = vsel %vm671_vm2, %v8489_v60, 0.0 }
 0x4b0   : > { %v8870_v31 = vadd.f32 %v8869_v62, %v8868_v11  ;;  %v8617_v40 = vadd.f32 %v8616_v51, %v8615_v24  ;;  %v8288_v26 = vpop.permute.xlu1 %8287  ;;  %v8283_v47 = vpop.permute.xlu0 %8282  ;;  %v19245_v62 = vld [vmem:[#allocation21_spill] sm:$0xff] }
 0x4b1   : > { %v8491_v9 = vmul.f32 %v19243_v54, %v8288_v26  ;;  %v8490_v59 = vmul.f32 %v19244_v28, %v8283_v47  ;;  %v8873_v1 = vsel %vm671_vm2, %v8744_v42, 0.0  ;;  %v8875_v2 = vsel %vm671_vm2, %v8745_v7, 0.0  ;;  %v19246_v54 = vld [vmem:[#allocation22_spill] sm:$0xff] }
 0x4b2   : > { %v8872_v25 = vadd.f32 %v8871_v56, %v8870_v31  ;;  %v8619_v16 = vadd.f32 %v8618_v15, %v8617_v40 }
 0x4b3   : > { %v8746_v57 = vmul.f32 %v8490_v59, %v8490_v59  ;;  %v8747_v21 = vmul.f32 %v8491_v9, %v8491_v9  ;;  %v8622_v5 = vsel %vm671_vm2, %v8490_v59, 0.0  ;;  %v8624_v60 = vsel %vm671_vm2, %v8491_v9, 0.0 }
 0x4b4   : > { %v8874_v48 = vadd.f32 %v8873_v1, %v8872_v25  ;;  %v8621_v11 = vadd.f32 %v8620_v13, %v8619_v16  ;;  %v8298_v24 = vpop.permute.xlu1 %8297  ;;  %v8293_v51 = vpop.permute.xlu0 %8292  ;;  %v19247_v1 = vld [vmem:[#allocation23_spill] sm:$0xff] }
 0x4b5   : > { %v8493_v26 = vmul.f32 %v19245_v62, %v8298_v24  ;;  %v8492_v47 = vmul.f32 %v19246_v54, %v8293_v51  ;;  %v8877_v42 = vsel %vm671_vm2, %v8746_v57, 0.0  ;;  %v8879_v13 = vsel %vm671_vm2, %v8747_v21, 0.0  ;;  %v19248_v62 = vld [vmem:[#allocation24_spill] sm:$0xff] }
 0x4b6   : > { %v8876_v31 = vadd.f32 %v8875_v2, %v8874_v48  ;;  %v8623_v40 = vadd.f32 %v8622_v5, %v8621_v11 }
 0x4b7   : > { %v8748_v56 = vmul.f32 %v8492_v47, %v8492_v47  ;;  %v8749_v7 = vmul.f32 %v8493_v26, %v8493_v26  ;;  %v8626_v59 = vsel %vm671_vm2, %v8492_v47, 0.0  ;;  %v8628_v9 = vsel %vm671_vm2, %v8493_v26, 0.0 }
 0x4b8   : > { %v8878_v15 = vadd.f32 %v8877_v42, %v8876_v31  ;;  %v8625_v28 = vadd.f32 %v8624_v60, %v8623_v40  ;;  %v8308_v25 = vpop.permute.xlu1 %8307  ;;  %v8303_v16 = vpop.permute.xlu0 %8302  ;;  %v19249_v42 = vld [vmem:[#allocation25_spill] sm:$0xff] }
 0x4b9   : > { %v8495_v24 = vmul.f32 %v19247_v1, %v8308_v25  ;;  %v8494_v51 = vmul.f32 %v19248_v62, %v8303_v16  ;;  %v8881_v57 = vsel %vm671_vm2, %v8748_v56, 0.0  ;;  %v8883_v5 = vsel %vm671_vm2, %v8749_v7, 0.0  ;;  %v19250_v1 = vld [vmem:[#allocation26_spill] sm:$0xff] }
 0x4ba   : > { %v8880_v2 = vadd.f32 %v8879_v13, %v8878_v15  ;;  %v8627_v48 = vadd.f32 %v8626_v59, %v8625_v28 }
 0x4bb   : > { %v8750_v11 = vmul.f32 %v8494_v51, %v8494_v51  ;;  %v8751_v21 = vmul.f32 %v8495_v24, %v8495_v24  ;;  %v8630_v47 = vsel %vm671_vm2, %v8494_v51, 0.0  ;;  %v8632_v26 = vsel %vm671_vm2, %v8495_v24, 0.0 }
 0x4bc   : > { %v8882_v54 = vadd.f32 %v8881_v57, %v8880_v2  ;;  %v8629_v31 = vadd.f32 %v8628_v9, %v8627_v48  ;;  %v8318_v40 = vpop.permute.xlu1 %8317  ;;  %v8313_v60 = vpop.permute.xlu0 %8312  ;;  %v19251_v57 = vld [vmem:[#allocation27_spill] sm:$0xff] }
 0x4bd   : > { %v8497_v25 = vmul.f32 %v19249_v42, %v8318_v40  ;;  %v8496_v16 = vmul.f32 %v19250_v1, %v8313_v60  ;;  %v8885_v56 = vsel %vm671_vm2, %v8750_v11, 0.0  ;;  %v8887_v9 = vsel %vm671_vm2, %v8751_v21, 0.0  ;;  %v19252_v42 = vld [vmem:[#allocation28_spill] sm:$0xff] }
 0x4be   : > { %v8884_v15 = vadd.f32 %v8883_v5, %v8882_v54  ;;  %v8631_v28 = vadd.f32 %v8630_v47, %v8629_v31 }
 0x4bf   : > { %v8752_v13 = vmul.f32 %v8496_v16, %v8496_v16  ;;  %v8753_v7 = vmul.f32 %v8497_v25, %v8497_v25  ;;  %v8634_v51 = vsel %vm671_vm2, %v8496_v16, 0.0  ;;  %v8636_v24 = vsel %vm671_vm2, %v8497_v25, 0.0 }
 0x4c0   : > { %v8886_v59 = vadd.f32 %v8885_v56, %v8884_v15  ;;  %v8633_v62 = vadd.f32 %v8632_v26, %v8631_v28  ;;  %v8328_v2 = vpop.permute.xlu1 %8327  ;;  %v8323_v48 = vpop.permute.xlu0 %8322  ;;  %v19253_v56 = vld [vmem:[#allocation29_spill] sm:$0xff] }
 0x4c1   : > { %v8499_v40 = vmul.f32 %v19251_v57, %v8328_v2  ;;  %v8498_v60 = vmul.f32 %v19252_v42, %v8323_v48  ;;  %v8889_v11 = vsel %vm671_vm2, %v8752_v13, 0.0  ;;  %v8891_v47 = vsel %vm671_vm2, %v8753_v7, 0.0  ;;  %v19254_v57 = vld [vmem:[#allocation30_spill] sm:$0xff] }
 0x4c2   : > { %v8888_v5 = vadd.f32 %v8887_v9, %v8886_v59  ;;  %v8635_v54 = vadd.f32 %v8634_v51, %v8633_v62 }
 0x4c3   : > { %v8754_v31 = vmul.f32 %v8498_v60, %v8498_v60  ;;  %v8755_v21 = vmul.f32 %v8499_v40, %v8499_v40  ;;  %v8638_v16 = vsel %vm671_vm2, %v8498_v60, 0.0  ;;  %v8640_v25 = vsel %vm671_vm2, %v8499_v40, 0.0 }
 0x4c4   : > { %v8890_v1 = vadd.f32 %v8889_v11, %v8888_v5  ;;  %v8637_v15 = vadd.f32 %v8636_v24, %v8635_v54  ;;  %v8338_v28 = vpop.permute.xlu1 %8337  ;;  %v8333_v26 = vpop.permute.xlu0 %8332  ;;  %v19255_v11 = vld [vmem:[#allocation32_spill] sm:$0xff] }
 0x4c5   : > { %v8501_v2 = vmul.f32 %v19253_v56, %v8338_v28  ;;  %v8500_v48 = vmul.f32 %v19254_v57, %v8333_v26  ;;  %v8893_v13 = vsel %vm671_vm2, %v8754_v31, 0.0  ;;  %v8895_v24 = vsel %vm671_vm2, %v8755_v21, 0.0  ;;  %v19256_v56 = vld [vmem:[#allocation31_spill] sm:$0xff] }
 0x4c6   : > { %v8892_v59 = vadd.f32 %v8891_v47, %v8890_v1  ;;  %v8639_v62 = vadd.f32 %v8638_v16, %v8637_v15 }
 0x4c7   : > { %v8756_v9 = vmul.f32 %v8500_v48, %v8500_v48  ;;  %v8757_v7 = vmul.f32 %v8501_v2, %v8501_v2  ;;  %v8642_v60 = vsel %vm671_vm2, %v8500_v48, 0.0  ;;  %v8644_v40 = vsel %vm671_vm2, %v8501_v2, 0.0 }
 0x4c8   : > { %v8894_v51 = vadd.f32 %v8893_v13, %v8892_v59  ;;  %v8641_v42 = vadd.f32 %v8640_v25, %v8639_v62  ;;  %v8348_v5 = vpop.permute.xlu1 %8347  ;;  %v8343_v54 = vpop.permute.xlu0 %8342  ;;  %v19257_v13 = vld [vmem:[#allocation33_spill] sm:$0xff] }
 0x4c9   : > { %v8503_v28 = vmul.f32 %v19255_v11, %v8348_v5  ;;  %v8502_v26 = vmul.f32 %v19256_v56, %v8343_v54  ;;  %v8897_v31 = vsel %vm671_vm2, %v8756_v9, 0.0  ;;  %v8899_v16 = vsel %vm671_vm2, %v8757_v7, 0.0  ;;  %v19258_v11 = vld [vmem:[#allocation34_spill] sm:$0xff] }
 0x4ca   : > { %v8896_v47 = vadd.f32 %v8895_v24, %v8894_v51  ;;  %v8643_v1 = vadd.f32 %v8642_v60, %v8641_v42 }
 0x4cb   : > { %v8758_v15 = vmul.f32 %v8502_v26, %v8502_v26  ;;  %v8759_v21 = vmul.f32 %v8503_v28, %v8503_v28  ;;  %v8646_v48 = vsel %vm671_vm2, %v8502_v26, 0.0  ;;  %v8648_v2 = vsel %vm671_vm2, %v8503_v28, 0.0 }
 0x4cc   : > { %v8898_v57 = vadd.f32 %v8897_v31, %v8896_v47  ;;  %v8645_v59 = vadd.f32 %v8644_v40, %v8643_v1  ;;  %v8358_v62 = vpop.permute.xlu1 %8357  ;;  %v8353_v25 = vpop.permute.xlu0 %8352  ;;  %v19259_v31 = vld [vmem:[#allocation36_spill] sm:$0xff] }
 0x4cd   : > { %v8505_v5 = vmul.f32 %v19257_v13, %v8358_v62  ;;  %v8504_v54 = vmul.f32 %v19258_v11, %v8353_v25  ;;  %v8901_v9 = vsel %vm671_vm2, %v8758_v15, 0.0  ;;  %v8903_v40 = vsel %vm671_vm2, %v8759_v21, 0.0  ;;  %v19260_v13 = vld [vmem:[#allocation35_spill] sm:$0xff] }
 0x4ce   : > { %v8900_v51 = vadd.f32 %v8899_v16, %v8898_v57  ;;  %v8647_v42 = vadd.f32 %v8646_v48, %v8645_v59 }
 0x4cf   : > { %v8760_v24 = vmul.f32 %v8504_v54, %v8504_v54  ;;  %v8761_v7 = vmul.f32 %v8505_v5, %v8505_v5  ;;  %v8650_v26 = vsel %vm671_vm2, %v8504_v54, 0.0  ;;  %v8652_v28 = vsel %vm671_vm2, %v8505_v5, 0.0 }
 0x4d0   : > { %v8902_v60 = vadd.f32 %v8901_v9, %v8900_v51  ;;  %v8649_v56 = vadd.f32 %v8648_v2, %v8647_v42  ;;  %v8368_v47 = vpop.permute.xlu1 %8367  ;;  %v8363_v1 = vpop.permute.xlu0 %8362  ;;  %v19261_v9 = vld [vmem:[#allocation37_spill] sm:$0xff] }
 0x4d1   : > { %v8507_v62 = vmul.f32 %v19259_v31, %v8368_v47  ;;  %v8506_v25 = vmul.f32 %v19260_v13, %v8363_v1  ;;  %v8905_v15 = vsel %vm671_vm2, %v8760_v24, 0.0  ;;  %v8907_v48 = vsel %vm671_vm2, %v8761_v7, 0.0  ;;  %v19262_v31 = vld [vmem:[#allocation38_spill] sm:$0xff] }
 0x4d2   : > { %v8904_v16 = vadd.f32 %v8903_v40, %v8902_v60  ;;  %v8651_v57 = vadd.f32 %v8650_v26, %v8649_v56 }
 0x4d3   : > { %v8762_v59 = vmul.f32 %v8506_v25, %v8506_v25  ;;  %v8763_v21 = vmul.f32 %v8507_v62, %v8507_v62  ;;  %v8654_v54 = vsel %vm671_vm2, %v8506_v25, 0.0  ;;  %v8656_v5 = vsel %vm671_vm2, %v8507_v62, 0.0 }
 0x4d4   : > { %v8906_v11 = vadd.f32 %v8905_v15, %v8904_v16  ;;  %v8653_v51 = vadd.f32 %v8652_v28, %v8651_v57  ;;  %v8378_v42 = vpop.permute.xlu1 %8377  ;;  %v8373_v2 = vpop.permute.xlu0 %8372  ;;  %v19263_v15 = vld [vmem:[#allocation40_spill] sm:$0xff] }
 0x4d5   : > { %v8509_v47 = vmul.f32 %v19261_v9, %v8378_v42  ;;  %v8508_v1 = vmul.f32 %v19262_v31, %v8373_v2  ;;  %v8909_v24 = vsel %vm671_vm2, %v8762_v59, 0.0  ;;  %v8911_v28 = vsel %vm671_vm2, %v8763_v21, 0.0  ;;  %v19264_v9 = vld [vmem:[#allocation39_spill] sm:$0xff] }
 0x4d6   : > { %v8908_v60 = vadd.f32 %v8907_v48, %v8906_v11  ;;  %v8655_v56 = vadd.f32 %v8654_v54, %v8653_v51 }
 0x4d7   : > { %v8764_v40 = vmul.f32 %v8508_v1, %v8508_v1  ;;  %v8765_v7 = vmul.f32 %v8509_v47, %v8509_v47  ;;  %v8658_v25 = vsel %vm671_vm2, %v8508_v1, 0.0  ;;  %v8660_v62 = vsel %vm671_vm2, %v8509_v47, 0.0 }
 0x4d8   : > { %v8910_v26 = vadd.f32 %v8909_v24, %v8908_v60  ;;  %v8657_v13 = vadd.f32 %v8656_v5, %v8655_v56  ;;  %v8388_v16 = vpop.permute.xlu1 %8387  ;;  %v8383_v57 = vpop.permute.xlu0 %8382  ;;  %v19265_v24 = vld [vmem:[#allocation76_spill] sm:$0xff] }
 0x4d9   : > { %v8511_v42 = vmul.f32 %v19263_v15, %v8388_v16  ;;  %v8510_v2 = vmul.f32 %v19264_v9, %v8383_v57  ;;  %v8913_v59 = vsel %vm671_vm2, %v8764_v40, 0.0  ;;  %v8915_v54 = vsel %vm671_vm2, %v8765_v7, 0.0  ;;  %v19266_v15 = vld [vmem:[#allocation41_spill] sm:$0xff] }
 0x4da   : > { %v8912_v48 = vadd.f32 %v8911_v28, %v8910_v26  ;;  %v8659_v11 = vadd.f32 %v8658_v25, %v8657_v13 }
 0x4db   : > { %v8766_v51 = vmul.f32 %v8510_v2, %v8510_v2  ;;  %v8767_v21 = vmul.f32 %v8511_v42, %v8511_v42  ;;  %v8662_v1 = vsel %vm671_vm2, %v8510_v2, 0.0  ;;  %v8664_v47 = vsel %vm671_vm2, %v8511_v42, 0.0 }
 0x4dc   : > { %v8914_v31 = vadd.f32 %v8913_v59, %v8912_v48  ;;  %v8661_v60 = vadd.f32 %v8660_v62, %v8659_v11  ;;  %v8398_v56 = vpop.permute.xlu1 %8397  ;;  %v8393_v5 = vpop.permute.xlu0 %8392  ;;  %v19267_v59 = vld [vmem:[#allocation43_spill] sm:$0xff] }
 0x4dd   : > { %v8513_v16 = vmul.f32 %v19265_v24, %v8398_v56  ;;  %v8512_v57 = vmul.f32 %v19266_v15, %v8393_v5  ;;  %v8917_v40 = vsel %vm671_vm2, %v8766_v51, 0.0  ;;  %v8919_v62 = vsel %vm671_vm2, %v8767_v21, 0.0  ;;  %v19268_v24 = vld [vmem:[#allocation42_spill] sm:$0xff] }
 0x4de   : > { %v8916_v26 = vadd.f32 %v8915_v54, %v8914_v31  ;;  %v8663_v13 = vadd.f32 %v8662_v1, %v8661_v60 }
 0x4df   : > { %v8768_v28 = vmul.f32 %v8512_v57, %v8512_v57  ;;  %v8769_v7 = vmul.f32 %v8513_v16, %v8513_v16  ;;  %v8666_v2 = vsel %vm671_vm2, %v8512_v57, 0.0  ;;  %v8668_v42 = vsel %vm671_vm2, %v8513_v16, 0.0 }
 0x4e0   : > { %v8918_v25 = vadd.f32 %v8917_v40, %v8916_v26  ;;  %v8665_v9 = vadd.f32 %v8664_v47, %v8663_v13  ;;  %v8408_v48 = vpop.permute.xlu1 %8407  ;;  %v8403_v11 = vpop.permute.xlu0 %8402  ;;  %v19269_v40 = vld [vmem:[#allocation44_spill] sm:$0xff] }
 0x4e1   : > { %v8515_v56 = vmul.f32 %v19267_v59, %v8408_v48  ;;  %v8514_v5 = vmul.f32 %v19268_v24, %v8403_v11  ;;  %v8921_v51 = vsel %vm671_vm2, %v8768_v28, 0.0  ;;  %v8923_v1 = vsel %vm671_vm2, %v8769_v7, 0.0  ;;  %v19270_v59 = vld [vmem:[#allocation46_spill] sm:$0xff] }
 0x4e2   : > { %v8920_v54 = vadd.f32 %v8919_v62, %v8918_v25  ;;  %v8667_v31 = vadd.f32 %v8666_v2, %v8665_v9 }
 0x4e3   : > { %v8770_v60 = vmul.f32 %v8514_v5, %v8514_v5  ;;  %v8771_v21 = vmul.f32 %v8515_v56, %v8515_v56  ;;  %v8670_v57 = vsel %vm671_vm2, %v8514_v5, 0.0  ;;  %v8672_v16 = vsel %vm671_vm2, %v8515_v56, 0.0 }
 0x4e4   : > { %v8922_v15 = vadd.f32 %v8921_v51, %v8920_v54  ;;  %v8669_v26 = vadd.f32 %v8668_v42, %v8667_v31  ;;  %v8418_v13 = vpop.permute.xlu1 %8417  ;;  %v8413_v47 = vpop.permute.xlu0 %8412  ;;  %v19271_v51 = vld [vmem:[#allocation47_spill] sm:$0xff] }
 0x4e5   : > { %v8517_v48 = vmul.f32 %v19269_v40, %v8418_v13  ;;  %v8516_v11 = vmul.f32 %v19270_v59, %v8413_v47  ;;  %v8925_v28 = vsel %vm671_vm2, %v8770_v60, 0.0  ;;  %v8927_v42 = vsel %vm671_vm2, %v8771_v21, 0.0  ;;  %v19272_v40 = vld [vmem:[#allocation45_spill] sm:$0xff] }
 0x4e6   : > { %v8924_v25 = vadd.f32 %v8923_v1, %v8922_v15  ;;  %v8671_v9 = vadd.f32 %v8670_v57, %v8669_v26 }
 0x4e7   : > { %v8772_v62 = vmul.f32 %v8516_v11, %v8516_v11  ;;  %v8773_v7 = vmul.f32 %v8517_v48, %v8517_v48  ;;  %v8674_v5 = vsel %vm671_vm2, %v8516_v11, 0.0  ;;  %v8676_v56 = vsel %vm671_vm2, %v8517_v48, 0.0 }
 0x4e8   : > { %v8926_v2 = vadd.f32 %v8925_v28, %v8924_v25  ;;  %v8673_v24 = vadd.f32 %v8672_v16, %v8671_v9  ;;  %v8428_v54 = vpop.permute.xlu1 %8427  ;;  %v8423_v31 = vpop.permute.xlu0 %8422  ;;  %v19273_v28 = vld [vmem:[#allocation48_spill] sm:$0xff] }
 0x4e9   : > { %v8519_v13 = vmul.f32 %v19271_v51, %v8428_v54  ;;  %v8518_v47 = vmul.f32 %v19272_v40, %v8423_v31  ;;  %v8929_v60 = vsel %vm671_vm2, %v8772_v62, 0.0  ;;  %v8931_v57 = vsel %vm671_vm2, %v8773_v7, 0.0  ;;  %v19274_v51 = vld [vmem:[#allocation50_spill] sm:$0xff] }
 0x4ea   : > { %v8928_v1 = vadd.f32 %v8927_v42, %v8926_v2  ;;  %v8675_v15 = vadd.f32 %v8674_v5, %v8673_v24 }
 0x4eb   : > { %v8774_v26 = vmul.f32 %v8518_v47, %v8518_v47  ;;  %v8775_v21 = vmul.f32 %v8519_v13, %v8519_v13  ;;  %v8678_v11 = vsel %vm671_vm2, %v8518_v47, 0.0  ;;  %v8680_v48 = vsel %vm671_vm2, %v8519_v13, 0.0 }
 0x4ec   : > { %v8930_v59 = vadd.f32 %v8929_v60, %v8928_v1  ;;  %v8677_v25 = vadd.f32 %v8676_v56, %v8675_v15  ;;  %v8438_v9 = vpop.permute.xlu1 %8437  ;;  %v8433_v16 = vpop.permute.xlu0 %8432 }
 0x4ed   : > { %v8521_v54 = vmul.f32 %v19273_v28, %v8438_v9  ;;  %v8520_v31 = vmul.f32 %v19274_v51, %v8433_v16  ;;  %v8933_v62 = vsel %vm671_vm2, %v8774_v26, 0.0  ;;  %v8935_v40 = vsel %vm671_vm2, %v8775_v21, 0.0 }
 0x4ee   : > { %v8932_v2 = vadd.f32 %v8931_v57, %v8930_v59  ;;  %v8679_v24 = vadd.f32 %v8678_v11, %v8677_v25 }
 0x4ef   : > { %v8776_v42 = vmul.f32 %v8520_v31, %v8520_v31  ;;  %v8777_v1 = vmul.f32 %v8521_v54, %v8521_v54  ;;  %v8682_v15 = vsel %vm671_vm2, %v8520_v31, 0.0  ;;  %v8684_v60 = vsel %vm671_vm2, %v8521_v54, 0.0  ;;  %v8695_v54 = vld [vmem:[#allocation3] sm:$0x1] }
 0x4f0   : > { %v8934_v5 = vadd.f32 %v8933_v62, %v8932_v2  ;;  %v8681_v7 = vadd.f32 %v8680_v48, %v8679_v24  ;;  %v8522_v48 = vld [vmem:[#allocation2] sm:$0x1] }
 0x4f1   : > { %v8937_v9 = vsel %vm671_vm2, %v8776_v42, 0.0  ;;  %v8939_v13 = vsel %vm671_vm2, %v8777_v1, 0.0 }
 0x4f2   : > { %v8936_v56 = vadd.f32 %v8935_v40, %v8934_v5  ;;  %v8683_v47 = vadd.f32 %v8682_v15, %v8681_v7 }
 0x4f4   : > { %v8685_v57 = vadd.f32 %v8684_v60, %v8683_v47  ;;  %v8938_v59 = vadd.f32 %v8937_v9, %v8936_v56 }
 0x4f6   : > { %v8686_v25 = vrot.slane %v8685_v57, 4  ;;  %v8940_v26 = vadd.f32 %v8939_v13, %v8938_v59 }
 0x4f8   : > { %v8687_v16 = vadd.f32 %v8686_v25, %v8685_v57  ;;  %v8941_v11 = vrot.slane %v8940_v26, 4 }
 0x4fa   : > { %v8688_v28 = vrot.slane %v8687_v16, 2  ;;  %v8942_v51 = vadd.f32 %v8941_v11, %v8940_v26 }
 0x4fc   : > { %v8689_v21 = vadd.f32 %v8688_v28, %v8687_v16  ;;  %v8943_v2 = vrot.slane %v8942_v51, 2 }
 0x4fe   : > { %v8690_v24 = vrot.slane %v8689_v21, 1  ;;  %v8944_v31 = vadd.f32 %v8943_v2, %v8942_v51 }
 0x500   : > { %v8691_v62 = vadd.f32 %v8690_v24, %v8689_v21  ;;  %v8945_v5 = vrot.slane %v8944_v31, 1 }
 0x502   : > { %v8692_v42 = vadd.f32 %v8691_v62, %v8522_v48  ;;  %v8946_v7 = vadd.f32 %v8945_v5, %v8944_v31 }
 0x504   : > { %8694 = vst.msk [vmem:[#allocation2] sm:$0x1] %vm8693_vm9, %v8692_v42  ;;  %v8947_v40 = vadd.f32 %v8946_v7, %v8695_v54 }
 0x506   : > { %8948 = vst.msk [vmem:[#allocation3] sm:$0x1] %vm8693_vm9, %v8947_v40 }
 0x507 PF: > { %p8949_p6 = scmp.eq.s32.totalorder %s12896_s18, 1 }
 0x508   : > { %v8963_v13 = vld [vmem:[%s18512_s3] sm:$0x1] (%p8949_p6)  ;;  %vm8965_vm10 = vcmask (%p8949_p6), 24576  }
 0x509   : > { %8953 = sbr.rel (!%p8949_p6) target bundleno = 1320 (0x528), region = 52  ;;  %v8967_v16 = vld [vmem:[%s18513_s4] sm:$0x1] (%p8949_p6) }
 0x50b   : > { %v8954_v1 = vld [vmem:[#allocation2] sm:$0x1] (%p8949_p6) }
 0x50c   : > { %v8955_v56 = vmul.f32 (%p8949_p6), 0.001953125, %v8954_v1 }
 0x50d   : > { %v8956_v15 = vld [vmem:[#allocation3] sm:$0x1] (%p8949_p6) }
 0x50e   : > { %v8957_v47 = vmul.f32 (%p8949_p6), 0.001953125, %v8956_v15  ;;  %v8958_v60 = vmul.f32 (%p8949_p6), %v8955_v56, %v8955_v56 }
 0x510   : > { %v8959_v9 = vsub.f32 %v8957_v47, %v8958_v60 }
 0x512   : > { %v8960_v57 = vmax.f32 %v8959_v9, 0.0 }
 0x514   : > { %v8961_v59 = vadd.f32 1e-05, %v8960_v57 }
 0x516   : > { %12880 = vrsqrt.f32 %v8961_v59 }
 0x520   : > { %v12881_v25 = vpop.eup %12880 }
 0x521   : > { %v8964_v26 = vmul.f32 %v12881_v25, %v8963_v13 }
 0x523   : > { %8966 = vst.msk [vmem:[#allocation4] sm:$0x1] %vm8965_vm10, %v8964_v26  ;;  %v8968_v11 = vmul.f32 %v8964_v26, %v8955_v56 }
 0x525   : > { %v8969_v28 = vsub.f32 %v8967_v16, %v8968_v11 }
 0x527   : > { %8970 = vst.msk [vmem:[#allocation5] sm:$0x1] %vm8965_vm10, %v8969_v28 }
 0x528 PF: > { %p10150_p7 = scmp.ne.s32.totalorder %s12896_s18, 1 }
 0x529   : > { %v19275_v2 = vld [vmem:[#allocation12_spill] sm:$0xff] (!%p10150_p7)  ;;  %v19276_v31 = vld [vmem:[#allocation11_spill] sm:$0xff] (!%p10150_p7)  ;;  %v19277_v62 = vld [vmem:[#allocation97_spill] sm:$0xff] (!%p10150_p7) }
 0x52a   : > { %8973 = sbr.rel (%p10150_p7) target bundleno = 1399 (0x577), region = 56  ;;  %v17922_v51 = vld [vmem:[#allocation4] ss:$0 sm:$0xff] (!%p10150_p7)  ;;  %v19278_v54 = vld [vmem:[#allocation15_spill] sm:$0xff] (!%p10150_p7)  ;;  %v19279_v40 = vld [vmem:[#allocation100_spill] sm:$0xff] (!%p10150_p7) }
 0x52b   : > { %v8981_v24 = vmul.f32 (!%p10150_p7), %v19275_v2, %v17922_v51  ;;  %v8982_v48 = vmul.f32 (!%p10150_p7), %v19276_v31, %v17922_v51  ;;  %v8983_v5 = vmul.f32 (!%p10150_p7), %v19277_v62, %v17922_v51  ;;  %v8984_v42 = vmul.f32 (!%p10150_p7), %v19278_v54, %v17922_v51  ;;  %v19281_v54 = vld [vmem:[#allocation16_spill] sm:$0xff] (!%p10150_p7) }
 0x52c   : > { %v8985_v7 = vmul.f32 (!%p10150_p7), %v17238_v50, %v17922_v51  ;;  %v8986_v1 = vmul.f32 (!%p10150_p7), %v19279_v40, %v17922_v51  ;;  %v8987_v15 = vmul.f32 (!%p10150_p7), %v17244_v38, %v17922_v51  ;;  %v8988_v56 = vmul.f32 (!%p10150_p7), %v17241_v36, %v17922_v51 }
 0x52d   : > { %v8989_v31 = vmul.f32 (!%p10150_p7), %v17250_v55, %v17922_v51  ;;  %v8991_v62 = vmul.f32 (!%p10150_p7), %v17256_v63, %v17922_v51  ;;  %v8994_v55 = vmul.f32 (!%p10150_p7), %v17258_v3, %v17922_v51 }
 0x52e   : > { %v17924_v21 = vld [vmem:[#allocation5] ss:$0 sm:$0xff] (!%p10150_p7) }
 0x52f   : > { %v9070_v47 = vadd.f32 (!%p10150_p7), %v17924_v21, %v8981_v24  ;;  %v9071_v60 = vadd.f32 (!%p10150_p7), %v17924_v21, %v8982_v48  ;;  %v9072_v9 = vadd.f32 (!%p10150_p7), %v17924_v21, %v8983_v5  ;;  %v9073_v57 = vadd.f32 (!%p10150_p7), %v17924_v21, %v8984_v42 }
 0x530   : > { %v9074_v59 = vadd.f32 (!%p10150_p7), %v17924_v21, %v8985_v7  ;;  %v9075_v50 = vadd.f32 (!%p10150_p7), %v17924_v21, %v8986_v1  ;;  %v9076_v13 = vadd.f32 (!%p10150_p7), %v17924_v21, %v8987_v15  ;;  %v9077_v25 = vadd.f32 (!%p10150_p7), %v17924_v21, %v8988_v56 }
 0x531   : > { %v9152_v38 = vmax.f32 %v9070_v47, 0.0  ;;  %v9153_v26 = vmax.f32 %v9071_v60, 0.0  ;;  %v9154_v16 = vmax.f32 %v9072_v9, 0.0  ;;  %v9155_v36 = vmax.f32 %v9073_v57, 0.0 }
 0x532   : > { %v9156_v11 = vmax.f32 %v9074_v59, 0.0  ;;  %v9157_v28 = vmax.f32 %v9075_v50, 0.0  ;;  %v9158_v2 = vmax.f32 %v9076_v13, 0.0  ;;  %v9159_v24 = vmax.f32 %v9077_v25, 0.0 }
 0x533   : > { %9234 = vst.msk [vmem:[%s18514_s5] sm:$0xff] %vm671_vm2, %v9152_v38  ;;  %9235 = vst.msk [vmem:[%s18514_s5 + $0x8] sm:$0xff] %vm671_vm2, %v9153_v26  ;;  %v8990_v48 = vmul.f32 %v17247_v37, %v17922_v51  ;;  %v8992_v5 = vmul.f32 %v17253_v53, %v17922_v51  ;;  %v8993_v37 = vmul.f32 %v17261_v19, %v17922_v51  ;;  %v19280_v53 = vld [vmem:[#allocation17_spill] sm:$0xff] }
 0x534   : > { %9236 = vst.msk [vmem:[%s18514_s5 + $0x10] sm:$0xff] %vm671_vm2, %v9154_v16  ;;  %9237 = vst.msk [vmem:[%s18514_s5 + $0x18] sm:$0xff] %vm671_vm2, %v9155_v36  ;;  %v8995_v63 = vmul.f32 %v19280_v53, %v17922_v51  ;;  %v8996_v42 = vmul.f32 %v19281_v54, %v17922_v51  ;;  %v9078_v7 = vadd.f32 %v17924_v21, %v8989_v31 }
 0x535   : > { %9238 = vst.msk [vmem:[%s18514_s5 + $0x20] sm:$0xff] %vm671_vm2, %v9156_v11  ;;  %9239 = vst.msk [vmem:[%s18514_s5 + $0x28] sm:$0xff] %vm671_vm2, %v9157_v28  ;;  %v9079_v40 = vadd.f32 %v17924_v21, %v8990_v48  ;;  %v9080_v1 = vadd.f32 %v17924_v21, %v8991_v62  ;;  %v9081_v15 = vadd.f32 %v17924_v21, %v8992_v5 }
 0x536   : > { %9240 = vst.msk [vmem:[%s18514_s5 + $0x30] sm:$0xff] %vm671_vm2, %v9158_v2  ;;  %9241 = vst.msk [vmem:[%s18514_s5 + $0x38] sm:$0xff] %vm671_vm2, %v9159_v24  ;;  %v9082_v56 = vadd.f32 %v17924_v21, %v8993_v37  ;;  %v9083_v19 = vadd.f32 %v17924_v21, %v8994_v55  ;;  %v9084_v3 = vadd.f32 %v17924_v21, %v8995_v63  ;;  %v9160_v60 = vmax.f32 %v9078_v7, 0.0 }
 0x537   : > { %v9085_v47 = vadd.f32 %v17924_v21, %v8996_v42  ;;  %v9161_v9 = vmax.f32 %v9079_v40, 0.0  ;;  %v9162_v57 = vmax.f32 %v9080_v1, 0.0  ;;  %v9163_v59 = vmax.f32 %v9081_v15, 0.0 }
 0x538   : > { %v9164_v50 = vmax.f32 %v9082_v56, 0.0  ;;  %v9165_v13 = vmax.f32 %v9083_v19, 0.0  ;;  %v9166_v25 = vmax.f32 %v9084_v3, 0.0  ;;  %9242 = vst.msk [vmem:[%s18514_s5 + $0x40] sm:$0xff] %vm671_vm2, %v9160_v60  ;;  %v8997_v26 = vmul.f32 %v17269_v46, %v17922_v51 }
 0x539   : > { %v9167_v38 = vmax.f32 %v9085_v47, 0.0  ;;  %9243 = vst.msk [vmem:[%s18514_s5 + $0x48] sm:$0xff] %vm671_vm2, %v9161_v9  ;;  %9244 = vst.msk [vmem:[%s18514_s5 + $0x50] sm:$0xff] %vm671_vm2, %v9162_v57  ;;  %v8998_v16 = vmul.f32 %v17267_v35, %v17922_v51  ;;  %v8999_v36 = vmul.f32 %v17273_v4, %v17922_v51  ;;  %v9000_v11 = vmul.f32 %v17271_v29, %v17922_v51 }
 0x53a   : > { %9245 = vst.msk [vmem:[%s18514_s5 + $0x58] sm:$0xff] %vm671_vm2, %v9163_v59  ;;  %9246 = vst.msk [vmem:[%s18514_s5 + $0x60] sm:$0xff] %vm671_vm2, %v9164_v50  ;;  %v9001_v35 = vmul.f32 %v17279_v43, %v17922_v51  ;;  %v9002_v46 = vmul.f32 %v17276_v34, %v17922_v51  ;;  %v9003_v29 = vmul.f32 %v17285_v6, %v17922_v51 }
 0x53b   : > { %9247 = vst.msk [vmem:[%s18514_s5 + $0x68] sm:$0xff] %vm671_vm2, %v9165_v13  ;;  %9248 = vst.msk [vmem:[%s18514_s5 + $0x70] sm:$0xff] %vm671_vm2, %v9166_v25  ;;  %v9004_v4 = vmul.f32 %v17282_v30, %v17922_v51  ;;  %v9086_v28 = vadd.f32 %v17924_v21, %v8997_v26  ;;  %v9087_v2 = vadd.f32 %v17924_v21, %v8998_v16 }
 0x53c   : > { %9249 = vst.msk [vmem:[%s18514_s5 + $0x78] sm:$0xff] %vm671_vm2, %v9167_v38  ;;  %v9088_v24 = vadd.f32 %v17924_v21, %v8999_v36  ;;  %v9089_v31 = vadd.f32 %v17924_v21, %v9000_v11  ;;  %v9090_v48 = vadd.f32 %v17924_v21, %v9001_v35  ;;  %v9091_v43 = vadd.f32 %v17924_v21, %v9002_v46 }
 0x53d   : > { %v9092_v34 = vadd.f32 %v17924_v21, %v9003_v29  ;;  %v9093_v62 = vadd.f32 %v17924_v21, %v9004_v4  ;;  %v9168_v6 = vmax.f32 %v9086_v28, 0.0  ;;  %v9169_v5 = vmax.f32 %v9087_v2, 0.0 }
 0x53e   : > { %v9170_v37 = vmax.f32 %v9088_v24, 0.0  ;;  %v9171_v30 = vmax.f32 %v9089_v31, 0.0  ;;  %v9172_v55 = vmax.f32 %v9090_v48, 0.0  ;;  %v9173_v53 = vmax.f32 %v9091_v43, 0.0 }
 0x53f   : > { %v9174_v63 = vmax.f32 %v9092_v34, 0.0  ;;  %v9175_v54 = vmax.f32 %v9093_v62, 0.0  ;;  %9250 = vst.msk [vmem:[%s18514_s5 + $0x80] sm:$0xff] %vm671_vm2, %v9168_v6  ;;  %9251 = vst.msk [vmem:[%s18514_s5 + $0x88] sm:$0xff] %vm671_vm2, %v9169_v5  ;;  %v9005_v42 = vmul.f32 %v17291_v33, %v17922_v51  ;;  %v9006_v7 = vmul.f32 %v17288_v52, %v17922_v51 }
 0x540   : > { %9252 = vst.msk [vmem:[%s18514_s5 + $0x90] sm:$0xff] %vm671_vm2, %v9170_v37  ;;  %9253 = vst.msk [vmem:[%s18514_s5 + $0x98] sm:$0xff] %vm671_vm2, %v9171_v30  ;;  %v9007_v40 = vmul.f32 %v17297_v39, %v17922_v51  ;;  %v9008_v1 = vmul.f32 %v17294_v27, %v17922_v51  ;;  %v9009_v52 = vmul.f32 %v17303_v10, %v17922_v51 }
 0x541   : > { %9254 = vst.msk [vmem:[%s18514_s5 + $0xa0] sm:$0xff] %vm671_vm2, %v9172_v55  ;;  %9255 = vst.msk [vmem:[%s18514_s5 + $0xa8] sm:$0xff] %vm671_vm2, %v9173_v53  ;;  %v9010_v33 = vmul.f32 %v17300_v49, %v17922_v51  ;;  %v9011_v27 = vmul.f32 %v17309_v14, %v17922_v51  ;;  %v9012_v39 = vmul.f32 %v17306_v23, %v17922_v51  ;;  %v19284_v55 = vld [vmem:[#allocation105_spill] sm:$0xff] }
 0x542   : > { %9256 = vst.msk [vmem:[%s18514_s5 + $0xb0] sm:$0xff] %vm671_vm2, %v9174_v63  ;;  %9257 = vst.msk [vmem:[%s18514_s5 + $0xb8] sm:$0xff] %vm671_vm2, %v9175_v54  ;;  %v9094_v15 = vadd.f32 %v17924_v21, %v9005_v42  ;;  %v9095_v56 = vadd.f32 %v17924_v21, %v9006_v7  ;;  %v9096_v19 = vadd.f32 %v17924_v21, %v9007_v40 }
 0x543   : > { %v9097_v3 = vadd.f32 %v17924_v21, %v9008_v1  ;;  %v9098_v47 = vadd.f32 %v17924_v21, %v9009_v52  ;;  %v9099_v10 = vadd.f32 %v17924_v21, %v9010_v33  ;;  %v9100_v49 = vadd.f32 %v17924_v21, %v9011_v27 }
 0x544   : > { %v9101_v60 = vadd.f32 %v17924_v21, %v9012_v39  ;;  %v9176_v14 = vmax.f32 %v9094_v15, 0.0  ;;  %v9177_v9 = vmax.f32 %v9095_v56, 0.0  ;;  %v9178_v57 = vmax.f32 %v9096_v19, 0.0 }
 0x545   : > { %v9179_v23 = vmax.f32 %v9097_v3, 0.0  ;;  %v9180_v59 = vmax.f32 %v9098_v47, 0.0  ;;  %v9181_v50 = vmax.f32 %v9099_v10, 0.0  ;;  %v9182_v13 = vmax.f32 %v9100_v49, 0.0  ;;  %v19285_v10 = vld [vmem:[#allocation109_spill] sm:$0xff] }
 0x546   : > { %v9183_v25 = vmax.f32 %v9101_v60, 0.0  ;;  %9258 = vst.msk [vmem:[%s18514_s5 + $0xc0] sm:$0xff] %vm671_vm2, %v9176_v14  ;;  %9259 = vst.msk [vmem:[%s18514_s5 + $0xc8] sm:$0xff] %vm671_vm2, %v9177_v9  ;;  %v9013_v38 = vmul.f32 %v17315_v12, %v17922_v51  ;;  %v9014_v26 = vmul.f32 %v17312_v18, %v17922_v51  ;;  %v9015_v16 = vmul.f32 %v17321_v44, %v17922_v51  ;;  %v19286_v60 = vld [vmem:[#allocation19_spill] sm:$0xff]  ;;  %v19287_v9 = vld [vmem:[#allocation20_spill] sm:$0xff] }
 0x547   : > { %9260 = vst.msk [vmem:[%s18514_s5 + $0xd0] sm:$0xff] %vm671_vm2, %v9178_v57  ;;  %9261 = vst.msk [vmem:[%s18514_s5 + $0xd8] sm:$0xff] %vm671_vm2, %v9179_v23  ;;  %v9016_v36 = vmul.f32 %v17318_v61, %v17922_v51  ;;  %v9017_v18 = vmul.f32 %v17327_v22, %v17922_v51  ;;  %v9018_v12 = vmul.f32 %v17324_v0, %v17922_v51  ;;  %v19288_v23 = vld [vmem:[#allocation110_spill] sm:$0xff] }
 0x548   : > { %9262 = vst.msk [vmem:[%s18514_s5 + $0xe0] sm:$0xff] %vm671_vm2, %v9180_v59  ;;  %9263 = vst.msk [vmem:[%s18514_s5 + $0xe8] sm:$0xff] %vm671_vm2, %v9181_v50  ;;  %v9019_v61 = vmul.f32 %v17333_v20, %v17922_v51  ;;  %v9020_v44 = vmul.f32 %v17330_v58, %v17922_v51  ;;  %v9102_v11 = vadd.f32 %v17924_v21, %v9013_v38  ;;  %v19289_v50 = vld [vmem:[#allocation22_spill] sm:$0xff] }
 0x549   : > { %9264 = vst.msk [vmem:[%s18514_s5 + $0xf0] sm:$0xff] %vm671_vm2, %v9182_v13  ;;  %9265 = vst.msk [vmem:[%s18514_s5 + $0xf8] sm:$0xff] %vm671_vm2, %v9183_v25  ;;  %v9103_v35 = vadd.f32 %v17924_v21, %v9014_v26  ;;  %v9104_v46 = vadd.f32 %v17924_v21, %v9015_v16  ;;  %v9105_v29 = vadd.f32 %v17924_v21, %v9016_v36  ;;  %v19290_v25 = vld [vmem:[#allocation21_spill] sm:$0xff]  ;;  %v19291_v26 = vld [vmem:[#allocation24_spill] sm:$0xff] }
 0x54a   : > { %v9106_v4 = vadd.f32 %v17924_v21, %v9017_v18  ;;  %v9107_v22 = vadd.f32 %v17924_v21, %v9018_v12  ;;  %v9108_v0 = vadd.f32 %v17924_v21, %v9019_v61  ;;  %v9109_v28 = vadd.f32 %v17924_v21, %v9020_v44  ;;  %v19292_v36 = vld [vmem:[#allocation23_spill] sm:$0xff] }
 0x54b   : > { %v9184_v20 = vmax.f32 %v9102_v11, 0.0  ;;  %v9185_v2 = vmax.f32 %v9103_v35, 0.0  ;;  %v9186_v24 = vmax.f32 %v9104_v46, 0.0  ;;  %v9187_v58 = vmax.f32 %v9105_v29, 0.0 }
 0x54c   : > { %v9188_v31 = vmax.f32 %v9106_v4, 0.0  ;;  %v9189_v48 = vmax.f32 %v9107_v22, 0.0  ;;  %v9190_v43 = vmax.f32 %v9108_v0, 0.0  ;;  %v9191_v34 = vmax.f32 %v9109_v28, 0.0 }
 0x54d   : > { %9266 = vst.msk [vmem:[%s18514_s5 + $0x100] sm:$0xff] %vm671_vm2, %v9184_v20  ;;  %9267 = vst.msk [vmem:[%s18514_s5 + $0x108] sm:$0xff] %vm671_vm2, %v9185_v2  ;;  %v9021_v62 = vmul.f32 %v17339_v41, %v17922_v51  ;;  %v9022_v6 = vmul.f32 %v17336_v32, %v17922_v51  ;;  %v9023_v5 = vmul.f32 %v17343_v8, %v17922_v51  ;;  %v19282_v41 = vld [vmem:[#allocation102_spill] sm:$0xff] }
 0x54e   : > { %9268 = vst.msk [vmem:[%s18514_s5 + $0x110] sm:$0xff] %vm671_vm2, %v9186_v24  ;;  %9269 = vst.msk [vmem:[%s18514_s5 + $0x118] sm:$0xff] %vm671_vm2, %v9187_v58  ;;  %v9024_v37 = vmul.f32 %v17341_v45, %v17922_v51  ;;  %v9025_v32 = vmul.f32 %v17347_v17, %v17922_v51  ;;  %v9026_v45 = vmul.f32 %v19282_v41, %v17922_v51  ;;  %v19283_v8 = vld [vmem:[#allocation18_spill] sm:$0xff] }
 0x54f   : > { %9270 = vst.msk [vmem:[%s18514_s5 + $0x120] sm:$0xff] %vm671_vm2, %v9188_v31  ;;  %9271 = vst.msk [vmem:[%s18514_s5 + $0x128] sm:$0xff] %vm671_vm2, %v9189_v48  ;;  %v9027_v30 = vmul.f32 %v19283_v8, %v17922_v51  ;;  %v9028_v53 = vmul.f32 %v19284_v55, %v17922_v51  ;;  %v9110_v63 = vadd.f32 %v17924_v21, %v9021_v62  ;;  %v19293_v48 = vld [vmem:[#allocation26_spill] sm:$0xff]  ;;  %v19298_v8 = vld [vmem:[#allocation29_spill] sm:$0xff] }
 0x550   : > { %9272 = vst.msk [vmem:[%s18514_s5 + $0x130] sm:$0xff] %vm671_vm2, %v9190_v43  ;;  %9273 = vst.msk [vmem:[%s18514_s5 + $0x138] sm:$0xff] %vm671_vm2, %v9191_v34  ;;  %v9111_v54 = vadd.f32 %v17924_v21, %v9022_v6  ;;  %v9112_v42 = vadd.f32 %v17924_v21, %v9023_v5  ;;  %v9113_v7 = vadd.f32 %v17924_v21, %v9024_v37  ;;  %v19294_v34 = vld [vmem:[#allocation25_spill] sm:$0xff]  ;;  %v19295_v6 = vld [vmem:[#allocation28_spill] sm:$0xff] }
 0x551   : > { %v9114_v40 = vadd.f32 %v17924_v21, %v9025_v32  ;;  %v9115_v17 = vadd.f32 %v17924_v21, %v9026_v45  ;;  %v9116_v1 = vadd.f32 %v17924_v21, %v9027_v30  ;;  %v9117_v52 = vadd.f32 %v17924_v21, %v9028_v53  ;;  %v19296_v37 = vld [vmem:[#allocation27_spill] sm:$0xff]  ;;  %v19297_v41 = vld [vmem:[#allocation30_spill] sm:$0xff] }
 0x552   : > { %v9192_v33 = vmax.f32 %v9110_v63, 0.0  ;;  %v9193_v27 = vmax.f32 %v9111_v54, 0.0  ;;  %v9194_v39 = vmax.f32 %v9112_v42, 0.0  ;;  %v9195_v15 = vmax.f32 %v9113_v7, 0.0  ;;  %v19299_v55 = vld [vmem:[#allocation31_spill] sm:$0xff]  ;;  %v19300_v63 = vld [vmem:[#allocation32_spill] sm:$0xff] }
 0x553   : > { %v9196_v56 = vmax.f32 %v9114_v40, 0.0  ;;  %v9197_v19 = vmax.f32 %v9115_v17, 0.0  ;;  %v9198_v3 = vmax.f32 %v9116_v1, 0.0  ;;  %v9199_v47 = vmax.f32 %v9117_v52, 0.0 }
 0x554   : > { %9274 = vst.msk [vmem:[%s18514_s5 + $0x140] sm:$0xff] %vm671_vm2, %v9192_v33  ;;  %9275 = vst.msk [vmem:[%s18514_s5 + $0x148] sm:$0xff] %vm671_vm2, %v9193_v27  ;;  %v9029_v49 = vmul.f32 %v19285_v10, %v17922_v51  ;;  %v9030_v14 = vmul.f32 %v19286_v60, %v17922_v51  ;;  %v9031_v57 = vmul.f32 %v19287_v9, %v17922_v51  ;;  %v19301_v60 = vld [vmem:[#allocation34_spill] sm:$0xff]  ;;  %v19302_v9 = vld [vmem:[#allocation33_spill] sm:$0xff] }
 0x555   : > { %9276 = vst.msk [vmem:[%s18514_s5 + $0x150] sm:$0xff] %vm671_vm2, %v9194_v39  ;;  %9277 = vst.msk [vmem:[%s18514_s5 + $0x158] sm:$0xff] %vm671_vm2, %v9195_v15  ;;  %v9032_v59 = vmul.f32 %v19288_v23, %v17922_v51  ;;  %v9033_v13 = vmul.f32 %v19289_v50, %v17922_v51  ;;  %v9034_v38 = vmul.f32 %v19290_v25, %v17922_v51  ;;  %v19303_v23 = vld [vmem:[#allocation35_spill] sm:$0xff]  ;;  %v19304_v50 = vld [vmem:[#allocation36_spill] sm:$0xff] }
 0x556   : > { %9278 = vst.msk [vmem:[%s18514_s5 + $0x160] sm:$0xff] %vm671_vm2, %v9196_v56  ;;  %9279 = vst.msk [vmem:[%s18514_s5 + $0x168] sm:$0xff] %vm671_vm2, %v9197_v19  ;;  %v9035_v16 = vmul.f32 %v19291_v26, %v17922_v51  ;;  %v9036_v18 = vmul.f32 %v19292_v36, %v17922_v51  ;;  %v9118_v12 = vadd.f32 %v17924_v21, %v9029_v49  ;;  %v19305_v25 = vld [vmem:[#allocation38_spill] sm:$0xff]  ;;  %v19306_v26 = vld [vmem:[#allocation37_spill] sm:$0xff] }
 0x557   : > { %9280 = vst.msk [vmem:[%s18514_s5 + $0x170] sm:$0xff] %vm671_vm2, %v9198_v3  ;;  %9281 = vst.msk [vmem:[%s18514_s5 + $0x178] sm:$0xff] %vm671_vm2, %v9199_v47  ;;  %v9119_v61 = vadd.f32 %v17924_v21, %v9030_v14  ;;  %v9120_v44 = vadd.f32 %v17924_v21, %v9031_v57  ;;  %v9121_v11 = vadd.f32 %v17924_v21, %v9032_v59  ;;  %v19307_v36 = vld [vmem:[#allocation39_spill] sm:$0xff] }
 0x558   : > { %v9122_v35 = vadd.f32 %v17924_v21, %v9033_v13  ;;  %v9123_v46 = vadd.f32 %v17924_v21, %v9034_v38  ;;  %v9124_v29 = vadd.f32 %v17924_v21, %v9035_v16  ;;  %v9125_v4 = vadd.f32 %v17924_v21, %v9036_v18 }
 0x559   : > { %v9200_v22 = vmax.f32 %v9118_v12, 0.0  ;;  %v9201_v0 = vmax.f32 %v9119_v61, 0.0  ;;  %v9202_v28 = vmax.f32 %v9120_v44, 0.0  ;;  %v9203_v20 = vmax.f32 %v9121_v11, 0.0  ;;  %v19308_v12 = vld [vmem:[#allocation40_spill] sm:$0xff] }
 0x55a   : > { %v9204_v2 = vmax.f32 %v9122_v35, 0.0  ;;  %v9205_v24 = vmax.f32 %v9123_v46, 0.0  ;;  %v9206_v58 = vmax.f32 %v9124_v29, 0.0  ;;  %v9207_v31 = vmax.f32 %v9125_v4, 0.0 }
 0x55b   : > { %9282 = vst.msk [vmem:[%s18514_s5 + $0x180] sm:$0xff] %vm671_vm2, %v9200_v22  ;;  %9283 = vst.msk [vmem:[%s18514_s5 + $0x188] sm:$0xff] %vm671_vm2, %v9201_v0  ;;  %v9037_v43 = vmul.f32 %v19293_v48, %v17922_v51  ;;  %v9038_v62 = vmul.f32 %v19294_v34, %v17922_v51  ;;  %v9039_v5 = vmul.f32 %v19295_v6, %v17922_v51  ;;  %v19309_v34 = vld [vmem:[#allocation41_spill] sm:$0xff]  ;;  %v19310_v6 = vld [vmem:[#allocation76_spill] sm:$0xff] }
 0x55c   : > { %9284 = vst.msk [vmem:[%s18514_s5 + $0x190] sm:$0xff] %vm671_vm2, %v9202_v28  ;;  %9285 = vst.msk [vmem:[%s18514_s5 + $0x198] sm:$0xff] %vm671_vm2, %v9203_v20  ;;  %v9040_v32 = vmul.f32 %v19296_v37, %v17922_v51  ;;  %v9041_v45 = vmul.f32 %v19297_v41, %v17922_v51  ;;  %v9042_v30 = vmul.f32 %v19298_v8, %v17922_v51  ;;  %v19311_v37 = vld [vmem:[#allocation42_spill] sm:$0xff]  ;;  %v19312_v41 = vld [vmem:[#allocation43_spill] sm:$0xff] }
 0x55d   : > { %9286 = vst.msk [vmem:[%s18514_s5 + $0x1a0] sm:$0xff] %vm671_vm2, %v9204_v2  ;;  %9287 = vst.msk [vmem:[%s18514_s5 + $0x1a8] sm:$0xff] %vm671_vm2, %v9205_v24  ;;  %v9043_v53 = vmul.f32 %v19299_v55, %v17922_v51  ;;  %v9044_v54 = vmul.f32 %v19300_v63, %v17922_v51  ;;  %v9126_v42 = vadd.f32 %v17924_v21, %v9037_v43  ;;  %v19313_v8 = vld [vmem:[#allocation46_spill] sm:$0xff]  ;;  %v19314_v55 = vld [vmem:[#allocation44_spill] sm:$0xff] }
 0x55e   : > { %9288 = vst.msk [vmem:[%s18514_s5 + $0x1b0] sm:$0xff] %vm671_vm2, %v9206_v58  ;;  %9289 = vst.msk [vmem:[%s18514_s5 + $0x1b8] sm:$0xff] %vm671_vm2, %v9207_v31  ;;  %v9127_v7 = vadd.f32 %v17924_v21, %v9038_v62  ;;  %v9128_v40 = vadd.f32 %v17924_v21, %v9039_v5  ;;  %v9129_v17 = vadd.f32 %v17924_v21, %v9040_v32  ;;  %v19315_v63 = vld [vmem:[#allocation45_spill] sm:$0xff] }
 0x55f   : > { %v9130_v1 = vadd.f32 %v17924_v21, %v9041_v45  ;;  %v9131_v52 = vadd.f32 %v17924_v21, %v9042_v30  ;;  %v9132_v33 = vadd.f32 %v17924_v21, %v9043_v53  ;;  %v9133_v27 = vadd.f32 %v17924_v21, %v9044_v54 }
 0x560   : > { %v9208_v39 = vmax.f32 %v9126_v42, 0.0  ;;  %v9209_v15 = vmax.f32 %v9127_v7, 0.0  ;;  %v9210_v56 = vmax.f32 %v9128_v40, 0.0  ;;  %v9211_v19 = vmax.f32 %v9129_v17, 0.0  ;;  %v19316_v42 = vld [vmem:[#allocation47_spill] sm:$0xff] }
 0x561   : > { %v9212_v3 = vmax.f32 %v9130_v1, 0.0  ;;  %v9213_v47 = vmax.f32 %v9131_v52, 0.0  ;;  %v9214_v10 = vmax.f32 %v9132_v33, 0.0  ;;  %v9215_v49 = vmax.f32 %v9133_v27, 0.0 }
 0x562   : > { %9290 = vst.msk [vmem:[%s18514_s5 + $0x1c0] sm:$0xff] %vm671_vm2, %v9208_v39  ;;  %9291 = vst.msk [vmem:[%s18514_s5 + $0x1c8] sm:$0xff] %vm671_vm2, %v9209_v15  ;;  %v9045_v14 = vmul.f32 %v19301_v60, %v17922_v51  ;;  %v9046_v57 = vmul.f32 %v19302_v9, %v17922_v51  ;;  %v9047_v59 = vmul.f32 %v19303_v23, %v17922_v51  ;;  %v19317_v9 = vld [vmem:[#allocation50_spill] sm:$0xff]  ;;  %v19318_v23 = vld [vmem:[#allocation48_spill] sm:$0xff] }
 0x563   : > { %9292 = vst.msk [vmem:[%s18514_s5 + $0x1d0] sm:$0xff] %vm671_vm2, %v9210_v56  ;;  %9293 = vst.msk [vmem:[%s18514_s5 + $0x1d8] sm:$0xff] %vm671_vm2, %v9211_v19  ;;  %v9048_v13 = vmul.f32 %v19304_v50, %v17922_v51  ;;  %v9049_v38 = vmul.f32 %v19305_v25, %v17922_v51  ;;  %v9050_v16 = vmul.f32 %v19306_v26, %v17922_v51 }
 0x564   : > { %9294 = vst.msk [vmem:[%s18514_s5 + $0x1e0] sm:$0xff] %vm671_vm2, %v9212_v3  ;;  %9295 = vst.msk [vmem:[%s18514_s5 + $0x1e8] sm:$0xff] %vm671_vm2, %v9213_v47  ;;  %v9051_v18 = vmul.f32 %v19307_v36, %v17922_v51  ;;  %v9052_v61 = vmul.f32 %v19308_v12, %v17922_v51  ;;  %v9134_v44 = vadd.f32 %v17924_v21, %v9045_v14 }
 0x565   : > { %9296 = vst.msk [vmem:[%s18514_s5 + $0x1f0] sm:$0xff] %vm671_vm2, %v9214_v10  ;;  %9297 = vst.msk [vmem:[%s18514_s5 + $0x1f8] sm:$0xff] %vm671_vm2, %v9215_v49  ;;  %v9135_v11 = vadd.f32 %v17924_v21, %v9046_v57  ;;  %v9136_v35 = vadd.f32 %v17924_v21, %v9047_v59  ;;  %v9137_v46 = vadd.f32 %v17924_v21, %v9048_v13 }
 0x566   : > { %v9138_v29 = vadd.f32 %v17924_v21, %v9049_v38  ;;  %v9139_v4 = vadd.f32 %v17924_v21, %v9050_v16  ;;  %v9140_v22 = vadd.f32 %v17924_v21, %v9051_v18  ;;  %v9141_v0 = vadd.f32 %v17924_v21, %v9052_v61 }
 0x567   : > { %v9216_v28 = vmax.f32 %v9134_v44, 0.0  ;;  %v9217_v20 = vmax.f32 %v9135_v11, 0.0  ;;  %v9218_v2 = vmax.f32 %v9136_v35, 0.0  ;;  %v9219_v24 = vmax.f32 %v9137_v46, 0.0 }
 0x568   : > { %v9220_v58 = vmax.f32 %v9138_v29, 0.0  ;;  %v9221_v31 = vmax.f32 %v9139_v4, 0.0  ;;  %v9222_v48 = vmax.f32 %v9140_v22, 0.0  ;;  %v9223_v43 = vmax.f32 %v9141_v0, 0.0 }
 0x569   : > { %9298 = vst.msk [vmem:[%s18514_s5 + $0x200] sm:$0xff] %vm671_vm2, %v9216_v28  ;;  %9299 = vst.msk [vmem:[%s18514_s5 + $0x208] sm:$0xff] %vm671_vm2, %v9217_v20  ;;  %v9053_v62 = vmul.f32 %v19309_v34, %v17922_v51  ;;  %v9054_v5 = vmul.f32 %v19310_v6, %v17922_v51  ;;  %v9055_v32 = vmul.f32 %v19311_v37, %v17922_v51 }
 0x56a   : > { %9300 = vst.msk [vmem:[%s18514_s5 + $0x210] sm:$0xff] %vm671_vm2, %v9218_v2  ;;  %9301 = vst.msk [vmem:[%s18514_s5 + $0x218] sm:$0xff] %vm671_vm2, %v9219_v24  ;;  %v9056_v45 = vmul.f32 %v19312_v41, %v17922_v51  ;;  %v9057_v30 = vmul.f32 %v19313_v8, %v17922_v51  ;;  %v9058_v53 = vmul.f32 %v19314_v55, %v17922_v51 }
 0x56b   : > { %9302 = vst.msk [vmem:[%s18514_s5 + $0x220] sm:$0xff] %vm671_vm2, %v9220_v58  ;;  %9303 = vst.msk [vmem:[%s18514_s5 + $0x228] sm:$0xff] %vm671_vm2, %v9221_v31  ;;  %v9059_v54 = vmul.f32 %v19315_v63, %v17922_v51  ;;  %v9060_v7 = vmul.f32 %v19316_v42, %v17922_v51  ;;  %v9142_v40 = vadd.f32 %v17924_v21, %v9053_v62 }
 0x56c   : > { %9304 = vst.msk [vmem:[%s18514_s5 + $0x230] sm:$0xff] %vm671_vm2, %v9222_v48  ;;  %9305 = vst.msk [vmem:[%s18514_s5 + $0x238] sm:$0xff] %vm671_vm2, %v9223_v43  ;;  %v9143_v17 = vadd.f32 %v17924_v21, %v9054_v5  ;;  %v9144_v1 = vadd.f32 %v17924_v21, %v9055_v32  ;;  %v9145_v52 = vadd.f32 %v17924_v21, %v9056_v45 }
 0x56d   : > { %v9146_v33 = vadd.f32 %v17924_v21, %v9057_v30  ;;  %v9147_v27 = vadd.f32 %v17924_v21, %v9058_v53  ;;  %v9148_v39 = vadd.f32 %v17924_v21, %v9059_v54  ;;  %v9149_v15 = vadd.f32 %v17924_v21, %v9060_v7 }
 0x56e   : > { %v9224_v56 = vmax.f32 %v9142_v40, 0.0  ;;  %v9225_v19 = vmax.f32 %v9143_v17, 0.0  ;;  %v9226_v3 = vmax.f32 %v9144_v1, 0.0  ;;  %v9227_v47 = vmax.f32 %v9145_v52, 0.0 }
 0x56f   : > { %v9228_v10 = vmax.f32 %v9146_v33, 0.0  ;;  %v9229_v49 = vmax.f32 %v9147_v27, 0.0  ;;  %v9230_v60 = vmax.f32 %v9148_v39, 0.0  ;;  %v9231_v14 = vmax.f32 %v9149_v15, 0.0 }
 0x570   : > { %9306 = vst.msk [vmem:[%s18514_s5 + $0x240] sm:$0xff] %vm671_vm2, %v9224_v56  ;;  %9307 = vst.msk [vmem:[%s18514_s5 + $0x248] sm:$0xff] %vm671_vm2, %v9225_v19  ;;  %v9061_v57 = vmul.f32 %v19317_v9, %v17922_v51  ;;  %v9062_v59 = vmul.f32 %v19318_v23, %v17922_v51 }
 0x571   : > { %9308 = vst.msk [vmem:[%s18514_s5 + $0x250] sm:$0xff] %vm671_vm2, %v9226_v3  ;;  %9309 = vst.msk [vmem:[%s18514_s5 + $0x258] sm:$0xff] %vm671_vm2, %v9227_v47 }
 0x572   : > { %9310 = vst.msk [vmem:[%s18514_s5 + $0x260] sm:$0xff] %vm671_vm2, %v9228_v10  ;;  %9311 = vst.msk [vmem:[%s18514_s5 + $0x268] sm:$0xff] %vm671_vm2, %v9229_v49  ;;  %v9150_v51 = vadd.f32 %v17924_v21, %v9061_v57  ;;  %v9151_v50 = vadd.f32 %v17924_v21, %v9062_v59 }
 0x573   : > { %9312 = vst.msk [vmem:[%s18514_s5 + $0x270] sm:$0xff] %vm671_vm2, %v9230_v60  ;;  %9313 = vst.msk [vmem:[%s18514_s5 + $0x278] sm:$0xff] %vm671_vm2, %v9231_v14 }
 0x574   : > { %v9232_v13 = vmax.f32 %v9150_v51, 0.0  ;;  %v9233_v25 = vmax.f32 %v9151_v50, 0.0 }
 0x576   : > { %9314 = vst.msk [vmem:[%s18514_s5 + $0x280] sm:$0xff] %vm671_vm2, %v9232_v13  ;;  %9315 = vst.msk [vmem:[%s18514_s5 + $0x288] sm:$0xff] %vm671_vm2, %v9233_v25 }
 0x577 PF: > { %s15_s20 = sadd.s32 1, %s12904_s20   ;;  %s19319_s18 = smov %s12900_s19 }
 0x578   : > { %p12_p8 = scmp.ge.s32.totalorder %s15_s20, 4   ;;  %s19320_s19 = smov %s19322_s21 }
 0x57a   :  { %14 = sbr.rel (!%p12_p8) target bundleno = 2 (0x2), region = 94 }

</bundles_post_ra>
